<compile_context>
chip_gen: v6e
topology: v6e:2x2x1
jax: 0.10.0
libtpu: 0.0.40
codegen_flags: <defaults>
</compile_context>

<pallas_src>
import jax
import jax.numpy as jnp
from jax.experimental import pallas as pl
from jax.experimental.pallas import tpu as pltpu

IMG = 32
KH = KW = 7
IC = 3
OC = 32
CONV_OUT = IMG - KH + 1            # 26
POOL_OUT = CONV_OUT // 2           # 13
FC_IN = OC * POOL_OUT * POOL_OUT   # 5408
FC_OUT = 10
KBAND = IC * KH * IMG              # 672  Toeplitz rows: (c, kh, iw)
NCOLS = OC * POOL_OUT              # 416  Toeplitz cols: (oc, pw)
PADC = 512                         # cols padded to a 128-aligned width
NMID = FC_OUT * POOL_OUT           # 130  (o, ph)
PAD_OUT = 128                      # logits padded to one full lane register
TILE_N = 16                        # images per grid step (26*16 = 416 MXU rows)


# ------------------------------ fused kernel -------------------------------

def _fused_kernel(b_ref, w_ref, cb_ref, a_ref, dt_ref, rm_ref, s_ref, fb_ref,
                  o_ref):
    nrows = dt_ref.shape[0]                     # TILE_N * 13 (= 208)

    # One big bf16 conv matmul for all images & both vertical pool phases.
    conv = jnp.dot(b_ref[...], w_ref[...],
                   preferred_element_type=jnp.float32)      # (2*nrows, 1024)

    # 2x2 max-pool: vertical phase = sublane-aligned row halves,
    # horizontal phase = 128-aligned lane halves.  Bias + ReLU commute with max.
    m = jnp.maximum(conv[:nrows, :], conv[nrows:, :])        # (nrows, 1024)
    m = jnp.maximum(m[:, :PADC], m[:, PADC:])                # (nrows, 512)
    pooled = jnp.maximum(m + cb_ref[...], 0.0)               # f32, pad cols = 0

    # FC with PyTorch NCHW flatten order folded into `a` (kept f32):
    # p[(t,ph), (o,ph')] = sum_{oc,pw} pooled[(t,ph), oc*13+pw] * fc_w[o,oc,ph',pw]
    p = jnp.dot(pooled, a_ref[...],
                preferred_element_type=jnp.float32)          # (nrows, 130)
    # keep only ph == ph', sum the 13 rows of each image, sum the ph' blocks.
    red = jnp.dot(rm_ref[...], p * dt_ref[...],
                  preferred_element_type=jnp.float32)        # (TILE_N, 130)
    o_ref[...] = jnp.dot(red, s_ref[...],
                         preferred_element_type=jnp.float32) + fb_ref[...]


# --------------------------- host-side weight prep -------------------------

def prepare_params(params):
    """Done ONCE, outside the jitted forward."""
    wc = params["conv_w"].astype(jnp.float32)   # (32, 3, 7, 7)
    bc = params["conv_b"].astype(jnp.float32)   # (32,)
    wf = params["fc_w"].astype(jnp.float32)     # (10, 5408)
    bf = params["fc_b"].astype(jnp.float32)     # (10,)

    iw = jnp.arange(IMG)
    pw = jnp.arange(POOL_OUT)

    def toeplitz(phase):
        # W[(c*7+kh)*32 + iw, oc*13 + pw] = wc[oc, c, kh, iw - (2*pw + phase)]
        kw = iw[:, None] - (2 * pw[None, :] + phase)            # (32, 13)
        valid = ((kw >= 0) & (kw < KW)).astype(jnp.float32)
        kw_c = jnp.clip(kw, 0, KW - 1)
        g = wc[:, :, :, kw_c] * valid[None, None, None]         # (oc,c,kh,32,13)
        w = g.transpose(1, 2, 3, 0, 4).reshape(KBAND, NCOLS)    # (672, 416)
        return jnp.pad(w, ((0, 0), (0, PADC - NCOLS)))          # (672, 512)

    # Fused conv weight: even pool-column phase in lanes [0,512), odd in [512,1024).
    w_fused = jnp.concatenate([toeplitz(0), toeplitz(1)],
                              axis=1).astype(jnp.bfloat16)      # (672, 1024)
    cb = jnp.pad(jnp.repeat(bc, POOL_OUT),
                 (0, PADC - NCOLS))[None, :]                    # (1, 512) f32

    w4 = wf.reshape(FC_OUT, OC, POOL_OUT, POOL_OUT)             # (o, oc, ph, pw)
    a = w4.transpose(1, 3, 0, 2).reshape(NCOLS, NMID)           # (416, 130)
    a_pad = jnp.pad(a, ((0, PADC - NCOLS), (0, 0)))             # (512, 130) f32

    d = jnp.tile(jnp.eye(POOL_OUT, dtype=jnp.float32), (1, FC_OUT))   # (13, 130)
    dt = jnp.tile(d, (TILE_N, 1))                                     # (208, 130)
    rm = jnp.repeat(jnp.eye(TILE_N, dtype=jnp.float32),
                    POOL_OUT, axis=1)                                 # (16, 208)
    s = jnp.repeat(jnp.eye(FC_OUT, dtype=jnp.float32),
                   POOL_OUT, axis=0)                                  # (130, 10)
    s_pad = jnp.pad(s, ((0, 0), (0, PAD_OUT - FC_OUT)))               # (130, 128)
    fb_pad = jnp.pad(bf, (0, PAD_OUT - FC_OUT))[None, :]              # (1, 128)
    return dict(w=w_fused, cb=cb, a=a_pad, dt=dt, rm=rm, s=s_pad, fb=fb_pad)


# ------------------------- band construction (XLA) --------------------------

def _build_bands(x, tile_n):
    """(n, 3, 32, 32) -> (n*26, 672) bf16, grouped so each grid step reads one
    contiguous (26*tile_n, 672) block: [even-row bands | odd-row bands], each
    image-major then pool-row-major."""
    n = x.shape[0]
    ph = jnp.arange(POOL_OUT)
    kh = jnp.arange(KH)
    p = jnp.arange(2)
    rows = p[:, None, None] + 2 * ph[None, :, None] + kh[None, None, :]  # (2,13,7)
    b = x[:, :, rows, :]                                  # (n, 3, 2, 13, 7, 32)
    b = b.transpose(0, 2, 3, 1, 4, 5)                     # (n, 2, 13, 3, 7, 32)
    b = b.reshape(n, 2, POOL_OUT, KBAND)                  # (n, 2, 13, 672)
    nt = n // tile_n
    b = b.reshape(nt, tile_n, 2, POOL_OUT, KBAND)
    b = b.transpose(0, 2, 1, 3, 4)                        # (nt, 2, tile_n, 13, 672)
    return b.reshape(nt * 2 * tile_n * POOL_OUT, KBAND).astype(jnp.bfloat16)


# ------------------------------- forward pass -------------------------------

def vanilla_cnn_forward(x, prepped):
    """x: (N, 3, 32, 32) float32 NCHW -> (N, 10) float32 logits."""
    n = x.shape[0]
    n_pad = -(-n // TILE_N) * TILE_N
    x = x.astype(jnp.float32)
    if n_pad != n:
        x = jnp.pad(x, ((0, n_pad - n), (0, 0), (0, 0), (0, 0)))

    bands = _build_bands(x, TILE_N)
    n_tiles = n_pad // TILE_N
    nrows = TILE_N * POOL_OUT

    out = pl.pallas_call(
        _fused_kernel,
        out_shape=jax.ShapeDtypeStruct((n_pad, PAD_OUT), jnp.float32),
        grid=(n_tiles,),
        in_specs=[
            pl.BlockSpec((2 * nrows, KBAND), lambda i: (i, 0)),   # bands (per tile)
            pl.BlockSpec((KBAND, 2 * PADC), lambda i: (0, 0)),    # fused conv W
            pl.BlockSpec((1, PADC), lambda i: (0, 0)),            # conv bias
            pl.BlockSpec((PADC, NMID), lambda i: (0, 0)),         # FC weight
            pl.BlockSpec((nrows, NMID), lambda i: (0, 0)),        # ph==ph' mask
            pl.BlockSpec((TILE_N, nrows), lambda i: (0, 0)),      # per-image reduce
            pl.BlockSpec((NMID, PAD_OUT), lambda i: (0, 0)),      # ph' block-sum
            pl.BlockSpec((1, PAD_OUT), lambda i: (0, 0)),         # FC bias
        ],
        out_specs=pl.BlockSpec((TILE_N, PAD_OUT), lambda i: (i, 0)),
        compiler_params=pltpu.CompilerParams(
            dimension_semantics=("parallel",)),
    )(bands, prepped["w"], prepped["cb"], prepped["a"], prepped["dt"],
      prepped["rm"], prepped["s"], prepped["fb"])
    return out[:n, :FC_OUT]


# -------------------------------- reference ---------------------------------

def vanilla_cnn_reference(x, params):
    wc, bc = params["conv_w"], params["conv_b"]
    wf, bf = params["fc_w"], params["fc_b"]
    n = x.shape[0]
    conv = jax.lax.conv_general_dilated(
        x, wc, window_strides=(1, 1), padding="VALID",
        dimension_numbers=("NCHW", "OIHW", "NCHW")) + bc[None, :, None, None]
    relu = jnp.maximum(conv, 0.0)
    pooled = relu.reshape(n, OC, POOL_OUT, 2, POOL_OUT, 2).max(axis=(3, 5))
    return pooled.reshape(n, FC_IN) @ wf.T + bf


# ----------------------------------- main ------------------------------------

def init_params(key):
    k1, k2, k3, k4 = jax.random.split(key, 4)
    return {
        "conv_w": jax.random.normal(k1, (OC, IC, KH, KW), jnp.float32) * 0.05,
        "conv_b": jax.random.normal(k2, (OC,), jnp.float32) * 0.05,
        "fc_w": jax.random.normal(k3, (FC_OUT, FC_IN), jnp.float32) * 0.02,
        "fc_b": jax.random.normal(k4, (FC_OUT,), jnp.float32) * 0.02,
    }


if __name__ == "__main__":
    key = jax.random.PRNGKey(0)
    kx, kp = jax.random.split(key)
    params = init_params(kp)

    batch = 2
    x = jax.random.normal(kx, (batch, IC, IMG, IMG), jnp.float32)

    prepped = prepare_params(params)            # once, outside the jitted call
    fwd = jax.jit(vanilla_cnn_forward)
    out = jax.block_until_ready(fwd(x, prepped))
    ref = jax.block_until_ready(vanilla_cnn_reference(x, params))

    assert out.shape == (batch, FC_OUT), out.shape
    max_err = jnp.max(jnp.abs(out - ref))
    # Conv matmul uses bf16 MXU inputs with f32 accumulation -> tolerance set
    # accordingly (observed error is O(1e-3) on O(1) logits).
    assert jnp.allclose(out, ref, atol=2e-2, rtol=2e-2), f"max abs err {max_err}"
    print("KERNEL_OK")
</pallas_src>

<mosaic_0001>
module attributes {stable_mosaic.version = 11 : i64} {
  func.func @_fused_kernel(%arg0: i32, %arg1: memref<416x672xbf16, #tpu.memory_space<vmem>>, %arg2: memref<672x1024xbf16, #tpu.memory_space<vmem>>, %arg3: memref<1x512xf32, #tpu.memory_space<vmem>>, %arg4: memref<512x130xf32, #tpu.memory_space<vmem>>, %arg5: memref<208x130xf32, #tpu.memory_space<vmem>>, %arg6: memref<16x208xf32, #tpu.memory_space<vmem>>, %arg7: memref<130x128xf32, #tpu.memory_space<vmem>>, %arg8: memref<1x128xf32, #tpu.memory_space<vmem>>, %arg9: memref<16x128xf32, #tpu.memory_space<vmem>>) attributes {dimension_semantics = [#tpu.dimension_semantics<parallel>], iteration_bounds = array<i64: 1>, scalar_prefetch = 0 : i64, scratch_operands = 0 : i64, tpu.core_type = #tpu.core_type<tc>, window_params = [{transform_indices = @transform_0, window_bounds = array<i64: 416, 672>}, {pipeline_mode = #tpu.pipeline_mode<synchronous>, transform_indices = @transform_1, window_bounds = array<i64: 672, 1024>}, {pipeline_mode = #tpu.pipeline_mode<synchronous>, transform_indices = @transform_2, window_bounds = array<i64: 1, 512>}, {pipeline_mode = #tpu.pipeline_mode<synchronous>, transform_indices = @transform_3, window_bounds = array<i64: 512, 130>}, {pipeline_mode = #tpu.pipeline_mode<synchronous>, transform_indices = @transform_4, window_bounds = array<i64: 208, 130>}, {pipeline_mode = #tpu.pipeline_mode<synchronous>, transform_indices = @transform_5, window_bounds = array<i64: 16, 208>}, {pipeline_mode = #tpu.pipeline_mode<synchronous>, transform_indices = @transform_6, window_bounds = array<i64: 130, 128>}, {pipeline_mode = #tpu.pipeline_mode<synchronous>, transform_indices = @transform_7, window_bounds = array<i64: 1, 128>}, {transform_indices = @transform_8, window_bounds = array<i64: 16, 128>}]} {
    %c0 = arith.constant 0 : index
    %c0_0 = arith.constant 0 : index
    %0 = vector.load %arg1[%c0, %c0_0] : memref<416x672xbf16, #tpu.memory_space<vmem>>, vector<416x672xbf16>
    %c0_1 = arith.constant 0 : index
    %c0_2 = arith.constant 0 : index
    %1 = vector.load %arg2[%c0_1, %c0_2] : memref<672x1024xbf16, #tpu.memory_space<vmem>>, vector<672x1024xbf16>
    %cst = arith.constant dense<0.000000e+00> : vector<416x1024xf32>
    %2 = tpu.matmul %0, %1, %cst {dimension_numbers = #tpu.dot_dimension_numbers<[1], [0], [0], [1], [0, 0, 1, 1], [], []>} : vector<416x672xbf16>, vector<672x1024xbf16>, vector<416x1024xf32> -> vector<416x1024xf32>
    %3 = vector.extract_strided_slice %2 {offsets = [0, 0], sizes = [208, 1024], strides = [1, 1]} : vector<416x1024xf32> to vector<208x1024xf32>
    %4 = vector.extract_strided_slice %2 {offsets = [208, 0], sizes = [208, 1024], strides = [1, 1]} : vector<416x1024xf32> to vector<208x1024xf32>
    %5 = arith.maximumf %3, %4 : vector<208x1024xf32>
    %6 = vector.extract_strided_slice %5 {offsets = [0, 0], sizes = [208, 512], strides = [1, 1]} : vector<208x1024xf32> to vector<208x512xf32>
    %7 = vector.extract_strided_slice %5 {offsets = [0, 512], sizes = [208, 512], strides = [1, 1]} : vector<208x1024xf32> to vector<208x512xf32>
    %8 = arith.maximumf %6, %7 : vector<208x512xf32>
    %c0_3 = arith.constant 0 : index
    %c0_4 = arith.constant 0 : index
    %9 = vector.load %arg3[%c0_3, %c0_4] : memref<1x512xf32, #tpu.memory_space<vmem>>, vector<1x512xf32>
    %10 = vector.broadcast %9 : vector<1x512xf32> to vector<208x512xf32>
    %11 = arith.addf %8, %10 : vector<208x512xf32>
    %cst_5 = arith.constant 0.000000e+00 : f32
    %12 = vector.broadcast %cst_5 : f32 to vector<208x512xf32>
    %13 = arith.maximumf %11, %12 : vector<208x512xf32>
    %c0_6 = arith.constant 0 : index
    %c0_7 = arith.constant 0 : index
    %14 = vector.load %arg4[%c0_6, %c0_7] : memref<512x130xf32, #tpu.memory_space<vmem>>, vector<512x130xf32>
    %cst_8 = arith.constant dense<0.000000e+00> : vector<208x130xf32>
    %15 = tpu.matmul %13, %14, %cst_8 {dimension_numbers = #tpu.dot_dimension_numbers<[1], [0], [0], [1], [0, 0, 1, 1], [], []>} : vector<208x512xf32>, vector<512x130xf32>, vector<208x130xf32> -> vector<208x130xf32>
    %c0_9 = arith.constant 0 : index
    %c0_10 = arith.constant 0 : index
    %16 = vector.load %arg6[%c0_9, %c0_10] : memref<16x208xf32, #tpu.memory_space<vmem>>, vector<16x208xf32>
    %c0_11 = arith.constant 0 : index
    %c0_12 = arith.constant 0 : index
    %17 = vector.load %arg5[%c0_11, %c0_12] : memref<208x130xf32, #tpu.memory_space<vmem>>, vector<208x130xf32>
    %18 = arith.mulf %15, %17 : vector<208x130xf32>
    %cst_13 = arith.constant dense<0.000000e+00> : vector<16x130xf32>
    %19 = tpu.matmul %16, %18, %cst_13 {dimension_numbers = #tpu.dot_dimension_numbers<[1], [0], [0], [1], [0, 0, 1, 1], [], []>} : vector<16x208xf32>, vector<208x130xf32>, vector<16x130xf32> -> vector<16x130xf32>
    %c0_14 = arith.constant 0 : index
    %c0_15 = arith.constant 0 : index
    %20 = vector.load %arg7[%c0_14, %c0_15] : memref<130x128xf32, #tpu.memory_space<vmem>>, vector<130x128xf32>
    %cst_16 = arith.constant dense<0.000000e+00> : vector<16x128xf32>
    %21 = tpu.matmul %19, %20, %cst_16 {dimension_numbers = #tpu.dot_dimension_numbers<[1], [0], [0], [1], [0, 0, 1, 1], [], []>} : vector<16x130xf32>, vector<130x128xf32>, vector<16x128xf32> -> vector<16x128xf32>
    %c0_17 = arith.constant 0 : index
    %c0_18 = arith.constant 0 : index
    %22 = vector.load %arg8[%c0_17, %c0_18] : memref<1x128xf32, #tpu.memory_space<vmem>>, vector<1x128xf32>
    %23 = vector.broadcast %22 : vector<1x128xf32> to vector<16x128xf32>
    %24 = arith.addf %21, %23 : vector<16x128xf32>
    %c0_19 = arith.constant 0 : index
    %c0_20 = arith.constant 0 : index
    %25 = vector.load %arg9[%c0_19, %c0_20] : memref<16x128xf32, #tpu.memory_space<vmem>>, vector<16x128xf32>
    tpu.vector_store %arg9[%c0_19, %c0_20], %24 {strides = array<i32>} : memref<16x128xf32, #tpu.memory_space<vmem>>, vector<16x128xf32>,
    return
  }
  func.func @transform_0(%arg0: i32) -> (i32, i32) {
    %c0_i32 = arith.constant 0 : i32
    %c0_i32_0 = arith.constant 0 : i32
    return %arg0, %c0_i32 : i32, i32
  }
  func.func @transform_1(%arg0: i32) -> (i32, i32) {
    %c0_i32 = arith.constant 0 : i32
    %c0_i32_0 = arith.constant 0 : i32
    %c0_i32_1 = arith.constant 0 : i32
    return %c0_i32, %c0_i32_0 : i32, i32
  }
  func.func @transform_2(%arg0: i32) -> (i32, i32) {
    %c0_i32 = arith.constant 0 : i32
    %c0_i32_0 = arith.constant 0 : i32
    %c0_i32_1 = arith.constant 0 : i32
    return %c0_i32, %c0_i32_0 : i32, i32
  }
  func.func @transform_3(%arg0: i32) -> (i32, i32) {
    %c0_i32 = arith.constant 0 : i32
    %c0_i32_0 = arith.constant 0 : i32
    %c0_i32_1 = arith.constant 0 : i32
    return %c0_i32, %c0_i32_0 : i32, i32
  }
  func.func @transform_4(%arg0: i32) -> (i32, i32) {
    %c0_i32 = arith.constant 0 : i32
    %c0_i32_0 = arith.constant 0 : i32
    %c0_i32_1 = arith.constant 0 : i32
    return %c0_i32, %c0_i32_0 : i32, i32
  }
  func.func @transform_5(%arg0: i32) -> (i32, i32) {
    %c0_i32 = arith.constant 0 : i32
    %c0_i32_0 = arith.constant 0 : i32
    %c0_i32_1 = arith.constant 0 : i32
    return %c0_i32, %c0_i32_0 : i32, i32
  }
  func.func @transform_6(%arg0: i32) -> (i32, i32) {
    %c0_i32 = arith.constant 0 : i32
    %c0_i32_0 = arith.constant 0 : i32
    %c0_i32_1 = arith.constant 0 : i32
    return %c0_i32, %c0_i32_0 : i32, i32
  }
  func.func @transform_7(%arg0: i32) -> (i32, i32) {
    %c0_i32 = arith.constant 0 : i32
    %c0_i32_0 = arith.constant 0 : i32
    %c0_i32_1 = arith.constant 0 : i32
    return %c0_i32, %c0_i32_0 : i32, i32
  }
  func.func @transform_8(%arg0: i32) -> (i32, i32) {
    %c0_i32 = arith.constant 0 : i32
    %c0_i32_0 = arith.constant 0 : i32
    return %arg0, %c0_i32 : i32, i32
  }
}

</mosaic_0001>

<bundles_post_ra>
// kernel: vanilla_cnn_forward.1
= control target key start
LH: loop header
LB: loop body
LE: loop exit
PB: predicated region body
PF: predicated region fallthrough
CT: control target
= control target key end

     0   :  { %vm2956_vm0 = vcmask 261120   ;;  %vm7771_vm1 = vcmask 654336   ;;  %vm7886_vm2 = vcmask 1041408   ;;  %vm7879_vm3 = vcmask 15360   ;;  %s16111_s1 = inlined_call_operand.vmem [shape: bf16[672,1024], index: 1, kind: input, shape index: {}]   ;;  %s16112_s0 = inlined_call_operand.vmem [shape: bf16[416,672], index: 0, kind: input, shape index: {}]   ;;  %s16113_s3 = inlined_call_operand.vmem [shape: f32[512,130], index: 3, kind: input, shape index: {}]   ;;  %s16114_s2 = inlined_call_operand.vmem [shape: f32[1,512], index: 2, kind: input, shape index: {}]   ;;  %s16115_s5 = inlined_call_operand.vmem [shape: f32[16,208], index: 5, kind: input, shape index: {}]   ;;  %s16116_s6 = inlined_call_operand.vmem [shape: f32[130,128], index: 6, kind: input, shape index: {}]   ;;  %s16117_s4 = inlined_call_operand.vmem [shape: f32[208,130], index: 4, kind: input, shape index: {}]   ;;  %s16118_s7 = inlined_call_operand.vmem [shape: f32[1,128], index: 7, kind: input, shape index: {}]   ;;  %s16119_s8 = inlined_call_operand.vmem [shape: f32[16,128], index: 8, kind: output, shape index: {}]  }
   0x1   :  { %v242_v0 = vld [vmem:[%s16111_s1 + $0x1c0] sm:$0xff] }
   0x2   :  { %v246_v1 = vld [vmem:[%s16111_s1 + $0x1e0] sm:$0xff] }
   0x3   :  { %v370_v2 = vld [vmem:[%s16111_s1 + $0x5c0] sm:$0xff]  ;;  %v8184_v3 = vcombine.high %v242_v0, %v246_v1  ;;  %v8183_v5 = vcombine.low %v242_v0, %v246_v1 }
   0x4   :  { %v374_v4 = vld [vmem:[%s16111_s1 + $0x5e0] sm:$0xff] }
   0x5   :  { %v234_v6 = vld [vmem:[%s16111_s1 + $0x180] sm:$0xff]  ;;  %v8312_v8 = vcombine.high %v370_v2, %v374_v4  ;;  %v8311_v9 = vcombine.low %v370_v2, %v374_v4  ;;  %3035 = vmatprep.subr.bf16.mxu0 %v8184_v3 }
   0x6   :  { %v238_v7 = vld [vmem:[%s16111_s1 + $0x1a0] sm:$0xff]  ;;  %3036 = vmatpush1.bf16.msra.mxu0 %v8183_v5 }
   0x7   :  { %v8176_v10 = vcombine.high %v234_v6, %v238_v7  ;;  %v362_v11 = vld [vmem:[%s16111_s1 + $0x580] sm:$0xff]  ;;  %3328 = vmatprep.subr.bf16.mxu1 %v8312_v8  ;;  %v8175_v18 = vcombine.low %v234_v6, %v238_v7 }
   0x8   :  { %v366_v12 = vld [vmem:[%s16111_s1 + $0x5a0] sm:$0xff]  ;;  %3329 = vmatpush1.bf16.msra.mxu1 %v8311_v9 }
   0x9   :  { %v226_v13 = vld [vmem:[%s16111_s1 + $0x140] sm:$0xff]  ;;  %v8304_v14 = vcombine.high %v362_v11, %v366_v12  ;;  %3037 = vmatprep.subr.bf16.mxu0 %v8176_v10  ;;  %v8303_v19 = vcombine.low %v362_v11, %v366_v12 }
   0xa   :  { %v230_v15 = vld [vmem:[%s16111_s1 + $0x160] sm:$0xff]  ;;  %3038 = vmatpush1.bf16.msra.mxu0 %v8175_v18 }
   0xb   :  { %v354_v16 = vld [vmem:[%s16111_s1 + $0x540] sm:$0xff]  ;;  %v8168_v20 = vcombine.high %v226_v13, %v230_v15  ;;  %3330 = vmatprep.subr.bf16.mxu1 %v8304_v14  ;;  %v8167_v26 = vcombine.low %v226_v13, %v230_v15 }
   0xc   :  { %v358_v17 = vld [vmem:[%s16111_s1 + $0x560] sm:$0xff]  ;;  %3331 = vmatpush1.bf16.msra.mxu1 %v8303_v19 }
   0xd   :  { %v8296_v21 = vcombine.high %v354_v16, %v358_v17  ;;  %v218_v22 = vld [vmem:[%s16111_s1 + $0x100] sm:$0xff]  ;;  %3039 = vmatprep.subr.bf16.mxu0 %v8168_v20  ;;  %v8295_v27 = vcombine.low %v354_v16, %v358_v17 }
   0xe   :  { %v222_v23 = vld [vmem:[%s16111_s1 + $0x120] sm:$0xff]  ;;  %3040 = vmatpush1.bf16.msra.mxu0 %v8167_v26 }
   0xf   :  { %v346_v24 = vld [vmem:[%s16111_s1 + $0x500] sm:$0xff]  ;;  %v8160_v28 = vcombine.high %v218_v22, %v222_v23  ;;  %3332 = vmatprep.subr.bf16.mxu1 %v8296_v21  ;;  %v8159_v34 = vcombine.low %v218_v22, %v222_v23 }
  0x10   :  { %v350_v25 = vld [vmem:[%s16111_s1 + $0x520] sm:$0xff]  ;;  %3333 = vmatpush1.bf16.msra.mxu1 %v8295_v27 }
  0x11   :  { %v8288_v29 = vcombine.high %v346_v24, %v350_v25  ;;  %v210_v30 = vld [vmem:[%s16111_s1 + $0xc0] sm:$0xff]  ;;  %3041 = vmatprep.subr.bf16.mxu0 %v8160_v28  ;;  %v8287_v35 = vcombine.low %v346_v24, %v350_v25 }
  0x12   :  { %v214_v31 = vld [vmem:[%s16111_s1 + $0xe0] sm:$0xff]  ;;  %3042 = vmatpush1.bf16.msra.mxu0 %v8159_v34 }
  0x13   :  { %v338_v32 = vld [vmem:[%s16111_s1 + $0x4c0] sm:$0xff]  ;;  %v8152_v36 = vcombine.high %v210_v30, %v214_v31  ;;  %3334 = vmatprep.subr.bf16.mxu1 %v8288_v29  ;;  %v8151_v42 = vcombine.low %v210_v30, %v214_v31 }
  0x14   :  { %v342_v33 = vld [vmem:[%s16111_s1 + $0x4e0] sm:$0xff]  ;;  %3335 = vmatpush1.bf16.msra.mxu1 %v8287_v35 }
  0x15   :  { %v8280_v37 = vcombine.high %v338_v32, %v342_v33  ;;  %v202_v38 = vld [vmem:[%s16111_s1 + $0x80] sm:$0xff]  ;;  %3043 = vmatprep.subr.bf16.mxu0 %v8152_v36  ;;  %v8279_v43 = vcombine.low %v338_v32, %v342_v33 }
  0x16   :  { %v206_v39 = vld [vmem:[%s16111_s1 + $0xa0] sm:$0xff]  ;;  %3044 = vmatpush1.bf16.msra.mxu0 %v8151_v42 }
  0x17   :  { %v330_v40 = vld [vmem:[%s16111_s1 + $0x480] sm:$0xff]  ;;  %v8144_v44 = vcombine.high %v202_v38, %v206_v39  ;;  %3336 = vmatprep.subr.bf16.mxu1 %v8280_v37  ;;  %v8143_v50 = vcombine.low %v202_v38, %v206_v39 }
  0x18   :  { %v334_v41 = vld [vmem:[%s16111_s1 + $0x4a0] sm:$0xff]  ;;  %3337 = vmatpush1.bf16.msra.mxu1 %v8279_v43 }
  0x19   :  { %v8272_v45 = vcombine.high %v330_v40, %v334_v41  ;;  %v194_v46 = vld [vmem:[%s16111_s1 + $0x40] sm:$0xff]  ;;  %3045 = vmatprep.subr.bf16.mxu0 %v8144_v44  ;;  %v8271_v52 = vcombine.low %v330_v40, %v334_v41 }
  0x1a   :  { %v198_v47 = vld [vmem:[%s16111_s1 + $0x60] sm:$0xff]  ;;  %3046 = vmatpush1.bf16.msra.mxu0 %v8143_v50 }
  0x1b   :  { %v322_v48 = vld [vmem:[%s16111_s1 + $0x440] sm:$0xff]  ;;  %v8136_v53 = vcombine.high %v194_v46, %v198_v47  ;;  %3338 = vmatprep.subr.bf16.mxu1 %v8272_v45  ;;  %v8135_v60 = vcombine.low %v194_v46, %v198_v47 }
  0x1c   :  { %v326_v49 = vld [vmem:[%s16111_s1 + $0x460] sm:$0xff]  ;;  %3339 = vmatpush1.bf16.msra.mxu1 %v8271_v52 }
  0x1d   :  { %v186_v51 = vld [vmem:[%s16111_s1] sm:$0xff]  ;;  %v8264_v55 = vcombine.high %v322_v48, %v326_v49  ;;  %3047 = vmatprep.subr.bf16.mxu0 %v8136_v53  ;;  %v8263_v61 = vcombine.low %v322_v48, %v326_v49 }
  0x1e   :  { %v190_v54 = vld [vmem:[%s16111_s1 + $0x20] sm:$0xff]  ;;  %3048 = vmatpush1.bf16.msra.mxu0 %v8135_v60 }
  0x1f   :  { %v8574_v56 = vld [vmem:[%s16112_s0 + $0x4] ss:$24 sps:$4 sm:$0xff]   ;;  %v8128_v62 = vcombine.high %v186_v51, %v190_v54  ;;  %3340 = vmatprep.subr.bf16.mxu1 %v8264_v55  ;;  %v8127_v4 = vcombine.low %v186_v51, %v190_v54 }
  0x20   :  { %v314_v57 = vld [vmem:[%s16111_s1 + $0x400] sm:$0xff]  ;;  %3067 = vmatprep.mubr.bf16.mxu0 %v8574_v56  ;;  %3341 = vmatpush1.bf16.msra.mxu1 %v8263_v61 }
  0x21   :  { %v318_v58 = vld [vmem:[%s16111_s1 + $0x420] sm:$0xff]  ;;  %3049 = vmatprep.subr.bf16.mxu0 %v8128_v62 }
  0x22   :  { %v8576_v59 = vld [vmem:[%s16112_s0 + $0xc] ss:$24 sps:$4 sm:$0xff]   ;;  %v8256_v0 = vcombine.high %v314_v57, %v318_v58  ;;  %v8255_v5 = vcombine.low %v314_v57, %v318_v58  ;;  %3050 = vmatpush1.bf16.msra.mxu0 %v8127_v4 }
  0x23   :  { %v306_v63 = vld [vmem:[%s16111_s1 + $0x3c0] sm:$0xff]  ;;  %3360 = vmatprep.mubr.bf16.mxu1 %v8576_v59 }
  0x24   :  { %v310_v1 = vld [vmem:[%s16111_s1 + $0x3e0] sm:$0xff]  ;;  %3342 = vmatprep.subr.bf16.mxu1 %v8256_v0 }
  0x25   :  { %v434_v2 = vld [vmem:[%s16111_s1 + $0x7c0] sm:$0xff]  ;;  %v8248_v6 = vcombine.high %v306_v63, %v310_v1  ;;  %v8247_v12 = vcombine.low %v306_v63, %v310_v1  ;;  %3343 = vmatpush1.bf16.msra.mxu1 %v8255_v5 }
  0x26   :  { %v438_v3 = vld [vmem:[%s16111_s1 + $0x7e0] sm:$0xff] }
  0x27   :  { %v298_v7 = vld [vmem:[%s16111_s1 + $0x380] sm:$0xff]  ;;  %v8376_v8 = vcombine.high %v434_v2, %v438_v3  ;;  %3051 = vmatprep.subr.bf16.mxu0 %v8248_v6  ;;  %v8375_v13 = vcombine.low %v434_v2, %v438_v3  ;;  %v243_v2 = vld [vmem:[%s16111_s1 + $0x1c8] sm:$0xff] }
  0x28   :  { %v302_v9 = vld [vmem:[%s16111_s1 + $0x3a0] sm:$0xff]  ;;  %3052 = vmatpush2.bf16.msra.mxu0 %v8247_v12  ;;  %v247_v3 = vld [vmem:[%s16111_s1 + $0x1e8] sm:$0xff] }
  0x29   :  { %v426_v10 = vld [vmem:[%s16111_s1 + $0x780] sm:$0xff]  ;;  %v8240_v14 = vcombine.high %v298_v7, %v302_v9  ;;  %3344 = vmatprep.subr.bf16.mxu1 %v8376_v8  ;;  %v8239_v20 = vcombine.low %v298_v7, %v302_v9  ;;  %v8186_v9 = vcombine.high %v243_v2, %v247_v3 }
  0x2a   :  { %v430_v11 = vld [vmem:[%s16111_s1 + $0x7a0] sm:$0xff]  ;;  %3345 = vmatpush2.bf16.msra.mxu1 %v8375_v13  ;;  %v235_v13 = vld [vmem:[%s16111_s1 + $0x188] sm:$0xff] }
  0x2b   :  { %v290_v15 = vld [vmem:[%s16111_s1 + $0x340] sm:$0xff]  ;;  %v8368_v16 = vcombine.high %v426_v10, %v430_v11  ;;  %3053 = vmatprep.subr.bf16.mxu0 %v8240_v14  ;;  %v8367_v21 = vcombine.low %v426_v10, %v430_v11  ;;  %v9522_v10 = vld [vmem:[%s16112_s0 + $0x34] ss:$24 sps:$4 sm:$0xff]  }
  0x2c   :  { %v294_v17 = vld [vmem:[%s16111_s1 + $0x360] sm:$0xff]  ;;  %3054 = vmatpush2.bf16.msra.mxu0 %v8239_v20  ;;  %v239_v14 = vld [vmem:[%s16111_s1 + $0x1a8] sm:$0xff] }
  0x2d   :  { %v418_v18 = vld [vmem:[%s16111_s1 + $0x740] sm:$0xff]  ;;  %v8232_v22 = vcombine.high %v290_v15, %v294_v17  ;;  %3346 = vmatprep.subr.bf16.mxu1 %v8368_v16  ;;  %v8231_v28 = vcombine.low %v290_v15, %v294_v17  ;;  %v8582_v15 = vld [vmem:[%s16112_s0 + $0x3c] ss:$24 sps:$4 sm:$0xff]   ;;  %v8185_v17 = vcombine.low %v243_v2, %v247_v3  ;;  %v227_v20 = vld [vmem:[%s16111_s1 + $0x148] sm:$0xff] }
  0x2e   :  { %v422_v19 = vld [vmem:[%s16111_s1 + $0x760] sm:$0xff]  ;;  %3347 = vmatpush2.bf16.msra.mxu1 %v8367_v21  ;;  %v187_v3 = vld [vmem:[%s16111_s1 + $0x8] sm:$0xff] }
  0x2f   :  { %v282_v23 = vld [vmem:[%s16111_s1 + $0x300] sm:$0xff]  ;;  %v8360_v24 = vcombine.high %v418_v18, %v422_v19  ;;  %3055 = vmatprep.subr.bf16.mxu0 %v8232_v22  ;;  %v8359_v29 = vcombine.low %v418_v18, %v422_v19  ;;  %v8178_v19 = vcombine.high %v235_v13, %v239_v14 }
  0x30   :  { %v286_v25 = vld [vmem:[%s16111_s1 + $0x320] sm:$0xff]  ;;  %3056 = vmatpush2.bf16.msra.mxu0 %v8231_v28  ;;  %v8177_v28 = vcombine.low %v235_v13, %v239_v14  ;;  %v9659_v14 = vld [vmem:[%s16112_s0 + $0xf4] ss:$24 sps:$4 sm:$0xff]  }
  0x31   :  { %v410_v26 = vld [vmem:[%s16111_s1 + $0x700] sm:$0xff]  ;;  %v8224_v30 = vcombine.high %v282_v23, %v286_v25  ;;  %3348 = vmatprep.subr.bf16.mxu1 %v8360_v24  ;;  %v8223_v36 = vcombine.low %v282_v23, %v286_v25  ;;  %v231_v23 = vld [vmem:[%s16111_s1 + $0x168] sm:$0xff] }
  0x32   :  { %v414_v27 = vld [vmem:[%s16111_s1 + $0x720] sm:$0xff]  ;;  %3349 = vmatpush2.bf16.msra.mxu1 %v8359_v29  ;;  %v8584_v24 = vld [vmem:[%s16112_s0 + $0x30] ss:$24 sps:$4 sm:$0xff]  }
  0x33   :  { %v274_v31 = vld [vmem:[%s16111_s1 + $0x2c0] sm:$0xff]  ;;  %v8352_v32 = vcombine.high %v410_v26, %v414_v27  ;;  %3057 = vmatprep.subr.bf16.mxu0 %v8224_v30  ;;  %v8351_v37 = vcombine.low %v410_v26, %v414_v27  ;;  %v8585_v26 = vld [vmem:[%s16112_s0 + $0x38] ss:$24 sps:$4 sm:$0xff]   ;;  %v219_v29 = vld [vmem:[%s16111_s1 + $0x108] sm:$0xff] }
  0x34   :  { %v278_v33 = vld [vmem:[%s16111_s1 + $0x2e0] sm:$0xff]  ;;  %3058 = vmatpush2.bf16.msra.mxu0 %v8223_v36 }
  0x35   :  { %v402_v34 = vld [vmem:[%s16111_s1 + $0x6c0] sm:$0xff]  ;;  %v8216_v38 = vcombine.high %v274_v31, %v278_v33  ;;  %3350 = vmatprep.subr.bf16.mxu1 %v8352_v32  ;;  %v8215_v44 = vcombine.low %v274_v31, %v278_v33  ;;  %v8170_v32 = vcombine.high %v227_v20, %v231_v23 }
  0x36   :  { %v406_v35 = vld [vmem:[%s16111_s1 + $0x6e0] sm:$0xff]  ;;  %3351 = vmatpush2.bf16.msra.mxu1 %v8351_v37  ;;  %v8169_v37 = vcombine.low %v227_v20, %v231_v23  ;;  %v303_v20 = vld [vmem:[%s16111_s1 + $0x3a8] sm:$0xff]  ;;  %v8609_v23 = vld [vmem:[%s16112_s0 + $0xf8] ss:$24 sps:$4 sm:$0xff]  }
  0x37   :  { %v8344_v39 = vcombine.high %v402_v34, %v406_v35  ;;  %v266_v40 = vld [vmem:[%s16111_s1 + $0x280] sm:$0xff]  ;;  %3059 = vmatprep.subr.bf16.mxu0 %v8216_v38  ;;  %v8343_v45 = vcombine.low %v402_v34, %v406_v35  ;;  %v223_v34 = vld [vmem:[%s16111_s1 + $0x128] sm:$0xff] }
  0x38   :  { %v270_v41 = vld [vmem:[%s16111_s1 + $0x2a0] sm:$0xff]  ;;  %3060 = vmatpush2.bf16.msra.mxu0 %v8215_v44 }
  0x39   :  { %v394_v42 = vld [vmem:[%s16111_s1 + $0x680] sm:$0xff]  ;;  %v8208_v46 = vcombine.high %v266_v40, %v270_v41  ;;  %3352 = vmatprep.subr.bf16.mxu1 %v8344_v39  ;;  %v8207_v52 = vcombine.low %v266_v40, %v270_v41  ;;  %v8162_v40 = vcombine.high %v219_v29, %v223_v34 }
  0x3a   :  { %v398_v43 = vld [vmem:[%s16111_s1 + $0x6a0] sm:$0xff]  ;;  %3353 = vmatpush2.bf16.msra.mxu1 %v8343_v45 }
  0x3b   :  { %v8336_v47 = vcombine.high %v394_v42, %v398_v43  ;;  %v258_v48 = vld [vmem:[%s16111_s1 + $0x240] sm:$0xff]  ;;  %3061 = vmatprep.subr.bf16.mxu0 %v8208_v46  ;;  %v8335_v53 = vcombine.low %v394_v42, %v398_v43  ;;  %v211_v42 = vld [vmem:[%s16111_s1 + $0xc8] sm:$0xff] }
  0x3c   :  { %v262_v49 = vld [vmem:[%s16111_s1 + $0x260] sm:$0xff]  ;;  %3062 = vmatpush2.bf16.msra.mxu0 %v8207_v52  ;;  %v215_v43 = vld [vmem:[%s16111_s1 + $0xe8] sm:$0xff] }
  0x3d   :  { %v386_v50 = vld [vmem:[%s16111_s1 + $0x640] sm:$0xff]  ;;  %v8200_v54 = vcombine.high %v258_v48, %v262_v49  ;;  %3354 = vmatprep.subr.bf16.mxu1 %v8336_v47  ;;  %v8199_v60 = vcombine.low %v258_v48, %v262_v49  ;;  %v8592_v47 = vld [vmem:[%s16112_s0 + $0x94] ss:$24 sps:$4 sm:$0xff]   ;;  %v8161_v48 = vcombine.low %v219_v29, %v223_v34 }
  0x3e   :  { %v390_v51 = vld [vmem:[%s16111_s1 + $0x660] sm:$0xff]  ;;  %3355 = vmatpush2.bf16.msra.mxu1 %v8335_v53  ;;  %v203_v52 = vld [vmem:[%s16111_s1 + $0x88] sm:$0xff]  ;;  %v8618_v34 = vld [vmem:[%s16112_s0 + $0x15c] ss:$24 sps:$4 sm:$0xff]  }
  0x3f   :  { %v8328_v55 = vcombine.high %v386_v50, %v390_v51  ;;  %v250_v56 = vld [vmem:[%s16111_s1 + $0x200] sm:$0xff]  ;;  %3063 = vmatprep.subr.bf16.mxu0 %v8200_v54  ;;  %v8327_v61 = vcombine.low %v386_v50, %v390_v51  ;;  %v8594_v50 = vld [vmem:[%s16112_s0 + $0x9c] ss:$24 sps:$4 sm:$0xff]   ;;  %v8154_v51 = vcombine.high %v211_v42, %v215_v43  ;;  %v207_v53 = vld [vmem:[%s16111_s1 + $0xa8] sm:$0xff] }
  0x40   :  { %v254_v57 = vld [vmem:[%s16111_s1 + $0x220] sm:$0xff]  ;;  %3064 = vmatpush2.bf16.msra.mxu0 %v8199_v60  ;;  %v8145_v2 = vcombine.low %v203_v52, %v207_v53 }
  0x41   :  { %v378_v58 = vld [vmem:[%s16111_s1 + $0x600] sm:$0xff]  ;;  %v8192_v62 = vcombine.high %v250_v56, %v254_v57  ;;  %3356 = vmatprep.subr.bf16.mxu1 %v8328_v55  ;;  %v8191_v4 = vcombine.low %v250_v56, %v254_v57  ;;  %v8153_v55 = vcombine.low %v211_v42, %v215_v43  ;;  %v195_v56 = vld [vmem:[%s16111_s1 + $0x48] sm:$0xff]  ;;  %v8146_v57 = vcombine.high %v203_v52, %v207_v53 }
  0x42   :  { %v382_v59 = vld [vmem:[%s16111_s1 + $0x620] sm:$0xff]  ;;  %3357 = vmatpush2.bf16.msra.mxu1 %v8327_v61  ;;  %v9621_v61 = vld [vmem:[%s16112_s0 + $0x90] ss:$24 sps:$4 sm:$0xff]   ;;  %v9761_v53 = vld [vmem:[%s16112_s0 + $0x1b4] ss:$24 sps:$4 sm:$0xff]  }
  0x43   :  { %v498_v63 = vld [vmem:[%s16111_s1 + $0x9c0] sm:$0xff]  ;;  %v8320_v1 = vcombine.high %v378_v58, %v382_v59  ;;  %3065 = vmatprep.subr.bf16.mxu0 %v8192_v62  ;;  %v8319_v5 = vcombine.low %v378_v58, %v382_v59  ;;  %v199_v58 = vld [vmem:[%s16111_s1 + $0x68] sm:$0xff] }
  0x44   :  { %v502_v0 = vld [vmem:[%s16111_s1 + $0x9e0] sm:$0xff]  ;;  %3066 = vmatpush2.bf16.msra.mxu0 %v8191_v4  ;;  %v191_v4 = vld [vmem:[%s16111_s1 + $0x28] sm:$0xff] }
  0x45   :  { %v8578_v6 = vld [vmem:[%s16112_s0] ss:$24 sps:$4 sm:$0xff]   ;;  %v8440_v7 = vcombine.high %v498_v63, %v502_v0  ;;  %3358 = vmatprep.subr.bf16.mxu1 %v8320_v1  ;;  %v8439_v16 = vcombine.low %v498_v63, %v502_v0  ;;  %v8586_v27 = vld [vmem:[%s16112_s0 + $0x64] ss:$24 sps:$4 sm:$0xff]   ;;  %v283_v43 = vld [vmem:[%s16111_s1 + $0x308] sm:$0xff] }
  0x46   :  { %v8579_v8 = vld [vmem:[%s16112_s0 + $0x8] ss:$24 sps:$4 sm:$0xff]   ;;  %3359 = vmatpush2.bf16.msra.mxu1 %v8319_v5  ;;  %v8588_v35 = vld [vmem:[%s16112_s0 + $0x6c] ss:$24 sps:$4 sm:$0xff]   ;;  %v8597_v0 = vld [vmem:[%s16112_s0 + $0x98] ss:$24 sps:$4 sm:$0xff]  }
  0x47   :  { %v490_v11 = vld [vmem:[%s16111_s1 + $0x980] sm:$0xff]  ;;  %3621 = vmatprep.subr.bf16.mxu0 %v8440_v7  ;;  %3914 = vmatprep.subr.bf16.mxu1 %v8186_v9  ;;  %v8137_v7 = vcombine.low %v195_v56, %v199_v58  ;;  %v307_v9 = vld [vmem:[%s16111_s1 + $0x3c8] sm:$0xff] }
  0x48   :  { %v494_v12 = vld [vmem:[%s16111_s1 + $0x9a0] sm:$0xff]  ;;  %3068 = vmatmul.mubr.bf16.vlgmr.msra.gmra.mxu0 %v8578_v6  ;;  %v8138_v6 = vcombine.high %v195_v56, %v199_v58  ;;  %v279_v56 = vld [vmem:[%s16111_s1 + $0x2e8] sm:$0xff] }
  0x49   :  { %v8432_v18 = vcombine.high %v490_v11, %v494_v12  ;;  %v482_v21 = vld [vmem:[%s16111_s1 + $0x940] sm:$0xff]  ;;  %3361 = vmatmul.mubr.bf16.vlgmr.msra.gmra.mxu1 %v8579_v8  ;;  %3077 = vmatprep.mubr.bf16.mxu0 %v9522_v10  ;;  %v8431_v25 = vcombine.low %v490_v11, %v494_v12  ;;  %v8130_v8 = vcombine.high %v187_v3, %v191_v4  ;;  %v311_v11 = vld [vmem:[%s16111_s1 + $0x3e8] sm:$0xff] }
  0x4a   :  { %v486_v22 = vld [vmem:[%s16111_s1 + $0x960] sm:$0xff]  ;;  %3370 = vmatprep.mubr.bf16.mxu1 %v8582_v15  ;;  %3622 = vmatpush1.bf16.msra.mxu0 %v8439_v16  ;;  %v8129_v15 = vcombine.low %v187_v3, %v191_v4  ;;  %v8606_v16 = vld [vmem:[%s16112_s0 + $0xfc] ss:$24 sps:$4 sm:$0xff]  }
  0x4b   :  { %3915 = vmatpush1.bf16.msra.mxu1 %v8185_v17  ;;  %3623 = vmatprep.subr.bf16.mxu0 %v8432_v18  ;;  %v8424_v30 = vcombine.high %v482_v21, %v486_v22  ;;  %v474_v31 = vld [vmem:[%s16111_s1 + $0x900] sm:$0xff]  ;;  %v8423_v36 = vcombine.low %v482_v21, %v486_v22  ;;  %v8250_v17 = vcombine.high %v307_v9, %v311_v11  ;;  %v9675_v21 = vld [vmem:[%s16112_s0 + $0xf0] ss:$24 sps:$4 sm:$0xff]  }
  0x4c   :  { %3916 = vmatprep.subr.bf16.mxu1 %v8178_v19  ;;  %v478_v33 = vld [vmem:[%s16111_s1 + $0x920] sm:$0xff]  ;;  %v8249_v18 = vcombine.low %v307_v9, %v311_v11  ;;  %v299_v19 = vld [vmem:[%s16111_s1 + $0x388] sm:$0xff] }
  0x4d   :  { %v8416_v38 = vcombine.high %v474_v31, %v478_v33  ;;  %v466_v39 = vld [vmem:[%s16111_s1 + $0x8c0] sm:$0xff]  ;;  %v8415_v45 = vcombine.low %v474_v31, %v478_v33  ;;  %v8242_v22 = vcombine.high %v299_v19, %v303_v20  ;;  %v9707_v33 = vld [vmem:[%s16112_s0 + $0x154] ss:$24 sps:$4 sm:$0xff]  }
  0x4e   :  { %3624 = vmatpush1.bf16.msra.mxu0 %v8431_v25  ;;  %v470_v41 = vld [vmem:[%s16111_s1 + $0x8e0] sm:$0xff]  ;;  %v8241_v25 = vcombine.low %v299_v19, %v303_v20  ;;  %v259_v9 = vld [vmem:[%s16111_s1 + $0x248] sm:$0xff] }
  0x4f   :  { %3917 = vmatpush1.bf16.msra.mxu1 %v8177_v28  ;;  %3625 = vmatprep.subr.bf16.mxu0 %v8424_v30  ;;  %v8590_v44 = vld [vmem:[%s16112_s0 + $0x60] ss:$24 sps:$4 sm:$0xff]   ;;  %v8408_v49 = vcombine.high %v466_v39, %v470_v41  ;;  %v8407_v54 = vcombine.low %v466_v39, %v470_v41  ;;  %v9629_v1 = vld [vmem:[%s16112_s0 + $0xc4] ss:$24 sps:$4 sm:$0xff]   ;;  %v9723_v39 = vld [vmem:[%s16112_s0 + $0x150] ss:$24 sps:$4 sm:$0xff]  }
  0x50   :  { %3078 = vmatmul.mubr.bf16.gmra.mxu0 %v8584_v24  ;;  %3918 = vmatprep.subr.bf16.mxu1 %v8170_v32  ;;  %v8591_v46 = vld [vmem:[%s16112_s0 + $0x68] ss:$24 sps:$4 sm:$0xff]   ;;  %v8600_v5 = vld [vmem:[%s16112_s0 + $0xcc] ss:$24 sps:$4 sm:$0xff]  }
  0x51   :  { %3371 = vmatmul.mubr.bf16.gmra.mxu1 %v8585_v26  ;;  %3087 = vmatprep.mubr.bf16.mxu0 %v8586_v27  ;;  %v458_v59 = vld [vmem:[%s16111_s1 + $0x880] sm:$0xff]  ;;  %v263_v11 = vld [vmem:[%s16111_s1 + $0x268] sm:$0xff] }
  0x52   :  { %3380 = vmatprep.mubr.bf16.mxu1 %v8588_v35  ;;  %3626 = vmatpush1.bf16.msra.mxu0 %v8423_v36  ;;  %v462_v60 = vld [vmem:[%s16111_s1 + $0x8a0] sm:$0xff]  ;;  %v291_v35 = vld [vmem:[%s16111_s1 + $0x348] sm:$0xff] }
  0x53   :  { %3919 = vmatpush1.bf16.msra.mxu1 %v8169_v37  ;;  %3627 = vmatprep.subr.bf16.mxu0 %v8416_v38  ;;  %v8399_v62 = vcombine.low %v458_v59, %v462_v60  ;;  %v8400_v63 = vcombine.high %v458_v59, %v462_v60  ;;  %v9651_v12 = vld [vmem:[%s16112_s0 + $0xc0] ss:$24 sps:$4 sm:$0xff]   ;;  %v9683_v24 = vld [vmem:[%s16112_s0 + $0x124] ss:$24 sps:$4 sm:$0xff]   ;;  %v295_v36 = vld [vmem:[%s16111_s1 + $0x368] sm:$0xff] }
  0x54   :  { %3920 = vmatprep.subr.bf16.mxu1 %v8162_v40  ;;  %v8603_v13 = vld [vmem:[%s16112_s0 + $0xc8] ss:$24 sps:$4 sm:$0xff]   ;;  %v8612_v26 = vld [vmem:[%s16112_s0 + $0x12c] ss:$24 sps:$4 sm:$0xff]   ;;  %v8233_v37 = vcombine.low %v291_v35, %v295_v36  ;;  %v8234_v38 = vcombine.high %v291_v35, %v295_v36  ;;  %v8621_v40 = vld [vmem:[%s16112_s0 + $0x158] ss:$24 sps:$4 sm:$0xff]  }
  0x55   :  { %v450_v27 = vld [vmem:[%s16111_s1 + $0x840] sm:$0xff]  ;;  %v267_v59 = vld [vmem:[%s16111_s1 + $0x288] sm:$0xff] }
  0x56   :  { %3628 = vmatpush1.bf16.msra.mxu0 %v8415_v45  ;;  %v454_v28 = vld [vmem:[%s16111_s1 + $0x860] sm:$0xff]  ;;  %v271_v60 = vld [vmem:[%s16111_s1 + $0x2a8] sm:$0xff] }
  0x57   :  { %3921 = vmatpush1.bf16.msra.mxu1 %v8161_v48  ;;  %3629 = vmatprep.subr.bf16.mxu0 %v8408_v49  ;;  %v9699_v29 = vld [vmem:[%s16112_s0 + $0x120] ss:$24 sps:$4 sm:$0xff]   ;;  %v8391_v30 = vcombine.low %v450_v27, %v454_v28  ;;  %v8392_v31 = vcombine.high %v450_v27, %v454_v28  ;;  %v9731_v41 = vld [vmem:[%s16112_s0 + $0x184] ss:$24 sps:$4 sm:$0xff]   ;;  %v255_v20 = vld [vmem:[%s16111_s1 + $0x228] sm:$0xff] }
  0x58   :  { %3088 = vmatmul.mubr.bf16.gmra.mxu0 %v8590_v44  ;;  %3922 = vmatprep.subr.bf16.mxu1 %v8154_v51  ;;  %v8615_v32 = vld [vmem:[%s16112_s0 + $0x128] ss:$24 sps:$4 sm:$0xff]   ;;  %v8624_v42 = vld [vmem:[%s16112_s0 + $0x18c] ss:$24 sps:$4 sm:$0xff]  }
  0x59   :  { %3381 = vmatmul.mubr.bf16.gmra.mxu1 %v8591_v46  ;;  %3097 = vmatprep.mubr.bf16.mxu0 %v8592_v47  ;;  %v287_v44 = vld [vmem:[%s16111_s1 + $0x328] sm:$0xff]  ;;  %v442_v45 = vld [vmem:[%s16111_s1 + $0x800] sm:$0xff] }
  0x5a   :  { %3390 = vmatprep.mubr.bf16.mxu1 %v8594_v50  ;;  %3630 = vmatpush1.bf16.msra.mxu0 %v8407_v54  ;;  %v8225_v46 = vcombine.low %v283_v43, %v287_v44  ;;  %v8226_v47 = vcombine.high %v283_v43, %v287_v44  ;;  %v446_v48 = vld [vmem:[%s16111_s1 + $0x820] sm:$0xff]  ;;  %v8630_v54 = vld [vmem:[%s16112_s0 + $0x1bc] ss:$24 sps:$4 sm:$0xff]   ;;  %v8657_v43 = vld [vmem:[%s16112_s0 + $0x278] ss:$24 sps:$4 sm:$0xff]  }
  0x5b   :  { %3923 = vmatpush1.bf16.msra.mxu1 %v8153_v55  ;;  %3631 = vmatprep.subr.bf16.mxu0 %v8400_v63  ;;  %v8383_v49 = vcombine.low %v442_v45, %v446_v48  ;;  %v8384_v50 = vcombine.high %v442_v45, %v446_v48  ;;  %v9753_v51 = vld [vmem:[%s16112_s0 + $0x180] ss:$24 sps:$4 sm:$0xff]   ;;  %v275_v55 = vld [vmem:[%s16111_s1 + $0x2c8] sm:$0xff]  ;;  %v9791_v3 = vld [vmem:[%s16112_s0 + $0x1e4] ss:$24 sps:$4 sm:$0xff]  }
  0x5c   :  { %3924 = vmatprep.subr.bf16.mxu1 %v8146_v57  ;;  %v8627_v52 = vld [vmem:[%s16112_s0 + $0x188] ss:$24 sps:$4 sm:$0xff]   ;;  %v8218_v57 = vcombine.high %v275_v55, %v279_v56  ;;  %v8217_v58 = vcombine.low %v275_v55, %v279_v56  ;;  %v8636_v4 = vld [vmem:[%s16112_s0 + $0x1ec] ss:$24 sps:$4 sm:$0xff]  }
  0x5d   :  { %v9783_v63 = vld [vmem:[%s16112_s0 + $0x1b0] ss:$24 sps:$4 sm:$0xff]   ;;  %v9833_v28 = vld [vmem:[%s16112_s0 + $0x214] ss:$24 sps:$4 sm:$0xff]   ;;  %v8650_v36 = vld [vmem:[%s16112_s0 + $0x240] ss:$24 sps:$4 sm:$0xff]  }
  0x5e   :  { %3632 = vmatpush1.bf16.msra.mxu0 %v8399_v62  ;;  %v8210_v62 = vcombine.high %v267_v59, %v271_v60  ;;  %v8639_v27 = vld [vmem:[%s16112_s0 + $0x1e8] ss:$24 sps:$4 sm:$0xff]   ;;  %v8648_v35 = vld [vmem:[%s16112_s0 + $0x24c] ss:$24 sps:$4 sm:$0xff]  }
  0x5f   :  { %3925 = vmatpush1.bf16.msra.mxu1 %v8145_v2  ;;  %3633 = vmatprep.subr.bf16.mxu0 %v8392_v31  ;;  %v8633_v2 = vld [vmem:[%s16112_s0 + $0x1b8] ss:$24 sps:$4 sm:$0xff]   ;;  %v8658_v44 = vld [vmem:[%s16112_s0 + $0x2a4] ss:$24 sps:$4 sm:$0xff]   ;;  %v8664_v48 = vld [vmem:[%s16112_s0 + $0x2d4] ss:$24 sps:$4 sm:$0xff]  }
  0x60   :  { %3098 = vmatmul.mubr.bf16.gmra.mxu0 %v9621_v61  ;;  %3926 = vmatprep.subr.bf16.mxu1 %v8138_v6  ;;  %v518_v6 = vld [vmem:[%s16111_s1 + $0xa60] sm:$0xff]  ;;  %v9843_v31 = vld [vmem:[%s16112_s0 + $0x210] ss:$24 sps:$4 sm:$0xff]  }
  0x61   :  { %3391 = vmatmul.mubr.bf16.gmra.mxu1 %v8597_v0  ;;  %3107 = vmatprep.mubr.bf16.mxu0 %v9629_v1  ;;  %v8209_v0 = vcombine.low %v267_v59, %v271_v60  ;;  %v8660_v45 = vld [vmem:[%s16112_s0 + $0x2ac] ss:$24 sps:$4 sm:$0xff]   ;;  %v8674_v56 = vld [vmem:[%s16112_s0 + $0x300] ss:$24 sps:$4 sm:$0xff]   ;;  %v8678_v59 = vld [vmem:[%s16112_s0 + $0x33c] ss:$24 sps:$4 sm:$0xff]  }
  0x62   :  { %3400 = vmatprep.mubr.bf16.mxu1 %v8600_v5  ;;  %3634 = vmatpush1.bf16.msra.mxu0 %v8391_v30  ;;  %v514_v5 = vld [vmem:[%s16111_s1 + $0xa40] sm:$0xff]  ;;  %v8642_v30 = vld [vmem:[%s16112_s0 + $0x21c] ss:$24 sps:$4 sm:$0xff]   ;;  %v9921_v60 = vld [vmem:[%s16111_s1 + $0x5c8] sm:$0xff] }
  0x63   :  { %3927 = vmatpush1.bf16.msra.mxu1 %v8137_v7  ;;  %3635 = vmatprep.subr.bf16.mxu0 %v8384_v50  ;;  %v8455_v7 = vcombine.low %v514_v5, %v518_v6  ;;  %v8668_v50 = vld [vmem:[%s16112_s0 + $0x2d0] ss:$24 sps:$4 sm:$0xff]   ;;  %v8672_v55 = vld [vmem:[%s16112_s0 + $0x30c] ss:$24 sps:$4 sm:$0xff]  }
  0x64   :  { %3928 = vmatprep.subr.bf16.mxu1 %v8130_v8  ;;  %v8456_v8 = vcombine.high %v514_v5, %v518_v6  ;;  %v9940_v5 = vld [vmem:[%s16111_s1 + $0x9e8] sm:$0xff] }
  0x66   :  { %3636 = vmatpush1.bf16.msra.mxu0 %v8383_v49  ;;  %v8666_v49 = vld [vmem:[%s16112_s0 + $0x2dc] ss:$24 sps:$4 sm:$0xff]  }
  0x67   :  { %3929 = vmatpush1.bf16.msra.mxu1 %v8129_v15  ;;  %v8202_v15 = vcombine.high %v259_v9, %v263_v11  ;;  %3649 = vmatprep.subr.bf16.mxu0 %v8456_v8  ;;  %v8680_v8 = vld [vmem:[%s16112_s0 + $0x330] ss:$24 sps:$4 sm:$0xff]  }
  0x68   :  { %3108 = vmatmul.mubr.bf16.gmra.mxu0 %v9651_v12  ;;  %3930 = vmatprep.subr.bf16.mxu1 %v8250_v17  ;;  %v510_v17 = vld [vmem:[%s16111_s1 + $0xa20] sm:$0xff] }
  0x69   :  { %3401 = vmatmul.mubr.bf16.gmra.mxu1 %v8603_v13  ;;  %3117 = vmatprep.mubr.bf16.mxu0 %v9659_v14  ;;  %v8201_v13 = vcombine.low %v259_v9, %v263_v11  ;;  %v8681_v9 = vld [vmem:[%s16112_s0 + $0x338] ss:$24 sps:$4 sm:$0xff]   ;;  %v8682_v11 = vld [vmem:[%s16112_s0 + $0x364] ss:$24 sps:$4 sm:$0xff]  }
  0x6a   :  { %3410 = vmatprep.mubr.bf16.mxu1 %v8606_v16  ;;  %v506_v16 = vld [vmem:[%s16111_s1 + $0xa00] sm:$0xff]  ;;  %3650 = vmatpush2.bf16.msra.mxu0 %v8455_v7 }
  0x6b   :  { %3931 = vmatpush2.bf16.msra.mxu1 %v8249_v18  ;;  %v251_v18 = vld [vmem:[%s16111_s1 + $0x208] sm:$0xff]  ;;  %v8448_v19 = vcombine.high %v506_v16, %v510_v17 }
  0x6c   :  { %3932 = vmatprep.subr.bf16.mxu1 %v8242_v22  ;;  %v9825_v22 = vld [vmem:[%s16112_s0 + $0x1e0] ss:$24 sps:$4 sm:$0xff]  }
  0x6d   :  { %3651 = vmatprep.subr.bf16.mxu0 %v8448_v19  ;;  %v8692_v19 = vld [vmem:[%s16112_s0 + $0x390] ss:$24 sps:$4 sm:$0xff]  }
  0x6f   :  { %3933 = vmatpush2.bf16.msra.mxu1 %v8241_v25  ;;  %v8193_v25 = vcombine.low %v251_v18, %v255_v20 }
  0x70   :  { %3118 = vmatmul.mubr.bf16.gmra.mxu0 %v9675_v21  ;;  %3934 = vmatprep.subr.bf16.mxu1 %v8234_v38  ;;  %v8652_v38 = vld [vmem:[%s16112_s0 + $0x274] ss:$24 sps:$4 sm:$0xff]  }
  0x71   :  { %3411 = vmatmul.mubr.bf16.gmra.mxu1 %v8609_v23  ;;  %3127 = vmatprep.mubr.bf16.mxu0 %v9683_v24  ;;  %v8447_v23 = vcombine.low %v506_v16, %v510_v17  ;;  %v8687_v16 = vld [vmem:[%s16112_s0 + $0x368] ss:$24 sps:$4 sm:$0xff]   ;;  %v8688_v17 = vld [vmem:[%s16112_s0 + $0x394] ss:$24 sps:$4 sm:$0xff]  }
  0x72   :  { %3420 = vmatprep.mubr.bf16.mxu1 %v8612_v26  ;;  %v8194_v26 = vcombine.high %v251_v18, %v255_v20  ;;  %v8690_v18 = vld [vmem:[%s16112_s0 + $0x39c] ss:$24 sps:$4 sm:$0xff]   ;;  %v8693_v20 = vld [vmem:[%s16112_s0 + $0x398] ss:$24 sps:$4 sm:$0xff]  }
  0x73   :  { %3935 = vmatpush2.bf16.msra.mxu1 %v8233_v37  ;;  %3652 = vmatpush2.bf16.msra.mxu0 %v8447_v23  ;;  %v8651_v37 = vld [vmem:[%s16112_s0 + $0x248] ss:$24 sps:$4 sm:$0xff]   ;;  %v8694_v23 = vld [vmem:[%s16112_s0 + $0x3c4] ss:$24 sps:$4 sm:$0xff]  }
  0x74   :  { %3936 = vmatprep.subr.bf16.mxu1 %v8226_v47  ;;  %v8663_v47 = vld [vmem:[%s16112_s0 + $0x2a8] ss:$24 sps:$4 sm:$0xff]  }
  0x77   :  { %3937 = vmatpush2.bf16.msra.mxu1 %v8225_v46  ;;  %v8662_v46 = vld [vmem:[%s16112_s0 + $0x2a0] ss:$24 sps:$4 sm:$0xff]  }
  0x78   :  { %3128 = vmatmul.mubr.bf16.gmra.mxu0 %v9699_v29  ;;  %3938 = vmatprep.subr.bf16.mxu1 %v8218_v57  ;;  %v8675_v57 = vld [vmem:[%s16112_s0 + $0x308] ss:$24 sps:$4 sm:$0xff]  }
  0x79   :  { %3421 = vmatmul.mubr.bf16.gmra.mxu1 %v8615_v32  ;;  %3137 = vmatprep.mubr.bf16.mxu0 %v9707_v33  ;;  %v8645_v32 = vld [vmem:[%s16112_s0 + $0x218] ss:$24 sps:$4 sm:$0xff]  }
  0x7a   :  { %3430 = vmatprep.mubr.bf16.mxu1 %v8618_v34  ;;  %v9851_v34 = vld [vmem:[%s16112_s0 + $0x244] ss:$24 sps:$4 sm:$0xff]  }
  0x7b   :  { %3939 = vmatpush2.bf16.msra.mxu1 %v8217_v58  ;;  %v8676_v58 = vld [vmem:[%s16112_s0 + $0x334] ss:$24 sps:$4 sm:$0xff]  }
  0x7c   :  { %3940 = vmatprep.subr.bf16.mxu1 %v8210_v62  ;;  %v9926_v62 = vld [vmem:[%s16111_s1 + $0x5e8] sm:$0xff] }
  0x7f   :  { %3941 = vmatpush2.bf16.msra.mxu1 %v8209_v0  ;;  %v8313_v0 = vcombine.low %v9921_v60, %v9926_v62 }
  0x80   :  { %3138 = vmatmul.mubr.bf16.gmra.mxu0 %v9723_v39  ;;  %3942 = vmatprep.subr.bf16.mxu1 %v8202_v15  ;;  %v8686_v15 = vld [vmem:[%s16112_s0 + $0x360] ss:$24 sps:$4 sm:$0xff]  }
  0x81   :  { %3431 = vmatmul.mubr.bf16.gmra.mxu1 %v8621_v40  ;;  %3147 = vmatprep.mubr.bf16.mxu0 %v9731_v41  ;;  %v8654_v40 = vld [vmem:[%s16112_s0 + $0x27c] ss:$24 sps:$4 sm:$0xff]  }
  0x82   :  { %3440 = vmatprep.mubr.bf16.mxu1 %v8624_v42  ;;  %v8656_v42 = vld [vmem:[%s16112_s0 + $0x270] ss:$24 sps:$4 sm:$0xff]  }
  0x83   :  { %3943 = vmatpush2.bf16.msra.mxu1 %v8201_v13  ;;  %v8684_v13 = vld [vmem:[%s16112_s0 + $0x36c] ss:$24 sps:$4 sm:$0xff]  }
  0x84   :  { %3944 = vmatprep.subr.bf16.mxu1 %v8194_v26  ;;  %v8698_v26 = vld [vmem:[%s16112_s0 + $0x3c0] ss:$24 sps:$4 sm:$0xff]  }
  0x87   :  { %3945 = vmatpush2.bf16.msra.mxu1 %v8193_v25  ;;  %v8696_v25 = vld [vmem:[%s16112_s0 + $0x3cc] ss:$24 sps:$4 sm:$0xff]  }
  0x88   :  { %3148 = vmatmul.mubr.bf16.gmra.mxu0 %v9753_v51 }
  0x89   :  { %3441 = vmatmul.mubr.bf16.gmra.mxu1 %v8627_v52  ;;  %3157 = vmatprep.mubr.bf16.mxu0 %v9761_v53  ;;  %v8669_v52 = vld [vmem:[%s16112_s0 + $0x2d8] ss:$24 sps:$4 sm:$0xff]  }
  0x8a   :  { %3450 = vmatprep.mubr.bf16.mxu1 %v8630_v54  ;;  %v8670_v54 = vld [vmem:[%s16112_s0 + $0x304] ss:$24 sps:$4 sm:$0xff]  }
  0x90   :  { %3158 = vmatmul.mubr.bf16.gmra.mxu0 %v9783_v63 }
  0x91   :  { %3451 = vmatmul.mubr.bf16.gmra.mxu1 %v8633_v2  ;;  %3167 = vmatprep.mubr.bf16.mxu0 %v9791_v3  ;;  %v8314_v2 = vcombine.high %v9921_v60, %v9926_v62  ;;  %v347_v60 = vld [vmem:[%s16111_s1 + $0x508] sm:$0xff] }
  0x92   :  { %3460 = vmatprep.mubr.bf16.mxu1 %v8636_v4  ;;  %v9935_v4 = vld [vmem:[%s16111_s1 + $0x9c8] sm:$0xff] }
  0x93   :  { %v8441_v6 = vcombine.low %v9935_v4, %v9940_v5  ;;  %v8442_v7 = vcombine.high %v9935_v4, %v9940_v5  ;;  %4207 = vmatprep.subr.bf16.mxu0 %v8314_v2  ;;  %v351_v62 = vld [vmem:[%s16111_s1 + $0x528] sm:$0xff] }
  0x94   :  { %v8736_v5 = vld [vmem:[%s16112_s0 + $0x74] ss:$24 sps:$4 sm:$0xff]  }
  0x95   :  { %4500 = vmatprep.subr.bf16.mxu1 %v8442_v7 }
  0x98   :  { %3168 = vmatmul.mubr.bf16.gmra.mxu0 %v9825_v22 }
  0x99   :  { %3461 = vmatmul.mubr.bf16.gmra.mxu1 %v8639_v27  ;;  %3177 = vmatprep.mubr.bf16.mxu0 %v9833_v28  ;;  %v8699_v27 = vld [vmem:[%s16112_s0 + $0x3c8] ss:$24 sps:$4 sm:$0xff]  }
  0x9a   :  { %3470 = vmatprep.mubr.bf16.mxu1 %v8642_v30  ;;  %v8700_v30 = vld [vmem:[%s16112_s0 + $0x3f4] ss:$24 sps:$4 sm:$0xff]  }
  0xa0   :  { %3178 = vmatmul.mubr.bf16.gmra.mxu0 %v9843_v31 }
  0xa1   :  { %3471 = vmatmul.mubr.bf16.gmra.mxu1 %v8645_v32  ;;  %3187 = vmatprep.mubr.bf16.mxu0 %v9851_v34  ;;  %v8702_v32 = vld [vmem:[%s16112_s0 + $0x3fc] ss:$24 sps:$4 sm:$0xff]  }
  0xa2   :  { %3480 = vmatprep.mubr.bf16.mxu1 %v8648_v35  ;;  %v8704_v35 = vld [vmem:[%s16112_s0 + $0x3f0] ss:$24 sps:$4 sm:$0xff]  }
  0xa8   :  { %3188 = vmatmul.mubr.bf16.gmra.mxu0 %v8650_v36  ;;  %v8705_v36 = vld [vmem:[%s16112_s0 + $0x3f8] ss:$24 sps:$4 sm:$0xff]  }
  0xa9   :  { %3481 = vmatmul.mubr.bf16.gmra.mxu1 %v8651_v37  ;;  %3197 = vmatprep.mubr.bf16.mxu0 %v8652_v38  ;;  %v8706_v37 = vld [vmem:[%s16112_s0 + $0x424] ss:$24 sps:$4 sm:$0xff]  }
  0xaa   :  { %3490 = vmatprep.mubr.bf16.mxu1 %v8654_v40  ;;  %v8708_v38 = vld [vmem:[%s16112_s0 + $0x42c] ss:$24 sps:$4 sm:$0xff]   ;;  %v8710_v40 = vld [vmem:[%s16112_s0 + $0x420] ss:$24 sps:$4 sm:$0xff]  }
  0xb0   :  { %3198 = vmatmul.mubr.bf16.gmra.mxu0 %v8656_v42  ;;  %v8711_v42 = vld [vmem:[%s16112_s0 + $0x428] ss:$24 sps:$4 sm:$0xff]  }
  0xb1   :  { %3491 = vmatmul.mubr.bf16.gmra.mxu1 %v8657_v43  ;;  %3207 = vmatprep.mubr.bf16.mxu0 %v8658_v44  ;;  %v8712_v43 = vld [vmem:[%s16112_s0 + $0x454] ss:$24 sps:$4 sm:$0xff]  }
  0xb2   :  { %3500 = vmatprep.mubr.bf16.mxu1 %v8660_v45  ;;  %v8714_v44 = vld [vmem:[%s16112_s0 + $0x45c] ss:$24 sps:$4 sm:$0xff]   ;;  %v8716_v45 = vld [vmem:[%s16112_s0 + $0x450] ss:$24 sps:$4 sm:$0xff]  }
  0xb8   :  { %3208 = vmatmul.mubr.bf16.gmra.mxu0 %v8662_v46  ;;  %v8717_v46 = vld [vmem:[%s16112_s0 + $0x458] ss:$24 sps:$4 sm:$0xff]  }
  0xb9   :  { %3501 = vmatmul.mubr.bf16.gmra.mxu1 %v8663_v47  ;;  %3217 = vmatprep.mubr.bf16.mxu0 %v8664_v48  ;;  %v8718_v47 = vld [vmem:[%s16112_s0 + $0x484] ss:$24 sps:$4 sm:$0xff]  }
  0xba   :  { %3510 = vmatprep.mubr.bf16.mxu1 %v8666_v49  ;;  %v8720_v48 = vld [vmem:[%s16112_s0 + $0x48c] ss:$24 sps:$4 sm:$0xff]   ;;  %v8722_v49 = vld [vmem:[%s16112_s0 + $0x480] ss:$24 sps:$4 sm:$0xff]  }
  0xc0   :  { %3218 = vmatmul.mubr.bf16.gmra.mxu0 %v8668_v50  ;;  %v8723_v50 = vld [vmem:[%s16112_s0 + $0x488] ss:$24 sps:$4 sm:$0xff]  }
  0xc1   :  { %3511 = vmatmul.mubr.bf16.gmra.mxu1 %v8669_v52  ;;  %3227 = vmatprep.mubr.bf16.mxu0 %v8670_v54  ;;  %v8724_v52 = vld [vmem:[%s16112_s0 + $0x4b4] ss:$24 sps:$4 sm:$0xff]  }
  0xc2   :  { %3520 = vmatprep.mubr.bf16.mxu1 %v8672_v55  ;;  %v8726_v54 = vld [vmem:[%s16112_s0 + $0x4bc] ss:$24 sps:$4 sm:$0xff]  }
  0xc8   :  { %3228 = vmatmul.mubr.bf16.gmra.mxu0 %v8674_v56 }
  0xc9   :  { %3521 = vmatmul.mubr.bf16.gmra.mxu1 %v8675_v57  ;;  %3237 = vmatprep.mubr.bf16.mxu0 %v8676_v58 }
  0xca   :  { %3530 = vmatprep.mubr.bf16.mxu1 %v8678_v59 }
  0xd0   :  { %3238 = vmatmul.mubr.bf16.gmra.mxu0 %v8680_v8  ;;  %v8728_v8 = vld [vmem:[%s16112_s0 + $0x4b0] ss:$24 sps:$4 sm:$0xff]  }
  0xd1   :  { %3531 = vmatmul.mubr.bf16.gmra.mxu1 %v8681_v9  ;;  %3247 = vmatprep.mubr.bf16.mxu0 %v8682_v11  ;;  %v8729_v11 = vld [vmem:[%s16112_s0 + $0x4b8] ss:$24 sps:$4 sm:$0xff]  }
  0xd2   :  { %3540 = vmatprep.mubr.bf16.mxu1 %v8684_v13  ;;  %v8732_v13 = vld [vmem:[%s16112_s0 + $0x14] ss:$24 sps:$4 sm:$0xff]  }
  0xd8   :  { %3248 = vmatmul.mubr.bf16.gmra.mxu0 %v8686_v15 }
  0xd9   :  { %3541 = vmatmul.mubr.bf16.gmra.mxu1 %v8687_v16  ;;  %3257 = vmatprep.mubr.bf16.mxu0 %v8688_v17 }
  0xda   :  { %3550 = vmatprep.mubr.bf16.mxu1 %v8690_v18 }
  0xe0   :  { %3258 = vmatmul.mubr.bf16.gmra.mxu0 %v8692_v19 }
  0xe1   :  { %3551 = vmatmul.mubr.bf16.gmra.mxu1 %v8693_v20  ;;  %3267 = vmatprep.mubr.bf16.mxu0 %v8694_v23 }
  0xe2   :  { %3560 = vmatprep.mubr.bf16.mxu1 %v8696_v25 }
  0xe8   :  { %3268 = vmatmul.mubr.bf16.gmra.mxu0 %v8698_v26  ;;  %v8808_v26 = vld [vmem:[%s16112_s0 + $0x4] ss:$24 sps:$4 sm:$0xff]  }
  0xe9   :  { %3561 = vmatmul.mubr.bf16.gmra.mxu1 %v8699_v27  ;;  %3277 = vmatprep.mubr.bf16.mxu0 %v8700_v30 }
  0xea   :  { %3570 = vmatprep.mubr.bf16.mxu1 %v8702_v32 }
  0xf0   :  { %3278 = vmatmul.mubr.bf16.gmra.mxu0 %v8704_v35  ;;  %v8730_v35 = vld [vmem:[%s16112_s0 + $0x10] ss:$24 sps:$4 sm:$0xff]  }
  0xf1   :  { %3571 = vmatmul.mubr.bf16.gmra.mxu1 %v8705_v36  ;;  %3287 = vmatprep.mubr.bf16.mxu0 %v8706_v37  ;;  %v363_v36 = vld [vmem:[%s16111_s1 + $0x588] sm:$0xff] }
  0xf2   :  { %3580 = vmatprep.mubr.bf16.mxu1 %v8708_v38  ;;  %v367_v37 = vld [vmem:[%s16111_s1 + $0x5a8] sm:$0xff] }
  0xf8   :  { %3288 = vmatmul.mubr.bf16.gmra.mxu0 %v8710_v40  ;;  %v8733_v40 = vld [vmem:[%s16112_s0 + $0x44] ss:$24 sps:$4 sm:$0xff]  }
  0xf9   :  { %3581 = vmatmul.mubr.bf16.gmra.mxu1 %v8711_v42  ;;  %3297 = vmatprep.mubr.bf16.mxu0 %v8712_v43  ;;  %v491_v42 = vld [vmem:[%s16111_s1 + $0x988] sm:$0xff] }
  0xfa   :  { %3590 = vmatprep.mubr.bf16.mxu1 %v8714_v44  ;;  %v495_v43 = vld [vmem:[%s16111_s1 + $0x9a8] sm:$0xff] }
 0x100   :  { %3298 = vmatmul.mubr.bf16.gmra.mxu0 %v8716_v45 }
 0x101   :  { %3591 = vmatmul.mubr.bf16.gmra.mxu1 %v8717_v46  ;;  %3307 = vmatprep.mubr.bf16.mxu0 %v8718_v47  ;;  %v8306_v47 = vcombine.high %v363_v36, %v367_v37 }
 0x102   :  { %3600 = vmatprep.mubr.bf16.mxu1 %v8720_v48 }
 0x108   :  { %v3069_v55 = vpop.f32.mrf.mxu0  ;;  %3308 = vmatmul.mubr.bf16.gmra.mxu0 %v8722_v49 }
 0x109   :  { %v3362_v56 = vpop.f32.mrf.mxu1  ;;  %3601 = vmatmul.mubr.bf16.gmra.mxu1 %v8723_v50  ;;  %3317 = vmatprep.mubr.bf16.mxu0 %v8724_v52  ;;  %v8434_v50 = vcombine.high %v491_v42, %v495_v43  ;;  %v355_v52 = vld [vmem:[%s16111_s1 + $0x548] sm:$0xff] }
 0x10a   :  { %v10042_v57 = vadd.f32 %v3362_v56, %v3069_v55  ;;  %v3071_v58 = vpop.f32.mrf.mxu0  ;;  %3610 = vmatprep.mubr.bf16.mxu1 %v8726_v54  ;;  %v359_v54 = vld [vmem:[%s16111_s1 + $0x568] sm:$0xff]  ;;  %v8809_v56 = vld [vmem:[%s16112_s0] ss:$24 sps:$4 sm:$0xff]  }
 0x10b   :  { %v3364_v59 = vpop.f32.mrf.mxu1 }
 0x10c   :  { %v10044_v2 = vadd.f32 %v3364_v59, %v3071_v58  ;;  %v3073_v7 = vpop.f32.mrf.mxu0  ;;  %v483_v58 = vld [vmem:[%s16111_s1 + $0x948] sm:$0xff] }
 0x10d   :  { %v3366_v9 = vpop.f32.mrf.mxu1  ;;  %v487_v59 = vld [vmem:[%s16111_s1 + $0x968] sm:$0xff] }
 0x10e   :  { %v10055_v15 = vadd.f32 %v3366_v9, %v3073_v7  ;;  %v3075_v16 = vpop.f32.mrf.mxu0  ;;  %v8305_v9 = vcombine.low %v363_v36, %v367_v37  ;;  %v8425_v36 = vcombine.low %v483_v58, %v487_v59 }
 0x10f   :  { %v3368_v17 = vpop.f32.mrf.mxu1 }
 0x110   :  { %v10057_v18 = vadd.f32 %v3368_v17, %v3075_v16  ;;  %v3079_v19 = vpop.f32.mrf.mxu0  ;;  %3318 = vmatmul.mubr.bf16.gmra.mxu0 %v8728_v8  ;;  %v8298_v16 = vcombine.high %v355_v52, %v359_v54 }
 0x111   :  { %v3372_v20 = vpop.f32.mrf.mxu1  ;;  %3611 = vmatmul.mubr.bf16.gmra.mxu1 %v8729_v11  ;;  %8463 = vmatprep.mubr.msk.bf16.mxu0 %vm2956_vm0, %v8732_v13  ;;  %v8433_v13 = vcombine.low %v491_v42, %v495_v43  ;;  %v343_v42 = vld [vmem:[%s16111_s1 + $0x4e8] sm:$0xff] }
 0x112   :  { %v10060_v23 = vadd.f32 %v3372_v20, %v3079_v19  ;;  %v3081_v25 = vpop.f32.mrf.mxu0  ;;  %3946 = vmatprep.mubr.bf16.mxu1 %v8808_v26  ;;  %v479_v20 = vld [vmem:[%s16111_s1 + $0x928] sm:$0xff] }
 0x113   :  { %v3374_v27 = vpop.f32.mrf.mxu1 }
 0x114   :  { %v10065_v30 = vadd.f32 %v3374_v27, %v3081_v25  ;;  %v3083_v32 = vpop.f32.mrf.mxu0  ;;  %v8297_v27 = vcombine.low %v355_v52, %v359_v54  ;;  %v8811_v54 = vld [vmem:[%s16112_s0 + $0x64] ss:$24 sps:$4 sm:$0xff]  }
 0x115   :  { %v3376_v38 = vpop.f32.mrf.mxu1 }
 0x116   :  { %v10085_v44 = vadd.f32 %v3376_v38, %v3083_v32  ;;  %v3085_v45 = vpop.f32.mrf.mxu0 }
 0x117   :  { %v3378_v46 = vpop.f32.mrf.mxu1 }
 0x118   :  { %v10087_v48 = vadd.f32 %v3378_v46, %v3085_v45  ;;  %v3089_v49 = vpop.f32.mrf.mxu0  ;;  %3654 = vmatmul.mubr.bf16.vlgmr.msra.gmra.mxu0 %v8730_v35  ;;  %v8290_v35 = vcombine.high %v347_v60, %v351_v62  ;;  %v8810_v46 = vld [vmem:[%s16112_s0 + $0x30] ss:$24 sps:$4 sm:$0xff]  }
 0x119   :  { %v3382_v55 = vpop.f32.mrf.mxu1  ;;  %3947 = vmatmul.mubr.bf16.vlgmr.msra.gmra.mxu1 %v8809_v56  ;;  %8464 = vmatprep.mubr.msk.bf16.mxu0 %vm2956_vm0, %v8733_v40  ;;  %v339_v40 = vld [vmem:[%s16111_s1 + $0x4c8] sm:$0xff] }
 0x11a   :  { %v10105_v7 = vadd.f32 %v3382_v55, %v3089_v49  ;;  %v3091_v8 = vpop.f32.mrf.mxu0  ;;  %3956 = vmatprep.mubr.bf16.mxu1 %v9522_v10  ;;  %4208 = vmatpush1.bf16.msra.mxu0 %v8313_v0  ;;  %v8735_v10 = vld [vmem:[%s16112_s0 + $0x40] ss:$24 sps:$4 sm:$0xff]   ;;  %v8426_v0 = vcombine.high %v483_v58, %v487_v59  ;;  %v471_v49 = vld [vmem:[%s16111_s1 + $0x8e8] sm:$0xff]  ;;  %v8289_v55 = vcombine.low %v347_v60, %v351_v62  ;;  %v8739_v60 = vld [vmem:[%s16112_s0 + $0xa4] ss:$24 sps:$4 sm:$0xff]  }
 0x11b   :  { %v3384_v11 = vpop.f32.mrf.mxu1  ;;  %4501 = vmatpush1.bf16.msra.mxu1 %v8441_v6  ;;  %4209 = vmatprep.subr.bf16.mxu0 %v8306_v47  ;;  %v475_v6 = vld [vmem:[%s16111_s1 + $0x908] sm:$0xff]  ;;  %v8282_v58 = vcombine.high %v339_v40, %v343_v42 }
 0x11c   :  { %v10114_v17 = vadd.f32 %v3384_v11, %v3091_v8  ;;  %v3093_v19 = vpop.f32.mrf.mxu0  ;;  %4502 = vmatprep.subr.bf16.mxu1 %v8434_v50  ;;  %v8418_v43 = vcombine.high %v475_v6, %v479_v20  ;;  %v467_v47 = vld [vmem:[%s16111_s1 + $0x8c8] sm:$0xff]  ;;  %v8417_v59 = vcombine.low %v475_v6, %v479_v20 }
 0x11d   :  { %v3386_v4 = vpop.f32.mrf.mxu1  ;;  %v8738_v11 = vld [vmem:[%s16112_s0 + $0x70] ss:$24 sps:$4 sm:$0xff]   ;;  %v8409_v20 = vcombine.low %v467_v47, %v471_v49 }
 0x11e   :  { %v10134_v25 = vadd.f32 %v3386_v4, %v3093_v19  ;;  %v3095_v26 = vpop.f32.mrf.mxu0  ;;  %4210 = vmatpush1.bf16.msra.mxu0 %v8305_v9  ;;  %v8410_v19 = vcombine.high %v467_v47, %v471_v49  ;;  %v8281_v4 = vcombine.low %v339_v40, %v343_v42 }
 0x11f   :  { %v3388_v32 = vpop.f32.mrf.mxu1  ;;  %4503 = vmatpush1.bf16.msra.mxu1 %v8433_v13  ;;  %4211 = vmatprep.subr.bf16.mxu0 %v8298_v16  ;;  %v331_v13 = vld [vmem:[%s16111_s1 + $0x488] sm:$0xff] }
 0x120   :  { %v10136_v37 = vadd.f32 %v3388_v32, %v3095_v26  ;;  %v3099_v38 = vpop.f32.mrf.mxu0  ;;  %3664 = vmatmul.mubr.bf16.gmra.mxu0 %v8735_v10  ;;  %4504 = vmatprep.subr.bf16.mxu1 %v8426_v0  ;;  %v335_v16 = vld [vmem:[%s16111_s1 + $0x4a8] sm:$0xff] }
 0x121   :  { %v3392_v45 = vpop.f32.mrf.mxu1  ;;  %3957 = vmatmul.mubr.bf16.gmra.mxu1 %v8810_v46  ;;  %8465 = vmatprep.mubr.msk.bf16.mxu0 %vm2956_vm0, %v8736_v5  ;;  %v8274_v6 = vcombine.high %v331_v13, %v335_v16  ;;  %v323_v32 = vld [vmem:[%s16111_s1 + $0x448] sm:$0xff] }
 0x122   :  { %v10154_v50 = vadd.f32 %v3392_v45, %v3099_v38  ;;  %v3101_v52 = vpop.f32.mrf.mxu0  ;;  %3966 = vmatprep.mubr.bf16.mxu1 %v8811_v54  ;;  %4212 = vmatpush1.bf16.msra.mxu0 %v8297_v27  ;;  %v8812_v38 = vld [vmem:[%s16112_s0 + $0x60] ss:$24 sps:$4 sm:$0xff]   ;;  %v8273_v45 = vcombine.low %v331_v13, %v335_v16 }
 0x123   :  { %v3394_v56 = vpop.f32.mrf.mxu1  ;;  %4213 = vmatprep.subr.bf16.mxu0 %v8290_v35  ;;  %4505 = vmatpush1.bf16.msra.mxu1 %v8425_v36  ;;  %v327_v35 = vld [vmem:[%s16111_s1 + $0x468] sm:$0xff]  ;;  %v8741_v54 = vld [vmem:[%s16112_s0 + $0xa0] ss:$24 sps:$4 sm:$0xff]  }
 0x124   :  { %v10159_v8 = vadd.f32 %v3394_v56, %v3101_v52  ;;  %v3103_v9 = vpop.f32.mrf.mxu0  ;;  %4506 = vmatprep.subr.bf16.mxu1 %v8418_v43  ;;  %v8813_v43 = vld [vmem:[%s16112_s0 + $0x94] ss:$24 sps:$4 sm:$0xff]   ;;  %v8266_v47 = vcombine.high %v323_v32, %v327_v35  ;;  %v8265_v13 = vcombine.low %v323_v32, %v327_v35 }
 0x125   :  { %v3396_v10 = vpop.f32.mrf.mxu1  ;;  %v319_v56 = vld [vmem:[%s16111_s1 + $0x428] sm:$0xff] }
 0x126   :  { %v10173_v62 = vadd.f32 %v3396_v10, %v3103_v9  ;;  %v3105_v0 = vpop.f32.mrf.mxu0  ;;  %4214 = vmatpush1.bf16.msra.mxu0 %v8289_v55  ;;  %v315_v55 = vld [vmem:[%s16111_s1 + $0x408] sm:$0xff] }
 0x127   :  { %v3398_v5 = vpop.f32.mrf.mxu1  ;;  %4215 = vmatprep.subr.bf16.mxu0 %v8282_v58  ;;  %4507 = vmatpush1.bf16.msra.mxu1 %v8417_v59  ;;  %v8742_v59 = vld [vmem:[%s16112_s0 + $0xd4] ss:$24 sps:$4 sm:$0xff]  }
 0x128   :  { %v10175_v26 = vadd.f32 %v3398_v5, %v3105_v0  ;;  %v3109_v27 = vpop.f32.mrf.mxu0  ;;  %3674 = vmatmul.mubr.bf16.gmra.mxu0 %v8738_v11  ;;  %4508 = vmatprep.subr.bf16.mxu1 %v8410_v19  ;;  %v8258_v19 = vcombine.high %v315_v55, %v319_v56  ;;  %v435_v10 = vld [vmem:[%s16111_s1 + $0x7c8] sm:$0xff] }
 0x129   :  { %v3402_v36 = vpop.f32.mrf.mxu1  ;;  %3967 = vmatmul.mubr.bf16.gmra.mxu1 %v8812_v38  ;;  %8466 = vmatprep.mubr.msk.bf16.mxu0 %vm2956_vm0, %v8739_v60  ;;  %v459_v5 = vld [vmem:[%s16111_s1 + $0x888] sm:$0xff]  ;;  %v8257_v38 = vcombine.low %v315_v55, %v319_v56 }
 0x12a   :  { %v10187_v40 = vadd.f32 %v3402_v36, %v3109_v27  ;;  %v3111_v42 = vpop.f32.mrf.mxu0  ;;  %3976 = vmatprep.mubr.bf16.mxu1 %v8813_v43  ;;  %4216 = vmatpush1.bf16.msra.mxu0 %v8281_v4  ;;  %v439_v4 = vld [vmem:[%s16111_s1 + $0x7e8] sm:$0xff] }
 0x12b   :  { %v3404_v46 = vpop.f32.mrf.mxu1  ;;  %4217 = vmatprep.subr.bf16.mxu0 %v8274_v6  ;;  %4509 = vmatpush1.bf16.msra.mxu1 %v8409_v20  ;;  %v463_v6 = vld [vmem:[%s16111_s1 + $0x8a8] sm:$0xff]  ;;  %v8378_v43 = vcombine.high %v435_v10, %v439_v4  ;;  %v8377_v55 = vcombine.low %v435_v10, %v439_v4 }
 0x12c   :  { %v10192_v49 = vadd.f32 %v3404_v46, %v3111_v42  ;;  %v3113_v52 = vpop.f32.mrf.mxu0  ;;  %v8401_v27 = vcombine.low %v459_v5, %v463_v6  ;;  %v8402_v32 = vcombine.high %v459_v5, %v463_v6  ;;  %v431_v10 = vld [vmem:[%s16111_s1 + $0x7a8] sm:$0xff] }
 0x12d   :  { %v3406_v58 = vpop.f32.mrf.mxu1 }
 0x12e   :  { %v10206_v9 = vadd.f32 %v3406_v58, %v3113_v52  ;;  %v3115_v11 = vpop.f32.mrf.mxu0  ;;  %4218 = vmatpush1.bf16.msra.mxu0 %v8273_v45  ;;  %4510 = vmatprep.subr.bf16.mxu1 %v8402_v32  ;;  %v8745_v52 = vld [vmem:[%s16112_s0 + $0x104] ss:$24 sps:$4 sm:$0xff]  }
 0x12f   :  { %v3408_v16 = vpop.f32.mrf.mxu1  ;;  %4219 = vmatprep.subr.bf16.mxu0 %v8266_v47  ;;  %4511 = vmatpush1.bf16.msra.mxu1 %v8401_v27  ;;  %v8748_v27 = vld [vmem:[%s16112_s0 + $0x134] ss:$24 sps:$4 sm:$0xff]  }
 0x130   :  { %v10211_v60 = vadd.f32 %v3408_v16, %v3115_v11  ;;  %v3119_v0 = vpop.f32.mrf.mxu0  ;;  %3684 = vmatmul.mubr.bf16.gmra.mxu0 %v8741_v54 }
 0x131   :  { %v3412_v20 = vpop.f32.mrf.mxu1  ;;  %3977 = vmatmul.mubr.bf16.gmra.mxu1 %v9621_v61  ;;  %8467 = vmatprep.mubr.msk.bf16.mxu0 %vm2956_vm0, %v8742_v59  ;;  %v8744_v61 = vld [vmem:[%s16112_s0 + $0xd0] ss:$24 sps:$4 sm:$0xff]  }
 0x132   :  { %v10224_v35 = vadd.f32 %v3412_v20, %v3119_v0  ;;  %v3121_v36 = vpop.f32.mrf.mxu0  ;;  %3986 = vmatprep.mubr.bf16.mxu1 %v9629_v1  ;;  %4220 = vmatpush1.bf16.msra.mxu0 %v8265_v13  ;;  %v8747_v20 = vld [vmem:[%s16112_s0 + $0x100] ss:$24 sps:$4 sm:$0xff]  }
 0x133   :  { %v3414_v42 = vpop.f32.mrf.mxu1  ;;  %4221 = vmatprep.subr.bf16.mxu0 %v8258_v19  ;;  %v427_v19 = vld [vmem:[%s16111_s1 + $0x788] sm:$0xff] }
 0x134   :  { %v10227_v45 = vadd.f32 %v3414_v42, %v3121_v36  ;;  %v3123_v46 = vpop.f32.mrf.mxu0  ;;  %v8369_v4 = vcombine.low %v427_v19, %v431_v10  ;;  %v8370_v5 = vcombine.high %v427_v19, %v431_v10 }
 0x135   :  { %v3416_v47 = vpop.f32.mrf.mxu1 }
 0x136   :  { %v10235_v1 = vadd.f32 %v3416_v47, %v3123_v46  ;;  %v3125_v54 = vpop.f32.mrf.mxu0  ;;  %4222 = vmatpush1.bf16.msra.mxu0 %v8257_v38 }
 0x137   :  { %v3418_v56 = vpop.f32.mrf.mxu1  ;;  %4223 = vmatprep.subr.bf16.mxu0 %v8378_v43 }
 0x138   :  { %v10237_v58 = vadd.f32 %v3418_v56, %v3125_v54  ;;  %v3129_v59 = vpop.f32.mrf.mxu0  ;;  %3694 = vmatmul.mubr.bf16.gmra.mxu0 %v8744_v61  ;;  %v8750_v56 = vld [vmem:[%s16112_s0 + $0x130] ss:$24 sps:$4 sm:$0xff]  }
 0x139   :  { %v3422_v11 = vpop.f32.mrf.mxu1  ;;  %3987 = vmatmul.mubr.bf16.gmra.mxu1 %v9651_v12  ;;  %8468 = vmatprep.mubr.msk.bf16.mxu0 %vm2956_vm0, %v8745_v52 }
 0x13a   :  { %v10241_v13 = vadd.f32 %v3422_v11, %v3129_v59  ;;  %v3131_v16 = vpop.f32.mrf.mxu0  ;;  %3996 = vmatprep.mubr.bf16.mxu1 %v9659_v14  ;;  %4224 = vmatpush2.bf16.msra.mxu0 %v8377_v55  ;;  %v451_v59 = vld [vmem:[%s16111_s1 + $0x848] sm:$0xff] }
 0x13b   :  { %v3424_v0 = vpop.f32.mrf.mxu1  ;;  %4225 = vmatprep.subr.bf16.mxu0 %v8370_v5 }
 0x13c   :  { %v10250_v12 = vadd.f32 %v3424_v0, %v3131_v16  ;;  %v3133_v6 = vpop.f32.mrf.mxu0 }
 0x13d   :  { %v3426_v14 = vpop.f32.mrf.mxu1 }
 0x13e   :  { %v10258_v32 = vadd.f32 %v3426_v14, %v3133_v6  ;;  %v3135_v36 = vpop.f32.mrf.mxu0  ;;  %4226 = vmatpush2.bf16.msra.mxu0 %v8369_v4  ;;  %v423_v14 = vld [vmem:[%s16111_s1 + $0x768] sm:$0xff] }
 0x13f   :  { %v3428_v38 = vpop.f32.mrf.mxu1 }
 0x140   :  { %v10260_v42 = vadd.f32 %v3428_v38, %v3135_v36  ;;  %v3139_v43 = vpop.f32.mrf.mxu0  ;;  %3704 = vmatmul.mubr.bf16.gmra.mxu0 %v8747_v20  ;;  %v419_v20 = vld [vmem:[%s16111_s1 + $0x748] sm:$0xff] }
 0x141   :  { %v3432_v46 = vpop.f32.mrf.mxu1  ;;  %3997 = vmatmul.mubr.bf16.gmra.mxu1 %v9675_v21  ;;  %8469 = vmatprep.mubr.msk.bf16.mxu0 %vm2956_vm0, %v8748_v27  ;;  %v455_v21 = vld [vmem:[%s16111_s1 + $0x868] sm:$0xff]  ;;  %v8361_v36 = vcombine.low %v419_v20, %v423_v14  ;;  %v8362_v38 = vcombine.high %v419_v20, %v423_v14 }
 0x142   :  { %v10264_v61 = vadd.f32 %v3432_v46, %v3139_v43  ;;  %v3141_v47 = vpop.f32.mrf.mxu0  ;;  %4006 = vmatprep.mubr.bf16.mxu1 %v9683_v24  ;;  %v8751_v24 = vld [vmem:[%s16112_s0 + $0x164] ss:$24 sps:$4 sm:$0xff]   ;;  %v8393_v16 = vcombine.low %v451_v59, %v455_v21  ;;  %v8394_v19 = vcombine.high %v451_v59, %v455_v21  ;;  %v8754_v59 = vld [vmem:[%s16112_s0 + $0x194] ss:$24 sps:$4 sm:$0xff]  }
 0x143   :  { %v3434_v52 = vpop.f32.mrf.mxu1  ;;  %4227 = vmatprep.subr.bf16.mxu0 %v8362_v38  ;;  %v415_v20 = vld [vmem:[%s16111_s1 + $0x728] sm:$0xff] }
 0x144   :  { %v10267_v54 = vadd.f32 %v3434_v52, %v3141_v47  ;;  %v3143_v55 = vpop.f32.mrf.mxu0  ;;  %4512 = vmatprep.subr.bf16.mxu1 %v8394_v19  ;;  %4228 = vmatpush2.bf16.msra.mxu0 %v8361_v36  ;;  %v8756_v38 = vld [vmem:[%s16112_s0 + $0x190] ss:$24 sps:$4 sm:$0xff]  }
 0x145   :  { %v3436_v11 = vpop.f32.mrf.mxu1  ;;  %4513 = vmatpush1.bf16.msra.mxu1 %v8393_v16 }
 0x146   :  { %v10281_v10 = vadd.f32 %v3436_v11, %v3143_v55  ;;  %v3145_v0 = vpop.f32.mrf.mxu0 }
 0x147   :  { %v3438_v4 = vpop.f32.mrf.mxu1 }
 0x148   :  { %v10283_v5 = vadd.f32 %v3438_v4, %v3145_v0  ;;  %v3149_v6 = vpop.f32.mrf.mxu0  ;;  %3714 = vmatmul.mubr.bf16.gmra.mxu0 %v8750_v56  ;;  %v8753_v56 = vld [vmem:[%s16112_s0 + $0x160] ss:$24 sps:$4 sm:$0xff]  }
 0x149   :  { %v3442_v27 = vpop.f32.mrf.mxu1  ;;  %4007 = vmatmul.mubr.bf16.gmra.mxu1 %v9699_v29  ;;  %8470 = vmatprep.mubr.msk.bf16.mxu0 %vm2956_vm0, %v8751_v24 }
 0x14a   :  { %v10293_v43 = vadd.f32 %v3442_v27, %v3149_v6  ;;  %v3151_v46 = vpop.f32.mrf.mxu0  ;;  %4016 = vmatprep.mubr.bf16.mxu1 %v9707_v33  ;;  %v411_v6 = vld [vmem:[%s16111_s1 + $0x708] sm:$0xff] }
 0x14b   :  { %v3444_v47 = vpop.f32.mrf.mxu1  ;;  %v8354_v27 = vcombine.high %v411_v6, %v415_v20 }
 0x14c   :  { %v10296_v52 = vadd.f32 %v3444_v47, %v3151_v46  ;;  %v3153_v55 = vpop.f32.mrf.mxu0  ;;  %v8353_v46 = vcombine.low %v411_v6, %v415_v20  ;;  %v443_v20 = vld [vmem:[%s16111_s1 + $0x808] sm:$0xff] }
 0x14d   :  { %v3446_v29 = vpop.f32.mrf.mxu1  ;;  %4229 = vmatprep.subr.bf16.mxu0 %v8354_v27 }
 0x14e   :  { %v10304_v21 = vadd.f32 %v3446_v29, %v3153_v55  ;;  %v3155_v11 = vpop.f32.mrf.mxu0  ;;  %4230 = vmatpush2.bf16.msra.mxu0 %v8353_v46  ;;  %v403_v29 = vld [vmem:[%s16111_s1 + $0x6c8] sm:$0xff] }
 0x14f   :  { %v3448_v24 = vpop.f32.mrf.mxu1 }
 0x150   :  { %v10306_v33 = vadd.f32 %v3448_v24, %v3155_v11  ;;  %v3159_v16 = vpop.f32.mrf.mxu0  ;;  %3724 = vmatmul.mubr.bf16.gmra.mxu0 %v8753_v56 }
 0x151   :  { %v3452_v19 = vpop.f32.mrf.mxu1  ;;  %4017 = vmatmul.mubr.bf16.gmra.mxu1 %v9723_v39  ;;  %8471 = vmatprep.mubr.msk.bf16.mxu0 %vm2956_vm0, %v8754_v59  ;;  %v407_v59 = vld [vmem:[%s16111_s1 + $0x6e8] sm:$0xff] }
 0x152   :  { %v10310_v0 = vadd.f32 %v3452_v19, %v3159_v16  ;;  %v3161_v4 = vpop.f32.mrf.mxu0  ;;  %4026 = vmatprep.mubr.bf16.mxu1 %v9731_v41  ;;  %v8757_v41 = vld [vmem:[%s16112_s0 + $0x1c4] ss:$24 sps:$4 sm:$0xff]   ;;  %v8346_v24 = vcombine.high %v403_v29, %v407_v59 }
 0x153   :  { %v3454_v14 = vpop.f32.mrf.mxu1 }
 0x154   :  { %v10319_v36 = vadd.f32 %v3454_v14, %v3161_v4  ;;  %v3163_v39 = vpop.f32.mrf.mxu0  ;;  %v8345_v4 = vcombine.low %v403_v29, %v407_v59  ;;  %v447_v14 = vld [vmem:[%s16111_s1 + $0x828] sm:$0xff]  ;;  %4231 = vmatprep.subr.bf16.mxu0 %v8346_v24 }
 0x155   :  { %v3456_v47 = vpop.f32.mrf.mxu1  ;;  %v8386_v46 = vcombine.high %v443_v20, %v447_v14 }
 0x156   :  { %v10327_v55 = vadd.f32 %v3456_v47, %v3163_v39  ;;  %v3165_v56 = vpop.f32.mrf.mxu0  ;;  %v399_v47 = vld [vmem:[%s16111_s1 + $0x6a8] sm:$0xff]  ;;  %4232 = vmatpush2.bf16.msra.mxu0 %v8345_v4 }
 0x157   :  { %v3458_v11 = vpop.f32.mrf.mxu1  ;;  %4514 = vmatprep.subr.bf16.mxu1 %v8386_v46 }
 0x158   :  { %v10335_v16 = vadd.f32 %v3458_v11, %v3165_v56  ;;  %v3169_v19 = vpop.f32.mrf.mxu0  ;;  %3734 = vmatmul.mubr.bf16.gmra.mxu0 %v8756_v38  ;;  %v8385_v38 = vcombine.low %v443_v20, %v447_v14  ;;  %v387_v20 = vld [vmem:[%s16111_s1 + $0x648] sm:$0xff] }
 0x159   :  { %v3462_v6 = vpop.f32.mrf.mxu1  ;;  %4027 = vmatmul.mubr.bf16.gmra.mxu1 %v9753_v51  ;;  %8472 = vmatprep.mubr.msk.bf16.mxu0 %vm2956_vm0, %v8757_v41  ;;  %v395_v51 = vld [vmem:[%s16111_s1 + $0x688] sm:$0xff] }
 0x15a   :  { %v10345_v27 = vadd.f32 %v3462_v6, %v3169_v19  ;;  %v3171_v39 = vpop.f32.mrf.mxu0  ;;  %4036 = vmatprep.mubr.bf16.mxu1 %v9761_v53  ;;  %v8338_v56 = vcombine.high %v395_v51, %v399_v47  ;;  %v8759_v53 = vld [vmem:[%s16112_s0 + $0x1c0] ss:$24 sps:$4 sm:$0xff]   ;;  %v8337_v11 = vcombine.low %v395_v51, %v399_v47  ;;  %v8760_v19 = vld [vmem:[%s16112_s0 + $0x1f4] ss:$24 sps:$4 sm:$0xff]   ;;  %4515 = vmatpush1.bf16.msra.mxu1 %v8385_v38 }
 0x15b   :  { %v3464_v41 = vpop.f32.mrf.mxu1  ;;  %v391_v14 = vld [vmem:[%s16111_s1 + $0x668] sm:$0xff] }
 0x15c   :  { %v10354_v29 = vadd.f32 %v3464_v41, %v3171_v39  ;;  %v3173_v59 = vpop.f32.mrf.mxu0  ;;  %4233 = vmatprep.subr.bf16.mxu0 %v8338_v56  ;;  %v8330_v46 = vcombine.high %v387_v20, %v391_v14  ;;  %v515_v51 = vld [vmem:[%s16111_s1 + $0xa48] sm:$0xff]  ;;  %v8329_v56 = vcombine.low %v387_v20, %v391_v14 }
 0x15d   :  { %v3466_v24 = vpop.f32.mrf.mxu1  ;;  %4234 = vmatpush2.bf16.msra.mxu0 %v8337_v11  ;;  %v519_v38 = vld [vmem:[%s16111_s1 + $0xa68] sm:$0xff] }
 0x15e   :  { %16330 = vst [vmem:[#allocation2_spill] sm:$0xff] %v10354_v29  ;;  %v10362_v6 = vadd.f32 %v3466_v24, %v3173_v59  ;;  %v3175_v4 = vpop.f32.mrf.mxu0  ;;  %v8457_v59 = vcombine.low %v515_v51, %v519_v38  ;;  %v8458_v24 = vcombine.high %v515_v51, %v519_v38  ;;  %4235 = vmatprep.subr.bf16.mxu0 %v8330_v46 }
 0x15f   :  { %v3468_v39 = vpop.f32.mrf.mxu1 }
 0x160   :  { %16331 = vst [vmem:[#allocation3_spill] sm:$0xff] %v10362_v6  ;;  %v10376_v47 = vadd.f32 %v3468_v39, %v3175_v4  ;;  %v3179_v41 = vpop.f32.mrf.mxu0  ;;  %3744 = vmatmul.mubr.bf16.gmra.mxu0 %v8759_v53  ;;  %v379_v4 = vld [vmem:[%s16111_s1 + $0x608] sm:$0xff]  ;;  %4528 = vmatprep.subr.bf16.mxu1 %v8458_v24 }
 0x161   :  { %v3472_v6 = vpop.f32.mrf.mxu1  ;;  %4037 = vmatmul.mubr.bf16.gmra.mxu1 %v9783_v63  ;;  %8473 = vmatprep.mubr.msk.bf16.mxu0 %vm2956_vm0, %v8760_v19  ;;  %v383_v53 = vld [vmem:[%s16111_s1 + $0x628] sm:$0xff] }
 0x162   :  { %v10380_v11 = vadd.f32 %v3472_v6, %v3179_v41  ;;  %v3181_v29 = vpop.f32.mrf.mxu0  ;;  %4046 = vmatprep.mubr.bf16.mxu1 %v9791_v3  ;;  %v507_v63 = vld [vmem:[%s16111_s1 + $0xa08] sm:$0xff]  ;;  %4236 = vmatpush2.bf16.msra.mxu0 %v8329_v56  ;;  %v8322_v19 = vcombine.high %v379_v4, %v383_v53  ;;  %v8321_v46 = vcombine.low %v379_v4, %v383_v53  ;;  %v8763_v56 = vld [vmem:[%s16112_s0 + $0x224] ss:$24 sps:$4 sm:$0xff]  }
 0x163   :  { %v3474_v20 = vpop.f32.mrf.mxu1  ;;  %v511_v3 = vld [vmem:[%s16111_s1 + $0xa28] sm:$0xff]  ;;  %4529 = vmatpush2.bf16.msra.mxu1 %v8457_v59 }
 0x164   :  { %16332 = vst [vmem:[#allocation4_spill] sm:$0xff] %v10380_v11  ;;  %v10395_v6 = vadd.f32 %v3474_v20, %v3181_v29  ;;  %v3183_v14 = vpop.f32.mrf.mxu0  ;;  %v8762_v39 = vld [vmem:[%s16112_s0 + $0x1f0] ss:$24 sps:$4 sm:$0xff]   ;;  %v8449_v51 = vcombine.low %v507_v63, %v511_v3  ;;  %v8450_v38 = vcombine.high %v507_v63, %v511_v3  ;;  %4237 = vmatprep.subr.bf16.mxu0 %v8322_v19 }
 0x165   :  { %v3476_v41 = vpop.f32.mrf.mxu1 }
 0x166   :  { %16333 = vst [vmem:[#allocation5_spill] sm:$0xff] %v10395_v6  ;;  %v10403_v24 = vadd.f32 %v3476_v41, %v3183_v14  ;;  %v3185_v11 = vpop.f32.mrf.mxu0  ;;  %4530 = vmatprep.subr.bf16.mxu1 %v8450_v38  ;;  %4238 = vmatpush2.bf16.msra.mxu0 %v8321_v46 }
 0x167   :  { %v3478_v29 = vpop.f32.mrf.mxu1  ;;  %4531 = vmatpush2.bf16.msra.mxu1 %v8449_v51 }
 0x168   :  { %v10405_v20 = vadd.f32 %v3478_v29, %v3185_v11  ;;  %v3189_v6 = vpop.f32.mrf.mxu0  ;;  %3754 = vmatmul.mubr.bf16.gmra.mxu0 %v8762_v39  ;;  %v8765_v11 = vld [vmem:[%s16112_s0 + $0x220] ss:$24 sps:$4 sm:$0xff]  }
 0x169   :  { %v3482_v59 = vpop.f32.mrf.mxu1  ;;  %4047 = vmatmul.mubr.bf16.gmra.mxu1 %v9825_v22  ;;  %8474 = vmatprep.mubr.msk.bf16.mxu0 %vm2956_vm0, %v8763_v56  ;;  %v8766_v22 = vld [vmem:[%s16112_s0 + $0x254] ss:$24 sps:$4 sm:$0xff]  }
 0x16a   :  { %v10409_v4 = vadd.f32 %v3482_v59, %v3189_v6  ;;  %v3191_v53 = vpop.f32.mrf.mxu0  ;;  %4056 = vmatprep.mubr.bf16.mxu1 %v9833_v28 }
 0x16b   :  { %v3484_v63 = vpop.f32.mrf.mxu1 }
 0x16c   :  { %v10412_v19 = vadd.f32 %v3484_v63, %v3191_v53  ;;  %v3193_v3 = vpop.f32.mrf.mxu0  ;;  %v8768_v63 = vld [vmem:[%s16112_s0 + $0x250] ss:$24 sps:$4 sm:$0xff]  }
 0x16d   :  { %v3486_v14 = vpop.f32.mrf.mxu1 }
 0x16e   :  { %v10420_v39 = vadd.f32 %v3486_v14, %v3193_v3  ;;  %v3195_v6 = vpop.f32.mrf.mxu0 }
 0x16f   :  { %v3488_v46 = vpop.f32.mrf.mxu1 }
 0x170   :  { %v10422_v51 = vadd.f32 %v3488_v46, %v3195_v6  ;;  %v3199_v28 = vpop.f32.mrf.mxu0  ;;  %3764 = vmatmul.mubr.bf16.gmra.mxu0 %v8765_v11 }
 0x171   :  { %v3492_v38 = vpop.f32.mrf.mxu1  ;;  %4057 = vmatmul.mubr.bf16.gmra.mxu1 %v9843_v31  ;;  %8475 = vmatprep.mubr.msk.bf16.mxu0 %vm2956_vm0, %v8766_v22  ;;  %v8769_v31 = vld [vmem:[%s16112_s0 + $0x284] ss:$24 sps:$4 sm:$0xff]  }
 0x172   :  { %16334 = vst [vmem:[#allocation6_spill] sm:$0xff] %v10422_v51  ;;  %v10426_v41 = vadd.f32 %v3492_v38, %v3199_v28  ;;  %v3201_v56 = vpop.f32.mrf.mxu0  ;;  %4066 = vmatprep.mubr.bf16.mxu1 %v9851_v34  ;;  %v8814_v28 = vld [vmem:[%s16112_s0 + $0x240] ss:$24 sps:$4 sm:$0xff]  }
 0x173   :  { %v3494_v29 = vpop.f32.mrf.mxu1 }
 0x174   :  { %16335 = vst [vmem:[#allocation7_spill] sm:$0xff] %v10426_v41  ;;  %v10429_v59 = vadd.f32 %v3494_v29, %v3201_v56  ;;  %v3203_v53 = vpop.f32.mrf.mxu0  ;;  %v8815_v29 = vld [vmem:[%s16112_s0 + $0x274] ss:$24 sps:$4 sm:$0xff]  }
 0x175   :  { %v3496_v3 = vpop.f32.mrf.mxu1 }
 0x176   :  { %16336 = vst [vmem:[#allocation8_spill] sm:$0xff] %v10429_v59  ;;  %v10437_v11 = vadd.f32 %v3496_v3, %v3203_v53  ;;  %v3205_v14 = vpop.f32.mrf.mxu0  ;;  %v8822_v59 = vld [vmem:[%s16112_s0 + $0x300] ss:$24 sps:$4 sm:$0xff]  }
 0x177   :  { %v3498_v22 = vpop.f32.mrf.mxu1 }
 0x178   :  { %16337 = vst [vmem:[#allocation9_spill] sm:$0xff] %v10437_v11  ;;  %v10439_v6 = vadd.f32 %v3498_v22, %v3205_v14  ;;  %v3209_v34 = vpop.f32.mrf.mxu0  ;;  %3774 = vmatmul.mubr.bf16.gmra.mxu0 %v8768_v63  ;;  %v8771_v14 = vld [vmem:[%s16112_s0 + $0x280] ss:$24 sps:$4 sm:$0xff]  }
 0x179   :  { %v3502_v46 = vpop.f32.mrf.mxu1  ;;  %4067 = vmatmul.mubr.bf16.gmra.mxu1 %v8814_v28  ;;  %8476 = vmatprep.mubr.msk.bf16.mxu0 %vm2956_vm0, %v8769_v31  ;;  %v8772_v31 = vld [vmem:[%s16112_s0 + $0x2b4] ss:$24 sps:$4 sm:$0xff]  }
 0x17a   :  { %16338 = vst [vmem:[#allocation10_spill] sm:$0xff] %v10439_v6  ;;  %v10445_v38 = vadd.f32 %v3502_v46, %v3209_v34  ;;  %v3211_v56 = vpop.f32.mrf.mxu0  ;;  %4076 = vmatprep.mubr.bf16.mxu1 %v8815_v29 }
 0x17b   :  { %v3504_v53 = vpop.f32.mrf.mxu1 }
 0x17c   :  { %16339 = vst [vmem:[#allocation11_spill] sm:$0xff] %v10445_v38  ;;  %v10450_v3 = vadd.f32 %v3504_v53, %v3211_v56  ;;  %v3213_v63 = vpop.f32.mrf.mxu0  ;;  %v8816_v53 = vld [vmem:[%s16112_s0 + $0x270] ss:$24 sps:$4 sm:$0xff]  }
 0x17d   :  { %v3506_v22 = vpop.f32.mrf.mxu1 }
 0x17e   :  { %16340 = vst [vmem:[#allocation12_spill] sm:$0xff] %v10450_v3  ;;  %v10458_v34 = vadd.f32 %v3506_v22, %v3213_v63  ;;  %v3215_v46 = vpop.f32.mrf.mxu0  ;;  %v8817_v63 = vld [vmem:[%s16112_s0 + $0x2a4] ss:$24 sps:$4 sm:$0xff]  }
 0x17f   :  { %v3508_v28 = vpop.f32.mrf.mxu1 }
 0x180   :  { %16341 = vst [vmem:[#allocation13_spill] sm:$0xff] %v10458_v34  ;;  %v10460_v38 = vadd.f32 %v3508_v28, %v3215_v46  ;;  %v3219_v29 = vpop.f32.mrf.mxu0  ;;  %3784 = vmatmul.mubr.bf16.gmra.mxu0 %v8771_v14  ;;  %v8774_v28 = vld [vmem:[%s16112_s0 + $0x2b0] ss:$24 sps:$4 sm:$0xff]  }
 0x181   :  { %v3512_v56 = vpop.f32.mrf.mxu1  ;;  %4077 = vmatmul.mubr.bf16.gmra.mxu1 %v8816_v53  ;;  %8477 = vmatprep.mubr.msk.bf16.mxu0 %vm2956_vm0, %v8772_v31  ;;  %v8775_v31 = vld [vmem:[%s16112_s0 + $0x2e4] ss:$24 sps:$4 sm:$0xff]  }
 0x182   :  { %16342 = vst [vmem:[#allocation14_spill] sm:$0xff] %v10460_v38  ;;  %v10466_v3 = vadd.f32 %v3512_v56, %v3219_v29  ;;  %v3221_v6 = vpop.f32.mrf.mxu0  ;;  %4086 = vmatprep.mubr.bf16.mxu1 %v8817_v63 }
 0x183   :  { %v3514_v22 = vpop.f32.mrf.mxu1 }
 0x184   :  { %16343 = vst [vmem:[#allocation15_spill] sm:$0xff] %v10466_v3  ;;  %v10471_v46 = vadd.f32 %v3514_v22, %v3221_v6  ;;  %v3223_v14 = vpop.f32.mrf.mxu0  ;;  %v8818_v22 = vld [vmem:[%s16112_s0 + $0x2a0] ss:$24 sps:$4 sm:$0xff]  }
 0x185   :  { %v3516_v38 = vpop.f32.mrf.mxu1 }
 0x186   :  { %16344 = vst [vmem:[#allocation16_spill] sm:$0xff] %v10471_v46  ;;  %v10479_v29 = vadd.f32 %v3516_v38, %v3223_v14  ;;  %v3225_v56 = vpop.f32.mrf.mxu0  ;;  %v8819_v38 = vld [vmem:[%s16112_s0 + $0x2d4] ss:$24 sps:$4 sm:$0xff]  }
 0x187   :  { %v3518_v53 = vpop.f32.mrf.mxu1 }
 0x188   :  { %16345 = vst [vmem:[#allocation17_spill] sm:$0xff] %v10479_v29  ;;  %v10481_v3 = vadd.f32 %v3518_v53, %v3225_v56  ;;  %v3229_v63 = vpop.f32.mrf.mxu0  ;;  %3794 = vmatmul.mubr.bf16.gmra.mxu0 %v8774_v28  ;;  %v8777_v53 = vld [vmem:[%s16112_s0 + $0x2e0] ss:$24 sps:$4 sm:$0xff]  }
 0x189   :  { %v3522_v6 = vpop.f32.mrf.mxu1  ;;  %4087 = vmatmul.mubr.bf16.gmra.mxu1 %v8818_v22  ;;  %8478 = vmatprep.mubr.msk.bf16.mxu0 %vm2956_vm0, %v8775_v31  ;;  %v8778_v31 = vld [vmem:[%s16112_s0 + $0x314] ss:$24 sps:$4 sm:$0xff]  }
 0x18a   :  { %16346 = vst [vmem:[#allocation18_spill] sm:$0xff] %v10481_v3  ;;  %v10487_v46 = vadd.f32 %v3522_v6, %v3229_v63  ;;  %v3231_v34 = vpop.f32.mrf.mxu0  ;;  %4096 = vmatprep.mubr.bf16.mxu1 %v8819_v38 }
 0x18b   :  { %v3524_v14 = vpop.f32.mrf.mxu1 }
 0x18c   :  { %16347 = vst [vmem:[#allocation19_spill] sm:$0xff] %v10487_v46  ;;  %v10492_v56 = vadd.f32 %v3524_v14, %v3231_v34  ;;  %v3233_v28 = vpop.f32.mrf.mxu0  ;;  %v8820_v14 = vld [vmem:[%s16112_s0 + $0x2d0] ss:$24 sps:$4 sm:$0xff]  }
 0x18d   :  { %v3526_v3 = vpop.f32.mrf.mxu1 }
 0x18e   :  { %16348 = vst [vmem:[#allocation20_spill] sm:$0xff] %v10492_v56  ;;  %v10500_v63 = vadd.f32 %v3526_v3, %v3233_v28  ;;  %v3235_v6 = vpop.f32.mrf.mxu0  ;;  %v8821_v3 = vld [vmem:[%s16112_s0 + $0x304] ss:$24 sps:$4 sm:$0xff]  }
 0x18f   :  { %v3528_v22 = vpop.f32.mrf.mxu1 }
 0x190   :  { %16349 = vst [vmem:[#allocation21_spill] sm:$0xff] %v10500_v63  ;;  %v10502_v46 = vadd.f32 %v3528_v22, %v3235_v6  ;;  %v3239_v38 = vpop.f32.mrf.mxu0  ;;  %3804 = vmatmul.mubr.bf16.gmra.mxu0 %v8777_v53  ;;  %v8780_v22 = vld [vmem:[%s16112_s0 + $0x310] ss:$24 sps:$4 sm:$0xff]  }
 0x191   :  { %v3532_v34 = vpop.f32.mrf.mxu1  ;;  %4097 = vmatmul.mubr.bf16.gmra.mxu1 %v8820_v14  ;;  %8479 = vmatprep.mubr.msk.bf16.mxu0 %vm2956_vm0, %v8778_v31  ;;  %v8781_v31 = vld [vmem:[%s16112_s0 + $0x344] ss:$24 sps:$4 sm:$0xff]   ;;  %v10545_v63 = vld [vmem:[%s16111_s1 + $0x5f0] sm:$0xff] }
 0x192   :  { %16350 = vst [vmem:[#allocation22_spill] sm:$0xff] %v10502_v46  ;;  %v10508_v56 = vadd.f32 %v3532_v34, %v3239_v38  ;;  %v3241_v29 = vpop.f32.mrf.mxu0  ;;  %4106 = vmatprep.mubr.bf16.mxu1 %v8821_v3  ;;  %v10524_v38 = vld [vmem:[%s16111_s1 + $0x1d0] sm:$0xff] }
 0x193   :  { %v3534_v28 = vpop.f32.mrf.mxu1 }
 0x194   :  { %16351 = vst [vmem:[#allocation23_spill] sm:$0xff] %v10508_v56  ;;  %v10513_v6 = vadd.f32 %v3534_v28, %v3241_v29  ;;  %v3243_v53 = vpop.f32.mrf.mxu0  ;;  %v10529_v29 = vld [vmem:[%s16111_s1 + $0x1f0] sm:$0xff] }
 0x195   :  { %v3536_v46 = vpop.f32.mrf.mxu1  ;;  %v8188_v28 = vcombine.high %v10524_v38, %v10529_v29  ;;  %v10540_v56 = vld [vmem:[%s16111_s1 + $0x5d0] sm:$0xff] }
 0x196   :  { %16352 = vst [vmem:[#allocation24_spill] sm:$0xff] %v10513_v6  ;;  %v10531_v34 = vadd.f32 %v3536_v46, %v3243_v53  ;;  %v3245_v14 = vpop.f32.mrf.mxu0 }
 0x197   :  { %v3538_v6 = vpop.f32.mrf.mxu1  ;;  %4793 = vmatprep.subr.bf16.mxu0 %v8188_v28 }
 0x198   :  { %16353 = vst [vmem:[#allocation25_spill] sm:$0xff] %v10531_v34  ;;  %v10547_v46 = vadd.f32 %v3538_v6, %v3245_v14  ;;  %v3249_v53 = vpop.f32.mrf.mxu0  ;;  %3814 = vmatmul.mubr.bf16.gmra.mxu0 %v8780_v22  ;;  %v8316_v34 = vcombine.high %v10540_v56, %v10545_v63  ;;  %v8823_v22 = vld [vmem:[%s16112_s0 + $0x334] ss:$24 sps:$4 sm:$0xff]  }
 0x199   :  { %v3542_v11 = vpop.f32.mrf.mxu1  ;;  %4107 = vmatmul.mubr.bf16.gmra.mxu1 %v8822_v59  ;;  %8480 = vmatprep.mubr.msk.bf16.mxu0 %vm2956_vm0, %v8781_v31 }
 0x19a   :  { %16354 = vst [vmem:[#allocation26_spill] sm:$0xff] %v10547_v46  ;;  %v10557_v41 = vadd.f32 %v3542_v11, %v3249_v53  ;;  %v3251_v6 = vpop.f32.mrf.mxu0  ;;  %4116 = vmatprep.mubr.bf16.mxu1 %v8823_v22  ;;  %5086 = vmatprep.subr.bf16.mxu1 %v8316_v34  ;;  %v8783_v46 = vld [vmem:[%s16112_s0 + $0x340] ss:$24 sps:$4 sm:$0xff]   ;;  %v8784_v11 = vld [vmem:[%s16112_s0 + $0x374] ss:$24 sps:$4 sm:$0xff]  }
 0x19b   :  { %v3544_v14 = vpop.f32.mrf.mxu1  ;;  %v8824_v22 = vld [vmem:[%s16112_s0 + $0x330] ss:$24 sps:$4 sm:$0xff]  }
 0x19c   :  { %16355 = vst [vmem:[#allocation27_spill] sm:$0xff] %v10557_v41  ;;  %v10562_v28 = vadd.f32 %v3544_v14, %v3251_v6  ;;  %v3253_v3 = vpop.f32.mrf.mxu0 }
 0x19d   :  { %v3546_v59 = vpop.f32.mrf.mxu1 }
 0x19e   :  { %16356 = vst [vmem:[#allocation28_spill] sm:$0xff] %v10562_v28  ;;  %v10570_v31 = vadd.f32 %v3546_v59, %v3253_v3  ;;  %v3255_v53 = vpop.f32.mrf.mxu0  ;;  %v8825_v3 = vld [vmem:[%s16112_s0 + $0x364] ss:$24 sps:$4 sm:$0xff]  }
 0x19f   :  { %v3548_v41 = vpop.f32.mrf.mxu1 }
 0x1a0   :  { %16357 = vst [vmem:[#allocation29_spill] sm:$0xff] %v10570_v31  ;;  %v10572_v51 = vadd.f32 %v3548_v41, %v3255_v53  ;;  %v3259_v34 = vpop.f32.mrf.mxu0  ;;  %3824 = vmatmul.mubr.bf16.gmra.mxu0 %v8783_v46  ;;  %v8786_v53 = vld [vmem:[%s16112_s0 + $0x370] ss:$24 sps:$4 sm:$0xff]  }
 0x1a1   :  { %v3552_v6 = vpop.f32.mrf.mxu1  ;;  %4117 = vmatmul.mubr.bf16.gmra.mxu1 %v8824_v22  ;;  %8481 = vmatprep.mubr.msk.bf16.mxu0 %vm2956_vm0, %v8784_v11  ;;  %v8787_v11 = vld [vmem:[%s16112_s0 + $0x3a4] ss:$24 sps:$4 sm:$0xff]  }
 0x1a2   :  { %16358 = vst [vmem:[#allocation30_spill] sm:$0xff] %v10572_v51  ;;  %v10578_v14 = vadd.f32 %v3552_v6, %v3259_v34  ;;  %v3261_v28 = vpop.f32.mrf.mxu0  ;;  %4126 = vmatprep.mubr.bf16.mxu1 %v8825_v3 }
 0x1a3   :  { %v3554_v41 = vpop.f32.mrf.mxu1 }
 0x1a4   :  { %16359 = vst [vmem:[#allocation31_spill] sm:$0xff] %v10578_v14  ;;  %v10583_v59 = vadd.f32 %v3554_v41, %v3261_v28  ;;  %v3263_v46 = vpop.f32.mrf.mxu0  ;;  %v8826_v41 = vld [vmem:[%s16112_s0 + $0x360] ss:$24 sps:$4 sm:$0xff]  }
 0x1a5   :  { %v3556_v51 = vpop.f32.mrf.mxu1 }
 0x1a6   :  { %16360 = vst [vmem:[#allocation32_spill] sm:$0xff] %v10583_v59  ;;  %v10591_v34 = vadd.f32 %v3556_v51, %v3263_v46  ;;  %v3265_v6 = vpop.f32.mrf.mxu0  ;;  %v8827_v51 = vld [vmem:[%s16112_s0 + $0x394] ss:$24 sps:$4 sm:$0xff]  }
 0x1a7   :  { %v3558_v22 = vpop.f32.mrf.mxu1 }
 0x1a8   :  { %16361 = vst [vmem:[#allocation33_spill] sm:$0xff] %v10591_v34  ;;  %v10593_v14 = vadd.f32 %v3558_v22, %v3265_v6  ;;  %v3269_v3 = vpop.f32.mrf.mxu0  ;;  %3834 = vmatmul.mubr.bf16.gmra.mxu0 %v8786_v53  ;;  %v8789_v22 = vld [vmem:[%s16112_s0 + $0x3a0] ss:$24 sps:$4 sm:$0xff]  }
 0x1a9   :  { %v3562_v28 = vpop.f32.mrf.mxu1  ;;  %4127 = vmatmul.mubr.bf16.gmra.mxu1 %v8826_v41  ;;  %8482 = vmatprep.mubr.msk.bf16.mxu0 %vm2956_vm0, %v8787_v11  ;;  %v8790_v11 = vld [vmem:[%s16112_s0 + $0x3d4] ss:$24 sps:$4 sm:$0xff]  }
 0x1aa   :  { %16362 = vst [vmem:[#allocation34_spill] sm:$0xff] %v10593_v14  ;;  %v10599_v59 = vadd.f32 %v3562_v28, %v3269_v3  ;;  %v3271_v31 = vpop.f32.mrf.mxu0  ;;  %4136 = vmatprep.mubr.bf16.mxu1 %v8827_v51 }
 0x1ab   :  { %v3564_v46 = vpop.f32.mrf.mxu1 }
 0x1ac   :  { %16363 = vst [vmem:[#allocation35_spill] sm:$0xff] %v10599_v59  ;;  %v10604_v6 = vadd.f32 %v3564_v46, %v3271_v31  ;;  %v3273_v53 = vpop.f32.mrf.mxu0  ;;  %v8828_v46 = vld [vmem:[%s16112_s0 + $0x390] ss:$24 sps:$4 sm:$0xff]  }
 0x1ad   :  { %v3566_v14 = vpop.f32.mrf.mxu1 }
 0x1ae   :  { %16364 = vst [vmem:[#allocation36_spill] sm:$0xff] %v10604_v6  ;;  %v10612_v3 = vadd.f32 %v3566_v14, %v3273_v53  ;;  %v3275_v28 = vpop.f32.mrf.mxu0  ;;  %v8829_v14 = vld [vmem:[%s16112_s0 + $0x3c4] ss:$24 sps:$4 sm:$0xff]  }
 0x1af   :  { %v3568_v41 = vpop.f32.mrf.mxu1 }
 0x1b0   :  { %16365 = vst [vmem:[#allocation37_spill] sm:$0xff] %v10612_v3  ;;  %v10614_v59 = vadd.f32 %v3568_v41, %v3275_v28  ;;  %v3279_v51 = vpop.f32.mrf.mxu0  ;;  %3844 = vmatmul.mubr.bf16.gmra.mxu0 %v8789_v22  ;;  %v8792_v41 = vld [vmem:[%s16112_s0 + $0x3d0] ss:$24 sps:$4 sm:$0xff]  }
 0x1b1   :  { %v3572_v31 = vpop.f32.mrf.mxu1  ;;  %4137 = vmatmul.mubr.bf16.gmra.mxu1 %v8828_v46  ;;  %8483 = vmatprep.mubr.msk.bf16.mxu0 %vm2956_vm0, %v8790_v11  ;;  %v8793_v11 = vld [vmem:[%s16112_s0 + $0x404] ss:$24 sps:$4 sm:$0xff]  }
 0x1b2   :  { %16366 = vst [vmem:[#allocation38_spill] sm:$0xff] %v10614_v59  ;;  %v10620_v6 = vadd.f32 %v3572_v31, %v3279_v51  ;;  %v3281_v34 = vpop.f32.mrf.mxu0  ;;  %4146 = vmatprep.mubr.bf16.mxu1 %v8829_v14 }
 0x1b3   :  { %v3574_v53 = vpop.f32.mrf.mxu1 }
 0x1b4   :  { %16367 = vst [vmem:[#allocation39_spill] sm:$0xff] %v10620_v6  ;;  %v10625_v28 = vadd.f32 %v3574_v53, %v3281_v34  ;;  %v3283_v22 = vpop.f32.mrf.mxu0  ;;  %v8830_v53 = vld [vmem:[%s16112_s0 + $0x3c0] ss:$24 sps:$4 sm:$0xff]  }
 0x1b5   :  { %v3576_v59 = vpop.f32.mrf.mxu1 }
 0x1b6   :  { %16368 = vst [vmem:[#allocation40_spill] sm:$0xff] %v10625_v28  ;;  %v10633_v51 = vadd.f32 %v3576_v59, %v3283_v22  ;;  %v3285_v31 = vpop.f32.mrf.mxu0  ;;  %v8831_v59 = vld [vmem:[%s16112_s0 + $0x3f4] ss:$24 sps:$4 sm:$0xff]  }
 0x1b7   :  { %v3578_v46 = vpop.f32.mrf.mxu1 }
 0x1b8   :  { %16369 = vst [vmem:[#allocation41_spill] sm:$0xff] %v10633_v51  ;;  %v10635_v6 = vadd.f32 %v3578_v46, %v3285_v31  ;;  %v3289_v14 = vpop.f32.mrf.mxu0  ;;  %3854 = vmatmul.mubr.bf16.gmra.mxu0 %v8792_v41  ;;  %v8795_v46 = vld [vmem:[%s16112_s0 + $0x400] ss:$24 sps:$4 sm:$0xff]  }
 0x1b9   :  { %v3582_v34 = vpop.f32.mrf.mxu1  ;;  %4147 = vmatmul.mubr.bf16.gmra.mxu1 %v8830_v53  ;;  %8484 = vmatprep.mubr.msk.bf16.mxu0 %vm2956_vm0, %v8793_v11  ;;  %v8796_v11 = vld [vmem:[%s16112_s0 + $0x434] ss:$24 sps:$4 sm:$0xff]  }
 0x1ba   :  { %16370 = vst [vmem:[#allocation42_spill] sm:$0xff] %v10635_v6  ;;  %v10641_v28 = vadd.f32 %v3582_v34, %v3289_v14  ;;  %v3291_v3 = vpop.f32.mrf.mxu0  ;;  %4156 = vmatprep.mubr.bf16.mxu1 %v8831_v59 }
 0x1bb   :  { %v3584_v22 = vpop.f32.mrf.mxu1 }
 0x1bc   :  { %16371 = vst [vmem:[#allocation43_spill] sm:$0xff] %v10641_v28  ;;  %v10646_v31 = vadd.f32 %v3584_v22, %v3291_v3  ;;  %v3293_v41 = vpop.f32.mrf.mxu0  ;;  %v8832_v22 = vld [vmem:[%s16112_s0 + $0x3f0] ss:$24 sps:$4 sm:$0xff]  }
 0x1bd   :  { %v3586_v6 = vpop.f32.mrf.mxu1 }
 0x1be   :  { %16372 = vst [vmem:[#allocation44_spill] sm:$0xff] %v10646_v31  ;;  %v10654_v14 = vadd.f32 %v3586_v6, %v3293_v41  ;;  %v3295_v34 = vpop.f32.mrf.mxu0  ;;  %v8833_v6 = vld [vmem:[%s16112_s0 + $0x424] ss:$24 sps:$4 sm:$0xff]  }
 0x1bf   :  { %v3588_v53 = vpop.f32.mrf.mxu1 }
 0x1c0   :  { %16373 = vst [vmem:[#allocation45_spill] sm:$0xff] %v10654_v14  ;;  %v10656_v28 = vadd.f32 %v3588_v53, %v3295_v34  ;;  %v3299_v59 = vpop.f32.mrf.mxu0  ;;  %3864 = vmatmul.mubr.bf16.gmra.mxu0 %v8795_v46  ;;  %v8798_v53 = vld [vmem:[%s16112_s0 + $0x430] ss:$24 sps:$4 sm:$0xff]  }
 0x1c1   :  { %v3592_v3 = vpop.f32.mrf.mxu1  ;;  %4157 = vmatmul.mubr.bf16.gmra.mxu1 %v8832_v22  ;;  %8485 = vmatprep.mubr.msk.bf16.mxu0 %vm2956_vm0, %v8796_v11  ;;  %v8799_v11 = vld [vmem:[%s16112_s0 + $0x464] ss:$24 sps:$4 sm:$0xff]  }
 0x1c2   :  { %16374 = vst [vmem:[#allocation46_spill] sm:$0xff] %v10656_v28  ;;  %v10662_v31 = vadd.f32 %v3592_v3, %v3299_v59  ;;  %v3301_v51 = vpop.f32.mrf.mxu0  ;;  %4166 = vmatprep.mubr.bf16.mxu1 %v8833_v6 }
 0x1c3   :  { %v3594_v41 = vpop.f32.mrf.mxu1 }
 0x1c4   :  { %16375 = vst [vmem:[#allocation47_spill] sm:$0xff] %v10662_v31  ;;  %v10667_v34 = vadd.f32 %v3594_v41, %v3301_v51  ;;  %v3303_v46 = vpop.f32.mrf.mxu0  ;;  %v8834_v41 = vld [vmem:[%s16112_s0 + $0x420] ss:$24 sps:$4 sm:$0xff]  }
 0x1c5   :  { %v3596_v28 = vpop.f32.mrf.mxu1 }
 0x1c6   :  { %16376 = vst [vmem:[#allocation48_spill] sm:$0xff] %v10667_v34  ;;  %v10675_v59 = vadd.f32 %v3596_v28, %v3303_v46  ;;  %v3305_v3 = vpop.f32.mrf.mxu0  ;;  %v8835_v28 = vld [vmem:[%s16112_s0 + $0x454] ss:$24 sps:$4 sm:$0xff]  }
 0x1c7   :  { %v3598_v22 = vpop.f32.mrf.mxu1 }
 0x1c8   :  { %16377 = vst [vmem:[#allocation49_spill] sm:$0xff] %v10675_v59  ;;  %v10677_v31 = vadd.f32 %v3598_v22, %v3305_v3  ;;  %v3309_v6 = vpop.f32.mrf.mxu0  ;;  %3874 = vmatmul.mubr.bf16.gmra.mxu0 %v8798_v53  ;;  %v8801_v22 = vld [vmem:[%s16112_s0 + $0x460] ss:$24 sps:$4 sm:$0xff]  }
 0x1c9   :  { %v3602_v51 = vpop.f32.mrf.mxu1  ;;  %4167 = vmatmul.mubr.bf16.gmra.mxu1 %v8834_v41  ;;  %8486 = vmatprep.mubr.msk.bf16.mxu0 %vm2956_vm0, %v8799_v11  ;;  %v8802_v11 = vld [vmem:[%s16112_s0 + $0x494] ss:$24 sps:$4 sm:$0xff]  }
 0x1ca   :  { %16378 = vst [vmem:[#allocation50_spill] sm:$0xff] %v10677_v31  ;;  %v10683_v34 = vadd.f32 %v3602_v51, %v3309_v6  ;;  %v3311_v14 = vpop.f32.mrf.mxu0  ;;  %4176 = vmatprep.mubr.bf16.mxu1 %v8835_v28 }
 0x1cb   :  { %v3604_v46 = vpop.f32.mrf.mxu1 }
 0x1cc   :  { %16379 = vst [vmem:[#allocation51_spill] sm:$0xff] %v10683_v34  ;;  %v10688_v3 = vadd.f32 %v3604_v46, %v3311_v14  ;;  %v3313_v53 = vpop.f32.mrf.mxu0  ;;  %v8836_v46 = vld [vmem:[%s16112_s0 + $0x450] ss:$24 sps:$4 sm:$0xff]  }
 0x1cd   :  { %v3606_v31 = vpop.f32.mrf.mxu1 }
 0x1ce   :  { %16380 = vst [vmem:[#allocation52_spill] sm:$0xff] %v10688_v3  ;;  %v10696_v6 = vadd.f32 %v3606_v31, %v3313_v53  ;;  %v3315_v51 = vpop.f32.mrf.mxu0  ;;  %v8837_v31 = vld [vmem:[%s16112_s0 + $0x484] ss:$24 sps:$4 sm:$0xff]  }
 0x1cf   :  { %v3608_v41 = vpop.f32.mrf.mxu1 }
 0x1d0   :  { %16381 = vst [vmem:[#allocation53_spill] sm:$0xff] %v10696_v6  ;;  %v10698_v34 = vadd.f32 %v3608_v41, %v3315_v51  ;;  %v3319_v28 = vpop.f32.mrf.mxu0  ;;  %3884 = vmatmul.mubr.bf16.gmra.mxu0 %v8801_v22  ;;  %v8804_v41 = vld [vmem:[%s16112_s0 + $0x490] ss:$24 sps:$4 sm:$0xff]  }
 0x1d1   :  { %v3612_v14 = vpop.f32.mrf.mxu1  ;;  %4177 = vmatmul.mubr.bf16.gmra.mxu1 %v8836_v46  ;;  %8487 = vmatprep.mubr.msk.bf16.mxu0 %vm2956_vm0, %v8802_v11  ;;  %v8805_v11 = vld [vmem:[%s16112_s0 + $0x4c4] ss:$24 sps:$4 sm:$0xff]   ;;  %v232_v6 = vld [vmem:[%s16111_s1 + $0x170] sm:$0xff] }
 0x1d2   :  { %16382 = vst [vmem:[#allocation54_spill] sm:$0xff] %v10698_v34  ;;  %v10704_v3 = vadd.f32 %v3612_v14, %v3319_v28  ;;  %v3321_v59 = vpop.f32.mrf.mxu0  ;;  %4186 = vmatprep.mubr.bf16.mxu1 %v8837_v31 }
 0x1d3   :  { %v3614_v53 = vpop.f32.mrf.mxu1 }
 0x1d4   :  { %16383 = vst [vmem:[#allocation55_spill] sm:$0xff] %v10704_v3  ;;  %v10709_v51 = vadd.f32 %v3614_v53, %v3321_v59  ;;  %v3323_v22 = vpop.f32.mrf.mxu0 }
 0x1d5   :  { %v3616_v34 = vpop.f32.mrf.mxu1 }
 0x1d6   :  { %16384 = vst [vmem:[#allocation56_spill] sm:$0xff] %v10709_v51  ;;  %v10717_v28 = vadd.f32 %v3616_v34, %v3323_v22  ;;  %v3325_v14 = vpop.f32.mrf.mxu0  ;;  %v8838_v51 = vld [vmem:[%s16112_s0 + $0x480] ss:$24 sps:$4 sm:$0xff]   ;;  %v8839_v22 = vld [vmem:[%s16112_s0 + $0x4b4] ss:$24 sps:$4 sm:$0xff]  }
 0x1d7   :  { %v3618_v46 = vpop.f32.mrf.mxu1 }
 0x1d8   :  { %16385 = vst [vmem:[#allocation57_spill] sm:$0xff] %v10717_v28  ;;  %v10719_v3 = vadd.f32 %v3618_v46, %v3325_v14  ;;  %v3655_v31 = vpop.f32.mrf.mxu0  ;;  %3894 = vmatmul.mubr.bf16.gmra.mxu0 %v8804_v41  ;;  %v8807_v46 = vld [vmem:[%s16112_s0 + $0x4c0] ss:$24 sps:$4 sm:$0xff]  }
 0x1d9   :  { %v10722_v59 = vadd.f32 %v3655_v31, %v10042_v57  ;;  %v10724_v53 = vpop.f32.mrf.mxu1  ;;  %4187 = vmatmul.mubr.bf16.gmra.mxu1 %v8838_v51  ;;  %8488 = vmatprep.mubr.msk.bf16.mxu0 %vm2956_vm0, %v8805_v11 }
 0x1da   :  { %16386 = vst [vmem:[#allocation58_spill] sm:$0xff] %v10719_v3  ;;  %16388 = vst [vmem:[#allocation60_spill] sm:$0xff] %v10724_v53  ;;  %v3657_v34 = vpop.f32.mrf.mxu0  ;;  %4196 = vmatprep.mubr.bf16.mxu1 %v8839_v22 }
 0x1db   :  { %16387 = vst [vmem:[#allocation59_spill] sm:$0xff] %v10722_v59  ;;  %v10734_v41 = vadd.f32 %v3657_v34, %v10044_v2  ;;  %v10736_v57 = vpop.f32.mrf.mxu1 }
 0x1dc   :  { %16390 = vst [vmem:[#allocation62_spill] sm:$0xff] %v10736_v57  ;;  %v3659_v14 = vpop.f32.mrf.mxu0 }
 0x1dd   :  { %16389 = vst [vmem:[#allocation61_spill] sm:$0xff] %v10734_v41  ;;  %v10742_v51 = vadd.f32 %v3659_v14, %v10055_v15  ;;  %v10744_v11 = vpop.f32.mrf.mxu1  ;;  %v8840_v15 = vld [vmem:[%s16112_s0 + $0x4b0] ss:$24 sps:$4 sm:$0xff]   ;;  %v8841_v14 = vld [vmem:[%s16112_s0 + $0xc] ss:$24 sps:$4 sm:$0xff]  }
 0x1de   :  { %16392 = vst [vmem:[#allocation64_spill] sm:$0xff] %v10744_v11  ;;  %v3661_v31 = vpop.f32.mrf.mxu0 }
 0x1df   :  { %16391 = vst [vmem:[#allocation63_spill] sm:$0xff] %v10742_v51  ;;  %v10747_v53 = vadd.f32 %v3661_v31, %v10057_v18  ;;  %v10749_v22 = vpop.f32.mrf.mxu1 }
 0x1e0   :  { %16394 = vst [vmem:[#allocation66_spill] sm:$0xff] %v10749_v22  ;;  %v3665_v2 = vpop.f32.mrf.mxu0  ;;  %3904 = vmatmul.mubr.bf16.gmra.mxu0 %v8807_v46  ;;  %v8842_v46 = vld [vmem:[%s16112_s0 + $0x14] ss:$24 sps:$4 sm:$0xff]  }
 0x1e1   :  { %16393 = vst [vmem:[#allocation65_spill] sm:$0xff] %v10747_v53  ;;  %v10752_v34 = vadd.f32 %v3665_v2, %v10060_v23  ;;  %v10754_v57 = vpop.f32.mrf.mxu1  ;;  %4197 = vmatmul.mubr.bf16.gmra.mxu1 %v8840_v15  ;;  %4239 = vmatprep.mubr.bf16.mxu0 %v8841_v14  ;;  %v236_v15 = vld [vmem:[%s16111_s1 + $0x190] sm:$0xff] }
 0x1e2   :  { %16396 = vst [vmem:[#allocation68_spill] sm:$0xff] %v10754_v57  ;;  %v3667_v18 = vpop.f32.mrf.mxu0  ;;  %8489 = vmatprep.mubr.msk.bf16.mxu1 %vm2956_vm0, %v8842_v46  ;;  %v240_v14 = vld [vmem:[%s16111_s1 + $0x1b0] sm:$0xff] }
 0x1e3   :  { %16395 = vst [vmem:[#allocation67_spill] sm:$0xff] %v10752_v34  ;;  %v10767_v23 = vadd.f32 %v3667_v18, %v10065_v30  ;;  %v10769_v31 = vpop.f32.mrf.mxu1  ;;  %v364_v30 = vld [vmem:[%s16111_s1 + $0x590] sm:$0xff]  ;;  %v8180_v3 = vcombine.high %v236_v15, %v240_v14 }
 0x1e4   :  { %16398 = vst [vmem:[#allocation70_spill] sm:$0xff] %v10769_v31  ;;  %v3669_v2 = vpop.f32.mrf.mxu0  ;;  %v368_v18 = vld [vmem:[%s16111_s1 + $0x5b0] sm:$0xff] }
 0x1e5   :  { %16397 = vst [vmem:[#allocation69_spill] sm:$0xff] %v10767_v23  ;;  %v10778_v57 = vadd.f32 %v3669_v2, %v10085_v44  ;;  %v10780_v22 = vpop.f32.mrf.mxu1  ;;  %v8843_v44 = vld [vmem:[%s16112_s0 + $0x8] ss:$24 sps:$4 sm:$0xff]   ;;  %v8308_v2 = vcombine.high %v364_v30, %v368_v18  ;;  %v16407_v23 = vcombine.low %v10540_v56, %v10545_v63  ;;  %v8307_v34 = vcombine.low %v364_v30, %v368_v18  ;;  %v348_v56 = vld [vmem:[%s16111_s1 + $0x510] sm:$0xff] }
 0x1e6   :  { %16400 = vst [vmem:[#allocation72_spill] sm:$0xff] %v10780_v22  ;;  %v3671_v46 = vpop.f32.mrf.mxu0  ;;  %v228_v22 = vld [vmem:[%s16111_s1 + $0x150] sm:$0xff] }
 0x1e7   :  { %16399 = vst [vmem:[#allocation71_spill] sm:$0xff] %v10778_v57  ;;  %v10789_v31 = vadd.f32 %v3671_v46, %v10087_v48  ;;  %v10791_v11 = vpop.f32.mrf.mxu1  ;;  %v8172_v53 = vcombine.high %v228_v22, %v232_v6  ;;  %v352_v63 = vld [vmem:[%s16111_s1 + $0x530] sm:$0xff] }
 0x1e8   :  { %16402 = vst [vmem:[#allocation74_spill] sm:$0xff] %v10791_v11  ;;  %v3675_v28 = vpop.f32.mrf.mxu0  ;;  %4240 = vmatmul.mubr.bf16.vlgmr.msra.gmra.mxu0 %v8843_v44  ;;  %v8844_v11 = vld [vmem:[%s16112_s0 + $0x10] ss:$24 sps:$4 sm:$0xff]   ;;  %v8845_v44 = vld [vmem:[%s16112_s0 + $0x3c] ss:$24 sps:$4 sm:$0xff]  }
 0x1e9   :  { %16401 = vst [vmem:[#allocation73_spill] sm:$0xff] %v10789_v31  ;;  %v10803_v48 = vadd.f32 %v3675_v28, %v10105_v7  ;;  %v10805_v46 = vpop.f32.mrf.mxu1  ;;  %4533 = vmatmul.mubr.bf16.vlgmr.msra.gmra.mxu1 %v8844_v11  ;;  %4249 = vmatprep.mubr.bf16.mxu0 %v8845_v44  ;;  %v356_v31 = vld [vmem:[%s16111_s1 + $0x550] sm:$0xff]  ;;  %v16405_v11 = vcombine.low %v10524_v38, %v10529_v29 }
 0x1ea   :  { %16404 = vst [vmem:[#allocation76_spill] sm:$0xff] %v10805_v46  ;;  %v360_v7 = vld [vmem:[%s16111_s1 + $0x570] sm:$0xff]  ;;  %v3677_v28 = vpop.f32.mrf.mxu0  ;;  %v8846_v46 = vld [vmem:[%s16112_s0 + $0x44] ss:$24 sps:$4 sm:$0xff]   ;;  %v8179_v44 = vcombine.low %v236_v15, %v240_v14  ;;  %5087 = vmatpush1.bf16.msra.mxu1 %v16407_v23  ;;  %v8171_v23 = vcombine.low %v228_v22, %v232_v6 }
 0x1eb   :  { %16403 = vst [vmem:[#allocation75_spill] sm:$0xff] %v10803_v48  ;;  %8490 = vmatprep.mubr.msk.bf16.mxu1 %vm2956_vm0, %v8846_v46  ;;  %4794 = vmatpush1.bf16.msra.mxu0 %v16405_v11  ;;  %v10827_v48 = vadd.f32 %v3677_v28, %v10114_v17  ;;  %v10829_v57 = vpop.f32.mrf.mxu1  ;;  %v8300_v46 = vcombine.high %v356_v31, %v360_v7  ;;  %v220_v38 = vld [vmem:[%s16111_s1 + $0x110] sm:$0xff] }
 0x1ec   :  { %4795 = vmatprep.subr.bf16.mxu0 %v8180_v3  ;;  %v3679_v51 = vpop.f32.mrf.mxu0  ;;  %5088 = vmatprep.subr.bf16.mxu1 %v8308_v2  ;;  %v224_v17 = vld [vmem:[%s16111_s1 + $0x130] sm:$0xff]  ;;  %v8292_v28 = vcombine.high %v348_v56, %v352_v63 }
 0x1ed   :  { %16406 = vst [vmem:[#allocation77_spill] sm:$0xff] %v10827_v48  ;;  %v10841_v29 = vadd.f32 %v3679_v51, %v10134_v25  ;;  %v10843_v15 = vpop.f32.mrf.mxu1  ;;  %v8299_v25 = vcombine.low %v356_v31, %v360_v7  ;;  %v8164_v51 = vcombine.high %v220_v38, %v224_v17  ;;  %v8847_v2 = vld [vmem:[%s16112_s0 + $0x38] ss:$24 sps:$4 sm:$0xff]   ;;  %v8849_v31 = vld [vmem:[%s16112_s0 + $0x6c] ss:$24 sps:$4 sm:$0xff]  }
 0x1ee   :  { %16409 = vst [vmem:[#allocation79_spill] sm:$0xff] %v10843_v15  ;;  %v3681_v3 = vpop.f32.mrf.mxu0  ;;  %5089 = vmatpush1.bf16.msra.mxu1 %v8307_v34  ;;  %v212_v6 = vld [vmem:[%s16111_s1 + $0xd0] sm:$0xff]  ;;  %v8848_v34 = vld [vmem:[%s16112_s0 + $0x40] ss:$24 sps:$4 sm:$0xff]  }
 0x1ef   :  { %16408 = vst [vmem:[#allocation78_spill] sm:$0xff] %v10841_v29  ;;  %4796 = vmatpush1.bf16.msra.mxu0 %v8179_v44  ;;  %v10852_v14 = vadd.f32 %v3681_v3, %v10136_v37  ;;  %v10854_v30 = vpop.f32.mrf.mxu1  ;;  %5090 = vmatprep.subr.bf16.mxu1 %v8300_v46  ;;  %v216_v37 = vld [vmem:[%s16111_s1 + $0xf0] sm:$0xff]  ;;  %v8163_v46 = vcombine.low %v220_v38, %v224_v17 }
 0x1f0   :  { %16411 = vst [vmem:[#allocation81_spill] sm:$0xff] %v10854_v30  ;;  %4797 = vmatprep.subr.bf16.mxu0 %v8172_v53  ;;  %v3685_v18 = vpop.f32.mrf.mxu0  ;;  %4250 = vmatmul.mubr.bf16.gmra.mxu0 %v8847_v2  ;;  %v340_v7 = vld [vmem:[%s16111_s1 + $0x4d0] sm:$0xff]  ;;  %v8291_v2 = vcombine.low %v348_v56, %v352_v63 }
 0x1f1   :  { %16410 = vst [vmem:[#allocation80_spill] sm:$0xff] %v10852_v14  ;;  %v10866_v53 = vadd.f32 %v3685_v18, %v10154_v50  ;;  %v10868_v22 = vpop.f32.mrf.mxu1  ;;  %4543 = vmatmul.mubr.bf16.gmra.mxu1 %v8848_v34  ;;  %4259 = vmatprep.mubr.bf16.mxu0 %v8849_v31  ;;  %v344_v50 = vld [vmem:[%s16111_s1 + $0x4f0] sm:$0xff]  ;;  %v8156_v34 = vcombine.high %v212_v6, %v216_v37 }
 0x1f2   :  { %16413 = vst [vmem:[#allocation83_spill] sm:$0xff] %v10868_v22  ;;  %v3687_v11 = vpop.f32.mrf.mxu0  ;;  %v8850_v44 = vld [vmem:[%s16112_s0 + $0x74] ss:$24 sps:$4 sm:$0xff]   ;;  %5091 = vmatpush1.bf16.msra.mxu1 %v8299_v25  ;;  %v8284_v22 = vcombine.high %v340_v7, %v344_v50  ;;  %v8155_v25 = vcombine.low %v212_v6, %v216_v37 }
 0x1f3   :  { %16412 = vst [vmem:[#allocation82_spill] sm:$0xff] %v10866_v53  ;;  %8491 = vmatprep.mubr.msk.bf16.mxu1 %vm2956_vm0, %v8850_v44  ;;  %4798 = vmatpush1.bf16.msra.mxu0 %v8171_v23  ;;  %v10887_v3 = vadd.f32 %v3687_v11, %v10159_v8  ;;  %v10889_v18 = vpop.f32.mrf.mxu1  ;;  %v204_v30 = vld [vmem:[%s16111_s1 + $0x90] sm:$0xff]  ;;  %v16548_v53 = vld [vmem:[#allocation26_spill] sm:$0xff] }
 0x1f4   :  { %16415 = vst [vmem:[#allocation85_spill] sm:$0xff] %v10889_v18  ;;  %4799 = vmatprep.subr.bf16.mxu0 %v8164_v51  ;;  %v3689_v31 = vpop.f32.mrf.mxu0  ;;  %5092 = vmatprep.subr.bf16.mxu1 %v8292_v28  ;;  %v208_v38 = vld [vmem:[%s16111_s1 + $0xb0] sm:$0xff] }
 0x1f5   :  { %16414 = vst [vmem:[#allocation84_spill] sm:$0xff] %v10887_v3  ;;  %v10898_v8 = vadd.f32 %v3689_v31, %v10173_v62  ;;  %v10900_v17 = vpop.f32.mrf.mxu1  ;;  %v332_v56 = vld [vmem:[%s16111_s1 + $0x490] sm:$0xff]  ;;  %v8283_v62 = vcombine.low %v340_v7, %v344_v50  ;;  %v8148_v11 = vcombine.high %v204_v30, %v208_v38  ;;  %v8851_v31 = vld [vmem:[%s16112_s0 + $0x68] ss:$24 sps:$4 sm:$0xff]  }
 0x1f6   :  { %16417 = vst [vmem:[#allocation87_spill] sm:$0xff] %v10900_v17  ;;  %v336_v63 = vld [vmem:[%s16111_s1 + $0x4b0] sm:$0xff]  ;;  %v3691_v23 = vpop.f32.mrf.mxu0  ;;  %5093 = vmatpush1.bf16.msra.mxu1 %v8291_v2 }
 0x1f7   :  { %16416 = vst [vmem:[#allocation86_spill] sm:$0xff] %v10898_v8  ;;  %4800 = vmatpush1.bf16.msra.mxu0 %v8163_v46  ;;  %v10909_v51 = vadd.f32 %v3691_v23, %v10175_v26  ;;  %v10911_v28 = vpop.f32.mrf.mxu1  ;;  %5094 = vmatprep.subr.bf16.mxu1 %v8284_v22  ;;  %v8276_v17 = vcombine.high %v332_v56, %v336_v63  ;;  %v196_v6 = vld [vmem:[%s16111_s1 + $0x50] sm:$0xff] }
 0x1f8   :  { %16419 = vst [vmem:[#allocation89_spill] sm:$0xff] %v10911_v28  ;;  %4801 = vmatprep.subr.bf16.mxu0 %v8156_v34  ;;  %v3695_v44 = vpop.f32.mrf.mxu0  ;;  %4260 = vmatmul.mubr.bf16.gmra.mxu0 %v8851_v31  ;;  %v200_v26 = vld [vmem:[%s16111_s1 + $0x70] sm:$0xff]  ;;  %v8854_v34 = vld [vmem:[%s16112_s0 + $0xa4] ss:$24 sps:$4 sm:$0xff]   ;;  %v8147_v23 = vcombine.low %v204_v30, %v208_v38 }
 0x1f9   :  { %16418 = vst [vmem:[#allocation88_spill] sm:$0xff] %v10909_v51  ;;  %v10923_v37 = vadd.f32 %v3695_v44, %v10187_v40  ;;  %v10925_v7 = vpop.f32.mrf.mxu1  ;;  %v8852_v50 = vld [vmem:[%s16112_s0 + $0x70] ss:$24 sps:$4 sm:$0xff]   ;;  %v8853_v22 = vld [vmem:[%s16112_s0 + $0x9c] ss:$24 sps:$4 sm:$0xff]  }
 0x1fa   :  { %16421 = vst [vmem:[#allocation91_spill] sm:$0xff] %v10925_v7  ;;  %4553 = vmatmul.mubr.bf16.gmra.mxu1 %v8852_v50  ;;  %4269 = vmatprep.mubr.bf16.mxu0 %v8853_v22  ;;  %v324_v46 = vld [vmem:[%s16111_s1 + $0x450] sm:$0xff]  ;;  %v3697_v2 = vpop.f32.mrf.mxu0  ;;  %v8275_v50 = vcombine.low %v332_v56, %v336_v63  ;;  %v8140_v22 = vcombine.high %v196_v6, %v200_v26 }
 0x1fb   :  { %16420 = vst [vmem:[#allocation90_spill] sm:$0xff] %v10923_v37  ;;  %v328_v40 = vld [vmem:[%s16111_s1 + $0x470] sm:$0xff]  ;;  %8492 = vmatprep.mubr.msk.bf16.mxu1 %vm2956_vm0, %v8854_v34  ;;  %4802 = vmatpush1.bf16.msra.mxu0 %v8155_v25  ;;  %v10944_v44 = vadd.f32 %v3697_v2, %v10192_v49  ;;  %v10946_v31 = vpop.f32.mrf.mxu1  ;;  %v8139_v25 = vcombine.low %v196_v6, %v200_v26 }
 0x1fc   :  { %16423 = vst [vmem:[#allocation93_spill] sm:$0xff] %v10946_v31  ;;  %5095 = vmatpush1.bf16.msra.mxu1 %v8283_v62  ;;  %4803 = vmatprep.subr.bf16.mxu0 %v8148_v11  ;;  %v3699_v7 = vpop.f32.mrf.mxu0  ;;  %v8268_v28 = vcombine.high %v324_v46, %v328_v40  ;;  %v188_v18 = vld [vmem:[%s16111_s1 + $0x10] sm:$0xff] }
 0x1fd   :  { %16422 = vst [vmem:[#allocation92_spill] sm:$0xff] %v10944_v44  ;;  %5096 = vmatprep.subr.bf16.mxu1 %v8276_v17  ;;  %v192_v30 = vld [vmem:[%s16111_s1 + $0x30] sm:$0xff]  ;;  %v10955_v49 = vadd.f32 %v3699_v7, %v10206_v9  ;;  %v10957_v38 = vpop.f32.mrf.mxu1  ;;  %v8267_v9 = vcombine.low %v324_v46, %v328_v40  ;;  %v8856_v40 = vld [vmem:[%s16112_s0 + $0xa0] ss:$24 sps:$4 sm:$0xff]  }
 0x1fe   :  { %16425 = vst [vmem:[#allocation95_spill] sm:$0xff] %v10957_v38  ;;  %v316_v56 = vld [vmem:[%s16111_s1 + $0x410] sm:$0xff]  ;;  %v3701_v63 = vpop.f32.mrf.mxu0  ;;  %v8132_v7 = vcombine.high %v188_v18, %v192_v30 }
 0x1ff   :  { %16424 = vst [vmem:[#allocation94_spill] sm:$0xff] %v10955_v49  ;;  %v320_v17 = vld [vmem:[%s16111_s1 + $0x430] sm:$0xff]  ;;  %4804 = vmatpush1.bf16.msra.mxu0 %v8147_v23  ;;  %v10966_v62 = vadd.f32 %v3701_v63, %v10211_v60  ;;  %v10968_v11 = vpop.f32.mrf.mxu1  ;;  %v8131_v63 = vcombine.low %v188_v18, %v192_v30 }
 0x200   :  { %16427 = vst [vmem:[#allocation97_spill] sm:$0xff] %v10968_v11  ;;  %5097 = vmatpush1.bf16.msra.mxu1 %v8275_v50  ;;  %4805 = vmatprep.subr.bf16.mxu0 %v8140_v22  ;;  %v3705_v2 = vpop.f32.mrf.mxu0  ;;  %v8855_v34 = vld [vmem:[%s16112_s0 + $0x98] ss:$24 sps:$4 sm:$0xff]   ;;  %v8260_v38 = vcombine.high %v316_v56, %v320_v17  ;;  %v8858_v22 = vld [vmem:[%s16112_s0 + $0xd4] ss:$24 sps:$4 sm:$0xff]  }
 0x201   :  { %16426 = vst [vmem:[#allocation96_spill] sm:$0xff] %v10966_v62  ;;  %4270 = vmatmul.mubr.bf16.gmra.mxu0 %v8855_v34  ;;  %5098 = vmatprep.subr.bf16.mxu1 %v8268_v28  ;;  %v308_v6 = vld [vmem:[%s16111_s1 + $0x3d0] sm:$0xff]  ;;  %v10980_v26 = vadd.f32 %v3705_v2, %v10224_v35  ;;  %v10982_v46 = vpop.f32.mrf.mxu1  ;;  %v8857_v28 = vld [vmem:[%s16112_s0 + $0xcc] ss:$24 sps:$4 sm:$0xff]  }
 0x202   :  { %v312_v60 = vld [vmem:[%s16111_s1 + $0x3f0] sm:$0xff]  ;;  %16429 = vst [vmem:[#allocation99_spill] sm:$0xff] %v10982_v46  ;;  %4563 = vmatmul.mubr.bf16.gmra.mxu1 %v8856_v40  ;;  %4279 = vmatprep.mubr.bf16.mxu0 %v8857_v28  ;;  %v3707_v50 = vpop.f32.mrf.mxu0  ;;  %v8259_v40 = vcombine.low %v316_v56, %v320_v17 }
 0x203   :  { %16428 = vst [vmem:[#allocation98_spill] sm:$0xff] %v10980_v26  ;;  %v436_v23 = vld [vmem:[%s16111_s1 + $0x7d0] sm:$0xff]  ;;  %8493 = vmatprep.mubr.msk.bf16.mxu1 %vm2956_vm0, %v8858_v22  ;;  %4806 = vmatpush1.bf16.msra.mxu0 %v8139_v25  ;;  %v11001_v2 = vadd.f32 %v3707_v50, %v10227_v45  ;;  %v11003_v34 = vpop.f32.mrf.mxu1  ;;  %v8252_v28 = vcombine.high %v308_v6, %v312_v60  ;;  %v16566_v26 = vld [vmem:[#allocation34_spill] sm:$0xff] }
 0x204   :  { %v440_v35 = vld [vmem:[%s16111_s1 + $0x7f0] sm:$0xff]  ;;  %5099 = vmatpush1.bf16.msra.mxu1 %v8267_v9  ;;  %4807 = vmatprep.subr.bf16.mxu0 %v8132_v7  ;;  %v3709_v46 = vpop.f32.mrf.mxu0  ;;  %v8251_v18 = vcombine.low %v308_v6, %v312_v60 }
 0x205   :  { %16430 = vst [vmem:[#allocation100_spill] sm:$0xff] %v11001_v2  ;;  %5100 = vmatprep.subr.bf16.mxu1 %v8260_v38  ;;  %v8380_v11 = vcombine.high %v436_v23, %v440_v35  ;;  %v11006_v31 = vadd.f32 %v3709_v46, %v10235_v1  ;;  %v11008_v15 = vpop.f32.mrf.mxu1  ;;  %v8379_v56 = vcombine.low %v436_v23, %v440_v35  ;;  %v8859_v38 = vld [vmem:[%s16112_s0 + $0xc8] ss:$24 sps:$4 sm:$0xff]   ;;  %v8861_v9 = vld [vmem:[%s16112_s0 + $0xfc] ss:$24 sps:$4 sm:$0xff]  }
 0x206   :  { %v3711_v22 = vpop.f32.mrf.mxu0  ;;  %v300_v60 = vld [vmem:[%s16111_s1 + $0x390] sm:$0xff] }
 0x207   :  { %16431 = vst [vmem:[#allocation101_spill] sm:$0xff] %v11006_v31  ;;  %4808 = vmatpush1.bf16.msra.mxu0 %v8131_v63  ;;  %v11011_v45 = vadd.f32 %v3711_v22, %v10237_v58  ;;  %v11013_v30 = vpop.f32.mrf.mxu1  ;;  %v8860_v58 = vld [vmem:[%s16112_s0 + $0xd0] ss:$24 sps:$4 sm:$0xff]  }
 0x208   :  { %16433 = vst [vmem:[#allocation103_spill] sm:$0xff] %v11013_v30  ;;  %5101 = vmatpush1.bf16.msra.mxu1 %v8259_v40  ;;  %4809 = vmatprep.subr.bf16.mxu0 %v8252_v28  ;;  %v3715_v17 = vpop.f32.mrf.mxu0  ;;  %v304_v46 = vld [vmem:[%s16111_s1 + $0x3b0] sm:$0xff] }
 0x209   :  { %16432 = vst [vmem:[#allocation102_spill] sm:$0xff] %v11011_v45  ;;  %4280 = vmatmul.mubr.bf16.gmra.mxu0 %v8859_v38  ;;  %5102 = vmatprep.subr.bf16.mxu1 %v8380_v11  ;;  %v11019_v1 = vadd.f32 %v3715_v17, %v10241_v13  ;;  %v11021_v25 = vpop.f32.mrf.mxu1  ;;  %v8862_v11 = vld [vmem:[%s16112_s0 + $0x104] ss:$24 sps:$4 sm:$0xff]   ;;  %v8243_v35 = vcombine.low %v300_v60, %v304_v46  ;;  %v432_v28 = vld [vmem:[%s16111_s1 + $0x7b0] sm:$0xff] }
 0x20a   :  { %16435 = vst [vmem:[#allocation105_spill] sm:$0xff] %v11021_v25  ;;  %4573 = vmatmul.mubr.bf16.gmra.mxu1 %v8860_v58  ;;  %4289 = vmatprep.mubr.bf16.mxu0 %v8861_v9  ;;  %v3717_v7 = vpop.f32.mrf.mxu0  ;;  %v8244_v50 = vcombine.high %v300_v60, %v304_v46  ;;  %v8863_v58 = vld [vmem:[%s16112_s0 + $0xf8] ss:$24 sps:$4 sm:$0xff]   ;;  %v8866_v46 = vld [vmem:[%s16112_s0 + $0x134] ss:$24 sps:$4 sm:$0xff]  }
 0x20b   :  { %16434 = vst [vmem:[#allocation104_spill] sm:$0xff] %v11019_v1  ;;  %8494 = vmatprep.mubr.msk.bf16.mxu1 %vm2956_vm0, %v8862_v11  ;;  %4810 = vmatpush2.bf16.msra.mxu0 %v8251_v18  ;;  %v11034_v13 = vadd.f32 %v3717_v7, %v10250_v12  ;;  %v11036_v6 = vpop.f32.mrf.mxu1  ;;  %v428_v12 = vld [vmem:[%s16111_s1 + $0x790] sm:$0xff]  ;;  %v8865_v11 = vld [vmem:[%s16112_s0 + $0x12c] ss:$24 sps:$4 sm:$0xff]  }
 0x20c   :  { %16437 = vst [vmem:[#allocation107_spill] sm:$0xff] %v11036_v6  ;;  %5103 = vmatpush2.bf16.msra.mxu1 %v8379_v56  ;;  %v3719_v23 = vpop.f32.mrf.mxu0  ;;  %4811 = vmatprep.subr.bf16.mxu0 %v8244_v50  ;;  %v8371_v18 = vcombine.low %v428_v12, %v432_v28  ;;  %v8372_v56 = vcombine.high %v428_v12, %v432_v28  ;;  %v8908_v44 = vld [vmem:[%s16112_s0 + $0x310] ss:$24 sps:$4 sm:$0xff]   ;;  %v16578_v1 = vld [vmem:[#allocation38_spill] sm:$0xff] }
 0x20d   :  { %16436 = vst [vmem:[#allocation106_spill] sm:$0xff] %v11034_v13  ;;  %v11045_v63 = vadd.f32 %v3719_v23, %v10258_v32  ;;  %v11047_v40 = vpop.f32.mrf.mxu1  ;;  %v16554_v62 = vld [vmem:[#allocation28_spill] sm:$0xff] }
 0x20e   :  { %16439 = vst [vmem:[#allocation109_spill] sm:$0xff] %v11047_v40  ;;  %v3721_v22 = vpop.f32.mrf.mxu0  ;;  %5104 = vmatprep.subr.bf16.mxu1 %v8372_v56 }
 0x20f   :  { %16438 = vst [vmem:[#allocation108_spill] sm:$0xff] %v11045_v63  ;;  %v11056_v17 = vadd.f32 %v3721_v22, %v10260_v42  ;;  %v11058_v38 = vpop.f32.mrf.mxu1  ;;  %4812 = vmatpush2.bf16.msra.mxu0 %v8243_v35  ;;  %v8864_v42 = vld [vmem:[%s16112_s0 + $0x100] ss:$24 sps:$4 sm:$0xff]  }
 0x210   :  { %16441 = vst [vmem:[#allocation111_spill] sm:$0xff] %v11058_v38  ;;  %v3725_v32 = vpop.f32.mrf.mxu0  ;;  %5105 = vmatpush2.bf16.msra.mxu1 %v8371_v18  ;;  %v16471_v38 = vld [vmem:[#allocation3_spill] sm:$0xff] }
 0x211   :  { %16440 = vst [vmem:[#allocation110_spill] sm:$0xff] %v11056_v17  ;;  %4290 = vmatmul.mubr.bf16.gmra.mxu0 %v8863_v58  ;;  %v11064_v9 = vadd.f32 %v3725_v32, %v10264_v61  ;;  %v11066_v7 = vpop.f32.mrf.mxu1 }
 0x212   :  { %16443 = vst [vmem:[#allocation113_spill] sm:$0xff] %v11066_v7  ;;  %4583 = vmatmul.mubr.bf16.gmra.mxu1 %v8864_v42  ;;  %4299 = vmatprep.mubr.bf16.mxu0 %v8865_v11  ;;  %v3727_v60 = vpop.f32.mrf.mxu0  ;;  %v292_v42 = vld [vmem:[%s16111_s1 + $0x350] sm:$0xff] }
 0x213   :  { %16442 = vst [vmem:[#allocation112_spill] sm:$0xff] %v11064_v9  ;;  %8495 = vmatprep.mubr.msk.bf16.mxu1 %vm2956_vm0, %v8866_v46  ;;  %v11079_v61 = vadd.f32 %v3727_v60, %v10267_v54  ;;  %v11081_v23 = vpop.f32.mrf.mxu1  ;;  %v8867_v54 = vld [vmem:[%s16112_s0 + $0x128] ss:$24 sps:$4 sm:$0xff]   ;;  %v8870_v60 = vld [vmem:[%s16112_s0 + $0x164] ss:$24 sps:$4 sm:$0xff]  }
 0x214   :  { %16445 = vst [vmem:[#allocation115_spill] sm:$0xff] %v11081_v23  ;;  %v3729_v35 = vpop.f32.mrf.mxu0  ;;  %v16590_v9 = vld [vmem:[#allocation42_spill] sm:$0xff] }
 0x215   :  { %16444 = vst [vmem:[#allocation114_spill] sm:$0xff] %v11079_v61  ;;  %v11084_v50 = vadd.f32 %v3729_v35, %v10281_v10  ;;  %v11086_v12 = vpop.f32.mrf.mxu1  ;;  %v8868_v10 = vld [vmem:[%s16112_s0 + $0x130] ss:$24 sps:$4 sm:$0xff]  }
 0x216   :  { %16447 = vst [vmem:[#allocation117_spill] sm:$0xff] %v11086_v12  ;;  %v3731_v28 = vpop.f32.mrf.mxu0 }
 0x217   :  { %16446 = vst [vmem:[#allocation116_spill] sm:$0xff] %v11084_v50  ;;  %v11089_v22 = vadd.f32 %v3731_v28, %v10283_v5  ;;  %v11091_v56 = vpop.f32.mrf.mxu1  ;;  %v8869_v5 = vld [vmem:[%s16112_s0 + $0x15c] ss:$24 sps:$4 sm:$0xff]  }
 0x218   :  { %16449 = vst [vmem:[#allocation119_spill] sm:$0xff] %v11091_v56  ;;  %v3735_v32 = vpop.f32.mrf.mxu0 }
 0x219   :  { %16448 = vst [vmem:[#allocation118_spill] sm:$0xff] %v11089_v22  ;;  %4300 = vmatmul.mubr.bf16.gmra.mxu0 %v8867_v54  ;;  %v11097_v18 = vadd.f32 %v3735_v32, %v10293_v43  ;;  %v11099_v58 = vpop.f32.mrf.mxu1  ;;  %v296_v43 = vld [vmem:[%s16111_s1 + $0x370] sm:$0xff] }
 0x21a   :  { %16451 = vst [vmem:[#allocation121_spill] sm:$0xff] %v11099_v58  ;;  %4593 = vmatmul.mubr.bf16.gmra.mxu1 %v8868_v10  ;;  %4309 = vmatprep.mubr.bf16.mxu0 %v8869_v5  ;;  %v3737_v11 = vpop.f32.mrf.mxu0  ;;  %v8235_v46 = vcombine.low %v292_v42, %v296_v43  ;;  %v8236_v35 = vcombine.high %v292_v42, %v296_v43  ;;  %v420_v54 = vld [vmem:[%s16111_s1 + $0x750] sm:$0xff] }
 0x21b   :  { %16450 = vst [vmem:[#allocation120_spill] sm:$0xff] %v11097_v18  ;;  %8496 = vmatprep.mubr.msk.bf16.mxu1 %vm2956_vm0, %v8870_v60  ;;  %v11118_v28 = vadd.f32 %v3737_v11, %v10296_v52  ;;  %v11120_v32 = vpop.f32.mrf.mxu1  ;;  %v424_v10 = vld [vmem:[%s16111_s1 + $0x770] sm:$0xff]  ;;  %v16602_v18 = vld [vmem:[#allocation46_spill] sm:$0xff] }
 0x21c   :  { %16453 = vst [vmem:[#allocation123_spill] sm:$0xff] %v11120_v32  ;;  %v3739_v5 = vpop.f32.mrf.mxu0  ;;  %4813 = vmatprep.subr.bf16.mxu0 %v8236_v35  ;;  %v8363_v58 = vcombine.low %v420_v54, %v424_v10  ;;  %v8364_v56 = vcombine.high %v420_v54, %v424_v10  ;;  %v8871_v35 = vld [vmem:[%s16112_s0 + $0x158] ss:$24 sps:$4 sm:$0xff]  }
 0x21d   :  { %16452 = vst [vmem:[#allocation122_spill] sm:$0xff] %v11118_v28  ;;  %v11129_v60 = vadd.f32 %v3739_v5, %v10304_v21  ;;  %v11131_v42 = vpop.f32.mrf.mxu1  ;;  %4814 = vmatpush2.bf16.msra.mxu0 %v8235_v46  ;;  %v8874_v46 = vld [vmem:[%s16112_s0 + $0x194] ss:$24 sps:$4 sm:$0xff]  }
 0x21e   :  { %16455 = vst [vmem:[#allocation125_spill] sm:$0xff] %v11131_v42  ;;  %v3741_v52 = vpop.f32.mrf.mxu0  ;;  %5106 = vmatprep.subr.bf16.mxu1 %v8364_v56  ;;  %v8872_v56 = vld [vmem:[%s16112_s0 + $0x160] ss:$24 sps:$4 sm:$0xff]   ;;  %v412_v10 = vld [vmem:[%s16111_s1 + $0x710] sm:$0xff] }
 0x21f   :  { %16454 = vst [vmem:[#allocation124_spill] sm:$0xff] %v11129_v60  ;;  %v11134_v43 = vadd.f32 %v3741_v52, %v10306_v33  ;;  %v11136_v11 = vpop.f32.mrf.mxu1  ;;  %5107 = vmatpush2.bf16.msra.mxu1 %v8363_v58  ;;  %v8873_v33 = vld [vmem:[%s16112_s0 + $0x18c] ss:$24 sps:$4 sm:$0xff]  }
 0x220   :  { %16457 = vst [vmem:[#allocation127_spill] sm:$0xff] %v11136_v11  ;;  %v3745_v32 = vpop.f32.mrf.mxu0 }
 0x221   :  { %16456 = vst [vmem:[#allocation126_spill] sm:$0xff] %v11134_v43  ;;  %4310 = vmatmul.mubr.bf16.gmra.mxu0 %v8871_v35  ;;  %v11142_v21 = vadd.f32 %v3745_v32, %v10310_v0  ;;  %v11144_v54 = vpop.f32.mrf.mxu1  ;;  %v284_v0 = vld [vmem:[%s16111_s1 + $0x310] sm:$0xff] }
 0x222   :  { %16459 = vst [vmem:[#allocation129_spill] sm:$0xff] %v11144_v54  ;;  %4603 = vmatmul.mubr.bf16.gmra.mxu1 %v8872_v56  ;;  %4319 = vmatprep.mubr.bf16.mxu0 %v8873_v33  ;;  %v3747_v58 = vpop.f32.mrf.mxu0  ;;  %v288_v32 = vld [vmem:[%s16111_s1 + $0x330] sm:$0xff] }
 0x223   :  { %16458 = vst [vmem:[#allocation128_spill] sm:$0xff] %v11142_v21  ;;  %8497 = vmatprep.mubr.msk.bf16.mxu1 %vm2956_vm0, %v8874_v46  ;;  %v11166_v5 = vadd.f32 %v3747_v58, %v10319_v36  ;;  %v11168_v52 = vpop.f32.mrf.mxu1  ;;  %v8228_v35 = vcombine.high %v284_v0, %v288_v32  ;;  %v416_v56 = vld [vmem:[%s16111_s1 + $0x730] sm:$0xff]  ;;  %v8227_v46 = vcombine.low %v284_v0, %v288_v32  ;;  %v16614_v21 = vld [vmem:[#allocation50_spill] sm:$0xff] }
 0x224   :  { %16461 = vst [vmem:[#allocation131_spill] sm:$0xff] %v11168_v52  ;;  %v3749_v33 = vpop.f32.mrf.mxu0  ;;  %v8355_v54 = vcombine.low %v412_v10, %v416_v56  ;;  %v8356_v11 = vcombine.high %v412_v10, %v416_v56  ;;  %v276_v36 = vld [vmem:[%s16111_s1 + $0x2d0] sm:$0xff]  ;;  %v8875_v56 = vld [vmem:[%s16112_s0 + $0x188] ss:$24 sps:$4 sm:$0xff]  }
 0x225   :  { %16460 = vst [vmem:[#allocation130_spill] sm:$0xff] %v11166_v5  ;;  %v11174_v42 = vadd.f32 %v3749_v33, %v10327_v55  ;;  %v11176_v12 = vpop.f32.mrf.mxu1  ;;  %4815 = vmatprep.subr.bf16.mxu0 %v8228_v35  ;;  %v280_v58 = vld [vmem:[%s16111_s1 + $0x2f0] sm:$0xff] }
 0x226   :  { %16463 = vst [vmem:[#allocation133_spill] sm:$0xff] %v11176_v12  ;;  %v3751_v23 = vpop.f32.mrf.mxu0  ;;  %4816 = vmatpush2.bf16.msra.mxu0 %v8227_v46  ;;  %5108 = vmatprep.subr.bf16.mxu1 %v8356_v11  ;;  %v404_v0 = vld [vmem:[%s16111_s1 + $0x6d0] sm:$0xff]  ;;  %v8220_v10 = vcombine.high %v276_v36, %v280_v58  ;;  %v8219_v33 = vcombine.low %v276_v36, %v280_v58  ;;  %v8878_v36 = vld [vmem:[%s16112_s0 + $0x1c4] ss:$24 sps:$4 sm:$0xff]  }
 0x227   :  { %16462 = vst [vmem:[#allocation132_spill] sm:$0xff] %v11174_v42  ;;  %v11188_v55 = vadd.f32 %v3751_v23, %v10335_v16  ;;  %v11190_v32 = vpop.f32.mrf.mxu1  ;;  %5109 = vmatpush2.bf16.msra.mxu1 %v8355_v54  ;;  %v408_v11 = vld [vmem:[%s16111_s1 + $0x6f0] sm:$0xff] }
 0x228   :  { %16465 = vst [vmem:[#allocation135_spill] sm:$0xff] %v11190_v32  ;;  %v3755_v35 = vpop.f32.mrf.mxu0  ;;  %v8347_v46 = vcombine.low %v404_v0, %v408_v11  ;;  %v8348_v12 = vcombine.high %v404_v0, %v408_v11  ;;  %v8876_v54 = vld [vmem:[%s16112_s0 + $0x190] ss:$24 sps:$4 sm:$0xff]   ;;  %v8877_v32 = vld [vmem:[%s16112_s0 + $0x1bc] ss:$24 sps:$4 sm:$0xff]   ;;  %4817 = vmatprep.subr.bf16.mxu0 %v8220_v10 }
 0x229   :  { %16464 = vst [vmem:[#allocation134_spill] sm:$0xff] %v11188_v55  ;;  %4320 = vmatmul.mubr.bf16.gmra.mxu0 %v8875_v56  ;;  %v11199_v16 = vadd.f32 %v3755_v35, %v10345_v27  ;;  %v11201_v23 = vpop.f32.mrf.mxu1  ;;  %v268_v27 = vld [vmem:[%s16111_s1 + $0x290] sm:$0xff] }
 0x22a   :  { %16467 = vst [vmem:[#allocation137_spill] sm:$0xff] %v11201_v23  ;;  %4613 = vmatmul.mubr.bf16.gmra.mxu1 %v8876_v54  ;;  %4329 = vmatprep.mubr.bf16.mxu0 %v8877_v32  ;;  %v3757_v52 = vpop.f32.mrf.mxu0  ;;  %v272_v58 = vld [vmem:[%s16111_s1 + $0x2b0] sm:$0xff]  ;;  %v16468_v32 = vld [vmem:[#allocation2_spill] sm:$0xff] }
 0x22b   :  { %16466 = vst [vmem:[#allocation136_spill] sm:$0xff] %v11199_v16  ;;  %8498 = vmatprep.mubr.msk.bf16.mxu1 %vm2956_vm0, %v8878_v36  ;;  %v396_v0 = vld [vmem:[%s16111_s1 + $0x690] sm:$0xff]  ;;  %v11223_v11 = vadd.f32 %v3757_v52, %v16468_v32  ;;  %v11225_v35 = vpop.f32.mrf.mxu1  ;;  %5110 = vmatprep.subr.bf16.mxu1 %v8348_v12  ;;  %v8212_v10 = vcombine.high %v268_v27, %v272_v58  ;;  %v16626_v16 = vld [vmem:[#allocation54_spill] sm:$0xff] }
 0x22c   :  { %16470 = vst [vmem:[#allocation138_spill] sm:$0xff] %v11225_v35  ;;  %4818 = vmatpush2.bf16.msra.mxu0 %v8219_v33  ;;  %v400_v56 = vld [vmem:[%s16111_s1 + $0x6b0] sm:$0xff]  ;;  %v3759_v54 = vpop.f32.mrf.mxu0  ;;  %5111 = vmatpush2.bf16.msra.mxu1 %v8347_v46  ;;  %v8211_v36 = vcombine.low %v268_v27, %v272_v58 }
 0x22d   :  { %16469 = vst [vmem:[#allocation2_spill] sm:$0xff] %v11223_v11  ;;  %v8339_v23 = vcombine.low %v396_v0, %v400_v56  ;;  %v8340_v7 = vcombine.high %v396_v0, %v400_v56  ;;  %v11231_v40 = vadd.f32 %v3759_v54, %v16471_v38  ;;  %v11233_v6 = vpop.f32.mrf.mxu1  ;;  %4819 = vmatprep.subr.bf16.mxu0 %v8212_v10  ;;  %v260_v12 = vld [vmem:[%s16111_s1 + $0x250] sm:$0xff] }
 0x22e   :  { %16473 = vst [vmem:[#allocation139_spill] sm:$0xff] %v11233_v6  ;;  %v3761_v52 = vpop.f32.mrf.mxu0  ;;  %v264_v33 = vld [vmem:[%s16111_s1 + $0x270] sm:$0xff]  ;;  %v8881_v6 = vld [vmem:[%s16112_s0 + $0x1ec] ss:$24 sps:$4 sm:$0xff]  }
 0x22f   :  { %16472 = vst [vmem:[#allocation3_spill] sm:$0xff] %v11231_v40  ;;  %5112 = vmatprep.subr.bf16.mxu1 %v8340_v7  ;;  %v388_v46 = vld [vmem:[%s16111_s1 + $0x650] sm:$0xff]  ;;  %v11245_v38 = vadd.f32 %v3761_v52, %v10376_v47  ;;  %v11247_v27 = vpop.f32.mrf.mxu1  ;;  %v8204_v58 = vcombine.high %v260_v12, %v264_v33  ;;  %v8203_v10 = vcombine.low %v260_v12, %v264_v33 }
 0x230   :  { %16475 = vst [vmem:[#allocation141_spill] sm:$0xff] %v11247_v27  ;;  %4820 = vmatpush2.bf16.msra.mxu0 %v8211_v36  ;;  %v392_v7 = vld [vmem:[%s16111_s1 + $0x670] sm:$0xff]  ;;  %v3765_v0 = vpop.f32.mrf.mxu0  ;;  %5113 = vmatpush2.bf16.msra.mxu1 %v8339_v23  ;;  %v8880_v36 = vld [vmem:[%s16112_s0 + $0x1c0] ss:$24 sps:$4 sm:$0xff]  }
 0x231   :  { %16474 = vst [vmem:[#allocation140_spill] sm:$0xff] %v11245_v38  ;;  %v8879_v32 = vld [vmem:[%s16112_s0 + $0x1b8] ss:$24 sps:$4 sm:$0xff]   ;;  %v8331_v56 = vcombine.low %v388_v46, %v392_v7  ;;  %v8332_v54 = vcombine.high %v388_v46, %v392_v7  ;;  %v11258_v27 = vpop.f32.mrf.mxu1  ;;  %v8882_v23 = vld [vmem:[%s16112_s0 + $0x1f4] ss:$24 sps:$4 sm:$0xff]   ;;  %4821 = vmatprep.subr.bf16.mxu0 %v8204_v58 }
 0x232   :  { %4330 = vmatmul.mubr.bf16.gmra.mxu0 %v8879_v32  ;;  %v16476_v47 = vld [vmem:[#allocation4_spill] sm:$0xff]  ;;  %16478 = vst [vmem:[#allocation142_spill] sm:$0xff] %v11258_v27  ;;  %4623 = vmatmul.mubr.bf16.gmra.mxu1 %v8880_v36  ;;  %v3767_v32 = vpop.f32.mrf.mxu0  ;;  %v16479_v46 = vld [vmem:[#allocation5_spill] sm:$0xff] }
 0x233   :  { %v11256_v52 = vadd.f32 %v3765_v0, %v16476_v47  ;;  %4339 = vmatprep.mubr.bf16.mxu0 %v8881_v6  ;;  %8499 = vmatprep.mubr.msk.bf16.mxu1 %vm2956_vm0, %v8882_v23  ;;  %v252_v12 = vld [vmem:[%s16111_s1 + $0x210] sm:$0xff]  ;;  %v11280_v7 = vadd.f32 %v3767_v32, %v16479_v46  ;;  %v11282_v0 = vpop.f32.mrf.mxu1 }
 0x234   :  { %v256_v33 = vld [vmem:[%s16111_s1 + $0x230] sm:$0xff]  ;;  %5114 = vmatprep.subr.bf16.mxu1 %v8332_v54  ;;  %4822 = vmatpush2.bf16.msra.mxu0 %v8203_v10  ;;  %v3769_v36 = vpop.f32.mrf.mxu0 }
 0x235   :  { %16477 = vst [vmem:[#allocation4_spill] sm:$0xff] %v11256_v52  ;;  %v380_v6 = vld [vmem:[%s16111_s1 + $0x610] sm:$0xff]  ;;  %16480 = vst [vmem:[#allocation5_spill] sm:$0xff] %v11280_v7  ;;  %v8196_v58 = vcombine.high %v252_v12, %v256_v33  ;;  %5115 = vmatpush2.bf16.msra.mxu1 %v8331_v56  ;;  %v8195_v23 = vcombine.low %v252_v12, %v256_v33  ;;  %v11288_v25 = vadd.f32 %v3769_v36, %v10403_v24  ;;  %v11290_v30 = vpop.f32.mrf.mxu1  ;;  %v8883_v56 = vld [vmem:[%s16112_s0 + $0x1e8] ss:$24 sps:$4 sm:$0xff]  }
 0x236   :  { %v384_v47 = vld [vmem:[%s16111_s1 + $0x630] sm:$0xff]  ;;  %16482 = vst [vmem:[#allocation144_spill] sm:$0xff] %v11290_v30  ;;  %v3771_v32 = vpop.f32.mrf.mxu0  ;;  %v16504_v30 = vld [vmem:[#allocation10_spill] sm:$0xff] }
 0x237   :  { %v8323_v27 = vcombine.low %v380_v6, %v384_v47  ;;  %v8324_v35 = vcombine.high %v380_v6, %v384_v47  ;;  %16481 = vst [vmem:[#allocation143_spill] sm:$0xff] %v11288_v25  ;;  %4823 = vmatprep.subr.bf16.mxu0 %v8196_v58  ;;  %v11293_v10 = vadd.f32 %v3771_v32, %v10405_v20  ;;  %v11295_v54 = vpop.f32.mrf.mxu1  ;;  %v8884_v20 = vld [vmem:[%s16112_s0 + $0x1f0] ss:$24 sps:$4 sm:$0xff]   ;;  %v16491_v32 = vld [vmem:[#allocation6_spill] sm:$0xff] }
 0x238   :  { %16484 = vst [vmem:[#allocation146_spill] sm:$0xff] %v11295_v54  ;;  %4824 = vmatpush2.bf16.msra.mxu0 %v8195_v23  ;;  %v3775_v46 = vpop.f32.mrf.mxu0  ;;  %v16638_v52 = vld [vmem:[#allocation58_spill] sm:$0xff] }
 0x239   :  { %5116 = vmatprep.subr.bf16.mxu1 %v8324_v35  ;;  %16483 = vst [vmem:[#allocation145_spill] sm:$0xff] %v11293_v10  ;;  %v11301_v24 = vadd.f32 %v3775_v46, %v10409_v4  ;;  %v11303_v12 = vpop.f32.mrf.mxu1  ;;  %v8885_v35 = vld [vmem:[%s16112_s0 + $0x21c] ss:$24 sps:$4 sm:$0xff]  }
 0x23a   :  { %4340 = vmatmul.mubr.bf16.gmra.mxu0 %v8883_v56  ;;  %5117 = vmatpush2.bf16.msra.mxu1 %v8323_v27  ;;  %16486 = vst [vmem:[#allocation148_spill] sm:$0xff] %v11303_v12  ;;  %v3777_v33 = vpop.f32.mrf.mxu0  ;;  %v8886_v27 = vld [vmem:[%s16112_s0 + $0x224] ss:$24 sps:$4 sm:$0xff]  }
 0x23b   :  { %16485 = vst [vmem:[#allocation147_spill] sm:$0xff] %v11301_v24  ;;  %4633 = vmatmul.mubr.bf16.gmra.mxu1 %v8884_v20  ;;  %4349 = vmatprep.mubr.bf16.mxu0 %v8885_v35  ;;  %v11316_v4 = vadd.f32 %v3777_v33, %v10412_v19  ;;  %v11318_v6 = vpop.f32.mrf.mxu1  ;;  %v8887_v19 = vld [vmem:[%s16112_s0 + $0x218] ss:$24 sps:$4 sm:$0xff]   ;;  %v16494_v35 = vld [vmem:[#allocation7_spill] sm:$0xff] }
 0x23c   :  { %8500 = vmatprep.mubr.msk.bf16.mxu1 %vm2956_vm0, %v8886_v27  ;;  %16488 = vst [vmem:[#allocation150_spill] sm:$0xff] %v11318_v6  ;;  %v3779_v58 = vpop.f32.mrf.mxu0 }
 0x23d   :  { %16487 = vst [vmem:[#allocation149_spill] sm:$0xff] %v11316_v4  ;;  %v11321_v47 = vadd.f32 %v3779_v58, %v10420_v39  ;;  %v11323_v36 = vpop.f32.mrf.mxu1  ;;  %v8888_v39 = vld [vmem:[%s16112_s0 + $0x220] ss:$24 sps:$4 sm:$0xff]   ;;  %v8889_v58 = vld [vmem:[%s16112_s0 + $0x24c] ss:$24 sps:$4 sm:$0xff]  }
 0x23e   :  { %16490 = vst [vmem:[#allocation152_spill] sm:$0xff] %v11323_v36  ;;  %v3781_v23 = vpop.f32.mrf.mxu0 }
 0x23f   :  { %16489 = vst [vmem:[#allocation151_spill] sm:$0xff] %v11321_v47  ;;  %v11326_v46 = vadd.f32 %v3781_v23, %v16491_v32  ;;  %v11328_v56 = vpop.f32.mrf.mxu1  ;;  %v8890_v32 = vld [vmem:[%s16112_s0 + $0x254] ss:$24 sps:$4 sm:$0xff]  }
 0x240   :  { %16493 = vst [vmem:[#allocation153_spill] sm:$0xff] %v11328_v56  ;;  %v3785_v20 = vpop.f32.mrf.mxu0  ;;  %v16508_v56 = vld [vmem:[#allocation11_spill] sm:$0xff] }
 0x241   :  { %16492 = vst [vmem:[#allocation6_spill] sm:$0xff] %v11326_v46  ;;  %v11334_v33 = vadd.f32 %v3785_v20, %v16494_v35  ;;  %v11336_v27 = vpop.f32.mrf.mxu1 }
 0x242   :  { %4350 = vmatmul.mubr.bf16.gmra.mxu0 %v8887_v19  ;;  %16496 = vst [vmem:[#allocation154_spill] sm:$0xff] %v11336_v27  ;;  %v3787_v23 = vpop.f32.mrf.mxu0  ;;  %v16497_v19 = vld [vmem:[#allocation8_spill] sm:$0xff] }
 0x243   :  { %16495 = vst [vmem:[#allocation7_spill] sm:$0xff] %v11334_v33  ;;  %4643 = vmatmul.mubr.bf16.gmra.mxu1 %v8888_v39  ;;  %4359 = vmatprep.mubr.bf16.mxu0 %v8889_v58  ;;  %v11351_v35 = vadd.f32 %v3787_v23, %v16497_v19  ;;  %v11353_v27 = vpop.f32.mrf.mxu1  ;;  %v16500_v58 = vld [vmem:[#allocation9_spill] sm:$0xff]  ;;  %v8891_v33 = vld [vmem:[%s16112_s0 + $0x248] ss:$24 sps:$4 sm:$0xff]  }
 0x244   :  { %8501 = vmatprep.mubr.msk.bf16.mxu1 %vm2956_vm0, %v8890_v32  ;;  %16499 = vst [vmem:[#allocation155_spill] sm:$0xff] %v11353_v27  ;;  %v3789_v39 = vpop.f32.mrf.mxu0  ;;  %v16518_v27 = vld [vmem:[#allocation14_spill] sm:$0xff]  ;;  %v16522_v32 = vld [vmem:[#allocation15_spill] sm:$0xff] }
 0x245   :  { %16498 = vst [vmem:[#allocation8_spill] sm:$0xff] %v11351_v35  ;;  %v11358_v36 = vadd.f32 %v3789_v39, %v16500_v58  ;;  %v11360_v6 = vpop.f32.mrf.mxu1  ;;  %v16512_v58 = vld [vmem:[#allocation12_spill] sm:$0xff] }
 0x246   :  { %16502 = vst [vmem:[#allocation156_spill] sm:$0xff] %v11360_v6  ;;  %v3791_v12 = vpop.f32.mrf.mxu0 }
 0x247   :  { %16501 = vst [vmem:[#allocation9_spill] sm:$0xff] %v11358_v36  ;;  %v11365_v20 = vadd.f32 %v3791_v12, %v16504_v30  ;;  %v11367_v23 = vpop.f32.mrf.mxu1  ;;  %v8892_v30 = vld [vmem:[%s16112_s0 + $0x250] ss:$24 sps:$4 sm:$0xff]   ;;  %v8893_v12 = vld [vmem:[%s16112_s0 + $0x27c] ss:$24 sps:$4 sm:$0xff]  }
 0x248   :  { %16506 = vst [vmem:[#allocation157_spill] sm:$0xff] %v11367_v23  ;;  %v3795_v19 = vpop.f32.mrf.mxu0 }
 0x249   :  { %16505 = vst [vmem:[#allocation10_spill] sm:$0xff] %v11365_v20  ;;  %v11375_v35 = vadd.f32 %v3795_v19, %v16508_v56  ;;  %v11377_v41 = vpop.f32.mrf.mxu1 }
 0x24a   :  { %4360 = vmatmul.mubr.bf16.gmra.mxu0 %v8891_v33  ;;  %16510 = vst [vmem:[#allocation158_spill] sm:$0xff] %v11377_v41  ;;  %v3797_v54 = vpop.f32.mrf.mxu0  ;;  %v8894_v33 = vld [vmem:[%s16112_s0 + $0x284] ss:$24 sps:$4 sm:$0xff]  }
 0x24b   :  { %16509 = vst [vmem:[#allocation11_spill] sm:$0xff] %v11375_v35  ;;  %4653 = vmatmul.mubr.bf16.gmra.mxu1 %v8892_v30  ;;  %4369 = vmatprep.mubr.bf16.mxu0 %v8893_v12  ;;  %v11392_v20 = vadd.f32 %v3797_v54, %v16512_v58  ;;  %v11394_v39 = vpop.f32.mrf.mxu1  ;;  %v16515_v12 = vld [vmem:[#allocation13_spill] sm:$0xff] }
 0x24c   :  { %8502 = vmatprep.mubr.msk.bf16.mxu1 %vm2956_vm0, %v8894_v33  ;;  %v3799_v30 = vpop.f32.mrf.mxu0  ;;  %v8895_v35 = vld [vmem:[%s16112_s0 + $0x278] ss:$24 sps:$4 sm:$0xff]  }
 0x24d   :  { %16513 = vst [vmem:[#allocation12_spill] sm:$0xff] %v11392_v20  ;;  %v11399_v59 = vadd.f32 %v3799_v30, %v16515_v12  ;;  %v11401_v41 = vpop.f32.mrf.mxu1  ;;  %v16526_v12 = vld [vmem:[#allocation16_spill] sm:$0xff] }
 0x24e   :  { %v3801_v23 = vpop.f32.mrf.mxu0 }
 0x24f   :  { %16516 = vst [vmem:[#allocation13_spill] sm:$0xff] %v11399_v59  ;;  %v11406_v19 = vadd.f32 %v3801_v23, %v16518_v27  ;;  %v11408_v54 = vpop.f32.mrf.mxu1  ;;  %v8896_v27 = vld [vmem:[%s16112_s0 + $0x280] ss:$24 sps:$4 sm:$0xff]   ;;  %v8897_v23 = vld [vmem:[%s16112_s0 + $0x2ac] ss:$24 sps:$4 sm:$0xff]  }
 0x250   :  { %16520 = vst [vmem:[#allocation159_spill] sm:$0xff] %v11408_v54  ;;  %v3805_v58 = vpop.f32.mrf.mxu0  ;;  %v16530_v54 = vld [vmem:[#allocation18_spill] sm:$0xff] }
 0x251   :  { %16519 = vst [vmem:[#allocation14_spill] sm:$0xff] %v11406_v19  ;;  %v11416_v20 = vadd.f32 %v3805_v58, %v16522_v32  ;;  %v11418_v36 = vpop.f32.mrf.mxu1  ;;  %v16538_v32 = vld [vmem:[#allocation22_spill] sm:$0xff] }
 0x252   :  { %4370 = vmatmul.mubr.bf16.gmra.mxu0 %v8895_v35  ;;  %16524 = vst [vmem:[#allocation160_spill] sm:$0xff] %v11418_v36  ;;  %v3807_v6 = vpop.f32.mrf.mxu0  ;;  %v8898_v35 = vld [vmem:[%s16112_s0 + $0x2b4] ss:$24 sps:$4 sm:$0xff]  }
 0x253   :  { %16523 = vst [vmem:[#allocation15_spill] sm:$0xff] %v11416_v20  ;;  %4663 = vmatmul.mubr.bf16.gmra.mxu1 %v8896_v27  ;;  %4379 = vmatprep.mubr.bf16.mxu0 %v8897_v23  ;;  %v11433_v19 = vadd.f32 %v3807_v6, %v16526_v12  ;;  %v11435_v30 = vpop.f32.mrf.mxu1  ;;  %v16528_v23 = vld [vmem:[#allocation17_spill] sm:$0xff]  ;;  %v8899_v20 = vld [vmem:[%s16112_s0 + $0x2a8] ss:$24 sps:$4 sm:$0xff]  }
 0x254   :  { %8503 = vmatprep.mubr.msk.bf16.mxu1 %vm2956_vm0, %v8898_v35  ;;  %v3809_v27 = vpop.f32.mrf.mxu0 }
 0x255   :  { %16527 = vst [vmem:[#allocation16_spill] sm:$0xff] %v11433_v19  ;;  %v11440_v33 = vadd.f32 %v3809_v27, %v16528_v23  ;;  %v11442_v56 = vpop.f32.mrf.mxu1  ;;  %v16532_v23 = vld [vmem:[#allocation19_spill] sm:$0xff] }
 0x256   :  { %v3811_v36 = vpop.f32.mrf.mxu0 }
 0x257   :  { %16529 = vst [vmem:[#allocation17_spill] sm:$0xff] %v11440_v33  ;;  %v11447_v58 = vadd.f32 %v3811_v36, %v16530_v54  ;;  %v11449_v6 = vpop.f32.mrf.mxu1  ;;  %v8900_v36 = vld [vmem:[%s16112_s0 + $0x2b0] ss:$24 sps:$4 sm:$0xff]   ;;  %v8901_v54 = vld [vmem:[%s16112_s0 + $0x2dc] ss:$24 sps:$4 sm:$0xff]  }
 0x258   :  { %v3815_v12 = vpop.f32.mrf.mxu0 }
 0x259   :  { %16531 = vst [vmem:[#allocation18_spill] sm:$0xff] %v11447_v58  ;;  %v11457_v59 = vadd.f32 %v3815_v12, %v16532_v23  ;;  %v11459_v19 = vpop.f32.mrf.mxu1  ;;  %v16534_v23 = vld [vmem:[#allocation20_spill] sm:$0xff] }
 0x25a   :  { %4380 = vmatmul.mubr.bf16.gmra.mxu0 %v8899_v20  ;;  %v3817_v35 = vpop.f32.mrf.mxu0  ;;  %v8902_v20 = vld [vmem:[%s16112_s0 + $0x2e4] ss:$24 sps:$4 sm:$0xff]  }
 0x25b   :  { %16533 = vst [vmem:[#allocation19_spill] sm:$0xff] %v11457_v59  ;;  %4673 = vmatmul.mubr.bf16.gmra.mxu1 %v8900_v36  ;;  %4389 = vmatprep.mubr.bf16.mxu0 %v8901_v54  ;;  %v11474_v27 = vadd.f32 %v3817_v35, %v16534_v23  ;;  %v11476_v58 = vpop.f32.mrf.mxu1  ;;  %v16536_v54 = vld [vmem:[#allocation21_spill] sm:$0xff] }
 0x25c   :  { %8504 = vmatprep.mubr.msk.bf16.mxu1 %vm2956_vm0, %v8902_v20  ;;  %v3819_v36 = vpop.f32.mrf.mxu0  ;;  %v8903_v59 = vld [vmem:[%s16112_s0 + $0x2d8] ss:$24 sps:$4 sm:$0xff]  }
 0x25d   :  { %16535 = vst [vmem:[#allocation20_spill] sm:$0xff] %v11474_v27  ;;  %v11481_v33 = vadd.f32 %v3819_v36, %v16536_v54  ;;  %v11483_v29 = vpop.f32.mrf.mxu1  ;;  %v16540_v54 = vld [vmem:[#allocation23_spill] sm:$0xff] }
 0x25e   :  { %v3821_v48 = vpop.f32.mrf.mxu0 }
 0x25f   :  { %16537 = vst [vmem:[#allocation21_spill] sm:$0xff] %v11481_v33  ;;  %v11488_v12 = vadd.f32 %v3821_v48, %v16538_v32  ;;  %v11490_v35 = vpop.f32.mrf.mxu1  ;;  %v8904_v48 = vld [vmem:[%s16112_s0 + $0x2e0] ss:$24 sps:$4 sm:$0xff]   ;;  %v8905_v32 = vld [vmem:[%s16112_s0 + $0x30c] ss:$24 sps:$4 sm:$0xff]  }
 0x260   :  { %v3825_v23 = vpop.f32.mrf.mxu0 }
 0x261   :  { %16539 = vst [vmem:[#allocation22_spill] sm:$0xff] %v11488_v12  ;;  %v11498_v14 = vadd.f32 %v3825_v23, %v16540_v54  ;;  %v11500_v27 = vpop.f32.mrf.mxu1  ;;  %v16542_v54 = vld [vmem:[#allocation24_spill] sm:$0xff] }
 0x262   :  { %4390 = vmatmul.mubr.bf16.gmra.mxu0 %v8903_v59  ;;  %v3827_v20 = vpop.f32.mrf.mxu0  ;;  %v8906_v59 = vld [vmem:[%s16112_s0 + $0x314] ss:$24 sps:$4 sm:$0xff]  }
 0x263   :  { %16541 = vst [vmem:[#allocation23_spill] sm:$0xff] %v11498_v14  ;;  %4683 = vmatmul.mubr.bf16.gmra.mxu1 %v8904_v48  ;;  %4399 = vmatprep.mubr.bf16.mxu0 %v8905_v32  ;;  %v11515_v36 = vadd.f32 %v3827_v20, %v16542_v54  ;;  %v11517_v12 = vpop.f32.mrf.mxu1  ;;  %v16545_v32 = vld [vmem:[#allocation25_spill] sm:$0xff]  ;;  %v11536_v54 = vld [vmem:[%s16111_s1 + $0x9d0] sm:$0xff] }
 0x264   :  { %8505 = vmatprep.mubr.msk.bf16.mxu1 %vm2956_vm0, %v8906_v59  ;;  %16544 = vst [vmem:[#allocation161_spill] sm:$0xff] %v11517_v12  ;;  %v3829_v48 = vpop.f32.mrf.mxu0  ;;  %v8907_v59 = vld [vmem:[%s16112_s0 + $0x308] ss:$24 sps:$4 sm:$0xff]  }
 0x265   :  { %16543 = vst [vmem:[#allocation24_spill] sm:$0xff] %v11515_v36  ;;  %v11522_v33 = vadd.f32 %v3829_v48, %v16545_v32  ;;  %v11524_v8 = vpop.f32.mrf.mxu1  ;;  %v11541_v48 = vld [vmem:[%s16111_s1 + $0x9f0] sm:$0xff] }
 0x266   :  { %16547 = vst [vmem:[#allocation162_spill] sm:$0xff] %v11524_v8  ;;  %v3831_v3 = vpop.f32.mrf.mxu0 }
 0x267   :  { %16546 = vst [vmem:[#allocation25_spill] sm:$0xff] %v11522_v33  ;;  %v11529_v23 = vadd.f32 %v3831_v3, %v16548_v53  ;;  %v11531_v20 = vpop.f32.mrf.mxu1  ;;  %v8444_v3 = vcombine.high %v11536_v54, %v11541_v48  ;;  %v16551_v33 = vld [vmem:[#allocation27_spill] sm:$0xff]  ;;  %v11566_v53 = vld [vmem:[%s16111_s1 + $0x1d8] sm:$0xff] }
 0x268   :  { %16550 = vst [vmem:[#allocation163_spill] sm:$0xff] %v11531_v20  ;;  %v3835_v32 = vpop.f32.mrf.mxu0 }
 0x269   :  { %16549 = vst [vmem:[#allocation26_spill] sm:$0xff] %v11529_v23  ;;  %v11553_v49 = vadd.f32 %v3835_v32, %v16551_v33  ;;  %v11555_v36 = vpop.f32.mrf.mxu1  ;;  %v11571_v33 = vld [vmem:[%s16111_s1 + $0x1f8] sm:$0xff]  ;;  %5379 = vmatprep.subr.bf16.mxu0 %v8444_v3  ;;  %v16558_v23 = vld [vmem:[#allocation30_spill] sm:$0xff] }
 0x26a   :  { %4400 = vmatmul.mubr.bf16.gmra.mxu0 %v8907_v59  ;;  %16553 = vst [vmem:[#allocation164_spill] sm:$0xff] %v11555_v36  ;;  %v8909_v59 = vld [vmem:[%s16112_s0 + $0x33c] ss:$24 sps:$4 sm:$0xff]   ;;  %v3837_v32 = vpop.f32.mrf.mxu0  ;;  %v8190_v51 = vcombine.high %v11566_v53, %v11571_v33 }
 0x26b   :  { %16552 = vst [vmem:[#allocation27_spill] sm:$0xff] %v11553_v49  ;;  %4693 = vmatmul.mubr.bf16.gmra.mxu1 %v8908_v44  ;;  %4409 = vmatprep.mubr.bf16.mxu0 %v8909_v59  ;;  %v8910_v44 = vld [vmem:[%s16112_s0 + $0x344] ss:$24 sps:$4 sm:$0xff]   ;;  %v11584_v14 = vadd.f32 %v3837_v32, %v16554_v62  ;;  %v11586_v37 = vpop.f32.mrf.mxu1 }
 0x26c   :  { %8506 = vmatprep.mubr.msk.bf16.mxu1 %vm2956_vm0, %v8910_v44  ;;  %v3839_v36 = vpop.f32.mrf.mxu0  ;;  %5672 = vmatprep.subr.bf16.mxu1 %v8190_v51  ;;  %v16556_v3 = vld [vmem:[#allocation29_spill] sm:$0xff] }
 0x26d   :  { %16555 = vst [vmem:[#allocation28_spill] sm:$0xff] %v11584_v14  ;;  %v11591_v20 = vadd.f32 %v3839_v36, %v16556_v3  ;;  %v11593_v59 = vpop.f32.mrf.mxu1  ;;  %v8911_v51 = vld [vmem:[%s16112_s0 + $0x338] ss:$24 sps:$4 sm:$0xff]   ;;  %v16560_v3 = vld [vmem:[#allocation31_spill] sm:$0xff] }
 0x26e   :  { %v3841_v8 = vpop.f32.mrf.mxu0 }
 0x26f   :  { %16557 = vst [vmem:[#allocation29_spill] sm:$0xff] %v11591_v20  ;;  %v11598_v49 = vadd.f32 %v3841_v8, %v16558_v23  ;;  %v11600_v62 = vpop.f32.mrf.mxu1  ;;  %v8912_v8 = vld [vmem:[%s16112_s0 + $0x340] ss:$24 sps:$4 sm:$0xff]   ;;  %v8913_v23 = vld [vmem:[%s16112_s0 + $0x36c] ss:$24 sps:$4 sm:$0xff]  }
 0x270   :  { %v3845_v32 = vpop.f32.mrf.mxu0 }
 0x271   :  { %16559 = vst [vmem:[#allocation30_spill] sm:$0xff] %v11598_v49  ;;  %v11608_v44 = vadd.f32 %v3845_v32, %v16560_v3  ;;  %v11610_v14 = vpop.f32.mrf.mxu1  ;;  %v16562_v3 = vld [vmem:[#allocation32_spill] sm:$0xff] }
 0x272   :  { %4410 = vmatmul.mubr.bf16.gmra.mxu0 %v8911_v51  ;;  %v3847_v12 = vpop.f32.mrf.mxu0  ;;  %v8914_v51 = vld [vmem:[%s16112_s0 + $0x374] ss:$24 sps:$4 sm:$0xff]  }
 0x273   :  { %16561 = vst [vmem:[#allocation31_spill] sm:$0xff] %v11608_v44  ;;  %4703 = vmatmul.mubr.bf16.gmra.mxu1 %v8912_v8  ;;  %4419 = vmatprep.mubr.bf16.mxu0 %v8913_v23  ;;  %v11625_v36 = vadd.f32 %v3847_v12, %v16562_v3  ;;  %v11627_v49 = vpop.f32.mrf.mxu1  ;;  %v16564_v23 = vld [vmem:[#allocation33_spill] sm:$0xff]  ;;  %v8915_v44 = vld [vmem:[%s16112_s0 + $0x368] ss:$24 sps:$4 sm:$0xff]  }
 0x274   :  { %8507 = vmatprep.mubr.msk.bf16.mxu1 %vm2956_vm0, %v8914_v51  ;;  %v3849_v8 = vpop.f32.mrf.mxu0 }
 0x275   :  { %16563 = vst [vmem:[#allocation32_spill] sm:$0xff] %v11625_v36  ;;  %v11632_v20 = vadd.f32 %v3849_v8, %v16564_v23  ;;  %v11634_v31 = vpop.f32.mrf.mxu1  ;;  %v16569_v23 = vld [vmem:[#allocation35_spill] sm:$0xff] }
 0x276   :  { %v3851_v2 = vpop.f32.mrf.mxu0 }
 0x277   :  { %16565 = vst [vmem:[#allocation33_spill] sm:$0xff] %v11632_v20  ;;  %v11639_v32 = vadd.f32 %v3851_v2, %v16566_v26  ;;  %v11641_v12 = vpop.f32.mrf.mxu1  ;;  %v8916_v26 = vld [vmem:[%s16112_s0 + $0x370] ss:$24 sps:$4 sm:$0xff]   ;;  %v8917_v2 = vld [vmem:[%s16112_s0 + $0x39c] ss:$24 sps:$4 sm:$0xff]  }
 0x278   :  { %16568 = vst [vmem:[#allocation165_spill] sm:$0xff] %v11641_v12  ;;  %v3855_v3 = vpop.f32.mrf.mxu0 }
 0x279   :  { %16567 = vst [vmem:[#allocation34_spill] sm:$0xff] %v11639_v32  ;;  %v11649_v45 = vadd.f32 %v3855_v3, %v16569_v23  ;;  %v11651_v36 = vpop.f32.mrf.mxu1  ;;  %v16572_v23 = vld [vmem:[#allocation36_spill] sm:$0xff] }
 0x27a   :  { %4420 = vmatmul.mubr.bf16.gmra.mxu0 %v8915_v44  ;;  %16571 = vst [vmem:[#allocation166_spill] sm:$0xff] %v11651_v36  ;;  %v3857_v51 = vpop.f32.mrf.mxu0  ;;  %v8918_v44 = vld [vmem:[%s16112_s0 + $0x3a4] ss:$24 sps:$4 sm:$0xff]   ;;  %v16724_v36 = vld [vmem:[#allocation139_spill] sm:$0xff] }
 0x27b   :  { %16570 = vst [vmem:[#allocation35_spill] sm:$0xff] %v11649_v45  ;;  %4713 = vmatmul.mubr.bf16.gmra.mxu1 %v8916_v26  ;;  %4429 = vmatprep.mubr.bf16.mxu0 %v8917_v2  ;;  %v11666_v8 = vadd.f32 %v3857_v51, %v16572_v23  ;;  %v11668_v32 = vpop.f32.mrf.mxu1  ;;  %v16575_v2 = vld [vmem:[#allocation37_spill] sm:$0xff] }
 0x27c   :  { %8508 = vmatprep.mubr.msk.bf16.mxu1 %vm2956_vm0, %v8918_v44  ;;  %16574 = vst [vmem:[#allocation167_spill] sm:$0xff] %v11668_v32  ;;  %v3859_v26 = vpop.f32.mrf.mxu0  ;;  %v8919_v45 = vld [vmem:[%s16112_s0 + $0x398] ss:$24 sps:$4 sm:$0xff]  }
 0x27d   :  { %16573 = vst [vmem:[#allocation36_spill] sm:$0xff] %v11666_v8  ;;  %v11673_v20 = vadd.f32 %v3859_v26, %v16575_v2  ;;  %v11675_v63 = vpop.f32.mrf.mxu1  ;;  %v16581_v2 = vld [vmem:[#allocation39_spill] sm:$0xff] }
 0x27e   :  { %16577 = vst [vmem:[#allocation168_spill] sm:$0xff] %v11675_v63  ;;  %v3861_v13 = vpop.f32.mrf.mxu0 }
 0x27f   :  { %16576 = vst [vmem:[#allocation37_spill] sm:$0xff] %v11673_v20  ;;  %v11680_v3 = vadd.f32 %v3861_v13, %v16578_v1  ;;  %v11682_v51 = vpop.f32.mrf.mxu1  ;;  %v8920_v1 = vld [vmem:[%s16112_s0 + $0x3a0] ss:$24 sps:$4 sm:$0xff]   ;;  %v8921_v13 = vld [vmem:[%s16112_s0 + $0x3cc] ss:$24 sps:$4 sm:$0xff]  }
 0x280   :  { %16580 = vst [vmem:[#allocation169_spill] sm:$0xff] %v11682_v51  ;;  %v3865_v23 = vpop.f32.mrf.mxu0 }
 0x281   :  { %16579 = vst [vmem:[#allocation38_spill] sm:$0xff] %v11680_v3  ;;  %v11690_v17 = vadd.f32 %v3865_v23, %v16581_v2  ;;  %v11692_v8 = vpop.f32.mrf.mxu1  ;;  %v16584_v2 = vld [vmem:[#allocation40_spill] sm:$0xff] }
 0x282   :  { %4430 = vmatmul.mubr.bf16.gmra.mxu0 %v8919_v45  ;;  %16583 = vst [vmem:[#allocation170_spill] sm:$0xff] %v11692_v8  ;;  %v3867_v44 = vpop.f32.mrf.mxu0  ;;  %v8922_v45 = vld [vmem:[%s16112_s0 + $0x3d4] ss:$24 sps:$4 sm:$0xff]  }
 0x283   :  { %16582 = vst [vmem:[#allocation39_spill] sm:$0xff] %v11690_v17  ;;  %4723 = vmatmul.mubr.bf16.gmra.mxu1 %v8920_v1  ;;  %4439 = vmatprep.mubr.bf16.mxu0 %v8921_v13  ;;  %v11707_v26 = vadd.f32 %v3867_v44, %v16584_v2  ;;  %v11709_v3 = vpop.f32.mrf.mxu1  ;;  %v16587_v13 = vld [vmem:[#allocation41_spill] sm:$0xff]  ;;  %v8923_v17 = vld [vmem:[%s16112_s0 + $0x3c8] ss:$24 sps:$4 sm:$0xff]  }
 0x284   :  { %8509 = vmatprep.mubr.msk.bf16.mxu1 %vm2956_vm0, %v8922_v45  ;;  %16586 = vst [vmem:[#allocation171_spill] sm:$0xff] %v11709_v3  ;;  %v3869_v1 = vpop.f32.mrf.mxu0  ;;  %v16670_v3 = vld [vmem:[#allocation87_spill] sm:$0xff] }
 0x285   :  { %16585 = vst [vmem:[#allocation40_spill] sm:$0xff] %v11707_v26  ;;  %v11714_v20 = vadd.f32 %v3869_v1, %v16587_v13  ;;  %v11716_v50 = vpop.f32.mrf.mxu1  ;;  %v16593_v13 = vld [vmem:[#allocation43_spill] sm:$0xff] }
 0x286   :  { %16589 = vst [vmem:[#allocation172_spill] sm:$0xff] %v11716_v50  ;;  %v3871_v61 = vpop.f32.mrf.mxu0 }
 0x287   :  { %16588 = vst [vmem:[#allocation41_spill] sm:$0xff] %v11714_v20  ;;  %v11721_v23 = vadd.f32 %v3871_v61, %v16590_v9  ;;  %v11723_v44 = vpop.f32.mrf.mxu1  ;;  %v8924_v9 = vld [vmem:[%s16112_s0 + $0x3d0] ss:$24 sps:$4 sm:$0xff]   ;;  %v8925_v61 = vld [vmem:[%s16112_s0 + $0x3fc] ss:$24 sps:$4 sm:$0xff]  }
 0x288   :  { %16592 = vst [vmem:[#allocation173_spill] sm:$0xff] %v11723_v44  ;;  %v3875_v2 = vpop.f32.mrf.mxu0 }
 0x289   :  { %16591 = vst [vmem:[#allocation42_spill] sm:$0xff] %v11721_v23  ;;  %v11731_v22 = vadd.f32 %v3875_v2, %v16593_v13  ;;  %v11733_v26 = vpop.f32.mrf.mxu1  ;;  %v16596_v13 = vld [vmem:[#allocation44_spill] sm:$0xff] }
 0x28a   :  { %4440 = vmatmul.mubr.bf16.gmra.mxu0 %v8923_v17  ;;  %16595 = vst [vmem:[#allocation174_spill] sm:$0xff] %v11733_v26  ;;  %v3877_v45 = vpop.f32.mrf.mxu0  ;;  %v8926_v17 = vld [vmem:[%s16112_s0 + $0x404] ss:$24 sps:$4 sm:$0xff]  }
 0x28b   :  { %16594 = vst [vmem:[#allocation43_spill] sm:$0xff] %v11731_v22  ;;  %4733 = vmatmul.mubr.bf16.gmra.mxu1 %v8924_v9  ;;  %4449 = vmatprep.mubr.bf16.mxu0 %v8925_v61  ;;  %v11748_v1 = vadd.f32 %v3877_v45, %v16596_v13  ;;  %v11750_v23 = vpop.f32.mrf.mxu1  ;;  %v16599_v61 = vld [vmem:[#allocation45_spill] sm:$0xff] }
 0x28c   :  { %8510 = vmatprep.mubr.msk.bf16.mxu1 %vm2956_vm0, %v8926_v17  ;;  %16598 = vst [vmem:[#allocation175_spill] sm:$0xff] %v11750_v23  ;;  %v3879_v9 = vpop.f32.mrf.mxu0  ;;  %v8927_v22 = vld [vmem:[%s16112_s0 + $0x3f8] ss:$24 sps:$4 sm:$0xff]  }
 0x28d   :  { %16597 = vst [vmem:[#allocation44_spill] sm:$0xff] %v11748_v1  ;;  %v11755_v20 = vadd.f32 %v3879_v9, %v16599_v61  ;;  %v11757_v60 = vpop.f32.mrf.mxu1  ;;  %v16605_v61 = vld [vmem:[#allocation47_spill] sm:$0xff] }
 0x28e   :  { %16601 = vst [vmem:[#allocation176_spill] sm:$0xff] %v11757_v60  ;;  %v3881_v28 = vpop.f32.mrf.mxu0  ;;  %v16660_v60 = vcombine.low %v11566_v53, %v11571_v33  ;;  %v225_v33 = vld [vmem:[%s16111_s1 + $0x138] sm:$0xff] }
 0x28f   :  { %16600 = vst [vmem:[#allocation45_spill] sm:$0xff] %v11755_v20  ;;  %v11762_v2 = vadd.f32 %v3881_v28, %v16602_v18  ;;  %v11764_v45 = vpop.f32.mrf.mxu1  ;;  %v8928_v18 = vld [vmem:[%s16112_s0 + $0x400] ss:$24 sps:$4 sm:$0xff]   ;;  %v8929_v28 = vld [vmem:[%s16112_s0 + $0x42c] ss:$24 sps:$4 sm:$0xff]  }
 0x290   :  { %16604 = vst [vmem:[#allocation177_spill] sm:$0xff] %v11764_v45  ;;  %v3885_v13 = vpop.f32.mrf.mxu0 }
 0x291   :  { %16603 = vst [vmem:[#allocation46_spill] sm:$0xff] %v11762_v2  ;;  %v11772_v43 = vadd.f32 %v3885_v13, %v16605_v61  ;;  %v11774_v1 = vpop.f32.mrf.mxu1  ;;  %v16608_v61 = vld [vmem:[#allocation48_spill] sm:$0xff] }
 0x292   :  { %4450 = vmatmul.mubr.bf16.gmra.mxu0 %v8927_v22  ;;  %16607 = vst [vmem:[#allocation178_spill] sm:$0xff] %v11774_v1  ;;  %v3887_v17 = vpop.f32.mrf.mxu0  ;;  %v8930_v22 = vld [vmem:[%s16112_s0 + $0x434] ss:$24 sps:$4 sm:$0xff]  }
 0x293   :  { %16606 = vst [vmem:[#allocation47_spill] sm:$0xff] %v11772_v43  ;;  %4743 = vmatmul.mubr.bf16.gmra.mxu1 %v8928_v18  ;;  %4459 = vmatprep.mubr.bf16.mxu0 %v8929_v28  ;;  %v11789_v9 = vadd.f32 %v3887_v17, %v16608_v61  ;;  %v11791_v2 = vpop.f32.mrf.mxu1  ;;  %v16611_v28 = vld [vmem:[#allocation49_spill] sm:$0xff]  ;;  %v8931_v43 = vld [vmem:[%s16112_s0 + $0x428] ss:$24 sps:$4 sm:$0xff]  }
 0x294   :  { %8511 = vmatprep.mubr.msk.bf16.mxu1 %vm2956_vm0, %v8930_v22  ;;  %16610 = vst [vmem:[#allocation179_spill] sm:$0xff] %v11791_v2  ;;  %v3889_v18 = vpop.f32.mrf.mxu0 }
 0x295   :  { %16609 = vst [vmem:[#allocation48_spill] sm:$0xff] %v11789_v9  ;;  %v11796_v20 = vadd.f32 %v3889_v18, %v16611_v28  ;;  %v11798_v42 = vpop.f32.mrf.mxu1  ;;  %v16617_v28 = vld [vmem:[#allocation51_spill] sm:$0xff] }
 0x296   :  { %16613 = vst [vmem:[#allocation180_spill] sm:$0xff] %v11798_v42  ;;  %v3891_v5 = vpop.f32.mrf.mxu0  ;;  %v229_v42 = vld [vmem:[%s16111_s1 + $0x158] sm:$0xff] }
 0x297   :  { %16612 = vst [vmem:[#allocation49_spill] sm:$0xff] %v11796_v20  ;;  %v11803_v13 = vadd.f32 %v3891_v5, %v16614_v21  ;;  %v11805_v17 = vpop.f32.mrf.mxu1  ;;  %v8932_v21 = vld [vmem:[%s16112_s0 + $0x430] ss:$24 sps:$4 sm:$0xff]   ;;  %v8933_v5 = vld [vmem:[%s16112_s0 + $0x45c] ss:$24 sps:$4 sm:$0xff]  }
 0x298   :  { %16616 = vst [vmem:[#allocation181_spill] sm:$0xff] %v11805_v17  ;;  %v3895_v61 = vpop.f32.mrf.mxu0  ;;  %v8948_v17 = vld [vmem:[%s16112_s0 + $0x8] ss:$24 sps:$4 sm:$0xff]  }
 0x299   :  { %16615 = vst [vmem:[#allocation50_spill] sm:$0xff] %v11803_v13  ;;  %v11813_v55 = vadd.f32 %v3895_v61, %v16617_v28  ;;  %v11815_v9 = vpop.f32.mrf.mxu1  ;;  %v16620_v28 = vld [vmem:[#allocation52_spill] sm:$0xff] }
 0x29a   :  { %4460 = vmatmul.mubr.bf16.gmra.mxu0 %v8931_v43  ;;  %16619 = vst [vmem:[#allocation182_spill] sm:$0xff] %v11815_v9  ;;  %v3897_v22 = vpop.f32.mrf.mxu0  ;;  %v8934_v43 = vld [vmem:[%s16112_s0 + $0x464] ss:$24 sps:$4 sm:$0xff]  }
 0x29b   :  { %16618 = vst [vmem:[#allocation51_spill] sm:$0xff] %v11813_v55  ;;  %4753 = vmatmul.mubr.bf16.gmra.mxu1 %v8932_v21  ;;  %4469 = vmatprep.mubr.bf16.mxu0 %v8933_v5  ;;  %v11830_v18 = vadd.f32 %v3897_v22, %v16620_v28  ;;  %v11832_v13 = vpop.f32.mrf.mxu1  ;;  %v16623_v5 = vld [vmem:[#allocation53_spill] sm:$0xff] }
 0x29c   :  { %8512 = vmatprep.mubr.msk.bf16.mxu1 %vm2956_vm0, %v8934_v43  ;;  %16622 = vst [vmem:[#allocation183_spill] sm:$0xff] %v11832_v13  ;;  %v3899_v21 = vpop.f32.mrf.mxu0  ;;  %v8935_v55 = vld [vmem:[%s16112_s0 + $0x458] ss:$24 sps:$4 sm:$0xff]  }
 0x29d   :  { %16621 = vst [vmem:[#allocation52_spill] sm:$0xff] %v11830_v18  ;;  %v11837_v20 = vadd.f32 %v3899_v21, %v16623_v5  ;;  %v11839_v40 = vpop.f32.mrf.mxu1  ;;  %v16629_v5 = vld [vmem:[#allocation55_spill] sm:$0xff] }
 0x29e   :  { %16625 = vst [vmem:[#allocation184_spill] sm:$0xff] %v11839_v40  ;;  %v3901_v11 = vpop.f32.mrf.mxu0 }
 0x29f   :  { %16624 = vst [vmem:[#allocation53_spill] sm:$0xff] %v11837_v20  ;;  %v11844_v61 = vadd.f32 %v3901_v11, %v16626_v16  ;;  %v11846_v22 = vpop.f32.mrf.mxu1  ;;  %v8936_v16 = vld [vmem:[%s16112_s0 + $0x460] ss:$24 sps:$4 sm:$0xff]   ;;  %v8937_v11 = vld [vmem:[%s16112_s0 + $0x48c] ss:$24 sps:$4 sm:$0xff]  }
 0x2a0   :  { %16628 = vst [vmem:[#allocation185_spill] sm:$0xff] %v11846_v22  ;;  %v3905_v28 = vpop.f32.mrf.mxu0 }
 0x2a1   :  { %16627 = vst [vmem:[#allocation54_spill] sm:$0xff] %v11844_v61  ;;  %v11854_v38 = vadd.f32 %v3905_v28, %v16629_v5  ;;  %v11856_v18 = vpop.f32.mrf.mxu1  ;;  %v16632_v5 = vld [vmem:[#allocation56_spill] sm:$0xff] }
 0x2a2   :  { %4470 = vmatmul.mubr.bf16.gmra.mxu0 %v8935_v55  ;;  %16631 = vst [vmem:[#allocation186_spill] sm:$0xff] %v11856_v18  ;;  %v3907_v43 = vpop.f32.mrf.mxu0  ;;  %v8938_v55 = vld [vmem:[%s16112_s0 + $0x494] ss:$24 sps:$4 sm:$0xff]  }
 0x2a3   :  { %16630 = vst [vmem:[#allocation55_spill] sm:$0xff] %v11854_v38  ;;  %4763 = vmatmul.mubr.bf16.gmra.mxu1 %v8936_v16  ;;  %4479 = vmatprep.mubr.bf16.mxu0 %v8937_v11  ;;  %v11871_v21 = vadd.f32 %v3907_v43, %v16632_v5  ;;  %v11873_v61 = vpop.f32.mrf.mxu1  ;;  %v16635_v11 = vld [vmem:[#allocation57_spill] sm:$0xff]  ;;  %v8939_v38 = vld [vmem:[%s16112_s0 + $0x488] ss:$24 sps:$4 sm:$0xff]  }
 0x2a4   :  { %8513 = vmatprep.mubr.msk.bf16.mxu1 %vm2956_vm0, %v8938_v55  ;;  %16634 = vst [vmem:[#allocation187_spill] sm:$0xff] %v11873_v61  ;;  %v3909_v16 = vpop.f32.mrf.mxu0  ;;  %v8940_v55 = vld [vmem:[%s16112_s0 + $0x490] ss:$24 sps:$4 sm:$0xff]  }
 0x2a5   :  { %16633 = vst [vmem:[#allocation56_spill] sm:$0xff] %v11871_v21  ;;  %v11878_v20 = vadd.f32 %v3909_v16, %v16635_v11  ;;  %v11880_v25 = vpop.f32.mrf.mxu1  ;;  %v16641_v11 = vld [vmem:[#allocation60_spill] sm:$0xff] }
 0x2a6   :  { %16637 = vst [vmem:[#allocation188_spill] sm:$0xff] %v11880_v25  ;;  %v3911_v7 = vpop.f32.mrf.mxu0 }
 0x2a7   :  { %16636 = vst [vmem:[#allocation57_spill] sm:$0xff] %v11878_v20  ;;  %v11885_v28 = vadd.f32 %v3911_v7, %v16638_v52  ;;  %v11887_v43 = vpop.f32.mrf.mxu1  ;;  %v8941_v52 = vld [vmem:[%s16112_s0 + $0x4bc] ss:$24 sps:$4 sm:$0xff]  }
 0x2a8   :  { %16640 = vst [vmem:[#allocation189_spill] sm:$0xff] %v11887_v43  ;;  %v4241_v5 = vpop.f32.mrf.mxu0  ;;  %v16647_v43 = vld [vmem:[#allocation66_spill] sm:$0xff] }
 0x2a9   :  { %16639 = vst [vmem:[#allocation58_spill] sm:$0xff] %v11885_v28  ;;  %v4242_v10 = vadd.f32 %v4241_v5, %v16641_v11  ;;  %v4534_v21 = vpop.f32.mrf.mxu1  ;;  %v16643_v5 = vld [vmem:[#allocation62_spill] sm:$0xff] }
 0x2aa   :  { %4480 = vmatmul.mubr.bf16.gmra.mxu0 %v8939_v38  ;;  %v4243_v7 = vpop.f32.mrf.mxu0  ;;  %v8942_v38 = vld [vmem:[%s16112_s0 + $0x4c4] ss:$24 sps:$4 sm:$0xff]  }
 0x2ab   :  { %4773 = vmatmul.mubr.bf16.gmra.mxu1 %v8940_v55  ;;  %4489 = vmatprep.mubr.bf16.mxu0 %v8941_v52  ;;  %v11905_v16 = vadd.f32 %v4534_v21, %v4242_v10  ;;  %v4244_v11 = vadd.f32 %v4243_v7, %v16643_v5  ;;  %v4536_v28 = vpop.f32.mrf.mxu1  ;;  %v16645_v55 = vld [vmem:[#allocation64_spill] sm:$0xff] }
 0x2ac   :  { %8514 = vmatprep.mubr.msk.bf16.mxu1 %vm2956_vm0, %v8942_v38  ;;  %v4245_v46 = vpop.f32.mrf.mxu0  ;;  %v8943_v10 = vld [vmem:[%s16112_s0 + $0x4b8] ss:$24 sps:$4 sm:$0xff]  }
 0x2ad   :  { %16642 = vst [vmem:[#allocation60_spill] sm:$0xff] %v11905_v16  ;;  %v11908_v20 = vadd.f32 %v4536_v28, %v4244_v11  ;;  %v4246_v47 = vadd.f32 %v4245_v46, %v16645_v55  ;;  %v4538_v4 = vpop.f32.mrf.mxu1  ;;  %v16649_v7 = vld [vmem:[#allocation68_spill] sm:$0xff]  ;;  %v8944_v46 = vld [vmem:[%s16112_s0 + $0x4c0] ss:$24 sps:$4 sm:$0xff]  }
 0x2ae   :  { %v4247_v24 = vpop.f32.mrf.mxu0  ;;  %v492_v11 = vld [vmem:[%s16111_s1 + $0x990] sm:$0xff] }
 0x2af   :  { %16644 = vst [vmem:[#allocation62_spill] sm:$0xff] %v11908_v20  ;;  %v11911_v52 = vadd.f32 %v4538_v4, %v4246_v47  ;;  %v4248_v25 = vadd.f32 %v4247_v24, %v16647_v43  ;;  %v4540_v61 = vpop.f32.mrf.mxu1  ;;  %v8945_v24 = vld [vmem:[%s16112_s0 + $0x4] ss:$24 sps:$4 sm:$0xff]   ;;  %v496_v55 = vld [vmem:[%s16111_s1 + $0x9b0] sm:$0xff] }
 0x2b0   :  { %v4251_v18 = vpop.f32.mrf.mxu0  ;;  %v8946_v47 = vld [vmem:[%s16112_s0 + $0xc] ss:$24 sps:$4 sm:$0xff]   ;;  %v8436_v13 = vcombine.high %v492_v11, %v496_v55 }
 0x2b1   :  { %16646 = vst [vmem:[#allocation64_spill] sm:$0xff] %v11911_v52  ;;  %v11917_v21 = vadd.f32 %v4540_v61, %v4248_v25  ;;  %v4252_v28 = vadd.f32 %v4251_v18, %v16649_v7  ;;  %v4544_v38 = vpop.f32.mrf.mxu1  ;;  %v16651_v18 = vld [vmem:[#allocation70_spill] sm:$0xff]  ;;  %v16653_v7 = vld [vmem:[#allocation72_spill] sm:$0xff] }
 0x2b2   :  { %4490 = vmatmul.mubr.bf16.gmra.mxu0 %v8943_v10  ;;  %v4253_v4 = vpop.f32.mrf.mxu0 }
 0x2b3   :  { %16648 = vst [vmem:[#allocation66_spill] sm:$0xff] %v11917_v21  ;;  %4783 = vmatmul.mubr.bf16.gmra.mxu1 %v8944_v46  ;;  %4825 = vmatprep.mubr.bf16.mxu0 %v8945_v24  ;;  %v11929_v25 = vadd.f32 %v4544_v38, %v4252_v28  ;;  %v4254_v61 = vadd.f32 %v4253_v4, %v16651_v18  ;;  %v4546_v43 = vpop.f32.mrf.mxu1  ;;  %v237_v28 = vld [vmem:[%s16111_s1 + $0x198] sm:$0xff]  ;;  %v16655_v18 = vld [vmem:[#allocation74_spill] sm:$0xff] }
 0x2b4   :  { %5118 = vmatprep.mubr.bf16.mxu1 %v8946_v47  ;;  %v4255_v5 = vpop.f32.mrf.mxu0  ;;  %v241_v38 = vld [vmem:[%s16111_s1 + $0x1b8] sm:$0xff] }
 0x2b5   :  { %16650 = vst [vmem:[#allocation68_spill] sm:$0xff] %v11929_v25  ;;  %v11938_v10 = vadd.f32 %v4546_v43, %v4254_v61  ;;  %v4256_v46 = vadd.f32 %v4255_v5, %v16653_v7  ;;  %v4548_v24 = vpop.f32.mrf.mxu1  ;;  %v8947_v43 = vld [vmem:[%s16112_s0] ss:$24 sps:$4 sm:$0xff]   ;;  %v8182_v5 = vcombine.high %v237_v28, %v241_v38  ;;  %v11956_v7 = vld [vmem:[%s16111_s1 + $0x950] sm:$0xff] }
 0x2b6   :  { %v4257_v4 = vpop.f32.mrf.mxu0 }
 0x2b7   :  { %16652 = vst [vmem:[#allocation70_spill] sm:$0xff] %v11938_v10  ;;  %v11947_v47 = vadd.f32 %v4548_v24, %v4256_v46  ;;  %v4258_v22 = vadd.f32 %v4257_v4, %v16655_v18  ;;  %v4550_v40 = vpop.f32.mrf.mxu1  ;;  %v488_v46 = vld [vmem:[%s16111_s1 + $0x970] sm:$0xff] }
 0x2b8   :  { %v4261_v61 = vpop.f32.mrf.mxu0  ;;  %v16657_v4 = vld [vmem:[#allocation76_spill] sm:$0xff]  ;;  %v8428_v23 = vcombine.high %v11956_v7, %v488_v46 }
 0x2b9   :  { %16654 = vst [vmem:[#allocation72_spill] sm:$0xff] %v11947_v47  ;;  %v11961_v24 = vadd.f32 %v4550_v40, %v4258_v22  ;;  %v4262_v18 = vadd.f32 %v4261_v61, %v16657_v4  ;;  %v233_v40 = vld [vmem:[%s16111_s1 + $0x178] sm:$0xff]  ;;  %v8181_v4 = vcombine.low %v237_v28, %v241_v38  ;;  %v8427_v28 = vcombine.low %v11956_v7, %v488_v46  ;;  %v472_v7 = vld [vmem:[%s16111_s1 + $0x8f0] sm:$0xff] }
 0x2ba   :  { %4826 = vmatmul.mubr.bf16.vlgmr.msra.gmra.mxu0 %v8947_v43  ;;  %v4554_v9 = vpop.f32.mrf.mxu1  ;;  %v8949_v43 = vld [vmem:[%s16112_s0 + $0x34] ss:$24 sps:$4 sm:$0xff]   ;;  %v4263_v22 = vpop.f32.mrf.mxu0 }
 0x2bb   :  { %16656 = vst [vmem:[#allocation74_spill] sm:$0xff] %v11961_v24  ;;  %5119 = vmatmul.mubr.bf16.vlgmr.msra.gmra.mxu1 %v8948_v17  ;;  %4835 = vmatprep.mubr.bf16.mxu0 %v8949_v43  ;;  %v8950_v61 = vld [vmem:[%s16112_s0 + $0x3c] ss:$24 sps:$4 sm:$0xff]   ;;  %v16658_v17 = vcombine.low %v11536_v54, %v11541_v48  ;;  %v8435_v43 = vcombine.low %v492_v11, %v496_v55 }
 0x2bc   :  { %5128 = vmatprep.mubr.bf16.mxu1 %v8950_v61  ;;  %v11982_v2 = vadd.f32 %v4554_v9, %v4262_v18  ;;  %v4264_v1 = vadd.f32 %v4263_v22, %v10829_v57  ;;  %v4556_v45 = vpop.f32.mrf.mxu1  ;;  %5673 = vmatpush1.bf16.msra.mxu1 %v16660_v60  ;;  %v4265_v26 = vpop.f32.mrf.mxu0  ;;  %v8174_v61 = vcombine.high %v229_v42, %v233_v40  ;;  %v476_v54 = vld [vmem:[%s16111_s1 + $0x910] sm:$0xff]  ;;  %v16662_v9 = vld [vmem:[#allocation79_spill] sm:$0xff]  ;;  %v221_v60 = vld [vmem:[%s16111_s1 + $0x118] sm:$0xff] }
 0x2bd   :  { %5380 = vmatpush1.bf16.msra.mxu0 %v16658_v17  ;;  %5674 = vmatprep.subr.bf16.mxu1 %v8182_v5  ;;  %v480_v48 = vld [vmem:[%s16111_s1 + $0x930] sm:$0xff]  ;;  %v4266_v11 = vadd.f32 %v4265_v26, %v16662_v9  ;;  %v8173_v55 = vcombine.low %v229_v42, %v233_v40  ;;  %v8166_v17 = vcombine.high %v221_v60, %v225_v33  ;;  %v213_v9 = vld [vmem:[%s16111_s1 + $0xd8] sm:$0xff] }
 0x2be   :  { %16659 = vst [vmem:[#allocation76_spill] sm:$0xff] %v11982_v2  ;;  %5381 = vmatprep.subr.bf16.mxu0 %v8436_v13  ;;  %v11995_v57 = vadd.f32 %v4556_v45, %v4264_v1  ;;  %v4558_v53 = vpop.f32.mrf.mxu1  ;;  %v4267_v13 = vpop.f32.mrf.mxu0  ;;  %v16664_v1 = vld [vmem:[#allocation81_spill] sm:$0xff]  ;;  %v8420_v26 = vcombine.high %v476_v54, %v480_v48  ;;  %v8951_v22 = vld [vmem:[%s16112_s0 + $0x30] ss:$24 sps:$4 sm:$0xff]  }
 0x2bf   :  { %v12005_v38 = vadd.f32 %v4558_v53, %v4266_v11  ;;  %v4268_v45 = vadd.f32 %v4267_v13, %v16664_v1  ;;  %v468_v42 = vld [vmem:[%s16111_s1 + $0x8d0] sm:$0xff]  ;;  %v217_v11 = vld [vmem:[%s16111_s1 + $0xf8] sm:$0xff]  ;;  %v8954_v13 = vld [vmem:[%s16112_s0 + $0x6c] ss:$24 sps:$4 sm:$0xff]   ;;  %v8165_v1 = vcombine.low %v221_v60, %v225_v33 }
 0x2c0   :  { %16661 = vst [vmem:[#allocation190_spill] sm:$0xff] %v11995_v57  ;;  %v4560_v5 = vpop.f32.mrf.mxu1  ;;  %5675 = vmatpush1.bf16.msra.mxu1 %v8181_v4  ;;  %v8158_v44 = vcombine.high %v213_v9, %v217_v11  ;;  %v8411_v33 = vcombine.low %v468_v42, %v472_v7  ;;  %v409_v57 = vld [vmem:[%s16111_s1 + $0x6f8] sm:$0xff] }
 0x2c1   :  { %5382 = vmatpush1.bf16.msra.mxu0 %v8435_v43  ;;  %16663 = vst [vmem:[#allocation79_spill] sm:$0xff] %v12005_v38  ;;  %v4271_v18 = vpop.f32.mrf.mxu0  ;;  %5676 = vmatprep.subr.bf16.mxu1 %v8174_v61  ;;  %v12017_v46 = vadd.f32 %v4560_v5, %v4268_v45  ;;  %v8952_v43 = vld [vmem:[%s16112_s0 + $0x38] ss:$24 sps:$4 sm:$0xff]   ;;  %v8953_v61 = vld [vmem:[%s16112_s0 + $0x64] ss:$24 sps:$4 sm:$0xff]   ;;  %v8419_v45 = vcombine.low %v476_v54, %v480_v48 }
 0x2c2   :  { %5383 = vmatprep.subr.bf16.mxu0 %v8428_v23  ;;  %4836 = vmatmul.mubr.bf16.gmra.mxu0 %v8951_v22  ;;  %v16666_v23 = vld [vmem:[#allocation83_spill] sm:$0xff]  ;;  %v4564_v4 = vpop.f32.mrf.mxu1  ;;  %v205_v54 = vld [vmem:[%s16111_s1 + $0x98] sm:$0xff] }
 0x2c3   :  { %16665 = vst [vmem:[#allocation81_spill] sm:$0xff] %v12017_v46  ;;  %v4272_v40 = vadd.f32 %v4271_v18, %v16666_v23  ;;  %5129 = vmatmul.mubr.bf16.gmra.mxu1 %v8952_v43  ;;  %4845 = vmatprep.mubr.bf16.mxu0 %v8953_v61  ;;  %v4273_v53 = vpop.f32.mrf.mxu0  ;;  %v16668_v18 = vld [vmem:[#allocation85_spill] sm:$0xff]  ;;  %v8412_v43 = vcombine.high %v468_v42, %v472_v7  ;;  %v8957_v7 = vld [vmem:[%s16112_s0 + $0x94] ss:$24 sps:$4 sm:$0xff]  }
 0x2c4   :  { %5138 = vmatprep.mubr.bf16.mxu1 %v8954_v13  ;;  %v4274_v22 = vadd.f32 %v4273_v53, %v16668_v18  ;;  %v4566_v23 = vpop.f32.mrf.mxu1  ;;  %5677 = vmatpush1.bf16.msra.mxu1 %v8173_v55  ;;  %v209_v48 = vld [vmem:[%s16111_s1 + $0xb8] sm:$0xff] }
 0x2c5   :  { %5384 = vmatpush1.bf16.msra.mxu0 %v8427_v28  ;;  %v12035_v5 = vadd.f32 %v4564_v4, %v4272_v40  ;;  %v4275_v61 = vpop.f32.mrf.mxu0  ;;  %5678 = vmatprep.subr.bf16.mxu1 %v8166_v17  ;;  %v16672_v28 = vld [vmem:[#allocation89_spill] sm:$0xff]  ;;  %v8157_v40 = vcombine.low %v213_v9, %v217_v11  ;;  %v8150_v53 = vcombine.high %v205_v54, %v209_v48 }
 0x2c6   :  { %5385 = vmatprep.subr.bf16.mxu0 %v8420_v26  ;;  %v12038_v50 = vadd.f32 %v4566_v23, %v4274_v22  ;;  %v4276_v8 = vadd.f32 %v4275_v61, %v16670_v3  ;;  %v4568_v51 = vpop.f32.mrf.mxu1  ;;  %v8955_v4 = vld [vmem:[%s16112_s0 + $0x60] ss:$24 sps:$4 sm:$0xff]   ;;  %v8149_v61 = vcombine.low %v205_v54, %v209_v48 }
 0x2c7   :  { %16667 = vst [vmem:[#allocation83_spill] sm:$0xff] %v12035_v5  ;;  %v4277_v60 = vpop.f32.mrf.mxu0  ;;  %v201_v9 = vld [vmem:[%s16111_s1 + $0x78] sm:$0xff] }
 0x2c8   :  { %16669 = vst [vmem:[#allocation85_spill] sm:$0xff] %v12038_v50  ;;  %v12047_v55 = vadd.f32 %v4568_v51, %v4276_v8  ;;  %v4278_v26 = vadd.f32 %v4277_v60, %v16672_v28  ;;  %v4570_v17 = vpop.f32.mrf.mxu1  ;;  %5679 = vmatpush1.bf16.msra.mxu1 %v8165_v1  ;;  %v8956_v51 = vld [vmem:[%s16112_s0 + $0x68] ss:$24 sps:$4 sm:$0xff]   ;;  %v8958_v1 = vld [vmem:[%s16112_s0 + $0x9c] ss:$24 sps:$4 sm:$0xff]  }
 0x2c9   :  { %5386 = vmatpush1.bf16.msra.mxu0 %v8419_v45  ;;  %v4281_v3 = vpop.f32.mrf.mxu0  ;;  %5680 = vmatprep.subr.bf16.mxu1 %v8158_v44  ;;  %v16674_v45 = vld [vmem:[#allocation91_spill] sm:$0xff]  ;;  %v197_v44 = vld [vmem:[%s16111_s1 + $0x58] sm:$0xff] }
 0x2ca   :  { %16671 = vst [vmem:[#allocation87_spill] sm:$0xff] %v12047_v55  ;;  %5387 = vmatprep.subr.bf16.mxu0 %v8412_v43  ;;  %4846 = vmatmul.mubr.bf16.gmra.mxu0 %v8955_v4  ;;  %v12053_v13 = vadd.f32 %v4570_v17, %v4278_v26  ;;  %v4282_v42 = vadd.f32 %v4281_v3, %v16674_v45  ;;  %v4574_v8 = vpop.f32.mrf.mxu1  ;;  %v16676_v22 = vld [vmem:[#allocation93_spill] sm:$0xff]  ;;  %v16678_v17 = vld [vmem:[#allocation95_spill] sm:$0xff] }
 0x2cb   :  { %5139 = vmatmul.mubr.bf16.gmra.mxu1 %v8956_v51  ;;  %4855 = vmatprep.mubr.bf16.mxu0 %v8957_v7  ;;  %v4283_v11 = vpop.f32.mrf.mxu0  ;;  %v8142_v28 = vcombine.high %v197_v44, %v201_v9  ;;  %v189_v45 = vld [vmem:[%s16111_s1 + $0x18] sm:$0xff]  ;;  %v8959_v7 = vld [vmem:[%s16112_s0 + $0x90] ss:$24 sps:$4 sm:$0xff]  }
 0x2cc   :  { %16673 = vst [vmem:[#allocation89_spill] sm:$0xff] %v12053_v13  ;;  %5148 = vmatprep.mubr.bf16.mxu1 %v8958_v1  ;;  %v12071_v18 = vadd.f32 %v4574_v8, %v4282_v42  ;;  %v4284_v23 = vadd.f32 %v4283_v11, %v16676_v22  ;;  %v4576_v43 = vpop.f32.mrf.mxu1  ;;  %5681 = vmatpush1.bf16.msra.mxu1 %v8157_v40  ;;  %v16680_v54 = vld [vmem:[#allocation97_spill] sm:$0xff]  ;;  %v16682_v22 = vld [vmem:[#allocation99_spill] sm:$0xff] }
 0x2cd   :  { %5388 = vmatpush1.bf16.msra.mxu0 %v8411_v33  ;;  %v4285_v60 = vpop.f32.mrf.mxu0  ;;  %5682 = vmatprep.subr.bf16.mxu1 %v8150_v53  ;;  %v193_v33 = vld [vmem:[%s16111_s1 + $0x38] sm:$0xff]  ;;  %v8141_v53 = vcombine.low %v197_v44, %v201_v9  ;;  %v460_v9 = vld [vmem:[%s16111_s1 + $0x890] sm:$0xff] }
 0x2ce   :  { %16675 = vst [vmem:[#allocation91_spill] sm:$0xff] %v12071_v18  ;;  %v12074_v26 = vadd.f32 %v4576_v43, %v4284_v23  ;;  %v4286_v3 = vadd.f32 %v4285_v60, %v16678_v17  ;;  %v4578_v4 = vpop.f32.mrf.mxu1  ;;  %v8134_v11 = vcombine.high %v189_v45, %v193_v33  ;;  %v8960_v60 = vld [vmem:[%s16112_s0 + $0x98] ss:$24 sps:$4 sm:$0xff]   ;;  %v8961_v44 = vld [vmem:[%s16112_s0 + $0xc4] ss:$24 sps:$4 sm:$0xff]  }
 0x2cf   :  { %v4287_v42 = vpop.f32.mrf.mxu0  ;;  %v8962_v17 = vld [vmem:[%s16112_s0 + $0xcc] ss:$24 sps:$4 sm:$0xff]  }
 0x2d0   :  { %16677 = vst [vmem:[#allocation93_spill] sm:$0xff] %v12074_v26  ;;  %v12083_v8 = vadd.f32 %v4578_v4, %v4286_v3  ;;  %v4288_v48 = vadd.f32 %v4287_v42, %v16680_v54  ;;  %v4580_v40 = vpop.f32.mrf.mxu1  ;;  %5683 = vmatpush1.bf16.msra.mxu1 %v8149_v61  ;;  %v464_v61 = vld [vmem:[%s16111_s1 + $0x8b0] sm:$0xff] }
 0x2d1   :  { %v4291_v51 = vpop.f32.mrf.mxu0  ;;  %5684 = vmatprep.subr.bf16.mxu1 %v8142_v28  ;;  %v8403_v3 = vcombine.low %v460_v9, %v464_v61  ;;  %v8404_v4 = vcombine.high %v460_v9, %v464_v61  ;;  %v9013_v26 = vld [vmem:[%s16112_s0 + $0x334] ss:$24 sps:$4 sm:$0xff]  }
 0x2d2   :  { %16679 = vst [vmem:[#allocation95_spill] sm:$0xff] %v12083_v8  ;;  %4856 = vmatmul.mubr.bf16.gmra.mxu0 %v8959_v7  ;;  %v12089_v1 = vadd.f32 %v4580_v40, %v4288_v48  ;;  %v4292_v23 = vadd.f32 %v4291_v51, %v16682_v22  ;;  %v4584_v43 = vpop.f32.mrf.mxu1  ;;  %v8133_v40 = vcombine.low %v189_v45, %v193_v33  ;;  %v309_v51 = vld [vmem:[%s16111_s1 + $0x3d8] sm:$0xff]  ;;  %v16686_v33 = vld [vmem:[#allocation103_spill] sm:$0xff] }
 0x2d3   :  { %5149 = vmatmul.mubr.bf16.gmra.mxu1 %v8960_v60  ;;  %4865 = vmatprep.mubr.bf16.mxu0 %v8961_v44  ;;  %v4293_v28 = vpop.f32.mrf.mxu0  ;;  %v313_v7 = vld [vmem:[%s16111_s1 + $0x3f8] sm:$0xff] }
 0x2d4   :  { %16681 = vst [vmem:[#allocation97_spill] sm:$0xff] %v12089_v1  ;;  %5158 = vmatprep.mubr.bf16.mxu1 %v8962_v17  ;;  %v12107_v42 = vadd.f32 %v4584_v43, %v4292_v23  ;;  %v4294_v54 = vadd.f32 %v4293_v28, %v11003_v34  ;;  %v4586_v48 = vpop.f32.mrf.mxu1  ;;  %5685 = vmatpush1.bf16.msra.mxu1 %v8141_v53 }
 0x2d5   :  { %v4295_v22 = vpop.f32.mrf.mxu0  ;;  %5686 = vmatprep.subr.bf16.mxu1 %v8134_v11  ;;  %5389 = vmatprep.subr.bf16.mxu0 %v8404_v4  ;;  %v8254_v60 = vcombine.high %v309_v51, %v313_v7  ;;  %v8253_v61 = vcombine.low %v309_v51, %v313_v7  ;;  %v8963_v11 = vld [vmem:[%s16112_s0 + $0xc0] ss:$24 sps:$4 sm:$0xff]   ;;  %v8966_v51 = vld [vmem:[%s16112_s0 + $0xfc] ss:$24 sps:$4 sm:$0xff]  }
 0x2d6   :  { %16683 = vst [vmem:[#allocation99_spill] sm:$0xff] %v12107_v42  ;;  %v12116_v44 = vadd.f32 %v4586_v48, %v4294_v54  ;;  %v4296_v23 = vadd.f32 %v4295_v22, %v11008_v15  ;;  %v4588_v34 = vpop.f32.mrf.mxu1  ;;  %5390 = vmatpush1.bf16.msra.mxu0 %v8403_v3  ;;  %v16688_v15 = vld [vmem:[#allocation105_spill] sm:$0xff]  ;;  %v8964_v54 = vld [vmem:[%s16112_s0 + $0xc8] ss:$24 sps:$4 sm:$0xff]   ;;  %v8965_v48 = vld [vmem:[%s16112_s0 + $0xf4] ss:$24 sps:$4 sm:$0xff]  }
 0x2d7   :  { %v4297_v53 = vpop.f32.mrf.mxu0  ;;  %v16690_v22 = vld [vmem:[#allocation107_spill] sm:$0xff] }
 0x2d8   :  { %16684 = vst [vmem:[#allocation191_spill] sm:$0xff] %v12116_v44  ;;  %v12119_v45 = vadd.f32 %v4588_v34, %v4296_v23  ;;  %v4298_v43 = vadd.f32 %v4297_v53, %v16686_v33  ;;  %v4590_v9 = vpop.f32.mrf.mxu1  ;;  %5687 = vmatpush1.bf16.msra.mxu1 %v8133_v40  ;;  %v16692_v33 = vld [vmem:[#allocation109_spill] sm:$0xff]  ;;  %v9059_v42 = vld [vmem:[%s16112_s0 + $0x70] ss:$24 sps:$4 sm:$0xff]  }
 0x2d9   :  { %v4301_v28 = vpop.f32.mrf.mxu0  ;;  %5688 = vmatprep.subr.bf16.mxu1 %v8254_v60 }
 0x2da   :  { %16685 = vst [vmem:[#allocation192_spill] sm:$0xff] %v12119_v45  ;;  %4866 = vmatmul.mubr.bf16.gmra.mxu0 %v8963_v11  ;;  %v12125_v17 = vadd.f32 %v4590_v9, %v4298_v43  ;;  %v4302_v4 = vadd.f32 %v4301_v28, %v16688_v15  ;;  %v4594_v3 = vpop.f32.mrf.mxu1  ;;  %v16694_v15 = vld [vmem:[#allocation111_spill] sm:$0xff] }
 0x2db   :  { %5159 = vmatmul.mubr.bf16.gmra.mxu1 %v8964_v54  ;;  %4875 = vmatprep.mubr.bf16.mxu0 %v8965_v48  ;;  %v4303_v40 = vpop.f32.mrf.mxu0 }
 0x2dc   :  { %16687 = vst [vmem:[#allocation103_spill] sm:$0xff] %v12125_v17  ;;  %5168 = vmatprep.mubr.bf16.mxu1 %v8966_v51  ;;  %v12137_v7 = vadd.f32 %v4594_v3, %v4302_v4  ;;  %v4304_v60 = vadd.f32 %v4303_v40, %v16690_v22  ;;  %v4596_v23 = vpop.f32.mrf.mxu1  ;;  %5689 = vmatpush2.bf16.msra.mxu1 %v8253_v61  ;;  %v301_v4 = vld [vmem:[%s16111_s1 + $0x398] sm:$0xff]  ;;  %v8967_v40 = vld [vmem:[%s16112_s0 + $0xf0] ss:$24 sps:$4 sm:$0xff]  }
 0x2dd   :  { %v4305_v34 = vpop.f32.mrf.mxu0  ;;  %v305_v61 = vld [vmem:[%s16111_s1 + $0x3b8] sm:$0xff] }
 0x2de   :  { %16689 = vst [vmem:[#allocation105_spill] sm:$0xff] %v12137_v7  ;;  %v12140_v53 = vadd.f32 %v4596_v23, %v4304_v60  ;;  %v4306_v43 = vadd.f32 %v4305_v34, %v16692_v33  ;;  %v4598_v9 = vpop.f32.mrf.mxu1  ;;  %v8245_v51 = vcombine.low %v301_v4, %v305_v61  ;;  %v8246_v22 = vcombine.high %v301_v4, %v305_v61  ;;  %v16696_v23 = vld [vmem:[#allocation113_spill] sm:$0xff] }
 0x2df   :  { %v4307_v28 = vpop.f32.mrf.mxu0 }
 0x2e0   :  { %16691 = vst [vmem:[#allocation107_spill] sm:$0xff] %v12140_v53  ;;  %v12143_v11 = vadd.f32 %v4598_v9, %v4306_v43  ;;  %v4308_v54 = vadd.f32 %v4307_v28, %v16694_v15  ;;  %v4600_v48 = vpop.f32.mrf.mxu1  ;;  %v8968_v43 = vld [vmem:[%s16112_s0 + $0xf8] ss:$24 sps:$4 sm:$0xff]   ;;  %v8969_v9 = vld [vmem:[%s16112_s0 + $0x124] ss:$24 sps:$4 sm:$0xff]   ;;  %5690 = vmatprep.subr.bf16.mxu1 %v8246_v22 }
 0x2e1   :  { %v4311_v3 = vpop.f32.mrf.mxu0  ;;  %v8970_v15 = vld [vmem:[%s16112_s0 + $0x12c] ss:$24 sps:$4 sm:$0xff]   ;;  %5691 = vmatpush2.bf16.msra.mxu1 %v8245_v51  ;;  %v456_v22 = vld [vmem:[%s16111_s1 + $0x870] sm:$0xff] }
 0x2e2   :  { %16693 = vst [vmem:[#allocation109_spill] sm:$0xff] %v12143_v11  ;;  %4876 = vmatmul.mubr.bf16.gmra.mxu0 %v8967_v40  ;;  %v12155_v60 = vadd.f32 %v4600_v48, %v4308_v54  ;;  %v4312_v34 = vadd.f32 %v4311_v3, %v16696_v23  ;;  %v4604_v33 = vpop.f32.mrf.mxu1  ;;  %v16698_v48 = vld [vmem:[#allocation115_spill] sm:$0xff]  ;;  %v16700_v23 = vld [vmem:[#allocation117_spill] sm:$0xff] }
 0x2e3   :  { %5169 = vmatmul.mubr.bf16.gmra.mxu1 %v8968_v43  ;;  %4885 = vmatprep.mubr.bf16.mxu0 %v8969_v9  ;;  %v4313_v28 = vpop.f32.mrf.mxu0  ;;  %v452_v9 = vld [vmem:[%s16111_s1 + $0x850] sm:$0xff]  ;;  %v16702_v51 = vld [vmem:[#allocation119_spill] sm:$0xff] }
 0x2e4   :  { %16695 = vst [vmem:[#allocation111_spill] sm:$0xff] %v12155_v60  ;;  %5178 = vmatprep.mubr.bf16.mxu1 %v8970_v15  ;;  %v12167_v54 = vadd.f32 %v4604_v33, %v4312_v34  ;;  %v4314_v4 = vadd.f32 %v4313_v28, %v16698_v48  ;;  %v4606_v61 = vpop.f32.mrf.mxu1  ;;  %v8395_v33 = vcombine.low %v452_v9, %v456_v22  ;;  %v277_v60 = vld [vmem:[%s16111_s1 + $0x2d8] sm:$0xff] }
 0x2e5   :  { %v4315_v3 = vpop.f32.mrf.mxu0  ;;  %v8396_v15 = vcombine.high %v452_v9, %v456_v22  ;;  %v8974_v22 = vld [vmem:[%s16112_s0 + $0x15c] ss:$24 sps:$4 sm:$0xff]  }
 0x2e6   :  { %16697 = vst [vmem:[#allocation113_spill] sm:$0xff] %v12167_v54  ;;  %v12170_v40 = vadd.f32 %v4606_v61, %v4314_v4  ;;  %v4316_v43 = vadd.f32 %v4315_v3, %v16700_v23  ;;  %v4608_v63 = vpop.f32.mrf.mxu1  ;;  %v8971_v3 = vld [vmem:[%s16112_s0 + $0x120] ss:$24 sps:$4 sm:$0xff]  }
 0x2e7   :  { %v4317_v34 = vpop.f32.mrf.mxu0  ;;  %5391 = vmatprep.subr.bf16.mxu0 %v8396_v15 }
 0x2e8   :  { %16699 = vst [vmem:[#allocation115_spill] sm:$0xff] %v12170_v40  ;;  %v12179_v28 = vadd.f32 %v4608_v63, %v4316_v43  ;;  %v4318_v48 = vadd.f32 %v4317_v34, %v16702_v51  ;;  %v4610_v4 = vpop.f32.mrf.mxu1  ;;  %v16704_v40 = vld [vmem:[#allocation121_spill] sm:$0xff]  ;;  %v8972_v63 = vld [vmem:[%s16112_s0 + $0x128] ss:$24 sps:$4 sm:$0xff]   ;;  %v8973_v43 = vld [vmem:[%s16112_s0 + $0x154] ss:$24 sps:$4 sm:$0xff]   ;;  %5392 = vmatpush1.bf16.msra.mxu0 %v8395_v33 }
 0x2e9   :  { %v4321_v61 = vpop.f32.mrf.mxu0 }
 0x2ea   :  { %16701 = vst [vmem:[#allocation117_spill] sm:$0xff] %v12179_v28  ;;  %4886 = vmatmul.mubr.bf16.gmra.mxu0 %v8971_v3  ;;  %v12185_v23 = vadd.f32 %v4610_v4, %v4318_v48  ;;  %v4322_v54 = vadd.f32 %v4321_v61, %v16704_v40  ;;  %v4614_v32 = vpop.f32.mrf.mxu1  ;;  %v16706_v40 = vld [vmem:[#allocation123_spill] sm:$0xff]  ;;  %v16708_v61 = vld [vmem:[#allocation125_spill] sm:$0xff] }
 0x2eb   :  { %5179 = vmatmul.mubr.bf16.gmra.mxu1 %v8972_v63  ;;  %4895 = vmatprep.mubr.bf16.mxu0 %v8973_v43  ;;  %v4323_v9 = vpop.f32.mrf.mxu0  ;;  %v293_v43 = vld [vmem:[%s16111_s1 + $0x358] sm:$0xff] }
 0x2ec   :  { %16703 = vst [vmem:[#allocation119_spill] sm:$0xff] %v12185_v23  ;;  %5188 = vmatprep.mubr.bf16.mxu1 %v8974_v22  ;;  %v12197_v34 = vadd.f32 %v4614_v32, %v4322_v54  ;;  %v4324_v15 = vadd.f32 %v4323_v9, %v16706_v40  ;;  %v4616_v51 = vpop.f32.mrf.mxu1  ;;  %v297_v22 = vld [vmem:[%s16111_s1 + $0x378] sm:$0xff]  ;;  %v16710_v9 = vld [vmem:[#allocation127_spill] sm:$0xff] }
 0x2ed   :  { %v4325_v48 = vpop.f32.mrf.mxu0  ;;  %v8237_v32 = vcombine.low %v293_v43, %v297_v22  ;;  %v8238_v54 = vcombine.high %v293_v43, %v297_v22  ;;  %v8978_v22 = vld [vmem:[%s16112_s0 + $0x18c] ss:$24 sps:$4 sm:$0xff]  }
 0x2ee   :  { %16705 = vst [vmem:[#allocation121_spill] sm:$0xff] %v12197_v34  ;;  %v12200_v4 = vadd.f32 %v4616_v51, %v4324_v15  ;;  %v4326_v3 = vadd.f32 %v4325_v48, %v16708_v61  ;;  %v4618_v63 = vpop.f32.mrf.mxu1  ;;  %v8975_v48 = vld [vmem:[%s16112_s0 + $0x150] ss:$24 sps:$4 sm:$0xff]  }
 0x2ef   :  { %v4327_v33 = vpop.f32.mrf.mxu0  ;;  %5692 = vmatprep.subr.bf16.mxu1 %v8238_v54 }
 0x2f0   :  { %16707 = vst [vmem:[#allocation123_spill] sm:$0xff] %v12200_v4  ;;  %v12209_v34 = vadd.f32 %v4618_v63, %v4326_v3  ;;  %v4328_v40 = vadd.f32 %v4327_v33, %v16710_v9  ;;  %v4620_v15 = vpop.f32.mrf.mxu1  ;;  %v16712_v4 = vld [vmem:[#allocation129_spill] sm:$0xff]  ;;  %5693 = vmatpush2.bf16.msra.mxu1 %v8237_v32  ;;  %v16714_v9 = vld [vmem:[#allocation131_spill] sm:$0xff] }
 0x2f1   :  { %v8976_v3 = vld [vmem:[%s16112_s0 + $0x158] ss:$24 sps:$4 sm:$0xff]   ;;  %v8977_v63 = vld [vmem:[%s16112_s0 + $0x184] ss:$24 sps:$4 sm:$0xff]  }
 0x2f2   :  { %16709 = vst [vmem:[#allocation125_spill] sm:$0xff] %v12209_v34  ;;  %v4331_v51 = vpop.f32.mrf.mxu0  ;;  %4896 = vmatmul.mubr.bf16.gmra.mxu0 %v8975_v48  ;;  %v12215_v61 = vadd.f32 %v4620_v15, %v4328_v40  ;;  %v4624_v28 = vpop.f32.mrf.mxu1  ;;  %v289_v33 = vld [vmem:[%s16111_s1 + $0x338] sm:$0xff] }
 0x2f3   :  { %v4332_v23 = vadd.f32 %v4331_v51, %v16712_v4  ;;  %5189 = vmatmul.mubr.bf16.gmra.mxu1 %v8976_v3  ;;  %4905 = vmatprep.mubr.bf16.mxu0 %v8977_v63  ;;  %v285_v4 = vld [vmem:[%s16111_s1 + $0x318] sm:$0xff] }
 0x2f4   :  { %16711 = vst [vmem:[#allocation127_spill] sm:$0xff] %v12215_v61  ;;  %v4333_v43 = vpop.f32.mrf.mxu0  ;;  %5198 = vmatprep.mubr.bf16.mxu1 %v8978_v22  ;;  %v4626_v15 = vpop.f32.mrf.mxu1  ;;  %v8230_v51 = vcombine.high %v285_v4, %v289_v33  ;;  %v8229_v3 = vcombine.low %v285_v4, %v289_v33  ;;  %v16716_v22 = vld [vmem:[#allocation133_spill] sm:$0xff] }
 0x2f5   :  { %v12233_v54 = vadd.f32 %v4624_v28, %v4332_v23  ;;  %v4334_v40 = vadd.f32 %v4333_v43, %v16714_v9  ;;  %v281_v28 = vld [vmem:[%s16111_s1 + $0x2f8] sm:$0xff]  ;;  %v16718_v43 = vld [vmem:[#allocation135_spill] sm:$0xff] }
 0x2f6   :  { %v4335_v48 = vpop.f32.mrf.mxu0  ;;  %v4628_v61 = vpop.f32.mrf.mxu1  ;;  %5694 = vmatprep.subr.bf16.mxu1 %v8230_v51  ;;  %v8222_v9 = vcombine.high %v277_v60, %v281_v28  ;;  %v8221_v51 = vcombine.low %v277_v60, %v281_v28  ;;  %v8982_v60 = vld [vmem:[%s16112_s0 + $0x1bc] ss:$24 sps:$4 sm:$0xff]  }
 0x2f7   :  { %16713 = vst [vmem:[#allocation129_spill] sm:$0xff] %v12233_v54  ;;  %v12236_v63 = vadd.f32 %v4626_v15, %v4334_v40  ;;  %v4336_v32 = vadd.f32 %v4335_v48, %v16716_v22  ;;  %5695 = vmatpush2.bf16.msra.mxu1 %v8229_v3  ;;  %v8979_v15 = vld [vmem:[%s16112_s0 + $0x180] ss:$24 sps:$4 sm:$0xff]   ;;  %v444_v28 = vld [vmem:[%s16111_s1 + $0x810] sm:$0xff] }
 0x2f8   :  { %v4337_v34 = vpop.f32.mrf.mxu0  ;;  %v4630_v33 = vpop.f32.mrf.mxu1  ;;  %v16720_v3 = vld [vmem:[#allocation137_spill] sm:$0xff]  ;;  %5696 = vmatprep.subr.bf16.mxu1 %v8222_v9 }
 0x2f9   :  { %16715 = vst [vmem:[#allocation131_spill] sm:$0xff] %v12236_v63  ;;  %v12245_v23 = vadd.f32 %v4628_v61, %v4336_v32  ;;  %v4338_v4 = vadd.f32 %v4337_v34, %v16718_v43  ;;  %v8980_v61 = vld [vmem:[%s16112_s0 + $0x188] ss:$24 sps:$4 sm:$0xff]   ;;  %v8981_v34 = vld [vmem:[%s16112_s0 + $0x1b4] ss:$24 sps:$4 sm:$0xff]  }
 0x2fa   :  { %v4341_v40 = vpop.f32.mrf.mxu0  ;;  %4906 = vmatmul.mubr.bf16.gmra.mxu0 %v8979_v15  ;;  %v448_v43 = vld [vmem:[%s16111_s1 + $0x830] sm:$0xff] }
 0x2fb   :  { %16717 = vst [vmem:[#allocation133_spill] sm:$0xff] %v12245_v23  ;;  %v12251_v48 = vadd.f32 %v4630_v33, %v4338_v4  ;;  %v4342_v22 = vadd.f32 %v4341_v40, %v16720_v3  ;;  %v4634_v63 = vpop.f32.mrf.mxu1  ;;  %5199 = vmatmul.mubr.bf16.gmra.mxu1 %v8980_v61  ;;  %4915 = vmatprep.mubr.bf16.mxu0 %v8981_v34  ;;  %v269_v4 = vld [vmem:[%s16111_s1 + $0x298] sm:$0xff]  ;;  %v16722_v40 = vld [vmem:[#allocation138_spill] sm:$0xff] }
 0x2fc   :  { %v4343_v32 = vpop.f32.mrf.mxu0  ;;  %5208 = vmatprep.mubr.bf16.mxu1 %v8982_v60  ;;  %v8387_v61 = vcombine.low %v444_v28, %v448_v43  ;;  %v8388_v34 = vcombine.high %v444_v28, %v448_v43  ;;  %5697 = vmatpush2.bf16.msra.mxu1 %v8221_v51  ;;  %v273_v60 = vld [vmem:[%s16111_s1 + $0x2b8] sm:$0xff]  ;;  %v516_v51 = vld [vmem:[%s16111_s1 + $0xa50] sm:$0xff] }
 0x2fd   :  { %16719 = vst [vmem:[#allocation135_spill] sm:$0xff] %v12251_v48  ;;  %v12272_v33 = vadd.f32 %v4634_v63, %v4342_v22  ;;  %v4344_v15 = vadd.f32 %v4343_v32, %v16722_v40  ;;  %v4636_v3 = vpop.f32.mrf.mxu1  ;;  %v8213_v23 = vcombine.low %v269_v4, %v273_v60  ;;  %v8214_v54 = vcombine.high %v269_v4, %v273_v60  ;;  %v520_v22 = vld [vmem:[%s16111_s1 + $0xa70] sm:$0xff]  ;;  %v261_v32 = vld [vmem:[%s16111_s1 + $0x258] sm:$0xff] }
 0x2fe   :  { %v4345_v48 = vpop.f32.mrf.mxu0  ;;  %5393 = vmatprep.subr.bf16.mxu0 %v8388_v34  ;;  %v8460_v4 = vcombine.high %v516_v51, %v520_v22 }
 0x2ff   :  { %16721 = vst [vmem:[#allocation137_spill] sm:$0xff] %v12272_v33  ;;  %v12278_v9 = vadd.f32 %v4636_v3, %v4344_v15  ;;  %v4346_v11 = vadd.f32 %v4345_v48, %v16724_v36  ;;  %v4638_v12 = vpop.f32.mrf.mxu1  ;;  %5394 = vmatpush1.bf16.msra.mxu0 %v8387_v61  ;;  %5698 = vmatprep.subr.bf16.mxu1 %v8214_v54  ;;  %v16726_v36 = vld [vmem:[#allocation141_spill] sm:$0xff]  ;;  %v8983_v15 = vld [vmem:[%s16112_s0 + $0x1b0] ss:$24 sps:$4 sm:$0xff]  }
 0x300   :  { %v4347_v63 = vpop.f32.mrf.mxu0  ;;  %5699 = vmatpush2.bf16.msra.mxu1 %v8213_v23  ;;  %v265_v54 = vld [vmem:[%s16111_s1 + $0x278] sm:$0xff]  ;;  %v8459_v3 = vcombine.low %v516_v51, %v520_v22  ;;  %v8986_v51 = vld [vmem:[%s16112_s0 + $0x1ec] ss:$24 sps:$4 sm:$0xff]   ;;  %5407 = vmatprep.subr.bf16.mxu0 %v8460_v4  ;;  %v508_v22 = vld [vmem:[%s16111_s1 + $0xa10] sm:$0xff] }
 0x301   :  { %16723 = vst [vmem:[#allocation138_spill] sm:$0xff] %v12278_v9  ;;  %v12290_v28 = vadd.f32 %v4638_v12, %v4346_v11  ;;  %v4348_v48 = vadd.f32 %v4347_v63, %v16726_v36  ;;  %v4640_v43 = vpop.f32.mrf.mxu1  ;;  %v8205_v61 = vcombine.low %v261_v32, %v265_v54  ;;  %v8206_v34 = vcombine.high %v261_v32, %v265_v54  ;;  %v16728_v11 = vld [vmem:[#allocation142_spill] sm:$0xff]  ;;  %v8984_v23 = vld [vmem:[%s16112_s0 + $0x1b8] ss:$24 sps:$4 sm:$0xff]  }
 0x302   :  { %v4351_v40 = vpop.f32.mrf.mxu0  ;;  %4916 = vmatmul.mubr.bf16.gmra.mxu0 %v8983_v15  ;;  %v8985_v36 = vld [vmem:[%s16112_s0 + $0x1e4] ss:$24 sps:$4 sm:$0xff]   ;;  %v512_v32 = vld [vmem:[%s16111_s1 + $0xa30] sm:$0xff] }
 0x303   :  { %16725 = vst [vmem:[#allocation139_spill] sm:$0xff] %v12290_v28  ;;  %v12299_v12 = vadd.f32 %v4640_v43, %v4348_v48  ;;  %v4352_v60 = vadd.f32 %v4351_v40, %v16728_v11  ;;  %v4644_v63 = vpop.f32.mrf.mxu1  ;;  %5209 = vmatmul.mubr.bf16.gmra.mxu1 %v8984_v23  ;;  %4925 = vmatprep.mubr.bf16.mxu0 %v8985_v36  ;;  %v253_v48 = vld [vmem:[%s16111_s1 + $0x218] sm:$0xff]  ;;  %v16731_v9 = vld [vmem:[#allocation144_spill] sm:$0xff] }
 0x304   :  { %v4353_v28 = vpop.f32.mrf.mxu0  ;;  %5218 = vmatprep.mubr.bf16.mxu1 %v8986_v51  ;;  %5700 = vmatprep.subr.bf16.mxu1 %v8206_v34  ;;  %v8452_v4 = vcombine.high %v508_v22, %v512_v32  ;;  %v257_v15 = vld [vmem:[%s16111_s1 + $0x238] sm:$0xff]  ;;  %v8451_v23 = vcombine.low %v508_v22, %v512_v32 }
 0x305   :  { %16727 = vst [vmem:[#allocation141_spill] sm:$0xff] %v12299_v12  ;;  %v12320_v43 = vadd.f32 %v4644_v63, %v4352_v60  ;;  %v4354_v54 = vadd.f32 %v4353_v28, %v11282_v0  ;;  %v4646_v40 = vpop.f32.mrf.mxu1  ;;  %5408 = vmatpush2.bf16.msra.mxu0 %v8459_v3  ;;  %5701 = vmatpush2.bf16.msra.mxu1 %v8205_v61  ;;  %v16733_v3 = vld [vmem:[#allocation146_spill] sm:$0xff] }
 0x306   :  { %v4355_v11 = vpop.f32.mrf.mxu0  ;;  %v8197_v36 = vcombine.low %v253_v48, %v257_v15  ;;  %v8198_v51 = vcombine.high %v253_v48, %v257_v15  ;;  %5409 = vmatprep.subr.bf16.mxu0 %v8452_v4  ;;  %v8987_v61 = vld [vmem:[%s16112_s0 + $0x1e0] ss:$24 sps:$4 sm:$0xff]   ;;  %v8990_v15 = vld [vmem:[%s16112_s0 + $0x21c] ss:$24 sps:$4 sm:$0xff]  }
 0x307   :  { %16729 = vst [vmem:[#allocation142_spill] sm:$0xff] %v12320_v43  ;;  %v12326_v12 = vadd.f32 %v4646_v40, %v4354_v54  ;;  %v4356_v60 = vadd.f32 %v4355_v11, %v16731_v9  ;;  %v4648_v63 = vpop.f32.mrf.mxu1  ;;  %v16735_v9 = vld [vmem:[#allocation148_spill] sm:$0xff]  ;;  %v8988_v54 = vld [vmem:[%s16112_s0 + $0x1e8] ss:$24 sps:$4 sm:$0xff]  }
 0x308   :  { %v4357_v0 = vpop.f32.mrf.mxu0  ;;  %5702 = vmatprep.subr.bf16.mxu1 %v8198_v51  ;;  %v8989_v40 = vld [vmem:[%s16112_s0 + $0x214] ss:$24 sps:$4 sm:$0xff]  }
 0x309   :  { %16730 = vst [vmem:[#allocation193_spill] sm:$0xff] %v12326_v12  ;;  %v12329_v28 = vadd.f32 %v4648_v63, %v4356_v60  ;;  %v4358_v34 = vadd.f32 %v4357_v0, %v16733_v3  ;;  %v4650_v43 = vpop.f32.mrf.mxu1  ;;  %5410 = vmatpush2.bf16.msra.mxu0 %v8451_v23  ;;  %5703 = vmatpush2.bf16.msra.mxu1 %v8197_v36  ;;  %v16739_v60 = vld [vmem:[#allocation152_spill] sm:$0xff] }
 0x30a   :  { %v4361_v33 = vpop.f32.mrf.mxu0  ;;  %4926 = vmatmul.mubr.bf16.gmra.mxu0 %v8987_v61  ;;  %v16741_v61 = vld [vmem:[#allocation153_spill] sm:$0xff] }
 0x30b   :  { %16732 = vst [vmem:[#allocation144_spill] sm:$0xff] %v12329_v28  ;;  %v12335_v22 = vadd.f32 %v4650_v43, %v4358_v34  ;;  %v4362_v32 = vadd.f32 %v4361_v33, %v16735_v9  ;;  %v4654_v48 = vpop.f32.mrf.mxu1  ;;  %5219 = vmatmul.mubr.bf16.gmra.mxu1 %v8988_v54  ;;  %4935 = vmatprep.mubr.bf16.mxu0 %v8989_v40  ;;  %v16737_v33 = vld [vmem:[#allocation150_spill] sm:$0xff] }
 0x30c   :  { %v4363_v4 = vpop.f32.mrf.mxu0  ;;  %5228 = vmatprep.mubr.bf16.mxu1 %v8990_v15 }
 0x30d   :  { %16734 = vst [vmem:[#allocation146_spill] sm:$0xff] %v12335_v22  ;;  %v12347_v43 = vadd.f32 %v4654_v48, %v4362_v32  ;;  %v4364_v11 = vadd.f32 %v4363_v4, %v16737_v33  ;;  %v4656_v23 = vpop.f32.mrf.mxu1  ;;  %v8991_v32 = vld [vmem:[%s16112_s0 + $0x210] ss:$24 sps:$4 sm:$0xff]   ;;  %v16743_v4 = vld [vmem:[#allocation154_spill] sm:$0xff]  ;;  %v357_v22 = vld [vmem:[%s16111_s1 + $0x558] sm:$0xff] }
 0x30e   :  { %v4365_v36 = vpop.f32.mrf.mxu0 }
 0x30f   :  { %16736 = vst [vmem:[#allocation148_spill] sm:$0xff] %v12347_v43  ;;  %v12350_v51 = vadd.f32 %v4656_v23, %v4364_v11  ;;  %v4366_v63 = vadd.f32 %v4365_v36, %v16739_v60  ;;  %v4658_v0 = vpop.f32.mrf.mxu1  ;;  %v8992_v11 = vld [vmem:[%s16112_s0 + $0x218] ss:$24 sps:$4 sm:$0xff]   ;;  %v8993_v23 = vld [vmem:[%s16112_s0 + $0x244] ss:$24 sps:$4 sm:$0xff]  }
 0x310   :  { %v4367_v3 = vpop.f32.mrf.mxu0  ;;  %v8994_v60 = vld [vmem:[%s16112_s0 + $0x24c] ss:$24 sps:$4 sm:$0xff]   ;;  %v9051_v43 = vld [vmem:[%s16112_s0 + $0x10] ss:$24 sps:$4 sm:$0xff]  }
 0x311   :  { %16738 = vst [vmem:[#allocation150_spill] sm:$0xff] %v12350_v51  ;;  %v12353_v34 = vadd.f32 %v4658_v0, %v4366_v63  ;;  %v4368_v9 = vadd.f32 %v4367_v3, %v16741_v61  ;;  %v4660_v54 = vpop.f32.mrf.mxu1  ;;  %v16745_v0 = vld [vmem:[#allocation155_spill] sm:$0xff] }
 0x312   :  { %v4371_v40 = vpop.f32.mrf.mxu0  ;;  %4936 = vmatmul.mubr.bf16.gmra.mxu0 %v8991_v32  ;;  %v16747_v32 = vld [vmem:[#allocation156_spill] sm:$0xff] }
 0x313   :  { %16740 = vst [vmem:[#allocation152_spill] sm:$0xff] %v12353_v34  ;;  %v12359_v48 = vadd.f32 %v4660_v54, %v4368_v9  ;;  %v4372_v15 = vadd.f32 %v4371_v40, %v16743_v4  ;;  %v4664_v33 = vpop.f32.mrf.mxu1  ;;  %5229 = vmatmul.mubr.bf16.gmra.mxu1 %v8992_v11  ;;  %4945 = vmatprep.mubr.bf16.mxu0 %v8993_v23 }
 0x314   :  { %v4373_v36 = vpop.f32.mrf.mxu0  ;;  %5238 = vmatprep.mubr.bf16.mxu1 %v8994_v60 }
 0x315   :  { %16742 = vst [vmem:[#allocation153_spill] sm:$0xff] %v12359_v48  ;;  %v12371_v63 = vadd.f32 %v4664_v33, %v4372_v15  ;;  %v4374_v3 = vadd.f32 %v4373_v36, %v16745_v0  ;;  %v4666_v61 = vpop.f32.mrf.mxu1  ;;  %v16749_v15 = vld [vmem:[#allocation157_spill] sm:$0xff] }
 0x316   :  { %v4375_v9 = vpop.f32.mrf.mxu0  ;;  %v8995_v0 = vld [vmem:[%s16112_s0 + $0x240] ss:$24 sps:$4 sm:$0xff]  }
 0x317   :  { %16744 = vst [vmem:[#allocation154_spill] sm:$0xff] %v12371_v63  ;;  %v12376_v40 = vadd.f32 %v4666_v61, %v4374_v3  ;;  %v4376_v4 = vadd.f32 %v4375_v9, %v16747_v32  ;;  %v4668_v11 = vpop.f32.mrf.mxu1  ;;  %v16751_v9 = vld [vmem:[#allocation158_spill] sm:$0xff] }
 0x318   :  { %v4377_v23 = vpop.f32.mrf.mxu0 }
 0x319   :  { %16746 = vst [vmem:[#allocation155_spill] sm:$0xff] %v12376_v40  ;;  %v12381_v34 = vadd.f32 %v4668_v11, %v4376_v4  ;;  %v4378_v33 = vadd.f32 %v4377_v23, %v16749_v15  ;;  %v4670_v60 = vpop.f32.mrf.mxu1  ;;  %v8996_v4 = vld [vmem:[%s16112_s0 + $0x248] ss:$24 sps:$4 sm:$0xff]   ;;  %v8997_v11 = vld [vmem:[%s16112_s0 + $0x274] ss:$24 sps:$4 sm:$0xff]  }
 0x31a   :  { %v4381_v36 = vpop.f32.mrf.mxu0  ;;  %4946 = vmatmul.mubr.bf16.gmra.mxu0 %v8995_v0  ;;  %v8998_v15 = vld [vmem:[%s16112_s0 + $0x27c] ss:$24 sps:$4 sm:$0xff]  }
 0x31b   :  { %16748 = vst [vmem:[#allocation156_spill] sm:$0xff] %v12381_v34  ;;  %v12389_v61 = vadd.f32 %v4670_v60, %v4378_v33  ;;  %v4382_v32 = vadd.f32 %v4381_v36, %v16751_v9  ;;  %v4674_v54 = vpop.f32.mrf.mxu1  ;;  %5239 = vmatmul.mubr.bf16.gmra.mxu1 %v8996_v4  ;;  %4955 = vmatprep.mubr.bf16.mxu0 %v8997_v11 }
 0x31c   :  { %v4383_v23 = vpop.f32.mrf.mxu0  ;;  %5248 = vmatprep.mubr.bf16.mxu1 %v8998_v15 }
 0x31d   :  { %16750 = vst [vmem:[#allocation157_spill] sm:$0xff] %v12389_v61  ;;  %v12403_v60 = vadd.f32 %v4674_v54, %v4382_v32  ;;  %v4384_v36 = vadd.f32 %v4383_v23, %v11394_v39  ;;  %v4676_v0 = vpop.f32.mrf.mxu1  ;;  %v16755_v54 = vld [vmem:[#allocation159_spill] sm:$0xff] }
 0x31e   :  { %v4385_v9 = vpop.f32.mrf.mxu0  ;;  %v8999_v23 = vld [vmem:[%s16112_s0 + $0x270] ss:$24 sps:$4 sm:$0xff]  }
 0x31f   :  { %16752 = vst [vmem:[#allocation158_spill] sm:$0xff] %v12403_v60  ;;  %v12408_v3 = vadd.f32 %v4676_v0, %v4384_v36  ;;  %v4386_v11 = vadd.f32 %v4385_v9, %v11401_v41  ;;  %v4678_v48 = vpop.f32.mrf.mxu1  ;;  %v16757_v0 = vld [vmem:[#allocation160_spill] sm:$0xff] }
 0x320   :  { %v4387_v34 = vpop.f32.mrf.mxu0 }
 0x321   :  { %16753 = vst [vmem:[#allocation194_spill] sm:$0xff] %v12408_v3  ;;  %v12413_v52 = vadd.f32 %v4678_v48, %v4386_v11  ;;  %v4388_v32 = vadd.f32 %v4387_v34, %v16755_v54  ;;  %v4680_v33 = vpop.f32.mrf.mxu1  ;;  %v9000_v48 = vld [vmem:[%s16112_s0 + $0x278] ss:$24 sps:$4 sm:$0xff]   ;;  %v9001_v34 = vld [vmem:[%s16112_s0 + $0x2a4] ss:$24 sps:$4 sm:$0xff]  }
 0x322   :  { %v4391_v39 = vpop.f32.mrf.mxu0  ;;  %4956 = vmatmul.mubr.bf16.gmra.mxu0 %v8999_v23  ;;  %v9002_v54 = vld [vmem:[%s16112_s0 + $0x2ac] ss:$24 sps:$4 sm:$0xff]  }
 0x323   :  { %16754 = vst [vmem:[#allocation195_spill] sm:$0xff] %v12413_v52  ;;  %v12421_v41 = vadd.f32 %v4680_v33, %v4388_v32  ;;  %v4392_v9 = vadd.f32 %v4391_v39, %v16757_v0  ;;  %v4684_v4 = vpop.f32.mrf.mxu1  ;;  %5249 = vmatmul.mubr.bf16.gmra.mxu1 %v9000_v48  ;;  %4965 = vmatprep.mubr.bf16.mxu0 %v9001_v34 }
 0x324   :  { %v4393_v11 = vpop.f32.mrf.mxu0  ;;  %5258 = vmatprep.mubr.bf16.mxu1 %v9002_v54 }
 0x325   :  { %16756 = vst [vmem:[#allocation159_spill] sm:$0xff] %v12421_v41  ;;  %v12435_v32 = vadd.f32 %v4684_v4, %v4392_v9  ;;  %v4394_v39 = vadd.f32 %v4393_v11, %v11435_v30  ;;  %v4686_v23 = vpop.f32.mrf.mxu1  ;;  %v9003_v11 = vld [vmem:[%s16112_s0 + $0x2a0] ss:$24 sps:$4 sm:$0xff]  }
 0x326   :  { %v4395_v0 = vpop.f32.mrf.mxu0  ;;  %v401_v41 = vld [vmem:[%s16111_s1 + $0x6b8] sm:$0xff] }
 0x327   :  { %16758 = vst [vmem:[#allocation160_spill] sm:$0xff] %v12435_v32  ;;  %v12440_v36 = vadd.f32 %v4686_v23, %v4394_v39  ;;  %v4396_v34 = vadd.f32 %v4395_v0, %v11442_v56  ;;  %v4688_v15 = vpop.f32.mrf.mxu1 }
 0x328   :  { %v4397_v52 = vpop.f32.mrf.mxu0 }
 0x329   :  { %16759 = vst [vmem:[#allocation196_spill] sm:$0xff] %v12440_v36  ;;  %v12445_v47 = vadd.f32 %v4688_v15, %v4396_v34  ;;  %v4398_v4 = vadd.f32 %v4397_v52, %v11449_v6  ;;  %v4690_v9 = vpop.f32.mrf.mxu1  ;;  %v9004_v15 = vld [vmem:[%s16112_s0 + $0x2a8] ss:$24 sps:$4 sm:$0xff]   ;;  %v9005_v6 = vld [vmem:[%s16112_s0 + $0x2d4] ss:$24 sps:$4 sm:$0xff]  }
 0x32a   :  { %v4401_v30 = vpop.f32.mrf.mxu0  ;;  %4966 = vmatmul.mubr.bf16.gmra.mxu0 %v9003_v11  ;;  %v9006_v34 = vld [vmem:[%s16112_s0 + $0x2dc] ss:$24 sps:$4 sm:$0xff]  }
 0x32b   :  { %16760 = vst [vmem:[#allocation197_spill] sm:$0xff] %v12445_v47  ;;  %v12453_v56 = vadd.f32 %v4690_v9, %v4398_v4  ;;  %v4402_v23 = vadd.f32 %v4401_v30, %v11459_v19  ;;  %v4694_v0 = vpop.f32.mrf.mxu1  ;;  %5259 = vmatmul.mubr.bf16.gmra.mxu1 %v9004_v15  ;;  %4975 = vmatprep.mubr.bf16.mxu0 %v9005_v6 }
 0x32c   :  { %v4403_v52 = vpop.f32.mrf.mxu0  ;;  %5268 = vmatprep.mubr.bf16.mxu1 %v9006_v34 }
 0x32d   :  { %16761 = vst [vmem:[#allocation198_spill] sm:$0xff] %v12453_v56  ;;  %v12467_v4 = vadd.f32 %v4694_v0, %v4402_v23  ;;  %v4404_v9 = vadd.f32 %v4403_v52, %v11476_v58  ;;  %v4696_v30 = vpop.f32.mrf.mxu1  ;;  %v9007_v52 = vld [vmem:[%s16112_s0 + $0x2d0] ss:$24 sps:$4 sm:$0xff]  }
 0x32e   :  { %v4405_v11 = vpop.f32.mrf.mxu0 }
 0x32f   :  { %16762 = vst [vmem:[#allocation199_spill] sm:$0xff] %v12467_v4  ;;  %v12472_v39 = vadd.f32 %v4696_v30, %v4404_v9  ;;  %v4406_v6 = vadd.f32 %v4405_v11, %v11483_v29  ;;  %v4698_v54 = vpop.f32.mrf.mxu1  ;;  %v9011_v9 = vld [vmem:[%s16112_s0 + $0x300] ss:$24 sps:$4 sm:$0xff]  }
 0x330   :  { %v4407_v48 = vpop.f32.mrf.mxu0  ;;  %v421_v4 = vld [vmem:[%s16111_s1 + $0x758] sm:$0xff] }
 0x331   :  { %16763 = vst [vmem:[#allocation200_spill] sm:$0xff] %v12472_v39  ;;  %v12477_v33 = vadd.f32 %v4698_v54, %v4406_v6  ;;  %v4408_v23 = vadd.f32 %v4407_v48, %v11490_v35  ;;  %v4700_v0 = vpop.f32.mrf.mxu1  ;;  %v9008_v54 = vld [vmem:[%s16112_s0 + $0x2d8] ss:$24 sps:$4 sm:$0xff]   ;;  %v9009_v35 = vld [vmem:[%s16112_s0 + $0x304] ss:$24 sps:$4 sm:$0xff]  }
 0x332   :  { %v4411_v58 = vpop.f32.mrf.mxu0  ;;  %4976 = vmatmul.mubr.bf16.gmra.mxu0 %v9007_v52  ;;  %v9010_v6 = vld [vmem:[%s16112_s0 + $0x30c] ss:$24 sps:$4 sm:$0xff]  }
 0x333   :  { %16764 = vst [vmem:[#allocation201_spill] sm:$0xff] %v12477_v33  ;;  %v12485_v29 = vadd.f32 %v4700_v0, %v4408_v23  ;;  %v4412_v30 = vadd.f32 %v4411_v58, %v11500_v27  ;;  %v4704_v11 = vpop.f32.mrf.mxu1  ;;  %5269 = vmatmul.mubr.bf16.gmra.mxu1 %v9008_v54  ;;  %4985 = vmatprep.mubr.bf16.mxu0 %v9009_v35  ;;  %v16767_v0 = vld [vmem:[#allocation161_spill] sm:$0xff]  ;;  %v16769_v35 = vld [vmem:[#allocation162_spill] sm:$0xff] }
 0x334   :  { %v4413_v48 = vpop.f32.mrf.mxu0  ;;  %5278 = vmatprep.mubr.bf16.mxu1 %v9010_v6  ;;  %v12510_v6 = vld [vmem:[%s16111_s1 + $0x5d8] sm:$0xff] }
 0x335   :  { %16765 = vst [vmem:[#allocation202_spill] sm:$0xff] %v12485_v29  ;;  %v12499_v23 = vadd.f32 %v4704_v11, %v4412_v30  ;;  %v4414_v58 = vadd.f32 %v4413_v48, %v16767_v0  ;;  %v4706_v52 = vpop.f32.mrf.mxu1  ;;  %v12515_v30 = vld [vmem:[%s16111_s1 + $0x5f8] sm:$0xff]  ;;  %v16771_v0 = vld [vmem:[#allocation163_spill] sm:$0xff]  ;;  %v16773_v11 = vld [vmem:[#allocation164_spill] sm:$0xff] }
 0x336   :  { %v4415_v54 = vpop.f32.mrf.mxu0  ;;  %v8318_v27 = vcombine.high %v12510_v6, %v12515_v30 }
 0x337   :  { %16766 = vst [vmem:[#allocation203_spill] sm:$0xff] %v12499_v23  ;;  %v12504_v34 = vadd.f32 %v4706_v52, %v4414_v58  ;;  %v4416_v15 = vadd.f32 %v4415_v54, %v16769_v35  ;;  %v4708_v19 = vpop.f32.mrf.mxu1 }
 0x338   :  { %v4417_v33 = vpop.f32.mrf.mxu0  ;;  %5965 = vmatprep.subr.bf16.mxu0 %v8318_v27 }
 0x339   :  { %16768 = vst [vmem:[#allocation161_spill] sm:$0xff] %v12504_v34  ;;  %v12519_v48 = vadd.f32 %v4708_v19, %v4416_v15  ;;  %v4418_v58 = vadd.f32 %v4417_v33, %v16771_v0  ;;  %v4710_v52 = vpop.f32.mrf.mxu1  ;;  %v12532_v19 = vld [vmem:[%s16111_s1 + $0x9d8] sm:$0xff]  ;;  %v9012_v34 = vld [vmem:[%s16112_s0 + $0x308] ss:$24 sps:$4 sm:$0xff]  }
 0x33a   :  { %v4421_v35 = vpop.f32.mrf.mxu0  ;;  %4986 = vmatmul.mubr.bf16.gmra.mxu0 %v9011_v9  ;;  %v12537_v33 = vld [vmem:[%s16111_s1 + $0x9f8] sm:$0xff] }
 0x33b   :  { %16770 = vst [vmem:[#allocation162_spill] sm:$0xff] %v12519_v48  ;;  %v12541_v0 = vadd.f32 %v4710_v52, %v4418_v58  ;;  %v4422_v9 = vadd.f32 %v4421_v35, %v16773_v11  ;;  %v4714_v54 = vpop.f32.mrf.mxu1  ;;  %5279 = vmatmul.mubr.bf16.gmra.mxu1 %v9012_v34  ;;  %4995 = vmatprep.mubr.bf16.mxu0 %v9013_v26  ;;  %v9014_v15 = vld [vmem:[%s16112_s0 + $0x33c] ss:$24 sps:$4 sm:$0xff]  }
 0x33c   :  { %v4423_v23 = vpop.f32.mrf.mxu0  ;;  %5288 = vmatprep.mubr.bf16.mxu1 %v9014_v15  ;;  %v8446_v58 = vcombine.high %v12532_v19, %v12537_v33 }
 0x33d   :  { %16772 = vst [vmem:[#allocation163_spill] sm:$0xff] %v12541_v0  ;;  %v12559_v52 = vadd.f32 %v4714_v54, %v4422_v9  ;;  %v4424_v26 = vadd.f32 %v4423_v23, %v11586_v37  ;;  %v4716_v35 = vpop.f32.mrf.mxu1  ;;  %v9015_v9 = vld [vmem:[%s16112_s0 + $0x330] ss:$24 sps:$4 sm:$0xff]   ;;  %v9066_v0 = vld [vmem:[%s16112_s0 + $0xc4] ss:$24 sps:$4 sm:$0xff]  }
 0x33e   :  { %v4425_v48 = vpop.f32.mrf.mxu0  ;;  %6258 = vmatprep.subr.bf16.mxu1 %v8446_v58 }
 0x33f   :  { %16774 = vst [vmem:[#allocation164_spill] sm:$0xff] %v12559_v52  ;;  %v12564_v27 = vadd.f32 %v4716_v35, %v4424_v26  ;;  %v4426_v11 = vadd.f32 %v4425_v48, %v11593_v59  ;;  %v4718_v8 = vpop.f32.mrf.mxu1 }
 0x340   :  { %v4427_v18 = vpop.f32.mrf.mxu0 }
 0x341   :  { %16775 = vst [vmem:[#allocation204_spill] sm:$0xff] %v12564_v27  ;;  %v12569_v34 = vadd.f32 %v4718_v8, %v4426_v11  ;;  %v4428_v54 = vadd.f32 %v4427_v18, %v11600_v62  ;;  %v4720_v37 = vpop.f32.mrf.mxu1  ;;  %v9016_v8 = vld [vmem:[%s16112_s0 + $0x338] ss:$24 sps:$4 sm:$0xff]   ;;  %v9017_v62 = vld [vmem:[%s16112_s0 + $0x364] ss:$24 sps:$4 sm:$0xff]  }
 0x342   :  { %v4431_v23 = vpop.f32.mrf.mxu0  ;;  %4996 = vmatmul.mubr.bf16.gmra.mxu0 %v9015_v9  ;;  %v9018_v11 = vld [vmem:[%s16112_s0 + $0x36c] ss:$24 sps:$4 sm:$0xff]  }
 0x343   :  { %16776 = vst [vmem:[#allocation205_spill] sm:$0xff] %v12569_v34  ;;  %v12577_v59 = vadd.f32 %v4720_v37, %v4428_v54  ;;  %v4432_v48 = vadd.f32 %v4431_v23, %v11610_v14  ;;  %v4724_v26 = vpop.f32.mrf.mxu1  ;;  %5289 = vmatmul.mubr.bf16.gmra.mxu1 %v9016_v8  ;;  %5005 = vmatprep.mubr.bf16.mxu0 %v9017_v62 }
 0x344   :  { %v4433_v18 = vpop.f32.mrf.mxu0  ;;  %5298 = vmatprep.mubr.bf16.mxu1 %v9018_v11  ;;  %v16853_v34 = vcombine.low %v12532_v19, %v12537_v33  ;;  %v477_v19 = vld [vmem:[%s16111_s1 + $0x918] sm:$0xff] }
 0x345   :  { %16777 = vst [vmem:[#allocation206_spill] sm:$0xff] %v12577_v59  ;;  %v12591_v35 = vadd.f32 %v4724_v26, %v4432_v48  ;;  %v4434_v54 = vadd.f32 %v4433_v18, %v11627_v49  ;;  %v4726_v37 = vpop.f32.mrf.mxu1  ;;  %v16781_v48 = vld [vmem:[#allocation165_spill] sm:$0xff] }
 0x346   :  { %v4435_v23 = vpop.f32.mrf.mxu0  ;;  %v9019_v18 = vld [vmem:[%s16112_s0 + $0x360] ss:$24 sps:$4 sm:$0xff]  }
 0x347   :  { %16778 = vst [vmem:[#allocation207_spill] sm:$0xff] %v12591_v35  ;;  %v12596_v8 = vadd.f32 %v4726_v37, %v4434_v54  ;;  %v4436_v62 = vadd.f32 %v4435_v23, %v11634_v31  ;;  %v4728_v58 = vpop.f32.mrf.mxu1  ;;  %v16784_v23 = vld [vmem:[#allocation166_spill] sm:$0xff]  ;;  %v481_v33 = vld [vmem:[%s16111_s1 + $0x938] sm:$0xff] }
 0x348   :  { %v4437_v29 = vpop.f32.mrf.mxu0 }
 0x349   :  { %16779 = vst [vmem:[#allocation208_spill] sm:$0xff] %v12596_v8  ;;  %v12601_v15 = vadd.f32 %v4728_v58, %v4436_v62  ;;  %v4438_v26 = vadd.f32 %v4437_v29, %v16781_v48  ;;  %v4730_v14 = vpop.f32.mrf.mxu1  ;;  %v9020_v58 = vld [vmem:[%s16112_s0 + $0x368] ss:$24 sps:$4 sm:$0xff]   ;;  %v9021_v29 = vld [vmem:[%s16112_s0 + $0x394] ss:$24 sps:$4 sm:$0xff]  }
 0x34a   :  { %v4441_v49 = vpop.f32.mrf.mxu0  ;;  %5006 = vmatmul.mubr.bf16.gmra.mxu0 %v9019_v18  ;;  %v9022_v48 = vld [vmem:[%s16112_s0 + $0x39c] ss:$24 sps:$4 sm:$0xff]   ;;  %v16787_v18 = vld [vmem:[#allocation167_spill] sm:$0xff] }
 0x34b   :  { %16780 = vst [vmem:[#allocation209_spill] sm:$0xff] %v12601_v15  ;;  %v12609_v31 = vadd.f32 %v4730_v14, %v4438_v26  ;;  %v4442_v9 = vadd.f32 %v4441_v49, %v16784_v23  ;;  %v4734_v35 = vpop.f32.mrf.mxu1  ;;  %5299 = vmatmul.mubr.bf16.gmra.mxu1 %v9020_v58  ;;  %5015 = vmatprep.mubr.bf16.mxu0 %v9021_v29  ;;  %v16790_v29 = vld [vmem:[#allocation168_spill] sm:$0xff] }
 0x34c   :  { %v4443_v62 = vpop.f32.mrf.mxu0  ;;  %5308 = vmatprep.mubr.bf16.mxu1 %v9022_v48 }
 0x34d   :  { %16783 = vst [vmem:[#allocation165_spill] sm:$0xff] %v12609_v31  ;;  %v12623_v49 = vadd.f32 %v4734_v35, %v4442_v9  ;;  %v4444_v23 = vadd.f32 %v4443_v62, %v16787_v18  ;;  %v4736_v37 = vpop.f32.mrf.mxu1  ;;  %v16793_v35 = vld [vmem:[#allocation169_spill] sm:$0xff]  ;;  %v9023_v18 = vld [vmem:[%s16112_s0 + $0x390] ss:$24 sps:$4 sm:$0xff]  }
 0x34e   :  { %v4445_v58 = vpop.f32.mrf.mxu0 }
 0x34f   :  { %16786 = vst [vmem:[#allocation166_spill] sm:$0xff] %v12623_v49  ;;  %v12628_v54 = vadd.f32 %v4736_v37, %v4444_v23  ;;  %v4446_v8 = vadd.f32 %v4445_v58, %v16790_v29  ;;  %v4738_v53 = vpop.f32.mrf.mxu1  ;;  %v16796_v29 = vld [vmem:[#allocation170_spill] sm:$0xff] }
 0x350   :  { %v4447_v7 = vpop.f32.mrf.mxu0 }
 0x351   :  { %16789 = vst [vmem:[#allocation167_spill] sm:$0xff] %v12628_v54  ;;  %v12633_v17 = vadd.f32 %v4738_v53, %v4446_v8  ;;  %v4448_v9 = vadd.f32 %v4447_v7, %v16793_v35  ;;  %v4740_v26 = vpop.f32.mrf.mxu1  ;;  %v9024_v53 = vld [vmem:[%s16112_s0 + $0x398] ss:$24 sps:$4 sm:$0xff]   ;;  %v9025_v7 = vld [vmem:[%s16112_s0 + $0x3c4] ss:$24 sps:$4 sm:$0xff]  }
 0x352   :  { %v4451_v62 = vpop.f32.mrf.mxu0  ;;  %5016 = vmatmul.mubr.bf16.gmra.mxu0 %v9023_v18  ;;  %v9026_v35 = vld [vmem:[%s16112_s0 + $0x3cc] ss:$24 sps:$4 sm:$0xff]  }
 0x353   :  { %16792 = vst [vmem:[#allocation168_spill] sm:$0xff] %v12633_v17  ;;  %v12641_v58 = vadd.f32 %v4740_v26, %v4448_v9  ;;  %v4452_v15 = vadd.f32 %v4451_v62, %v16796_v29  ;;  %v4744_v49 = vpop.f32.mrf.mxu1  ;;  %5309 = vmatmul.mubr.bf16.gmra.mxu1 %v9024_v53  ;;  %5025 = vmatprep.mubr.bf16.mxu0 %v9025_v7  ;;  %v16799_v18 = vld [vmem:[#allocation171_spill] sm:$0xff]  ;;  %v16802_v7 = vld [vmem:[#allocation172_spill] sm:$0xff] }
 0x354   :  { %v4453_v8 = vpop.f32.mrf.mxu0  ;;  %5318 = vmatprep.mubr.bf16.mxu1 %v9026_v35 }
 0x355   :  { %16795 = vst [vmem:[#allocation169_spill] sm:$0xff] %v12641_v58  ;;  %v12655_v62 = vadd.f32 %v4744_v49, %v4452_v15  ;;  %v4454_v29 = vadd.f32 %v4453_v8, %v16799_v18  ;;  %v4746_v23 = vpop.f32.mrf.mxu1  ;;  %v16805_v15 = vld [vmem:[#allocation173_spill] sm:$0xff] }
 0x356   :  { %v4455_v53 = vpop.f32.mrf.mxu0  ;;  %v9027_v18 = vld [vmem:[%s16112_s0 + $0x3c0] ss:$24 sps:$4 sm:$0xff]  }
 0x357   :  { %16798 = vst [vmem:[#allocation170_spill] sm:$0xff] %v12655_v62  ;;  %v12660_v37 = vadd.f32 %v4746_v23, %v4454_v29  ;;  %v4456_v54 = vadd.f32 %v4455_v53, %v16802_v7  ;;  %v4748_v48 = vpop.f32.mrf.mxu1  ;;  %v16808_v7 = vld [vmem:[#allocation174_spill] sm:$0xff] }
 0x358   :  { %v4457_v11 = vpop.f32.mrf.mxu0 }
 0x359   :  { %16801 = vst [vmem:[#allocation171_spill] sm:$0xff] %v12660_v37  ;;  %v12665_v14 = vadd.f32 %v4748_v48, %v4456_v54  ;;  %v4458_v49 = vadd.f32 %v4457_v11, %v16805_v15  ;;  %v4750_v9 = vpop.f32.mrf.mxu1  ;;  %v9028_v54 = vld [vmem:[%s16112_s0 + $0x3c8] ss:$24 sps:$4 sm:$0xff]   ;;  %v9029_v11 = vld [vmem:[%s16112_s0 + $0x3f4] ss:$24 sps:$4 sm:$0xff]  }
 0x35a   :  { %v4461_v8 = vpop.f32.mrf.mxu0  ;;  %5026 = vmatmul.mubr.bf16.gmra.mxu0 %v9027_v18  ;;  %v9030_v15 = vld [vmem:[%s16112_s0 + $0x3fc] ss:$24 sps:$4 sm:$0xff]   ;;  %v16811_v18 = vld [vmem:[#allocation175_spill] sm:$0xff] }
 0x35b   :  { %16804 = vst [vmem:[#allocation172_spill] sm:$0xff] %v12665_v14  ;;  %v12673_v53 = vadd.f32 %v4750_v9, %v4458_v49  ;;  %v4462_v17 = vadd.f32 %v4461_v8, %v16808_v7  ;;  %v4754_v62 = vpop.f32.mrf.mxu1  ;;  %5319 = vmatmul.mubr.bf16.gmra.mxu1 %v9028_v54  ;;  %5035 = vmatprep.mubr.bf16.mxu0 %v9029_v11  ;;  %v16814_v11 = vld [vmem:[#allocation176_spill] sm:$0xff] }
 0x35c   :  { %v4463_v48 = vpop.f32.mrf.mxu0  ;;  %5328 = vmatprep.mubr.bf16.mxu1 %v9030_v15 }
 0x35d   :  { %16807 = vst [vmem:[#allocation173_spill] sm:$0xff] %v12673_v53  ;;  %v12687_v8 = vadd.f32 %v4754_v62, %v4462_v17  ;;  %v4464_v7 = vadd.f32 %v4463_v48, %v16811_v18  ;;  %v4756_v29 = vpop.f32.mrf.mxu1  ;;  %v16817_v17 = vld [vmem:[#allocation177_spill] sm:$0xff]  ;;  %v9031_v18 = vld [vmem:[%s16112_s0 + $0x3f0] ss:$24 sps:$4 sm:$0xff]  }
 0x35e   :  { %v4465_v54 = vpop.f32.mrf.mxu0 }
 0x35f   :  { %16810 = vst [vmem:[#allocation174_spill] sm:$0xff] %v12687_v8  ;;  %v12692_v23 = vadd.f32 %v4756_v29, %v4464_v7  ;;  %v4466_v37 = vadd.f32 %v4465_v54, %v16814_v11  ;;  %v4758_v35 = vpop.f32.mrf.mxu1  ;;  %v16820_v11 = vld [vmem:[#allocation178_spill] sm:$0xff] }
 0x360   :  { %v4467_v59 = vpop.f32.mrf.mxu0 }
 0x361   :  { %16813 = vst [vmem:[#allocation175_spill] sm:$0xff] %v12692_v23  ;;  %v12697_v26 = vadd.f32 %v4758_v35, %v4466_v37  ;;  %v4468_v62 = vadd.f32 %v4467_v59, %v16817_v17  ;;  %v4760_v49 = vpop.f32.mrf.mxu1  ;;  %v9032_v37 = vld [vmem:[%s16112_s0 + $0x3f8] ss:$24 sps:$4 sm:$0xff]   ;;  %v9033_v59 = vld [vmem:[%s16112_s0 + $0x424] ss:$24 sps:$4 sm:$0xff]  }
 0x362   :  { %v4471_v48 = vpop.f32.mrf.mxu0  ;;  %5036 = vmatmul.mubr.bf16.gmra.mxu0 %v9031_v18  ;;  %v9034_v17 = vld [vmem:[%s16112_s0 + $0x42c] ss:$24 sps:$4 sm:$0xff]  }
 0x363   :  { %16816 = vst [vmem:[#allocation176_spill] sm:$0xff] %v12697_v26  ;;  %v12705_v54 = vadd.f32 %v4760_v49, %v4468_v62  ;;  %v4472_v14 = vadd.f32 %v4471_v48, %v16820_v11  ;;  %v4764_v8 = vpop.f32.mrf.mxu1  ;;  %5329 = vmatmul.mubr.bf16.gmra.mxu1 %v9032_v37  ;;  %5045 = vmatprep.mubr.bf16.mxu0 %v9033_v59  ;;  %v16823_v18 = vld [vmem:[#allocation179_spill] sm:$0xff]  ;;  %v16826_v59 = vld [vmem:[#allocation180_spill] sm:$0xff] }
 0x364   :  { %v4473_v35 = vpop.f32.mrf.mxu0  ;;  %5338 = vmatprep.mubr.bf16.mxu1 %v9034_v17 }
 0x365   :  { %16819 = vst [vmem:[#allocation177_spill] sm:$0xff] %v12705_v54  ;;  %v12719_v48 = vadd.f32 %v4764_v8, %v4472_v14  ;;  %v4474_v11 = vadd.f32 %v4473_v35, %v16823_v18  ;;  %v4766_v7 = vpop.f32.mrf.mxu1  ;;  %v16829_v14 = vld [vmem:[#allocation181_spill] sm:$0xff] }
 0x366   :  { %v4475_v37 = vpop.f32.mrf.mxu0  ;;  %v9035_v18 = vld [vmem:[%s16112_s0 + $0x420] ss:$24 sps:$4 sm:$0xff]  }
 0x367   :  { %16822 = vst [vmem:[#allocation178_spill] sm:$0xff] %v12719_v48  ;;  %v12724_v29 = vadd.f32 %v4766_v7, %v4474_v11  ;;  %v4476_v23 = vadd.f32 %v4475_v37, %v16826_v59  ;;  %v4768_v15 = vpop.f32.mrf.mxu1  ;;  %v16832_v59 = vld [vmem:[#allocation182_spill] sm:$0xff] }
 0x368   :  { %v4477_v31 = vpop.f32.mrf.mxu0 }
 0x369   :  { %16825 = vst [vmem:[#allocation179_spill] sm:$0xff] %v12724_v29  ;;  %v12729_v9 = vadd.f32 %v4768_v15, %v4476_v23  ;;  %v4478_v8 = vadd.f32 %v4477_v31, %v16829_v14  ;;  %v4770_v62 = vpop.f32.mrf.mxu1  ;;  %v9036_v23 = vld [vmem:[%s16112_s0 + $0x428] ss:$24 sps:$4 sm:$0xff]   ;;  %v9037_v31 = vld [vmem:[%s16112_s0 + $0x454] ss:$24 sps:$4 sm:$0xff]  }
 0x36a   :  { %v4481_v35 = vpop.f32.mrf.mxu0  ;;  %5046 = vmatmul.mubr.bf16.gmra.mxu0 %v9035_v18  ;;  %v9038_v14 = vld [vmem:[%s16112_s0 + $0x45c] ss:$24 sps:$4 sm:$0xff]   ;;  %v16835_v18 = vld [vmem:[#allocation183_spill] sm:$0xff] }
 0x36b   :  { %16828 = vst [vmem:[#allocation180_spill] sm:$0xff] %v12729_v9  ;;  %v12737_v37 = vadd.f32 %v4770_v62, %v4478_v8  ;;  %v4482_v26 = vadd.f32 %v4481_v35, %v16832_v59  ;;  %v4774_v48 = vpop.f32.mrf.mxu1  ;;  %5339 = vmatmul.mubr.bf16.gmra.mxu1 %v9036_v23  ;;  %5055 = vmatprep.mubr.bf16.mxu0 %v9037_v31  ;;  %v16838_v31 = vld [vmem:[#allocation184_spill] sm:$0xff] }
 0x36c   :  { %v4483_v15 = vpop.f32.mrf.mxu0  ;;  %5348 = vmatprep.mubr.bf16.mxu1 %v9038_v14  ;;  %v16852_v62 = vcombine.low %v12510_v6, %v12515_v30  ;;  %v353_v6 = vld [vmem:[%s16111_s1 + $0x538] sm:$0xff] }
 0x36d   :  { %16831 = vst [vmem:[#allocation181_spill] sm:$0xff] %v12737_v37  ;;  %v12751_v35 = vadd.f32 %v4774_v48, %v4482_v26  ;;  %v4484_v59 = vadd.f32 %v4483_v15, %v16835_v18  ;;  %v4776_v11 = vpop.f32.mrf.mxu1  ;;  %v16840_v26 = vld [vmem:[#allocation185_spill] sm:$0xff]  ;;  %v9039_v18 = vld [vmem:[%s16112_s0 + $0x450] ss:$24 sps:$4 sm:$0xff]  }
 0x36e   :  { %v4485_v23 = vpop.f32.mrf.mxu0 }
 0x36f   :  { %16834 = vst [vmem:[#allocation182_spill] sm:$0xff] %v12751_v35  ;;  %v12756_v7 = vadd.f32 %v4776_v11, %v4484_v59  ;;  %v4486_v29 = vadd.f32 %v4485_v23, %v16838_v31  ;;  %v4778_v17 = vpop.f32.mrf.mxu1  ;;  %v16842_v23 = vld [vmem:[#allocation186_spill] sm:$0xff]  ;;  %v489_v35 = vld [vmem:[%s16111_s1 + $0x978] sm:$0xff] }
 0x370   :  { %v4487_v58 = vpop.f32.mrf.mxu0 }
 0x371   :  { %16837 = vst [vmem:[#allocation183_spill] sm:$0xff] %v12756_v7  ;;  %v12761_v54 = vadd.f32 %v4778_v17, %v4486_v29  ;;  %v4488_v48 = vadd.f32 %v4487_v58, %v16840_v26  ;;  %v4780_v8 = vpop.f32.mrf.mxu1  ;;  %v9040_v29 = vld [vmem:[%s16112_s0 + $0x458] ss:$24 sps:$4 sm:$0xff]   ;;  %v9041_v58 = vld [vmem:[%s16112_s0 + $0x484] ss:$24 sps:$4 sm:$0xff]  }
 0x372   :  { %v4491_v15 = vpop.f32.mrf.mxu0  ;;  %5056 = vmatmul.mubr.bf16.gmra.mxu0 %v9039_v18  ;;  %v9042_v26 = vld [vmem:[%s16112_s0 + $0x48c] ss:$24 sps:$4 sm:$0xff]  }
 0x373   :  { %16839 = vst [vmem:[#allocation184_spill] sm:$0xff] %v12761_v54  ;;  %v12769_v59 = vadd.f32 %v4780_v8, %v4488_v48  ;;  %v4492_v31 = vadd.f32 %v4491_v15, %v16842_v23  ;;  %v4784_v9 = vpop.f32.mrf.mxu1  ;;  %5349 = vmatmul.mubr.bf16.gmra.mxu1 %v9040_v29  ;;  %5065 = vmatprep.mubr.bf16.mxu0 %v9041_v58  ;;  %v16844_v15 = vld [vmem:[#allocation187_spill] sm:$0xff]  ;;  %v16846_v58 = vld [vmem:[#allocation188_spill] sm:$0xff] }
 0x374   :  { %v4493_v17 = vpop.f32.mrf.mxu0  ;;  %5358 = vmatprep.mubr.bf16.mxu1 %v9042_v26 }
 0x375   :  { %16841 = vst [vmem:[#allocation185_spill] sm:$0xff] %v12769_v59  ;;  %v12783_v48 = vadd.f32 %v4784_v9, %v4492_v31  ;;  %v4494_v18 = vadd.f32 %v4493_v17, %v16844_v15  ;;  %v4786_v23 = vpop.f32.mrf.mxu1  ;;  %v16848_v9 = vld [vmem:[#allocation189_spill] sm:$0xff] }
 0x376   :  { %v4495_v29 = vpop.f32.mrf.mxu0  ;;  %v9043_v15 = vld [vmem:[%s16112_s0 + $0x480] ss:$24 sps:$4 sm:$0xff]  }
 0x377   :  { %16843 = vst [vmem:[#allocation186_spill] sm:$0xff] %v12783_v48  ;;  %v12788_v14 = vadd.f32 %v4786_v23, %v4494_v18  ;;  %v4496_v54 = vadd.f32 %v4495_v29, %v16846_v58  ;;  %v4788_v28 = vpop.f32.mrf.mxu1 }
 0x378   :  { %v4497_v7 = vpop.f32.mrf.mxu0 }
 0x379   :  { %16845 = vst [vmem:[#allocation187_spill] sm:$0xff] %v12788_v14  ;;  %v12793_v12 = vadd.f32 %v4788_v28, %v4496_v54  ;;  %v4498_v31 = vadd.f32 %v4497_v7, %v16848_v9  ;;  %v4790_v8 = vpop.f32.mrf.mxu1  ;;  %v9044_v28 = vld [vmem:[%s16112_s0 + $0x488] ss:$24 sps:$4 sm:$0xff]   ;;  %v9045_v54 = vld [vmem:[%s16112_s0 + $0x4b4] ss:$24 sps:$4 sm:$0xff]  }
 0x37a   :  { %v4827_v17 = vpop.f32.mrf.mxu0  ;;  %5066 = vmatmul.mubr.bf16.gmra.mxu0 %v9043_v15  ;;  %v9046_v15 = vld [vmem:[%s16112_s0 + $0x4bc] ss:$24 sps:$4 sm:$0xff]   ;;  %v9047_v14 = vld [vmem:[%s16112_s0 + $0x4b0] ss:$24 sps:$4 sm:$0xff]  }
 0x37b   :  { %16847 = vst [vmem:[#allocation188_spill] sm:$0xff] %v12793_v12  ;;  %v12801_v29 = vadd.f32 %v4790_v8, %v4498_v31  ;;  %v5120_v58 = vpop.f32.mrf.mxu1  ;;  %5359 = vmatmul.mubr.bf16.gmra.mxu1 %v9044_v28  ;;  %5075 = vmatprep.mubr.bf16.mxu0 %v9045_v54 }
 0x37c   :  { %v12809_v7 = vadd.f32 %v5120_v58, %v4827_v17  ;;  %v4829_v9 = vpop.f32.mrf.mxu0  ;;  %5368 = vmatprep.mubr.bf16.mxu1 %v9046_v15 }
 0x37d   :  { %16850 = vst [vmem:[#allocation189_spill] sm:$0xff] %v12801_v29  ;;  %v5122_v23 = vpop.f32.mrf.mxu1 }
 0x37e   :  { %v12816_v26 = vadd.f32 %v5122_v23, %v4829_v9  ;;  %v4831_v28 = vpop.f32.mrf.mxu0  ;;  %v9048_v23 = vld [vmem:[%s16112_s0 + $0x4b8] ss:$24 sps:$4 sm:$0xff]  }
 0x37f   :  { %v5124_v11 = vpop.f32.mrf.mxu1 }
 0x380   :  { %v12818_v12 = vadd.f32 %v5124_v11, %v4831_v28  ;;  %v4833_v18 = vpop.f32.mrf.mxu0  ;;  %v9049_v11 = vld [vmem:[%s16112_s0 + $0x14] ss:$24 sps:$4 sm:$0xff]   ;;  %v9050_v28 = vld [vmem:[%s16112_s0 + $0x4] ss:$24 sps:$4 sm:$0xff]  }
 0x381   :  { %v5126_v54 = vpop.f32.mrf.mxu1 }
 0x382   :  { %v12820_v17 = vadd.f32 %v5126_v54, %v4833_v18  ;;  %v4837_v58 = vpop.f32.mrf.mxu0  ;;  %5076 = vmatmul.mubr.bf16.gmra.mxu0 %v9047_v14 }
 0x383   :  { %v5130_v15 = vpop.f32.mrf.mxu1  ;;  %5369 = vmatmul.mubr.bf16.gmra.mxu1 %v9048_v23  ;;  %8515 = vmatprep.mubr.msk.bf16.mxu0 %vm2956_vm0, %v9049_v11  ;;  %v365_v23 = vld [vmem:[%s16111_s1 + $0x598] sm:$0xff] }
 0x384   :  { %v12832_v18 = vadd.f32 %v5130_v15, %v4837_v58  ;;  %v4839_v9 = vpop.f32.mrf.mxu0  ;;  %5704 = vmatprep.mubr.bf16.mxu1 %v9050_v28  ;;  %v369_v11 = vld [vmem:[%s16111_s1 + $0x5b8] sm:$0xff] }
 0x385   :  { %v5132_v14 = vpop.f32.mrf.mxu1  ;;  %v493_v15 = vld [vmem:[%s16111_s1 + $0x998] sm:$0xff]  ;;  %v8310_v8 = vcombine.high %v365_v23, %v369_v11 }
 0x386   :  { %v12837_v54 = vadd.f32 %v5132_v14, %v4839_v9  ;;  %v4841_v31 = vpop.f32.mrf.mxu0  ;;  %v497_v28 = vld [vmem:[%s16111_s1 + $0x9b8] sm:$0xff] }
 0x387   :  { %v5134_v58 = vpop.f32.mrf.mxu1  ;;  %v8438_v59 = vcombine.high %v493_v15, %v497_v28  ;;  %v8437_v45 = vcombine.low %v493_v15, %v497_v28  ;;  %v9055_v28 = vld [vmem:[%s16112_s0 + $0x40] ss:$24 sps:$4 sm:$0xff]  }
 0x388   :  { %v12851_v9 = vadd.f32 %v5134_v58, %v4841_v31  ;;  %v4843_v14 = vpop.f32.mrf.mxu0  ;;  %v361_v31 = vld [vmem:[%s16111_s1 + $0x578] sm:$0xff] }
 0x389   :  { %v5136_v29 = vpop.f32.mrf.mxu1 }
 0x38a   :  { %v12853_v51 = vadd.f32 %v5136_v29, %v4843_v14  ;;  %v4847_v48 = vpop.f32.mrf.mxu0  ;;  %5412 = vmatmul.mubr.bf16.vlgmr.msra.gmra.mxu0 %v9051_v43  ;;  %v9052_v29 = vld [vmem:[%s16112_s0] ss:$24 sps:$4 sm:$0xff]   ;;  %v9053_v14 = vld [vmem:[%s16112_s0 + $0x44] ss:$24 sps:$4 sm:$0xff]  }
 0x38b   :  { %v5140_v58 = vpop.f32.mrf.mxu1  ;;  %5705 = vmatmul.mubr.bf16.vlgmr.msra.gmra.mxu1 %v9052_v29  ;;  %8516 = vmatprep.mubr.msk.bf16.mxu0 %vm2956_vm0, %v9053_v14  ;;  %v485_v43 = vld [vmem:[%s16111_s1 + $0x958] sm:$0xff]  ;;  %v9054_v29 = vld [vmem:[%s16112_s0 + $0x34] ss:$24 sps:$4 sm:$0xff]   ;;  %v8309_v14 = vcombine.low %v365_v23, %v369_v11 }
 0x38c   :  { %v12877_v53 = vadd.f32 %v5140_v58, %v4847_v48  ;;  %v4849_v37 = vpop.f32.mrf.mxu0  ;;  %5714 = vmatprep.mubr.bf16.mxu1 %v9054_v29  ;;  %5966 = vmatpush1.bf16.msra.mxu0 %v16852_v62  ;;  %v8302_v48 = vcombine.high %v357_v22, %v361_v31  ;;  %v349_v29 = vld [vmem:[%s16111_s1 + $0x518] sm:$0xff]  ;;  %v8430_v30 = vcombine.high %v485_v43, %v489_v35 }
 0x38d   :  { %v5142_v49 = vpop.f32.mrf.mxu1  ;;  %6259 = vmatpush1.bf16.msra.mxu1 %v16853_v34  ;;  %5967 = vmatprep.subr.bf16.mxu0 %v8310_v8  ;;  %v8294_v8 = vcombine.high %v349_v29, %v353_v6  ;;  %v8429_v23 = vcombine.low %v485_v43, %v489_v35  ;;  %v9056_v35 = vld [vmem:[%s16112_s0 + $0x30] ss:$24 sps:$4 sm:$0xff]   ;;  %v9057_v43 = vld [vmem:[%s16112_s0 + $0x74] ss:$24 sps:$4 sm:$0xff]  }
 0x38e   :  { %v12888_v58 = vadd.f32 %v5142_v49, %v4849_v37  ;;  %v4851_v27 = vpop.f32.mrf.mxu0  ;;  %6260 = vmatprep.subr.bf16.mxu1 %v8438_v59  ;;  %v8301_v37 = vcombine.low %v357_v22, %v361_v31  ;;  %v8422_v22 = vcombine.high %v477_v19, %v481_v33 }
 0x38f   :  { %v5144_v62 = vpop.f32.mrf.mxu1 }
 0x390   :  { %v12902_v34 = vadd.f32 %v5144_v62, %v4851_v27  ;;  %v4853_v49 = vpop.f32.mrf.mxu0  ;;  %5968 = vmatpush1.bf16.msra.mxu0 %v8309_v14  ;;  %v341_v27 = vld [vmem:[%s16111_s1 + $0x4d8] sm:$0xff] }
 0x391   :  { %v5146_v59 = vpop.f32.mrf.mxu1  ;;  %6261 = vmatpush1.bf16.msra.mxu1 %v8437_v45  ;;  %5969 = vmatprep.subr.bf16.mxu0 %v8302_v48  ;;  %v345_v45 = vld [vmem:[%s16111_s1 + $0x4f8] sm:$0xff] }
 0x392   :  { %v12904_v11 = vadd.f32 %v5146_v59, %v4853_v49  ;;  %v4857_v15 = vpop.f32.mrf.mxu0  ;;  %5422 = vmatmul.mubr.bf16.gmra.mxu0 %v9055_v28  ;;  %6262 = vmatprep.subr.bf16.mxu1 %v8430_v30  ;;  %v469_v14 = vld [vmem:[%s16111_s1 + $0x8d8] sm:$0xff]  ;;  %v8293_v59 = vcombine.low %v349_v29, %v353_v6 }
 0x393   :  { %v5150_v31 = vpop.f32.mrf.mxu1  ;;  %5715 = vmatmul.mubr.bf16.gmra.mxu1 %v9056_v35  ;;  %8517 = vmatprep.mubr.msk.bf16.mxu0 %vm2956_vm0, %v9057_v43  ;;  %v473_v48 = vld [vmem:[%s16111_s1 + $0x8f8] sm:$0xff]  ;;  %v8286_v35 = vcombine.high %v341_v27, %v345_v45  ;;  %v8421_v43 = vcombine.low %v477_v19, %v481_v33 }
 0x394   :  { %v12928_v30 = vadd.f32 %v5150_v31, %v4857_v15  ;;  %v4859_v62 = vpop.f32.mrf.mxu0  ;;  %v9058_v49 = vld [vmem:[%s16112_s0 + $0x64] ss:$24 sps:$4 sm:$0xff]   ;;  %5970 = vmatpush1.bf16.msra.mxu0 %v8301_v37 }
 0x395   :  { %5724 = vmatprep.mubr.bf16.mxu1 %v9058_v49  ;;  %v5152_v28 = vpop.f32.mrf.mxu1  ;;  %5971 = vmatprep.subr.bf16.mxu0 %v8294_v8  ;;  %v333_v15 = vld [vmem:[%s16111_s1 + $0x498] sm:$0xff]  ;;  %v8414_v49 = vcombine.high %v469_v14, %v473_v48  ;;  %v8285_v8 = vcombine.low %v341_v27, %v345_v45 }
 0x396   :  { %6263 = vmatpush1.bf16.msra.mxu1 %v8429_v23  ;;  %v12933_v44 = vadd.f32 %v5152_v28, %v4859_v62  ;;  %v4861_v52 = vpop.f32.mrf.mxu0  ;;  %v337_v31 = vld [vmem:[%s16111_s1 + $0x4b8] sm:$0xff]  ;;  %v8413_v23 = vcombine.low %v469_v14, %v473_v48 }
 0x397   :  { %6264 = vmatprep.subr.bf16.mxu1 %v8422_v22  ;;  %v5154_v37 = vpop.f32.mrf.mxu1  ;;  %v8278_v33 = vcombine.high %v333_v15, %v337_v31  ;;  %v329_v27 = vld [vmem:[%s16111_s1 + $0x478] sm:$0xff] }
 0x398   :  { %v12941_v29 = vadd.f32 %v5154_v37, %v4861_v52  ;;  %v4863_v6 = vpop.f32.mrf.mxu0  ;;  %5972 = vmatpush1.bf16.msra.mxu0 %v8293_v59  ;;  %v325_v52 = vld [vmem:[%s16111_s1 + $0x458] sm:$0xff]  ;;  %v9062_v59 = vld [vmem:[%s16112_s0 + $0x94] ss:$24 sps:$4 sm:$0xff]  }
 0x399   :  { %v5156_v19 = vpop.f32.mrf.mxu1  ;;  %5973 = vmatprep.subr.bf16.mxu0 %v8286_v35  ;;  %v9060_v22 = vld [vmem:[%s16112_s0 + $0x60] ss:$24 sps:$4 sm:$0xff]   ;;  %v9061_v14 = vld [vmem:[%s16112_s0 + $0xa4] ss:$24 sps:$4 sm:$0xff]   ;;  %v8277_v35 = vcombine.low %v333_v15, %v337_v31  ;;  %v8269_v15 = vcombine.low %v325_v52, %v329_v27 }
 0x39a   :  { %6265 = vmatpush1.bf16.msra.mxu1 %v8421_v43  ;;  %v12943_v62 = vadd.f32 %v5156_v19, %v4863_v6  ;;  %v4867_v28 = vpop.f32.mrf.mxu0  ;;  %5432 = vmatmul.mubr.bf16.gmra.mxu0 %v9059_v42  ;;  %v317_v19 = vld [vmem:[%s16111_s1 + $0x418] sm:$0xff] }
 0x39b   :  { %6266 = vmatprep.subr.bf16.mxu1 %v8414_v49  ;;  %v5160_v45 = vpop.f32.mrf.mxu1  ;;  %5725 = vmatmul.mubr.bf16.gmra.mxu1 %v9060_v22  ;;  %v8270_v49 = vcombine.high %v325_v52, %v329_v27  ;;  %v461_v52 = vld [vmem:[%s16111_s1 + $0x898] sm:$0xff] }
 0x39c   :  { %8518 = vmatprep.mubr.msk.bf16.mxu0 %vm2956_vm0, %v9061_v14  ;;  %v12961_v42 = vadd.f32 %v5160_v45, %v4867_v28  ;;  %v4869_v48 = vpop.f32.mrf.mxu0  ;;  %5734 = vmatprep.mubr.bf16.mxu1 %v9062_v59  ;;  %v321_v28 = vld [vmem:[%s16111_s1 + $0x438] sm:$0xff] }
 0x39d   :  { %5974 = vmatpush1.bf16.msra.mxu0 %v8285_v8  ;;  %v5162_v43 = vpop.f32.mrf.mxu1  ;;  %v9063_v59 = vld [vmem:[%s16112_s0 + $0xa0] ss:$24 sps:$4 sm:$0xff]   ;;  %v8261_v1 = vcombine.low %v317_v19, %v321_v28 }
 0x39e   :  { %5975 = vmatprep.subr.bf16.mxu0 %v8278_v33  ;;  %6267 = vmatpush1.bf16.msra.mxu1 %v8413_v23  ;;  %v12966_v37 = vadd.f32 %v5162_v43, %v4869_v48  ;;  %v4871_v6 = vpop.f32.mrf.mxu0  ;;  %v8262_v33 = vcombine.high %v317_v19, %v321_v28  ;;  %v437_v23 = vld [vmem:[%s16111_s1 + $0x7d8] sm:$0xff]  ;;  %v9067_v19 = vld [vmem:[%s16112_s0 + $0xd0] ss:$24 sps:$4 sm:$0xff]  }
 0x39f   :  { %v5164_v45 = vpop.f32.mrf.mxu1  ;;  %v465_v27 = vld [vmem:[%s16111_s1 + $0x8b8] sm:$0xff] }
 0x3a0   :  { %v12974_v22 = vadd.f32 %v5164_v45, %v4871_v6  ;;  %v4873_v8 = vpop.f32.mrf.mxu0  ;;  %v9065_v6 = vld [vmem:[%s16112_s0 + $0xd4] ss:$24 sps:$4 sm:$0xff]   ;;  %v8405_v45 = vcombine.low %v461_v52, %v465_v27  ;;  %v9068_v28 = vld [vmem:[%s16112_s0 + $0xc0] ss:$24 sps:$4 sm:$0xff]  }
 0x3a1   :  { %5976 = vmatpush1.bf16.msra.mxu0 %v8277_v35  ;;  %v5166_v31 = vpop.f32.mrf.mxu1  ;;  %v441_v35 = vld [vmem:[%s16111_s1 + $0x7f8] sm:$0xff] }
 0x3a2   :  { %5977 = vmatprep.subr.bf16.mxu0 %v8270_v49  ;;  %v12979_v14 = vadd.f32 %v5166_v31, %v4873_v8  ;;  %v4877_v48 = vpop.f32.mrf.mxu0  ;;  %5442 = vmatmul.mubr.bf16.gmra.mxu0 %v9063_v59  ;;  %v9064_v49 = vld [vmem:[%s16112_s0 + $0x90] ss:$24 sps:$4 sm:$0xff]   ;;  %v8406_v8 = vcombine.high %v461_v52, %v465_v27  ;;  %v8381_v27 = vcombine.low %v437_v23, %v441_v35 }
 0x3a3   :  { %v5170_v43 = vpop.f32.mrf.mxu1  ;;  %5735 = vmatmul.mubr.bf16.gmra.mxu1 %v9064_v49  ;;  %8519 = vmatprep.mubr.msk.bf16.mxu0 %vm2956_vm0, %v9065_v6  ;;  %v8382_v49 = vcombine.high %v437_v23, %v441_v35  ;;  %v429_v23 = vld [vmem:[%s16111_s1 + $0x798] sm:$0xff] }
 0x3a4   :  { %v13000_v31 = vadd.f32 %v5170_v43, %v4877_v48  ;;  %v4879_v59 = vpop.f32.mrf.mxu0  ;;  %5744 = vmatprep.mubr.bf16.mxu1 %v9066_v0  ;;  %6268 = vmatprep.subr.bf16.mxu1 %v8406_v8  ;;  %v433_v35 = vld [vmem:[%s16111_s1 + $0x7b8] sm:$0xff] }
 0x3a5   :  { %5978 = vmatpush1.bf16.msra.mxu0 %v8269_v15  ;;  %v5172_v13 = vpop.f32.mrf.mxu1  ;;  %6269 = vmatpush1.bf16.msra.mxu1 %v8405_v45  ;;  %v8373_v8 = vcombine.low %v429_v23, %v433_v35 }
 0x3a6   :  { %5979 = vmatprep.subr.bf16.mxu0 %v8262_v33  ;;  %v13005_v55 = vadd.f32 %v5172_v13, %v4879_v59  ;;  %v4881_v39 = vpop.f32.mrf.mxu0  ;;  %v9070_v33 = vld [vmem:[%s16112_s0 + $0xf4] ss:$24 sps:$4 sm:$0xff]   ;;  %v8374_v59 = vcombine.high %v429_v23, %v433_v35 }
 0x3a7   :  { %v5174_v6 = vpop.f32.mrf.mxu1 }
 0x3a8   :  { %v13007_v52 = vadd.f32 %v5174_v6, %v4881_v39  ;;  %v4883_v48 = vpop.f32.mrf.mxu0 }
 0x3a9   :  { %5980 = vmatpush1.bf16.msra.mxu0 %v8261_v1  ;;  %v5176_v43 = vpop.f32.mrf.mxu1  ;;  %v9069_v1 = vld [vmem:[%s16112_s0 + $0x104] ss:$24 sps:$4 sm:$0xff]  }
 0x3aa   :  { %5981 = vmatprep.subr.bf16.mxu0 %v8382_v49  ;;  %v13009_v50 = vadd.f32 %v5176_v43, %v4883_v48  ;;  %v4887_v0 = vpop.f32.mrf.mxu0  ;;  %5452 = vmatmul.mubr.bf16.gmra.mxu0 %v9067_v19 }
 0x3ab   :  { %v5180_v13 = vpop.f32.mrf.mxu1  ;;  %5745 = vmatmul.mubr.bf16.gmra.mxu1 %v9068_v28  ;;  %8520 = vmatprep.mubr.msk.bf16.mxu0 %vm2956_vm0, %v9069_v1  ;;  %v9071_v28 = vld [vmem:[%s16112_s0 + $0x100] ss:$24 sps:$4 sm:$0xff]  }
 0x3ac   :  { %v13021_v39 = vadd.f32 %v5180_v13, %v4887_v0  ;;  %v4889_v15 = vpop.f32.mrf.mxu0  ;;  %5754 = vmatprep.mubr.bf16.mxu1 %v9070_v33  ;;  %v9073_v33 = vld [vmem:[%s16112_s0 + $0x134] ss:$24 sps:$4 sm:$0xff]  }
 0x3ad   :  { %5982 = vmatpush2.bf16.msra.mxu0 %v8381_v27  ;;  %v5182_v45 = vpop.f32.mrf.mxu1 }
 0x3ae   :  { %v13032_v49 = vadd.f32 %v5182_v45, %v4889_v15  ;;  %v4891_v6 = vpop.f32.mrf.mxu0  ;;  %5983 = vmatprep.subr.bf16.mxu0 %v8374_v59  ;;  %v9072_v15 = vld [vmem:[%s16112_s0 + $0xf0] ss:$24 sps:$4 sm:$0xff]   ;;  %v9074_v45 = vld [vmem:[%s16112_s0 + $0x124] ss:$24 sps:$4 sm:$0xff]  }
 0x3af   :  { %v5184_v48 = vpop.f32.mrf.mxu1 }
 0x3b0   :  { %v13034_v43 = vadd.f32 %v5184_v48, %v4891_v6  ;;  %v4893_v0 = vpop.f32.mrf.mxu0  ;;  %v453_v48 = vld [vmem:[%s16111_s1 + $0x858] sm:$0xff] }
 0x3b1   :  { %5984 = vmatpush2.bf16.msra.mxu0 %v8373_v8  ;;  %v5186_v27 = vpop.f32.mrf.mxu1 }
 0x3b2   :  { %v13036_v19 = vadd.f32 %v5186_v27, %v4893_v0  ;;  %v4897_v13 = vpop.f32.mrf.mxu0  ;;  %5462 = vmatmul.mubr.bf16.gmra.mxu0 %v9071_v28  ;;  %v457_v0 = vld [vmem:[%s16111_s1 + $0x878] sm:$0xff] }
 0x3b3   :  { %v5190_v1 = vpop.f32.mrf.mxu1  ;;  %5755 = vmatmul.mubr.bf16.gmra.mxu1 %v9072_v15  ;;  %8521 = vmatprep.mubr.msk.bf16.mxu0 %vm2956_vm0, %v9073_v33  ;;  %v8398_v28 = vcombine.high %v453_v48, %v457_v0 }
 0x3b4   :  { %v13048_v23 = vadd.f32 %v5190_v1, %v4897_v13  ;;  %v4899_v35 = vpop.f32.mrf.mxu0  ;;  %5764 = vmatprep.mubr.bf16.mxu1 %v9074_v45  ;;  %v8397_v13 = vcombine.low %v453_v48, %v457_v0  ;;  %v9076_v0 = vld [vmem:[%s16112_s0 + $0x120] ss:$24 sps:$4 sm:$0xff]  }
 0x3b5   :  { %v5192_v8 = vpop.f32.mrf.mxu1  ;;  %6270 = vmatprep.subr.bf16.mxu1 %v8398_v28 }
 0x3b6   :  { %v13053_v59 = vadd.f32 %v5192_v8, %v4899_v35  ;;  %v4901_v6 = vpop.f32.mrf.mxu0  ;;  %v9075_v8 = vld [vmem:[%s16112_s0 + $0x130] ss:$24 sps:$4 sm:$0xff]   ;;  %6271 = vmatpush1.bf16.msra.mxu1 %v8397_v13 }
 0x3b7   :  { %v5194_v27 = vpop.f32.mrf.mxu1 }
 0x3b8   :  { %v13061_v1 = vadd.f32 %v5194_v27, %v4901_v6  ;;  %v4903_v15 = vpop.f32.mrf.mxu0  ;;  %v425_v6 = vld [vmem:[%s16111_s1 + $0x778] sm:$0xff] }
 0x3b9   :  { %v5196_v33 = vpop.f32.mrf.mxu1  ;;  %v9077_v27 = vld [vmem:[%s16112_s0 + $0x164] ss:$24 sps:$4 sm:$0xff]   ;;  %v8365_v13 = vcombine.low %v421_v4, %v425_v6  ;;  %v8366_v28 = vcombine.high %v421_v4, %v425_v6  ;;  %v9079_v6 = vld [vmem:[%s16112_s0 + $0x160] ss:$24 sps:$4 sm:$0xff]  }
 0x3ba   :  { %v13063_v45 = vadd.f32 %v5196_v33, %v4903_v15  ;;  %v4907_v35 = vpop.f32.mrf.mxu0  ;;  %5472 = vmatmul.mubr.bf16.gmra.mxu0 %v9075_v8  ;;  %v9078_v8 = vld [vmem:[%s16112_s0 + $0x154] ss:$24 sps:$4 sm:$0xff]  }
 0x3bb   :  { %v5200_v48 = vpop.f32.mrf.mxu1  ;;  %5765 = vmatmul.mubr.bf16.gmra.mxu1 %v9076_v0  ;;  %8522 = vmatprep.mubr.msk.bf16.mxu0 %vm2956_vm0, %v9077_v27 }
 0x3bc   :  { %v13081_v15 = vadd.f32 %v5200_v48, %v4907_v35  ;;  %v4909_v33 = vpop.f32.mrf.mxu0  ;;  %5774 = vmatprep.mubr.bf16.mxu1 %v9078_v8  ;;  %5985 = vmatprep.subr.bf16.mxu0 %v8366_v28  ;;  %v9082_v28 = vld [vmem:[%s16112_s0 + $0x184] ss:$24 sps:$4 sm:$0xff]  }
 0x3bd   :  { %v5202_v5 = vpop.f32.mrf.mxu1  ;;  %5986 = vmatpush2.bf16.msra.mxu0 %v8365_v13  ;;  %v417_v8 = vld [vmem:[%s16111_s1 + $0x738] sm:$0xff] }
 0x3be   :  { %v13086_v56 = vadd.f32 %v5202_v5, %v4909_v33  ;;  %v4911_v0 = vpop.f32.mrf.mxu0  ;;  %v9080_v5 = vld [vmem:[%s16112_s0 + $0x150] ss:$24 sps:$4 sm:$0xff]   ;;  %v413_v33 = vld [vmem:[%s16111_s1 + $0x718] sm:$0xff] }
 0x3bf   :  { %v5204_v46 = vpop.f32.mrf.mxu1 }
 0x3c0   :  { %v13088_v47 = vadd.f32 %v5204_v46, %v4911_v0  ;;  %v4913_v27 = vpop.f32.mrf.mxu0  ;;  %v9081_v46 = vld [vmem:[%s16112_s0 + $0x194] ss:$24 sps:$4 sm:$0xff]  }
 0x3c1   :  { %v5206_v38 = vpop.f32.mrf.mxu1 }
 0x3c2   :  { %v13090_v4 = vadd.f32 %v5206_v38, %v4913_v27  ;;  %v4917_v35 = vpop.f32.mrf.mxu0  ;;  %5482 = vmatmul.mubr.bf16.gmra.mxu0 %v9079_v6  ;;  %v8358_v27 = vcombine.high %v413_v33, %v417_v8 }
 0x3c3   :  { %v5210_v48 = vpop.f32.mrf.mxu1  ;;  %5775 = vmatmul.mubr.bf16.gmra.mxu1 %v9080_v5  ;;  %8523 = vmatprep.mubr.msk.bf16.mxu0 %vm2956_vm0, %v9081_v46 }
 0x3c4   :  { %v13102_v38 = vadd.f32 %v5210_v48, %v4917_v35  ;;  %v4919_v13 = vpop.f32.mrf.mxu0  ;;  %5784 = vmatprep.mubr.bf16.mxu1 %v9082_v28  ;;  %v8357_v48 = vcombine.low %v413_v33, %v417_v8  ;;  %5987 = vmatprep.subr.bf16.mxu0 %v8358_v27  ;;  %v405_v28 = vld [vmem:[%s16111_s1 + $0x6d8] sm:$0xff]  ;;  %v9083_v33 = vld [vmem:[%s16112_s0 + $0x190] ss:$24 sps:$4 sm:$0xff]  }
 0x3c5   :  { %v5212_v0 = vpop.f32.mrf.mxu1  ;;  %v8350_v2 = vcombine.high %v405_v28, %v409_v57  ;;  %v8349_v8 = vcombine.low %v405_v28, %v409_v57  ;;  %v449_v57 = vld [vmem:[%s16111_s1 + $0x838] sm:$0xff]  ;;  %v9086_v28 = vld [vmem:[%s16112_s0 + $0x1b4] ss:$24 sps:$4 sm:$0xff]  }
 0x3c6   :  { %v13113_v6 = vadd.f32 %v5212_v0, %v4919_v13  ;;  %v4921_v35 = vpop.f32.mrf.mxu0  ;;  %5988 = vmatpush2.bf16.msra.mxu0 %v8357_v48  ;;  %v9085_v48 = vld [vmem:[%s16112_s0 + $0x1c4] ss:$24 sps:$4 sm:$0xff]  }
 0x3c7   :  { %v5214_v5 = vpop.f32.mrf.mxu1  ;;  %5989 = vmatprep.subr.bf16.mxu0 %v8350_v2 }
 0x3c8   :  { %v13115_v46 = vadd.f32 %v5214_v5, %v4921_v35  ;;  %v4923_v36 = vpop.f32.mrf.mxu0  ;;  %v9084_v35 = vld [vmem:[%s16112_s0 + $0x180] ss:$24 sps:$4 sm:$0xff]  }
 0x3c9   :  { %v5216_v32 = vpop.f32.mrf.mxu1 }
 0x3ca   :  { %v13123_v13 = vadd.f32 %v5216_v32, %v4923_v36  ;;  %v4927_v0 = vpop.f32.mrf.mxu0  ;;  %5492 = vmatmul.mubr.bf16.gmra.mxu0 %v9083_v33  ;;  %v445_v36 = vld [vmem:[%s16111_s1 + $0x818] sm:$0xff] }
 0x3cb   :  { %v5220_v27 = vpop.f32.mrf.mxu1  ;;  %5785 = vmatmul.mubr.bf16.gmra.mxu1 %v9084_v35  ;;  %8524 = vmatprep.mubr.msk.bf16.mxu0 %vm2956_vm0, %v9085_v48  ;;  %v8389_v33 = vcombine.low %v445_v36, %v449_v57  ;;  %v8390_v35 = vcombine.high %v445_v36, %v449_v57  ;;  %v397_v48 = vld [vmem:[%s16111_s1 + $0x698] sm:$0xff] }
 0x3cc   :  { %v13141_v32 = vadd.f32 %v5220_v27, %v4927_v0  ;;  %v4929_v5 = vpop.f32.mrf.mxu0  ;;  %5794 = vmatprep.mubr.bf16.mxu1 %v9086_v28  ;;  %5990 = vmatpush2.bf16.msra.mxu0 %v8349_v8  ;;  %v8342_v0 = vcombine.high %v397_v48, %v401_v41  ;;  %v8341_v10 = vcombine.low %v397_v48, %v401_v41  ;;  %v389_v57 = vld [vmem:[%s16111_s1 + $0x658] sm:$0xff] }
 0x3cd   :  { %v5222_v24 = vpop.f32.mrf.mxu1  ;;  %6272 = vmatprep.subr.bf16.mxu1 %v8390_v35  ;;  %v393_v8 = vld [vmem:[%s16111_s1 + $0x678] sm:$0xff] }
 0x3ce   :  { %v13152_v27 = vadd.f32 %v5222_v24, %v4929_v5  ;;  %v4931_v3 = vpop.f32.mrf.mxu0  ;;  %6273 = vmatpush1.bf16.msra.mxu1 %v8389_v33  ;;  %5991 = vmatprep.subr.bf16.mxu0 %v8342_v0  ;;  %v517_v24 = vld [vmem:[%s16111_s1 + $0xa58] sm:$0xff]  ;;  %v8334_v41 = vcombine.high %v389_v57, %v393_v8  ;;  %v8333_v0 = vcombine.low %v389_v57, %v393_v8 }
 0x3cf   :  { %v5224_v28 = vpop.f32.mrf.mxu1  ;;  %v9087_v48 = vld [vmem:[%s16112_s0 + $0x1c0] ss:$24 sps:$4 sm:$0xff]   ;;  %v9090_v57 = vld [vmem:[%s16112_s0 + $0x1e4] ss:$24 sps:$4 sm:$0xff]  }
 0x3d0   :  { %v13154_v2 = vadd.f32 %v5224_v28, %v4931_v3  ;;  %v4933_v36 = vpop.f32.mrf.mxu0  ;;  %5992 = vmatpush2.bf16.msra.mxu0 %v8341_v10  ;;  %v521_v3 = vld [vmem:[%s16111_s1 + $0xa78] sm:$0xff]  ;;  %v9088_v10 = vld [vmem:[%s16112_s0 + $0x1b0] ss:$24 sps:$4 sm:$0xff]  }
 0x3d1   :  { %v5226_v5 = vpop.f32.mrf.mxu1  ;;  %v8461_v28 = vcombine.low %v517_v24, %v521_v3  ;;  %v8462_v60 = vcombine.high %v517_v24, %v521_v3  ;;  %5993 = vmatprep.subr.bf16.mxu0 %v8334_v41  ;;  %v381_v8 = vld [vmem:[%s16111_s1 + $0x618] sm:$0xff] }
 0x3d2   :  { %v13168_v33 = vadd.f32 %v5226_v5, %v4933_v36  ;;  %v4937_v35 = vpop.f32.mrf.mxu0  ;;  %5502 = vmatmul.mubr.bf16.gmra.mxu0 %v9087_v48  ;;  %v9089_v36 = vld [vmem:[%s16112_s0 + $0x1f4] ss:$24 sps:$4 sm:$0xff]   ;;  %v385_v24 = vld [vmem:[%s16111_s1 + $0x638] sm:$0xff] }
 0x3d3   :  { %v5230_v25 = vpop.f32.mrf.mxu1  ;;  %5795 = vmatmul.mubr.bf16.gmra.mxu1 %v9088_v10  ;;  %8525 = vmatprep.mubr.msk.bf16.mxu0 %vm2956_vm0, %v9089_v36  ;;  %v513_v41 = vld [vmem:[%s16111_s1 + $0xa38] sm:$0xff]  ;;  %v8325_v36 = vcombine.low %v381_v8, %v385_v24 }
 0x3d4   :  { %v13180_v5 = vadd.f32 %v5230_v25, %v4937_v35  ;;  %v4939_v61 = vpop.f32.mrf.mxu0  ;;  %5804 = vmatprep.mubr.bf16.mxu1 %v9090_v57  ;;  %v509_v25 = vld [vmem:[%s16111_s1 + $0xa18] sm:$0xff]  ;;  %6286 = vmatprep.subr.bf16.mxu1 %v8462_v60  ;;  %v8326_v35 = vcombine.high %v381_v8, %v385_v24  ;;  %v9094_v24 = vld [vmem:[%s16112_s0 + $0x214] ss:$24 sps:$4 sm:$0xff]  }
 0x3d5   :  { %v5232_v3 = vpop.f32.mrf.mxu1  ;;  %5994 = vmatpush2.bf16.msra.mxu0 %v8333_v0  ;;  %6287 = vmatpush2.bf16.msra.mxu1 %v8461_v28  ;;  %v8453_v57 = vcombine.low %v509_v25, %v513_v41  ;;  %v8454_v21 = vcombine.high %v509_v25, %v513_v41  ;;  %v9092_v8 = vld [vmem:[%s16112_s0 + $0x1e0] ss:$24 sps:$4 sm:$0xff]  }
 0x3d6   :  { %v13197_v48 = vadd.f32 %v5232_v3, %v4939_v61  ;;  %v4941_v10 = vpop.f32.mrf.mxu0  ;;  %5995 = vmatprep.subr.bf16.mxu0 %v8326_v35  ;;  %v9091_v61 = vld [vmem:[%s16112_s0 + $0x1f0] ss:$24 sps:$4 sm:$0xff]  }
 0x3d7   :  { %v5234_v40 = vpop.f32.mrf.mxu1  ;;  %6288 = vmatprep.subr.bf16.mxu1 %v8454_v21  ;;  %v9093_v21 = vld [vmem:[%s16112_s0 + $0x224] ss:$24 sps:$4 sm:$0xff]  }
 0x3d8   :  { %v13199_v20 = vadd.f32 %v5234_v40, %v4941_v10  ;;  %v4943_v63 = vpop.f32.mrf.mxu0 }
 0x3d9   :  { %v5236_v60 = vpop.f32.mrf.mxu1  ;;  %5996 = vmatpush2.bf16.msra.mxu0 %v8325_v36  ;;  %6289 = vmatpush2.bf16.msra.mxu1 %v8453_v57 }
 0x3da   :  { %v13201_v0 = vadd.f32 %v5236_v60, %v4943_v63  ;;  %v4947_v16 = vpop.f32.mrf.mxu0  ;;  %5512 = vmatmul.mubr.bf16.gmra.mxu0 %v9091_v61 }
 0x3db   :  { %v5240_v28 = vpop.f32.mrf.mxu1  ;;  %5805 = vmatmul.mubr.bf16.gmra.mxu1 %v9092_v8  ;;  %8526 = vmatprep.mubr.msk.bf16.mxu0 %vm2956_vm0, %v9093_v21  ;;  %v9096_v8 = vld [vmem:[%s16112_s0 + $0x210] ss:$24 sps:$4 sm:$0xff]   ;;  %v9097_v21 = vld [vmem:[%s16112_s0 + $0x254] ss:$24 sps:$4 sm:$0xff]  }
 0x3dc   :  { %v13213_v63 = vadd.f32 %v5240_v28, %v4947_v16  ;;  %v4949_v40 = vpop.f32.mrf.mxu0  ;;  %5814 = vmatprep.mubr.bf16.mxu1 %v9094_v24  ;;  %v9095_v16 = vld [vmem:[%s16112_s0 + $0x220] ss:$24 sps:$4 sm:$0xff]  }
 0x3dd   :  { %v5242_v25 = vpop.f32.mrf.mxu1 }
 0x3de   :  { %v13218_v3 = vadd.f32 %v5242_v25, %v4949_v40  ;;  %v4951_v35 = vpop.f32.mrf.mxu0  ;;  %v9098_v25 = vld [vmem:[%s16112_s0 + $0x244] ss:$24 sps:$4 sm:$0xff]  }
 0x3df   :  { %v5244_v41 = vpop.f32.mrf.mxu1 }
 0x3e0   :  { %v13220_v10 = vadd.f32 %v5244_v41, %v4951_v35  ;;  %v4953_v36 = vpop.f32.mrf.mxu0 }
 0x3e1   :  { %v5246_v57 = vpop.f32.mrf.mxu1 }
 0x3e2   :  { %16854 = vst [vmem:[#allocation210_spill] sm:$0xff] %v13220_v10  ;;  %v13222_v60 = vadd.f32 %v5246_v57, %v4953_v36  ;;  %v4957_v61 = vpop.f32.mrf.mxu0  ;;  %5522 = vmatmul.mubr.bf16.gmra.mxu0 %v9095_v16 }
 0x3e3   :  { %v5250_v28 = vpop.f32.mrf.mxu1  ;;  %5815 = vmatmul.mubr.bf16.gmra.mxu1 %v9096_v8  ;;  %8527 = vmatprep.mubr.msk.bf16.mxu0 %vm2956_vm0, %v9097_v21 }
 0x3e4   :  { %16855 = vst [vmem:[#allocation211_spill] sm:$0xff] %v13222_v60  ;;  %v13234_v40 = vadd.f32 %v5250_v28, %v4957_v61  ;;  %v4959_v24 = vpop.f32.mrf.mxu0  ;;  %5824 = vmatprep.mubr.bf16.mxu1 %v9098_v25  ;;  %v9099_v61 = vld [vmem:[%s16112_s0 + $0x250] ss:$24 sps:$4 sm:$0xff]   ;;  %v9101_v25 = vld [vmem:[%s16112_s0 + $0x284] ss:$24 sps:$4 sm:$0xff]  }
 0x3e5   :  { %v5252_v35 = vpop.f32.mrf.mxu1 }
 0x3e6   :  { %16856 = vst [vmem:[#allocation212_spill] sm:$0xff] %v13234_v40  ;;  %v13239_v41 = vadd.f32 %v5252_v35, %v4959_v24  ;;  %v4961_v36 = vpop.f32.mrf.mxu0  ;;  %v9100_v24 = vld [vmem:[%s16112_s0 + $0x240] ss:$24 sps:$4 sm:$0xff]  }
 0x3e7   :  { %v5254_v57 = vpop.f32.mrf.mxu1 }
 0x3e8   :  { %16857 = vst [vmem:[#allocation213_spill] sm:$0xff] %v13239_v41  ;;  %v13241_v16 = vadd.f32 %v5254_v57, %v4961_v36  ;;  %v4963_v8 = vpop.f32.mrf.mxu0  ;;  %v9102_v36 = vld [vmem:[%s16112_s0 + $0x274] ss:$24 sps:$4 sm:$0xff]  }
 0x3e9   :  { %v5256_v60 = vpop.f32.mrf.mxu1 }
 0x3ea   :  { %16858 = vst [vmem:[#allocation214_spill] sm:$0xff] %v13241_v16  ;;  %v13243_v10 = vadd.f32 %v5256_v60, %v4963_v8  ;;  %v4967_v21 = vpop.f32.mrf.mxu0  ;;  %5532 = vmatmul.mubr.bf16.gmra.mxu0 %v9099_v61 }
 0x3eb   :  { %v5260_v28 = vpop.f32.mrf.mxu1  ;;  %5825 = vmatmul.mubr.bf16.gmra.mxu1 %v9100_v24  ;;  %8528 = vmatprep.mubr.msk.bf16.mxu0 %vm2956_vm0, %v9101_v25 }
 0x3ec   :  { %16859 = vst [vmem:[#allocation215_spill] sm:$0xff] %v13243_v10  ;;  %v13255_v60 = vadd.f32 %v5260_v28, %v4967_v21  ;;  %v4969_v35 = vpop.f32.mrf.mxu0  ;;  %5834 = vmatprep.mubr.bf16.mxu1 %v9102_v36  ;;  %v9103_v21 = vld [vmem:[%s16112_s0 + $0x280] ss:$24 sps:$4 sm:$0xff]   ;;  %v9106_v36 = vld [vmem:[%s16112_s0 + $0x2a4] ss:$24 sps:$4 sm:$0xff]  }
 0x3ed   :  { %v5262_v57 = vpop.f32.mrf.mxu1 }
 0x3ee   :  { %16860 = vst [vmem:[#allocation216_spill] sm:$0xff] %v13255_v60  ;;  %v13260_v8 = vadd.f32 %v5262_v57, %v4969_v35  ;;  %v4971_v61 = vpop.f32.mrf.mxu0  ;;  %v9104_v35 = vld [vmem:[%s16112_s0 + $0x270] ss:$24 sps:$4 sm:$0xff]  }
 0x3ef   :  { %v5264_v10 = vpop.f32.mrf.mxu1 }
 0x3f0   :  { %16861 = vst [vmem:[#allocation217_spill] sm:$0xff] %v13260_v8  ;;  %v13262_v24 = vadd.f32 %v5264_v10, %v4971_v61  ;;  %v4973_v16 = vpop.f32.mrf.mxu0  ;;  %v9105_v10 = vld [vmem:[%s16112_s0 + $0x2b4] ss:$24 sps:$4 sm:$0xff]  }
 0x3f1   :  { %v5266_v41 = vpop.f32.mrf.mxu1 }
 0x3f2   :  { %16862 = vst [vmem:[#allocation218_spill] sm:$0xff] %v13262_v24  ;;  %v13264_v40 = vadd.f32 %v5266_v41, %v4973_v16  ;;  %v4977_v25 = vpop.f32.mrf.mxu0  ;;  %5542 = vmatmul.mubr.bf16.gmra.mxu0 %v9103_v21 }
 0x3f3   :  { %v5270_v28 = vpop.f32.mrf.mxu1  ;;  %5835 = vmatmul.mubr.bf16.gmra.mxu1 %v9104_v35  ;;  %8529 = vmatprep.mubr.msk.bf16.mxu0 %vm2956_vm0, %v9105_v10 }
 0x3f4   :  { %16863 = vst [vmem:[#allocation219_spill] sm:$0xff] %v13264_v40  ;;  %v13276_v41 = vadd.f32 %v5270_v28, %v4977_v25  ;;  %v4979_v16 = vpop.f32.mrf.mxu0  ;;  %5844 = vmatprep.mubr.bf16.mxu1 %v9106_v36  ;;  %v9107_v25 = vld [vmem:[%s16112_s0 + $0x2b0] ss:$24 sps:$4 sm:$0xff]   ;;  %v9110_v36 = vld [vmem:[%s16112_s0 + $0x2d4] ss:$24 sps:$4 sm:$0xff]  }
 0x3f5   :  { %v5272_v57 = vpop.f32.mrf.mxu1 }
 0x3f6   :  { %16864 = vst [vmem:[#allocation220_spill] sm:$0xff] %v13276_v41  ;;  %v13281_v61 = vadd.f32 %v5272_v57, %v4979_v16  ;;  %v4981_v21 = vpop.f32.mrf.mxu0  ;;  %v9108_v16 = vld [vmem:[%s16112_s0 + $0x2a0] ss:$24 sps:$4 sm:$0xff]  }
 0x3f7   :  { %v5274_v40 = vpop.f32.mrf.mxu1 }
 0x3f8   :  { %16865 = vst [vmem:[#allocation221_spill] sm:$0xff] %v13281_v61  ;;  %v13283_v35 = vadd.f32 %v5274_v40, %v4981_v21  ;;  %v4983_v24 = vpop.f32.mrf.mxu0  ;;  %v9109_v40 = vld [vmem:[%s16112_s0 + $0x2e4] ss:$24 sps:$4 sm:$0xff]  }
 0x3f9   :  { %v5276_v8 = vpop.f32.mrf.mxu1 }
 0x3fa   :  { %16866 = vst [vmem:[#allocation222_spill] sm:$0xff] %v13283_v35  ;;  %v13285_v60 = vadd.f32 %v5276_v8, %v4983_v24  ;;  %v4987_v10 = vpop.f32.mrf.mxu0  ;;  %5552 = vmatmul.mubr.bf16.gmra.mxu0 %v9107_v25 }
 0x3fb   :  { %v5280_v28 = vpop.f32.mrf.mxu1  ;;  %5845 = vmatmul.mubr.bf16.gmra.mxu1 %v9108_v16  ;;  %8530 = vmatprep.mubr.msk.bf16.mxu0 %vm2956_vm0, %v9109_v40 }
 0x3fc   :  { %16867 = vst [vmem:[#allocation223_spill] sm:$0xff] %v13285_v60  ;;  %v13297_v8 = vadd.f32 %v5280_v28, %v4987_v10  ;;  %v4989_v24 = vpop.f32.mrf.mxu0  ;;  %5854 = vmatprep.mubr.bf16.mxu1 %v9110_v36  ;;  %v9111_v10 = vld [vmem:[%s16112_s0 + $0x2e0] ss:$24 sps:$4 sm:$0xff]   ;;  %v9114_v36 = vld [vmem:[%s16112_s0 + $0x304] ss:$24 sps:$4 sm:$0xff]  }
 0x3fd   :  { %v5282_v57 = vpop.f32.mrf.mxu1 }
 0x3fe   :  { %16868 = vst [vmem:[#allocation224_spill] sm:$0xff] %v13297_v8  ;;  %v13302_v21 = vadd.f32 %v5282_v57, %v4989_v24  ;;  %v4991_v25 = vpop.f32.mrf.mxu0  ;;  %v9112_v24 = vld [vmem:[%s16112_s0 + $0x2d0] ss:$24 sps:$4 sm:$0xff]  }
 0x3ff   :  { %v5284_v60 = vpop.f32.mrf.mxu1 }
 0x400   :  { %16869 = vst [vmem:[#allocation225_spill] sm:$0xff] %v13302_v21  ;;  %v13304_v16 = vadd.f32 %v5284_v60, %v4991_v25  ;;  %v4993_v35 = vpop.f32.mrf.mxu0  ;;  %v9113_v60 = vld [vmem:[%s16112_s0 + $0x314] ss:$24 sps:$4 sm:$0xff]  }
 0x401   :  { %v5286_v61 = vpop.f32.mrf.mxu1 }
 0x402   :  { %16870 = vst [vmem:[#allocation226_spill] sm:$0xff] %v13304_v16  ;;  %v13306_v41 = vadd.f32 %v5286_v61, %v4993_v35  ;;  %v4997_v40 = vpop.f32.mrf.mxu0  ;;  %5562 = vmatmul.mubr.bf16.gmra.mxu0 %v9111_v10 }
 0x403   :  { %v5290_v28 = vpop.f32.mrf.mxu1  ;;  %5855 = vmatmul.mubr.bf16.gmra.mxu1 %v9112_v24  ;;  %8531 = vmatprep.mubr.msk.bf16.mxu0 %vm2956_vm0, %v9113_v60 }
 0x404   :  { %16871 = vst [vmem:[#allocation227_spill] sm:$0xff] %v13306_v41  ;;  %v13318_v61 = vadd.f32 %v5290_v28, %v4997_v40  ;;  %v4999_v35 = vpop.f32.mrf.mxu0  ;;  %5864 = vmatprep.mubr.bf16.mxu1 %v9114_v36  ;;  %v9115_v40 = vld [vmem:[%s16112_s0 + $0x310] ss:$24 sps:$4 sm:$0xff]   ;;  %v9118_v36 = vld [vmem:[%s16112_s0 + $0x334] ss:$24 sps:$4 sm:$0xff]  }
 0x405   :  { %v5292_v57 = vpop.f32.mrf.mxu1 }
 0x406   :  { %16872 = vst [vmem:[#allocation228_spill] sm:$0xff] %v13318_v61  ;;  %v13323_v25 = vadd.f32 %v5292_v57, %v4999_v35  ;;  %v5001_v10 = vpop.f32.mrf.mxu0  ;;  %v9116_v35 = vld [vmem:[%s16112_s0 + $0x300] ss:$24 sps:$4 sm:$0xff]  }
 0x407   :  { %v5294_v41 = vpop.f32.mrf.mxu1 }
 0x408   :  { %16873 = vst [vmem:[#allocation229_spill] sm:$0xff] %v13323_v25  ;;  %v13325_v24 = vadd.f32 %v5294_v41, %v5001_v10  ;;  %v5003_v16 = vpop.f32.mrf.mxu0  ;;  %v9117_v41 = vld [vmem:[%s16112_s0 + $0x344] ss:$24 sps:$4 sm:$0xff]  }
 0x409   :  { %v5296_v21 = vpop.f32.mrf.mxu1 }
 0x40a   :  { %16874 = vst [vmem:[#allocation230_spill] sm:$0xff] %v13325_v24  ;;  %v13327_v8 = vadd.f32 %v5296_v21, %v5003_v16  ;;  %v5007_v60 = vpop.f32.mrf.mxu0  ;;  %5572 = vmatmul.mubr.bf16.gmra.mxu0 %v9115_v40 }
 0x40b   :  { %v5300_v28 = vpop.f32.mrf.mxu1  ;;  %5865 = vmatmul.mubr.bf16.gmra.mxu1 %v9116_v35  ;;  %8532 = vmatprep.mubr.msk.bf16.mxu0 %vm2956_vm0, %v9117_v41 }
 0x40c   :  { %16875 = vst [vmem:[#allocation231_spill] sm:$0xff] %v13327_v8  ;;  %v13339_v21 = vadd.f32 %v5300_v28, %v5007_v60  ;;  %v5009_v16 = vpop.f32.mrf.mxu0  ;;  %5874 = vmatprep.mubr.bf16.mxu1 %v9118_v36  ;;  %v9119_v60 = vld [vmem:[%s16112_s0 + $0x340] ss:$24 sps:$4 sm:$0xff]   ;;  %v9122_v36 = vld [vmem:[%s16112_s0 + $0x364] ss:$24 sps:$4 sm:$0xff]  }
 0x40d   :  { %v5302_v57 = vpop.f32.mrf.mxu1 }
 0x40e   :  { %16876 = vst [vmem:[#allocation232_spill] sm:$0xff] %v13339_v21  ;;  %v13344_v10 = vadd.f32 %v5302_v57, %v5009_v16  ;;  %v5011_v40 = vpop.f32.mrf.mxu0  ;;  %v9120_v16 = vld [vmem:[%s16112_s0 + $0x330] ss:$24 sps:$4 sm:$0xff]  }
 0x40f   :  { %v5304_v8 = vpop.f32.mrf.mxu1 }
 0x410   :  { %16877 = vst [vmem:[#allocation233_spill] sm:$0xff] %v13344_v10  ;;  %v13346_v35 = vadd.f32 %v5304_v8, %v5011_v40  ;;  %v5013_v24 = vpop.f32.mrf.mxu0  ;;  %v9121_v8 = vld [vmem:[%s16112_s0 + $0x374] ss:$24 sps:$4 sm:$0xff]  }
 0x411   :  { %v5306_v25 = vpop.f32.mrf.mxu1 }
 0x412   :  { %16878 = vst [vmem:[#allocation234_spill] sm:$0xff] %v13346_v35  ;;  %v13348_v61 = vadd.f32 %v5306_v25, %v5013_v24  ;;  %v5017_v41 = vpop.f32.mrf.mxu0  ;;  %5582 = vmatmul.mubr.bf16.gmra.mxu0 %v9119_v60 }
 0x413   :  { %v5310_v28 = vpop.f32.mrf.mxu1  ;;  %5875 = vmatmul.mubr.bf16.gmra.mxu1 %v9120_v16  ;;  %8533 = vmatprep.mubr.msk.bf16.mxu0 %vm2956_vm0, %v9121_v8 }
 0x414   :  { %16879 = vst [vmem:[#allocation235_spill] sm:$0xff] %v13348_v61  ;;  %v13360_v25 = vadd.f32 %v5310_v28, %v5017_v41  ;;  %v5019_v24 = vpop.f32.mrf.mxu0  ;;  %5884 = vmatprep.mubr.bf16.mxu1 %v9122_v36  ;;  %v9123_v41 = vld [vmem:[%s16112_s0 + $0x370] ss:$24 sps:$4 sm:$0xff]   ;;  %v9126_v36 = vld [vmem:[%s16112_s0 + $0x394] ss:$24 sps:$4 sm:$0xff]  }
 0x415   :  { %v5312_v57 = vpop.f32.mrf.mxu1 }
 0x416   :  { %16880 = vst [vmem:[#allocation236_spill] sm:$0xff] %v13360_v25  ;;  %v13365_v40 = vadd.f32 %v5312_v57, %v5019_v24  ;;  %v5021_v60 = vpop.f32.mrf.mxu0  ;;  %v9124_v24 = vld [vmem:[%s16112_s0 + $0x360] ss:$24 sps:$4 sm:$0xff]  }
 0x417   :  { %v5314_v61 = vpop.f32.mrf.mxu1 }
 0x418   :  { %16881 = vst [vmem:[#allocation237_spill] sm:$0xff] %v13365_v40  ;;  %v13367_v16 = vadd.f32 %v5314_v61, %v5021_v60  ;;  %v5023_v35 = vpop.f32.mrf.mxu0  ;;  %v9125_v61 = vld [vmem:[%s16112_s0 + $0x3a4] ss:$24 sps:$4 sm:$0xff]  }
 0x419   :  { %v5316_v10 = vpop.f32.mrf.mxu1 }
 0x41a   :  { %16882 = vst [vmem:[#allocation238_spill] sm:$0xff] %v13367_v16  ;;  %v13369_v21 = vadd.f32 %v5316_v10, %v5023_v35  ;;  %v5027_v8 = vpop.f32.mrf.mxu0  ;;  %5592 = vmatmul.mubr.bf16.gmra.mxu0 %v9123_v41 }
 0x41b   :  { %v5320_v28 = vpop.f32.mrf.mxu1  ;;  %5885 = vmatmul.mubr.bf16.gmra.mxu1 %v9124_v24  ;;  %8534 = vmatprep.mubr.msk.bf16.mxu0 %vm2956_vm0, %v9125_v61 }
 0x41c   :  { %16883 = vst [vmem:[#allocation239_spill] sm:$0xff] %v13369_v21  ;;  %v13381_v10 = vadd.f32 %v5320_v28, %v5027_v8  ;;  %v5029_v35 = vpop.f32.mrf.mxu0  ;;  %5894 = vmatprep.mubr.bf16.mxu1 %v9126_v36  ;;  %v9127_v8 = vld [vmem:[%s16112_s0 + $0x3a0] ss:$24 sps:$4 sm:$0xff]   ;;  %v9130_v36 = vld [vmem:[%s16112_s0 + $0x3c4] ss:$24 sps:$4 sm:$0xff]  }
 0x41d   :  { %v5322_v57 = vpop.f32.mrf.mxu1 }
 0x41e   :  { %16884 = vst [vmem:[#allocation240_spill] sm:$0xff] %v13381_v10  ;;  %v13386_v60 = vadd.f32 %v5322_v57, %v5029_v35  ;;  %v5031_v41 = vpop.f32.mrf.mxu0  ;;  %v9128_v35 = vld [vmem:[%s16112_s0 + $0x390] ss:$24 sps:$4 sm:$0xff]  }
 0x41f   :  { %v5324_v21 = vpop.f32.mrf.mxu1 }
 0x420   :  { %16885 = vst [vmem:[#allocation241_spill] sm:$0xff] %v13386_v60  ;;  %v13388_v24 = vadd.f32 %v5324_v21, %v5031_v41  ;;  %v5033_v16 = vpop.f32.mrf.mxu0  ;;  %v9129_v21 = vld [vmem:[%s16112_s0 + $0x3d4] ss:$24 sps:$4 sm:$0xff]  }
 0x421   :  { %v5326_v40 = vpop.f32.mrf.mxu1 }
 0x422   :  { %16886 = vst [vmem:[#allocation242_spill] sm:$0xff] %v13388_v24  ;;  %v13390_v25 = vadd.f32 %v5326_v40, %v5033_v16  ;;  %v5037_v61 = vpop.f32.mrf.mxu0  ;;  %5602 = vmatmul.mubr.bf16.gmra.mxu0 %v9127_v8 }
 0x423   :  { %v5330_v28 = vpop.f32.mrf.mxu1  ;;  %5895 = vmatmul.mubr.bf16.gmra.mxu1 %v9128_v35  ;;  %8535 = vmatprep.mubr.msk.bf16.mxu0 %vm2956_vm0, %v9129_v21 }
 0x424   :  { %16887 = vst [vmem:[#allocation243_spill] sm:$0xff] %v13390_v25  ;;  %v13402_v40 = vadd.f32 %v5330_v28, %v5037_v61  ;;  %v5039_v16 = vpop.f32.mrf.mxu0  ;;  %5904 = vmatprep.mubr.bf16.mxu1 %v9130_v36  ;;  %v9131_v61 = vld [vmem:[%s16112_s0 + $0x3d0] ss:$24 sps:$4 sm:$0xff]   ;;  %v9134_v36 = vld [vmem:[%s16112_s0 + $0x3f4] ss:$24 sps:$4 sm:$0xff]  }
 0x425   :  { %v5332_v57 = vpop.f32.mrf.mxu1 }
 0x426   :  { %16888 = vst [vmem:[#allocation244_spill] sm:$0xff] %v13402_v40  ;;  %v13407_v41 = vadd.f32 %v5332_v57, %v5039_v16  ;;  %v5041_v8 = vpop.f32.mrf.mxu0  ;;  %v9132_v16 = vld [vmem:[%s16112_s0 + $0x3c0] ss:$24 sps:$4 sm:$0xff]  }
 0x427   :  { %v5334_v25 = vpop.f32.mrf.mxu1 }
 0x428   :  { %16889 = vst [vmem:[#allocation245_spill] sm:$0xff] %v13407_v41  ;;  %v13409_v35 = vadd.f32 %v5334_v25, %v5041_v8  ;;  %v5043_v24 = vpop.f32.mrf.mxu0  ;;  %v9133_v25 = vld [vmem:[%s16112_s0 + $0x404] ss:$24 sps:$4 sm:$0xff]  }
 0x429   :  { %v5336_v60 = vpop.f32.mrf.mxu1 }
 0x42a   :  { %16890 = vst [vmem:[#allocation246_spill] sm:$0xff] %v13409_v35  ;;  %v13411_v10 = vadd.f32 %v5336_v60, %v5043_v24  ;;  %v5047_v21 = vpop.f32.mrf.mxu0  ;;  %5612 = vmatmul.mubr.bf16.gmra.mxu0 %v9131_v61 }
 0x42b   :  { %v5340_v28 = vpop.f32.mrf.mxu1  ;;  %5905 = vmatmul.mubr.bf16.gmra.mxu1 %v9132_v16  ;;  %8536 = vmatprep.mubr.msk.bf16.mxu0 %vm2956_vm0, %v9133_v25 }
 0x42c   :  { %16891 = vst [vmem:[#allocation247_spill] sm:$0xff] %v13411_v10  ;;  %v13423_v60 = vadd.f32 %v5340_v28, %v5047_v21  ;;  %v5049_v24 = vpop.f32.mrf.mxu0  ;;  %5914 = vmatprep.mubr.bf16.mxu1 %v9134_v36  ;;  %v9135_v21 = vld [vmem:[%s16112_s0 + $0x400] ss:$24 sps:$4 sm:$0xff]   ;;  %v9138_v36 = vld [vmem:[%s16112_s0 + $0x424] ss:$24 sps:$4 sm:$0xff]  }
 0x42d   :  { %v5342_v57 = vpop.f32.mrf.mxu1 }
 0x42e   :  { %16892 = vst [vmem:[#allocation248_spill] sm:$0xff] %v13423_v60  ;;  %v13428_v8 = vadd.f32 %v5342_v57, %v5049_v24  ;;  %v5051_v61 = vpop.f32.mrf.mxu0  ;;  %v9136_v24 = vld [vmem:[%s16112_s0 + $0x3f0] ss:$24 sps:$4 sm:$0xff]  }
 0x42f   :  { %v5344_v10 = vpop.f32.mrf.mxu1 }
 0x430   :  { %16893 = vst [vmem:[#allocation249_spill] sm:$0xff] %v13428_v8  ;;  %v13430_v16 = vadd.f32 %v5344_v10, %v5051_v61  ;;  %v5053_v35 = vpop.f32.mrf.mxu0  ;;  %v9137_v10 = vld [vmem:[%s16112_s0 + $0x434] ss:$24 sps:$4 sm:$0xff]  }
 0x431   :  { %v5346_v41 = vpop.f32.mrf.mxu1 }
 0x432   :  { %16894 = vst [vmem:[#allocation250_spill] sm:$0xff] %v13430_v16  ;;  %v13432_v40 = vadd.f32 %v5346_v41, %v5053_v35  ;;  %v5057_v25 = vpop.f32.mrf.mxu0  ;;  %5622 = vmatmul.mubr.bf16.gmra.mxu0 %v9135_v21 }
 0x433   :  { %v5350_v28 = vpop.f32.mrf.mxu1  ;;  %5915 = vmatmul.mubr.bf16.gmra.mxu1 %v9136_v24  ;;  %8537 = vmatprep.mubr.msk.bf16.mxu0 %vm2956_vm0, %v9137_v10 }
 0x434   :  { %16895 = vst [vmem:[#allocation251_spill] sm:$0xff] %v13432_v40  ;;  %v13444_v41 = vadd.f32 %v5350_v28, %v5057_v25  ;;  %v5059_v35 = vpop.f32.mrf.mxu0  ;;  %5924 = vmatprep.mubr.bf16.mxu1 %v9138_v36  ;;  %v9139_v25 = vld [vmem:[%s16112_s0 + $0x430] ss:$24 sps:$4 sm:$0xff]   ;;  %v9142_v36 = vld [vmem:[%s16112_s0 + $0x454] ss:$24 sps:$4 sm:$0xff]  }
 0x435   :  { %v5352_v57 = vpop.f32.mrf.mxu1 }
 0x436   :  { %16896 = vst [vmem:[#allocation252_spill] sm:$0xff] %v13444_v41  ;;  %v13449_v61 = vadd.f32 %v5352_v57, %v5059_v35  ;;  %v5061_v21 = vpop.f32.mrf.mxu0  ;;  %v9140_v35 = vld [vmem:[%s16112_s0 + $0x420] ss:$24 sps:$4 sm:$0xff]  }
 0x437   :  { %v5354_v40 = vpop.f32.mrf.mxu1 }
 0x438   :  { %16897 = vst [vmem:[#allocation253_spill] sm:$0xff] %v13449_v61  ;;  %v13451_v24 = vadd.f32 %v5354_v40, %v5061_v21  ;;  %v5063_v16 = vpop.f32.mrf.mxu0  ;;  %v9141_v40 = vld [vmem:[%s16112_s0 + $0x464] ss:$24 sps:$4 sm:$0xff]  }
 0x439   :  { %v5356_v8 = vpop.f32.mrf.mxu1 }
 0x43a   :  { %16898 = vst [vmem:[#allocation254_spill] sm:$0xff] %v13451_v24  ;;  %v13453_v60 = vadd.f32 %v5356_v8, %v5063_v16  ;;  %v5067_v10 = vpop.f32.mrf.mxu0  ;;  %5632 = vmatmul.mubr.bf16.gmra.mxu0 %v9139_v25 }
 0x43b   :  { %v5360_v28 = vpop.f32.mrf.mxu1  ;;  %5925 = vmatmul.mubr.bf16.gmra.mxu1 %v9140_v35  ;;  %8538 = vmatprep.mubr.msk.bf16.mxu0 %vm2956_vm0, %v9141_v40 }
 0x43c   :  { %16899 = vst [vmem:[#allocation255_spill] sm:$0xff] %v13453_v60  ;;  %v13465_v8 = vadd.f32 %v5360_v28, %v5067_v10  ;;  %v5069_v16 = vpop.f32.mrf.mxu0  ;;  %5934 = vmatprep.mubr.bf16.mxu1 %v9142_v36  ;;  %v9143_v10 = vld [vmem:[%s16112_s0 + $0x460] ss:$24 sps:$4 sm:$0xff]   ;;  %v9146_v36 = vld [vmem:[%s16112_s0 + $0x484] ss:$24 sps:$4 sm:$0xff]  }
 0x43d   :  { %v5362_v57 = vpop.f32.mrf.mxu1 }
 0x43e   :  { %16900 = vst [vmem:[#allocation256_spill] sm:$0xff] %v13465_v8  ;;  %v13470_v21 = vadd.f32 %v5362_v57, %v5069_v16  ;;  %v5071_v25 = vpop.f32.mrf.mxu0  ;;  %v9144_v16 = vld [vmem:[%s16112_s0 + $0x450] ss:$24 sps:$4 sm:$0xff]  }
 0x43f   :  { %v5364_v60 = vpop.f32.mrf.mxu1 }
 0x440   :  { %16901 = vst [vmem:[#allocation257_spill] sm:$0xff] %v13470_v21  ;;  %v13472_v35 = vadd.f32 %v5364_v60, %v5071_v25  ;;  %v5073_v24 = vpop.f32.mrf.mxu0  ;;  %v9145_v60 = vld [vmem:[%s16112_s0 + $0x494] ss:$24 sps:$4 sm:$0xff]  }
 0x441   :  { %v5366_v61 = vpop.f32.mrf.mxu1 }
 0x442   :  { %16902 = vst [vmem:[#allocation258_spill] sm:$0xff] %v13472_v35  ;;  %v13474_v41 = vadd.f32 %v5366_v61, %v5073_v24  ;;  %v5077_v40 = vpop.f32.mrf.mxu0  ;;  %5642 = vmatmul.mubr.bf16.gmra.mxu0 %v9143_v10 }
 0x443   :  { %v5370_v28 = vpop.f32.mrf.mxu1  ;;  %5935 = vmatmul.mubr.bf16.gmra.mxu1 %v9144_v16  ;;  %8539 = vmatprep.mubr.msk.bf16.mxu0 %vm2956_vm0, %v9145_v60 }
 0x444   :  { %16903 = vst [vmem:[#allocation259_spill] sm:$0xff] %v13474_v41  ;;  %v13486_v61 = vadd.f32 %v5370_v28, %v5077_v40  ;;  %v5079_v24 = vpop.f32.mrf.mxu0  ;;  %5944 = vmatprep.mubr.bf16.mxu1 %v9146_v36  ;;  %v9147_v40 = vld [vmem:[%s16112_s0 + $0x490] ss:$24 sps:$4 sm:$0xff]  }
 0x445   :  { %v5372_v57 = vpop.f32.mrf.mxu1 }
 0x446   :  { %16904 = vst [vmem:[#allocation260_spill] sm:$0xff] %v13486_v61  ;;  %v13491_v25 = vadd.f32 %v5372_v57, %v5079_v24  ;;  %v5081_v10 = vpop.f32.mrf.mxu0  ;;  %v9150_v24 = vld [vmem:[%s16112_s0 + $0x4b4] ss:$24 sps:$4 sm:$0xff]  }
 0x447   :  { %v5374_v41 = vpop.f32.mrf.mxu1 }
 0x448   :  { %16905 = vst [vmem:[#allocation261_spill] sm:$0xff] %v13491_v25  ;;  %v13493_v16 = vadd.f32 %v5374_v41, %v5081_v10  ;;  %v5083_v35 = vpop.f32.mrf.mxu0  ;;  %v9148_v41 = vld [vmem:[%s16112_s0 + $0x480] ss:$24 sps:$4 sm:$0xff]  }
 0x449   :  { %v5376_v21 = vpop.f32.mrf.mxu1 }
 0x44a   :  { %16906 = vst [vmem:[#allocation262_spill] sm:$0xff] %v13493_v16  ;;  %v13495_v8 = vadd.f32 %v5376_v21, %v5083_v35  ;;  %v5413_v60 = vpop.f32.mrf.mxu0  ;;  %5652 = vmatmul.mubr.bf16.gmra.mxu0 %v9147_v40  ;;  %v9149_v21 = vld [vmem:[%s16112_s0 + $0x4c4] ss:$24 sps:$4 sm:$0xff]  }
 0x44b   :  { %v13501_v28 = vadd.f32 %v5413_v60, %v12809_v7  ;;  %v13503_v36 = vpop.f32.mrf.mxu1  ;;  %5945 = vmatmul.mubr.bf16.gmra.mxu1 %v9148_v41  ;;  %8540 = vmatprep.mubr.msk.bf16.mxu0 %vm2956_vm0, %v9149_v21 }
 0x44c   :  { %16907 = vst [vmem:[#allocation263_spill] sm:$0xff] %v13495_v8  ;;  %16908 = vst [vmem:[#allocation264_spill] sm:$0xff] %v13503_v36  ;;  %v5415_v35 = vpop.f32.mrf.mxu0  ;;  %5954 = vmatprep.mubr.bf16.mxu1 %v9150_v24 }
 0x44d   :  { %v13516_v7 = vadd.f32 %v5415_v35, %v12816_v26  ;;  %v13518_v57 = vpop.f32.mrf.mxu1  ;;  %v9151_v26 = vld [vmem:[%s16112_s0 + $0x4c0] ss:$24 sps:$4 sm:$0xff]  }
 0x44e   :  { %16909 = vst [vmem:[#allocation265_spill] sm:$0xff] %v13518_v57  ;;  %v5417_v10 = vpop.f32.mrf.mxu0 }
 0x44f   :  { %v13521_v60 = vadd.f32 %v5417_v10, %v12818_v12  ;;  %v13523_v40 = vpop.f32.mrf.mxu1  ;;  %v9152_v12 = vld [vmem:[%s16112_s0 + $0x4b0] ss:$24 sps:$4 sm:$0xff]  }
 0x450   :  { %16910 = vst [vmem:[#allocation266_spill] sm:$0xff] %v13523_v40  ;;  %v5419_v41 = vpop.f32.mrf.mxu0 }
 0x451   :  { %v13526_v21 = vadd.f32 %v5419_v41, %v12820_v17  ;;  %v13528_v36 = vpop.f32.mrf.mxu1  ;;  %v9153_v17 = vld [vmem:[%s16112_s0 + $0xc] ss:$24 sps:$4 sm:$0xff]  }
 0x452   :  { %16911 = vst [vmem:[#allocation267_spill] sm:$0xff] %v13528_v36  ;;  %v5423_v8 = vpop.f32.mrf.mxu0  ;;  %5662 = vmatmul.mubr.bf16.gmra.mxu0 %v9151_v26  ;;  %v9154_v41 = vld [vmem:[%s16112_s0 + $0x14] ss:$24 sps:$4 sm:$0xff]  }
 0x453   :  { %v13534_v35 = vadd.f32 %v5423_v8, %v12832_v18  ;;  %v13536_v24 = vpop.f32.mrf.mxu1  ;;  %5955 = vmatmul.mubr.bf16.gmra.mxu1 %v9152_v12  ;;  %5997 = vmatprep.mubr.bf16.mxu0 %v9153_v17 }
 0x454   :  { %16912 = vst [vmem:[#allocation268_spill] sm:$0xff] %v13536_v24  ;;  %v5425_v10 = vpop.f32.mrf.mxu0  ;;  %8541 = vmatprep.mubr.msk.bf16.mxu1 %vm2956_vm0, %v9154_v41 }
 0x455   :  { %v13549_v18 = vadd.f32 %v5425_v10, %v12837_v54  ;;  %v13551_v8 = vpop.f32.mrf.mxu1  ;;  %v9155_v54 = vld [vmem:[%s16112_s0 + $0x8] ss:$24 sps:$4 sm:$0xff]  }
 0x456   :  { %16913 = vst [vmem:[#allocation269_spill] sm:$0xff] %v13551_v8  ;;  %v5427_v26 = vpop.f32.mrf.mxu0 }
 0x457   :  { %v13554_v12 = vadd.f32 %v5427_v26, %v12851_v9  ;;  %v13556_v36 = vpop.f32.mrf.mxu1  ;;  %v9156_v9 = vld [vmem:[%s16112_s0 + $0x10] ss:$24 sps:$4 sm:$0xff]   ;;  %v9158_v26 = vld [vmem:[%s16112_s0 + $0x44] ss:$24 sps:$4 sm:$0xff]  }
 0x458   :  { %16914 = vst [vmem:[#allocation270_spill] sm:$0xff] %v13556_v36  ;;  %v5429_v57 = vpop.f32.mrf.mxu0 }
 0x459   :  { %v13559_v17 = vadd.f32 %v5429_v57, %v12853_v51  ;;  %v13561_v24 = vpop.f32.mrf.mxu1  ;;  %v9157_v51 = vld [vmem:[%s16112_s0 + $0x3c] ss:$24 sps:$4 sm:$0xff]  }
 0x45a   :  { %16915 = vst [vmem:[#allocation271_spill] sm:$0xff] %v13561_v24  ;;  %v5433_v40 = vpop.f32.mrf.mxu0  ;;  %5998 = vmatmul.mubr.bf16.vlgmr.msra.gmra.mxu0 %v9155_v54 }
 0x45b   :  { %v13567_v10 = vadd.f32 %v5433_v40, %v12877_v53  ;;  %v13569_v41 = vpop.f32.mrf.mxu1  ;;  %6291 = vmatmul.mubr.bf16.vlgmr.msra.gmra.mxu1 %v9156_v9  ;;  %6007 = vmatprep.mubr.bf16.mxu0 %v9157_v51 }
 0x45c   :  { %16916 = vst [vmem:[#allocation272_spill] sm:$0xff] %v13569_v41  ;;  %v5435_v57 = vpop.f32.mrf.mxu0  ;;  %8542 = vmatprep.mubr.msk.bf16.mxu1 %vm2956_vm0, %v9158_v26 }
 0x45d   :  { %v13582_v53 = vadd.f32 %v5435_v57, %v12888_v58  ;;  %v13584_v40 = vpop.f32.mrf.mxu1  ;;  %v9159_v58 = vld [vmem:[%s16112_s0 + $0x38] ss:$24 sps:$4 sm:$0xff]  }
 0x45e   :  { %16917 = vst [vmem:[#allocation273_spill] sm:$0xff] %v13584_v40  ;;  %v5437_v54 = vpop.f32.mrf.mxu0 }
 0x45f   :  { %v13587_v9 = vadd.f32 %v5437_v54, %v12902_v34  ;;  %v13589_v24 = vpop.f32.mrf.mxu1  ;;  %v9160_v34 = vld [vmem:[%s16112_s0 + $0x40] ss:$24 sps:$4 sm:$0xff]   ;;  %v9162_v54 = vld [vmem:[%s16112_s0 + $0x74] ss:$24 sps:$4 sm:$0xff]  }
 0x460   :  { %16918 = vst [vmem:[#allocation274_spill] sm:$0xff] %v13589_v24  ;;  %v5439_v8 = vpop.f32.mrf.mxu0 }
 0x461   :  { %v13592_v51 = vadd.f32 %v5439_v8, %v12904_v11  ;;  %v13594_v41 = vpop.f32.mrf.mxu1  ;;  %v9161_v11 = vld [vmem:[%s16112_s0 + $0x6c] ss:$24 sps:$4 sm:$0xff]  }
 0x462   :  { %16919 = vst [vmem:[#allocation275_spill] sm:$0xff] %v13594_v41  ;;  %v5443_v36 = vpop.f32.mrf.mxu0  ;;  %6008 = vmatmul.mubr.bf16.gmra.mxu0 %v9159_v58 }
 0x463   :  { %v13600_v57 = vadd.f32 %v5443_v36, %v12928_v30  ;;  %v13602_v26 = vpop.f32.mrf.mxu1  ;;  %6301 = vmatmul.mubr.bf16.gmra.mxu1 %v9160_v34  ;;  %6017 = vmatprep.mubr.bf16.mxu0 %v9161_v11 }
 0x464   :  { %16920 = vst [vmem:[#allocation276_spill] sm:$0xff] %v13602_v26  ;;  %v5445_v8 = vpop.f32.mrf.mxu0  ;;  %8543 = vmatprep.mubr.msk.bf16.mxu1 %vm2956_vm0, %v9162_v54 }
 0x465   :  { %v13615_v30 = vadd.f32 %v5445_v8, %v12933_v44  ;;  %v13617_v36 = vpop.f32.mrf.mxu1  ;;  %v9163_v44 = vld [vmem:[%s16112_s0 + $0x68] ss:$24 sps:$4 sm:$0xff]   ;;  %v7124_v8 = vld [vmem:[%s16113_s3 + $0xf8] sm:$0xff] }
 0x466   :  { %16921 = vst [vmem:[#allocation277_spill] sm:$0xff] %v13617_v36  ;;  %v5447_v58 = vpop.f32.mrf.mxu0  ;;  %7221 = vmatprep.subr.mxu0 %v7124_v8  ;;  %v7120_v8 = vld [vmem:[%s16113_s3 + $0xd8] sm:$0xff] }
 0x467   :  { %v13620_v34 = vadd.f32 %v5447_v58, %v12941_v29  ;;  %v13622_v41 = vpop.f32.mrf.mxu1  ;;  %v7123_v58 = vld [vmem:[%s16113_s3 + $0xf0] sm:$0xff] }
 0x468   :  { %16922 = vst [vmem:[#allocation278_spill] sm:$0xff] %v13622_v41  ;;  %v5449_v40 = vpop.f32.mrf.mxu0  ;;  %7222 = vmatpush1.msra.mxu0 %v7123_v58 }
 0x469   :  { %v13625_v11 = vadd.f32 %v5449_v40, %v12943_v62  ;;  %v13627_v26 = vpop.f32.mrf.mxu1  ;;  %v9164_v62 = vld [vmem:[%s16112_s0 + $0x70] ss:$24 sps:$4 sm:$0xff]   ;;  %v9165_v40 = vld [vmem:[%s16112_s0 + $0x9c] ss:$24 sps:$4 sm:$0xff]  }
 0x46a   :  { %16923 = vst [vmem:[#allocation279_spill] sm:$0xff] %v13627_v26  ;;  %v5453_v24 = vpop.f32.mrf.mxu0  ;;  %6018 = vmatmul.mubr.bf16.gmra.mxu0 %v9163_v44  ;;  %v7121_v26 = vld [vmem:[%s16113_s3 + $0xe0] sm:$0xff] }
 0x46b   :  { %v13636_v29 = vadd.f32 %v5453_v24, %v12961_v42  ;;  %v13638_v54 = vpop.f32.mrf.mxu1  ;;  %6311 = vmatmul.mubr.bf16.gmra.mxu1 %v9164_v62  ;;  %6027 = vmatprep.mubr.bf16.mxu0 %v9165_v40  ;;  %v9166_v42 = vld [vmem:[%s16112_s0 + $0xa4] ss:$24 sps:$4 sm:$0xff]   ;;  %v7122_v24 = vld [vmem:[%s16113_s3 + $0xe8] sm:$0xff] }
 0x46c   :  { %16924 = vst [vmem:[#allocation280_spill] sm:$0xff] %v13638_v54  ;;  %v5455_v44 = vpop.f32.mrf.mxu0  ;;  %8544 = vmatprep.mubr.msk.bf16.mxu1 %vm2956_vm0, %v9166_v42  ;;  %7223 = vmatprep.subr.mxu0 %v7122_v24 }
 0x46d   :  { %v13657_v62 = vadd.f32 %v5455_v44, %v12966_v37  ;;  %v13659_v40 = vpop.f32.mrf.mxu1  ;;  %7224 = vmatpush1.msra.mxu0 %v7121_v26  ;;  %v7119_v37 = vld [vmem:[%s16113_s3 + $0xd0] sm:$0xff]  ;;  %v7118_v44 = vld [vmem:[%s16113_s3 + $0xc8] sm:$0xff] }
 0x46e   :  { %16925 = vst [vmem:[#allocation281_spill] sm:$0xff] %v13659_v40  ;;  %v5457_v36 = vpop.f32.mrf.mxu0  ;;  %7225 = vmatprep.subr.mxu0 %v7120_v8  ;;  %v7116_v8 = vld [vmem:[%s16113_s3 + $0xb8] sm:$0xff] }
 0x46f   :  { %v13668_v42 = vadd.f32 %v5457_v36, %v12974_v22  ;;  %v13670_v54 = vpop.f32.mrf.mxu1  ;;  %7226 = vmatpush1.msra.mxu0 %v7119_v37  ;;  %v7117_v22 = vld [vmem:[%s16113_s3 + $0xc0] sm:$0xff]  ;;  %v9167_v36 = vld [vmem:[%s16112_s0 + $0x98] ss:$24 sps:$4 sm:$0xff]  }
 0x470   :  { %16926 = vst [vmem:[#allocation282_spill] sm:$0xff] %v13670_v54  ;;  %v5459_v58 = vpop.f32.mrf.mxu0  ;;  %7227 = vmatprep.subr.mxu0 %v7118_v44  ;;  %v9168_v37 = vld [vmem:[%s16112_s0 + $0xa0] ss:$24 sps:$4 sm:$0xff]   ;;  %v7115_v44 = vld [vmem:[%s16113_s3 + $0xb0] sm:$0xff] }
 0x471   :  { %v13679_v24 = vadd.f32 %v5459_v58, %v12979_v14  ;;  %v13681_v40 = vpop.f32.mrf.mxu1  ;;  %7228 = vmatpush1.msra.mxu0 %v7117_v22  ;;  %v7112_v22 = vld [vmem:[%s16113_s3 + $0x98] sm:$0xff] }
 0x472   :  { %16927 = vst [vmem:[#allocation283_spill] sm:$0xff] %v13681_v40  ;;  %v5463_v26 = vpop.f32.mrf.mxu0  ;;  %6028 = vmatmul.mubr.bf16.gmra.mxu0 %v9167_v36  ;;  %v9169_v40 = vld [vmem:[%s16112_s0 + $0xcc] ss:$24 sps:$4 sm:$0xff]   ;;  %7229 = vmatprep.subr.mxu0 %v7116_v8  ;;  %v7187_v8 = vld [vmem:[%s16113_s3 + $0x2f0] sm:$0xff] }
 0x473   :  { %v13693_v14 = vadd.f32 %v5463_v26, %v13000_v31  ;;  %v13695_v58 = vpop.f32.mrf.mxu1  ;;  %6321 = vmatmul.mubr.bf16.gmra.mxu1 %v9168_v37  ;;  %6037 = vmatprep.mubr.bf16.mxu0 %v9169_v40  ;;  %v9170_v31 = vld [vmem:[%s16112_s0 + $0xd4] ss:$24 sps:$4 sm:$0xff]  }
 0x474   :  { %16928 = vst [vmem:[#allocation284_spill] sm:$0xff] %v13695_v58  ;;  %v5465_v36 = vpop.f32.mrf.mxu0  ;;  %8545 = vmatprep.mubr.msk.bf16.mxu1 %vm2956_vm0, %v9170_v31  ;;  %v7114_v26 = vld [vmem:[%s16113_s3 + $0xa8] sm:$0xff]  ;;  %v7113_v58 = vld [vmem:[%s16113_s3 + $0xa0] sm:$0xff]  ;;  %7230 = vmatpush1.msra.mxu0 %v7115_v44 }
 0x475   :  { %v13714_v37 = vadd.f32 %v5465_v36, %v13005_v55  ;;  %v13716_v40 = vpop.f32.mrf.mxu1  ;;  %v7188_v55 = vld [vmem:[%s16113_s3 + $0x2f8] sm:$0xff]  ;;  %7231 = vmatprep.subr.mxu0 %v7114_v26  ;;  %v7111_v26 = vld [vmem:[%s16113_s3 + $0x90] sm:$0xff] }
 0x476   :  { %16929 = vst [vmem:[#allocation285_spill] sm:$0xff] %v13716_v40  ;;  %v5467_v54 = vpop.f32.mrf.mxu0  ;;  %7442 = vmatprep.subr.mxu1 %v7188_v55  ;;  %7232 = vmatpush1.msra.mxu0 %v7113_v58 }
 0x477   :  { %v13725_v31 = vadd.f32 %v5467_v54, %v13007_v52  ;;  %v13727_v41 = vpop.f32.mrf.mxu1  ;;  %7443 = vmatpush1.msra.mxu1 %v7187_v8  ;;  %7233 = vmatprep.subr.mxu0 %v7112_v22  ;;  %v9171_v54 = vld [vmem:[%s16112_s0 + $0xc8] ss:$24 sps:$4 sm:$0xff]   ;;  %v9173_v22 = vld [vmem:[%s16112_s0 + $0xfc] ss:$24 sps:$4 sm:$0xff]  }
 0x478   :  { %16930 = vst [vmem:[#allocation286_spill] sm:$0xff] %v13727_v41  ;;  %v5469_v36 = vpop.f32.mrf.mxu0  ;;  %v7186_v8 = vld [vmem:[%s16113_s3 + $0x2e8] sm:$0xff]  ;;  %7234 = vmatpush1.msra.mxu0 %v7111_v26 }
 0x479   :  { %v13736_v44 = vadd.f32 %v5469_v36, %v13009_v50  ;;  %v13738_v40 = vpop.f32.mrf.mxu1  ;;  %v9172_v50 = vld [vmem:[%s16112_s0 + $0xd0] ss:$24 sps:$4 sm:$0xff]   ;;  %7444 = vmatprep.subr.mxu1 %v7186_v8 }
 0x47a   :  { %16931 = vst [vmem:[#allocation287_spill] sm:$0xff] %v13738_v40  ;;  %v5473_v52 = vpop.f32.mrf.mxu0  ;;  %6038 = vmatmul.mubr.bf16.gmra.mxu0 %v9171_v54  ;;  %v7109_v54 = vld [vmem:[%s16113_s3 + $0x80] sm:$0xff]  ;;  %v7108_v40 = vld [vmem:[%s16113_s3 + $0x78] sm:$0xff]  ;;  %v7107_v8 = vld [vmem:[%s16113_s3 + $0x70] sm:$0xff] }
 0x47b   :  { %v13747_v55 = vadd.f32 %v5473_v52, %v13021_v39  ;;  %v13749_v58 = vpop.f32.mrf.mxu1  ;;  %6331 = vmatmul.mubr.bf16.gmra.mxu1 %v9172_v50  ;;  %6047 = vmatprep.mubr.bf16.mxu0 %v9173_v22  ;;  %v7110_v39 = vld [vmem:[%s16113_s3 + $0x88] sm:$0xff]  ;;  %v9174_v52 = vld [vmem:[%s16112_s0 + $0x104] ss:$24 sps:$4 sm:$0xff]  }
 0x47c   :  { %16932 = vst [vmem:[#allocation288_spill] sm:$0xff] %v13749_v58  ;;  %v5475_v36 = vpop.f32.mrf.mxu0  ;;  %8546 = vmatprep.mubr.msk.bf16.mxu1 %vm2956_vm0, %v9174_v52  ;;  %7235 = vmatprep.subr.mxu0 %v7110_v39  ;;  %v7106_v26 = vld [vmem:[%s16113_s3 + $0x68] sm:$0xff] }
 0x47d   :  { %v13771_v50 = vadd.f32 %v5475_v36, %v13032_v49  ;;  %v13773_v22 = vpop.f32.mrf.mxu1  ;;  %v7185_v49 = vld [vmem:[%s16113_s3 + $0x2e0] sm:$0xff]  ;;  %7236 = vmatpush1.msra.mxu0 %v7109_v54 }
 0x47e   :  { %16933 = vst [vmem:[#allocation289_spill] sm:$0xff] %v13773_v22  ;;  %v5477_v58 = vpop.f32.mrf.mxu0  ;;  %7445 = vmatpush1.msra.mxu1 %v7185_v49  ;;  %7237 = vmatprep.subr.mxu0 %v7108_v40  ;;  %v7105_v54 = vld [vmem:[%s16113_s3 + $0x60] sm:$0xff] }
 0x47f   :  { %v13782_v52 = vadd.f32 %v5477_v58, %v13034_v43  ;;  %v13784_v41 = vpop.f32.mrf.mxu1  ;;  %7238 = vmatpush1.msra.mxu0 %v7107_v8  ;;  %v9175_v58 = vld [vmem:[%s16112_s0 + $0xf8] ss:$24 sps:$4 sm:$0xff]   ;;  %v9177_v8 = vld [vmem:[%s16112_s0 + $0x12c] ss:$24 sps:$4 sm:$0xff]  }
 0x480   :  { %16934 = vst [vmem:[#allocation290_spill] sm:$0xff] %v13784_v41  ;;  %v5479_v36 = vpop.f32.mrf.mxu0  ;;  %7239 = vmatprep.subr.mxu0 %v7106_v26  ;;  %v7184_v26 = vld [vmem:[%s16113_s3 + $0x2d8] sm:$0xff] }
 0x481   :  { %v13793_v39 = vadd.f32 %v5479_v36, %v13036_v19  ;;  %v13795_v22 = vpop.f32.mrf.mxu1  ;;  %v9176_v19 = vld [vmem:[%s16112_s0 + $0x100] ss:$24 sps:$4 sm:$0xff]   ;;  %7446 = vmatprep.subr.mxu1 %v7184_v26  ;;  %7240 = vmatpush1.msra.mxu0 %v7105_v54 }
 0x482   :  { %16935 = vst [vmem:[#allocation291_spill] sm:$0xff] %v13795_v22  ;;  %v5483_v43 = vpop.f32.mrf.mxu0  ;;  %6048 = vmatmul.mubr.bf16.gmra.mxu0 %v9175_v58  ;;  %v7104_v36 = vld [vmem:[%s16113_s3 + $0x58] sm:$0xff]  ;;  %v9178_v58 = vld [vmem:[%s16112_s0 + $0x134] ss:$24 sps:$4 sm:$0xff]   ;;  %v7101_v26 = vld [vmem:[%s16113_s3 + $0x40] sm:$0xff] }
 0x483   :  { %v13804_v49 = vadd.f32 %v5483_v43, %v13048_v23  ;;  %v13806_v40 = vpop.f32.mrf.mxu1  ;;  %6341 = vmatmul.mubr.bf16.gmra.mxu1 %v9176_v19  ;;  %6057 = vmatprep.mubr.bf16.mxu0 %v9177_v8  ;;  %v7183_v23 = vld [vmem:[%s16113_s3 + $0x2d0] sm:$0xff] }
 0x484   :  { %16936 = vst [vmem:[#allocation292_spill] sm:$0xff] %v13806_v40  ;;  %v5485_v43 = vpop.f32.mrf.mxu0  ;;  %8547 = vmatprep.mubr.msk.bf16.mxu1 %vm2956_vm0, %v9178_v58  ;;  %v7103_v19 = vld [vmem:[%s16113_s3 + $0x50] sm:$0xff]  ;;  %7447 = vmatpush1.msra.mxu1 %v7183_v23  ;;  %v7102_v40 = vld [vmem:[%s16113_s3 + $0x48] sm:$0xff] }
 0x485   :  { %v13831_v8 = vadd.f32 %v5485_v43, %v13053_v59  ;;  %v13833_v22 = vpop.f32.mrf.mxu1  ;;  %7241 = vmatprep.subr.mxu0 %v7104_v36  ;;  %v7100_v59 = vld [vmem:[%s16113_s3 + $0x38] sm:$0xff] }
 0x486   :  { %16937 = vst [vmem:[#allocation293_spill] sm:$0xff] %v13833_v22  ;;  %v5487_v41 = vpop.f32.mrf.mxu0  ;;  %7242 = vmatpush1.msra.mxu0 %v7103_v19  ;;  %v7096_v22 = vld [vmem:[%s16113_s3 + $0x18] sm:$0xff] }
 0x487   :  { %v13842_v58 = vadd.f32 %v5487_v41, %v13061_v1  ;;  %v13844_v16 = vpop.f32.mrf.mxu1  ;;  %7243 = vmatprep.subr.mxu0 %v7102_v40  ;;  %v9179_v1 = vld [vmem:[%s16112_s0 + $0x128] ss:$24 sps:$4 sm:$0xff]   ;;  %v7099_v41 = vld [vmem:[%s16113_s3 + $0x30] sm:$0xff] }
 0x488   :  { %16938 = vst [vmem:[#allocation294_spill] sm:$0xff] %v13844_v16  ;;  %v5489_v54 = vpop.f32.mrf.mxu0  ;;  %7244 = vmatpush1.msra.mxu0 %v7101_v26  ;;  %v9181_v26 = vld [vmem:[%s16112_s0 + $0x15c] ss:$24 sps:$4 sm:$0xff]  }
 0x489   :  { %v13850_v23 = vadd.f32 %v5489_v54, %v13063_v45  ;;  %v13852_v36 = vpop.f32.mrf.mxu1  ;;  %7245 = vmatprep.subr.mxu0 %v7100_v59  ;;  %v9180_v45 = vld [vmem:[%s16112_s0 + $0x130] ss:$24 sps:$4 sm:$0xff]  }
 0x48a   :  { %16939 = vst [vmem:[#allocation295_spill] sm:$0xff] %v13852_v36  ;;  %v5493_v43 = vpop.f32.mrf.mxu0  ;;  %6058 = vmatmul.mubr.bf16.gmra.mxu0 %v9179_v1  ;;  %v7182_v59 = vld [vmem:[%s16113_s3 + $0x2c8] sm:$0xff]  ;;  %v9182_v1 = vld [vmem:[%s16112_s0 + $0x164] ss:$24 sps:$4 sm:$0xff]  }
 0x48b   :  { %v13861_v19 = vadd.f32 %v5493_v43, %v13081_v15  ;;  %v13863_v40 = vpop.f32.mrf.mxu1  ;;  %6351 = vmatmul.mubr.bf16.gmra.mxu1 %v9180_v45  ;;  %6067 = vmatprep.mubr.bf16.mxu0 %v9181_v26  ;;  %v7181_v15 = vld [vmem:[%s16113_s3 + $0x2c0] sm:$0xff]  ;;  %v7098_v54 = vld [vmem:[%s16113_s3 + $0x28] sm:$0xff] }
 0x48c   :  { %16940 = vst [vmem:[#allocation296_spill] sm:$0xff] %v13863_v40  ;;  %v5495_v43 = vpop.f32.mrf.mxu0  ;;  %8548 = vmatprep.mubr.msk.bf16.mxu1 %vm2956_vm0, %v9182_v1  ;;  %7448 = vmatprep.subr.mxu1 %v7182_v59  ;;  %v7097_v45 = vld [vmem:[%s16113_s3 + $0x20] sm:$0xff]  ;;  %v7095_v59 = vld [vmem:[%s16113_s3 + $0x10] sm:$0xff] }
 0x48d   :  { %v13888_v26 = vadd.f32 %v5495_v43, %v13086_v56  ;;  %v13890_v36 = vpop.f32.mrf.mxu1  ;;  %7246 = vmatpush1.msra.mxu0 %v7099_v41  ;;  %7449 = vmatpush1.msra.mxu1 %v7181_v15  ;;  %v7094_v56 = vld [vmem:[%s16113_s3 + $0x8] sm:$0xff]  ;;  %v7180_v41 = vld [vmem:[%s16113_s3 + $0x2b8] sm:$0xff]  ;;  %v7179_v15 = vld [vmem:[%s16113_s3 + $0x2b0] sm:$0xff] }
 0x48e   :  { %16941 = vst [vmem:[#allocation297_spill] sm:$0xff] %v13890_v36  ;;  %v5497_v40 = vpop.f32.mrf.mxu0  ;;  %7247 = vmatprep.subr.mxu0 %v7098_v54  ;;  %7450 = vmatprep.subr.mxu1 %v7180_v41  ;;  %v7093_v43 = vld [vmem:[%s16113_s3] sm:$0xff]  ;;  %v9183_v36 = vld [vmem:[%s16112_s0 + $0x158] ss:$24 sps:$4 sm:$0xff]  }
 0x48f   :  { %v13899_v1 = vadd.f32 %v5497_v40, %v13088_v47  ;;  %v13901_v16 = vpop.f32.mrf.mxu1  ;;  %7248 = vmatpush1.msra.mxu0 %v7097_v45  ;;  %7451 = vmatpush1.msra.mxu1 %v7179_v15  ;;  %v9184_v41 = vld [vmem:[%s16112_s0 + $0x160] ss:$24 sps:$4 sm:$0xff]   ;;  %v9185_v15 = vld [vmem:[%s16112_s0 + $0x18c] ss:$24 sps:$4 sm:$0xff]  }
 0x490   :  { %16942 = vst [vmem:[#allocation298_spill] sm:$0xff] %v13901_v16  ;;  %v5499_v54 = vpop.f32.mrf.mxu0  ;;  %7249 = vmatprep.subr.mxu0 %v7096_v22 }
 0x491   :  { %v13913_v47 = vadd.f32 %v5499_v54, %v13090_v4  ;;  %v13915_v40 = vpop.f32.mrf.mxu1  ;;  %7250 = vmatpush1.msra.mxu0 %v7095_v59  ;;  %v7156_v4 = vld [vmem:[%s16113_s3 + $0x1f8] sm:$0xff]  ;;  %v7154_v54 = vld [vmem:[%s16113_s3 + $0x1e8] sm:$0xff] }
 0x492   :  { %16943 = vst [vmem:[#allocation299_spill] sm:$0xff] %v13915_v40  ;;  %v5503_v45 = vpop.f32.mrf.mxu0  ;;  %6068 = vmatmul.mubr.bf16.gmra.mxu0 %v9183_v36  ;;  %7251 = vmatprep.subr.mxu0 %v7094_v56  ;;  %v7155_v36 = vld [vmem:[%s16113_s3 + $0x1f0] sm:$0xff] }
 0x493   :  { %v13927_v22 = vadd.f32 %v5503_v45, %v13102_v38  ;;  %v13929_v59 = vpop.f32.mrf.mxu1  ;;  %6361 = vmatmul.mubr.bf16.gmra.mxu1 %v9184_v41  ;;  %6077 = vmatprep.mubr.bf16.mxu0 %v9185_v15  ;;  %v9186_v38 = vld [vmem:[%s16112_s0 + $0x194] ss:$24 sps:$4 sm:$0xff]   ;;  %v7153_v15 = vld [vmem:[%s16113_s3 + $0x1e0] sm:$0xff] }
 0x494   :  { %16944 = vst [vmem:[#allocation300_spill] sm:$0xff] %v13929_v59  ;;  %v5505_v56 = vpop.f32.mrf.mxu0  ;;  %8549 = vmatprep.mubr.msk.bf16.mxu1 %vm2956_vm0, %v9186_v38  ;;  %7252 = vmatpush1.msra.mxu0 %v7093_v43  ;;  %v7152_v43 = vld [vmem:[%s16113_s3 + $0x1d8] sm:$0xff] }
 0x495   :  { %v13948_v45 = vadd.f32 %v5505_v56, %v13113_v6  ;;  %v13950_v41 = vpop.f32.mrf.mxu1  ;;  %7253 = vmatprep.subr.mxu0 %v7156_v4  ;;  %v7178_v6 = vld [vmem:[%s16113_s3 + $0x2a8] sm:$0xff]  ;;  %v7177_v4 = vld [vmem:[%s16113_s3 + $0x2a0] sm:$0xff] }
 0x496   :  { %16945 = vst [vmem:[#allocation301_spill] sm:$0xff] %v13950_v41  ;;  %v5507_v40 = vpop.f32.mrf.mxu0  ;;  %7254 = vmatpush2.msra.mxu0 %v7155_v36  ;;  %7452 = vmatprep.subr.mxu1 %v7178_v6 }
 0x497   :  { %v13959_v38 = vadd.f32 %v5507_v40, %v13115_v46  ;;  %v13961_v59 = vpop.f32.mrf.mxu1  ;;  %7255 = vmatprep.subr.mxu0 %v7154_v54  ;;  %v7151_v46 = vld [vmem:[%s16113_s3 + $0x1d0] sm:$0xff]  ;;  %7453 = vmatpush1.msra.mxu1 %v7177_v4  ;;  %v9187_v54 = vld [vmem:[%s16112_s0 + $0x188] ss:$24 sps:$4 sm:$0xff]  }
 0x498   :  { %16946 = vst [vmem:[#allocation302_spill] sm:$0xff] %v13961_v59  ;;  %v5509_v56 = vpop.f32.mrf.mxu0  ;;  %7256 = vmatpush2.msra.mxu0 %v7153_v15  ;;  %v7150_v15 = vld [vmem:[%s16113_s3 + $0x1c8] sm:$0xff]  ;;  %v9189_v4 = vld [vmem:[%s16112_s0 + $0x1bc] ss:$24 sps:$4 sm:$0xff]  }
 0x499   :  { %v13970_v36 = vadd.f32 %v5509_v56, %v13123_v13  ;;  %v13972_v41 = vpop.f32.mrf.mxu1  ;;  %7257 = vmatprep.subr.mxu0 %v7152_v43  ;;  %v9188_v43 = vld [vmem:[%s16112_s0 + $0x190] ss:$24 sps:$4 sm:$0xff]   ;;  %v7149_v56 = vld [vmem:[%s16113_s3 + $0x1c0] sm:$0xff] }
 0x49a   :  { %16947 = vst [vmem:[#allocation303_spill] sm:$0xff] %v13972_v41  ;;  %v5513_v40 = vpop.f32.mrf.mxu0  ;;  %6078 = vmatmul.mubr.bf16.gmra.mxu0 %v9187_v54  ;;  %v9190_v54 = vld [vmem:[%s16112_s0 + $0x1c4] ss:$24 sps:$4 sm:$0xff]  }
 0x49b   :  { %v13984_v13 = vadd.f32 %v5513_v40, %v13141_v32  ;;  %v13986_v6 = vpop.f32.mrf.mxu1  ;;  %6371 = vmatmul.mubr.bf16.gmra.mxu1 %v9188_v43  ;;  %6087 = vmatprep.mubr.bf16.mxu0 %v9189_v4  ;;  %v7176_v32 = vld [vmem:[%s16113_s3 + $0x298] sm:$0xff] }
 0x49c   :  { %16948 = vst [vmem:[#allocation304_spill] sm:$0xff] %v13986_v6  ;;  %v5515_v40 = vpop.f32.mrf.mxu0  ;;  %8550 = vmatprep.mubr.msk.bf16.mxu1 %vm2956_vm0, %v9190_v54  ;;  %7258 = vmatpush2.msra.mxu0 %v7151_v46  ;;  %v7148_v43 = vld [vmem:[%s16113_s3 + $0x1b8] sm:$0xff]  ;;  %v7147_v6 = vld [vmem:[%s16113_s3 + $0x1b0] sm:$0xff]  ;;  %v7146_v46 = vld [vmem:[%s16113_s3 + $0x1a8] sm:$0xff] }
 0x49d   :  { %v14008_v4 = vadd.f32 %v5515_v40, %v13152_v27  ;;  %v14010_v41 = vpop.f32.mrf.mxu1  ;;  %7259 = vmatprep.subr.mxu0 %v7150_v15  ;;  %7454 = vmatprep.subr.mxu1 %v7176_v32  ;;  %v7175_v27 = vld [vmem:[%s16113_s3 + $0x290] sm:$0xff]  ;;  %v7174_v15 = vld [vmem:[%s16113_s3 + $0x288] sm:$0xff]  ;;  %v7145_v40 = vld [vmem:[%s16113_s3 + $0x1a0] sm:$0xff] }
 0x49e   :  { %16949 = vst [vmem:[#allocation305_spill] sm:$0xff] %v14010_v41  ;;  %v5517_v59 = vpop.f32.mrf.mxu0  ;;  %7260 = vmatpush2.msra.mxu0 %v7149_v56  ;;  %v7173_v56 = vld [vmem:[%s16113_s3 + $0x280] sm:$0xff]  ;;  %7455 = vmatpush1.msra.mxu1 %v7175_v27  ;;  %v9191_v41 = vld [vmem:[%s16112_s0 + $0x1b8] ss:$24 sps:$4 sm:$0xff]  }
 0x49f   :  { %v14019_v54 = vadd.f32 %v5517_v59, %v13154_v2  ;;  %v14021_v16 = vpop.f32.mrf.mxu1  ;;  %7261 = vmatprep.subr.mxu0 %v7148_v43  ;;  %7456 = vmatprep.subr.mxu1 %v7174_v15  ;;  %v9192_v27 = vld [vmem:[%s16112_s0 + $0x1c0] ss:$24 sps:$4 sm:$0xff]   ;;  %v9193_v15 = vld [vmem:[%s16112_s0 + $0x1ec] ss:$24 sps:$4 sm:$0xff]  }
 0x4a0   :  { %16950 = vst [vmem:[#allocation306_spill] sm:$0xff] %v14021_v16  ;;  %v5519_v32 = vpop.f32.mrf.mxu0  ;;  %7262 = vmatpush2.msra.mxu0 %v7147_v6  ;;  %v7144_v6 = vld [vmem:[%s16113_s3 + $0x198] sm:$0xff]  ;;  %7457 = vmatpush1.msra.mxu1 %v7173_v56 }
 0x4a1   :  { %v14033_v2 = vadd.f32 %v5519_v32, %v13168_v33  ;;  %v14035_v59 = vpop.f32.mrf.mxu1  ;;  %7263 = vmatprep.subr.mxu0 %v7146_v46  ;;  %v7142_v32 = vld [vmem:[%s16113_s3 + $0x188] sm:$0xff] }
 0x4a2   :  { %16951 = vst [vmem:[#allocation307_spill] sm:$0xff] %v14035_v59  ;;  %v5523_v43 = vpop.f32.mrf.mxu0  ;;  %6088 = vmatmul.mubr.bf16.gmra.mxu0 %v9191_v41  ;;  %v7143_v41 = vld [vmem:[%s16113_s3 + $0x190] sm:$0xff]  ;;  %v7172_v59 = vld [vmem:[%s16113_s3 + $0x278] sm:$0xff] }
 0x4a3   :  { %v14047_v33 = vadd.f32 %v5523_v43, %v13180_v5  ;;  %v14049_v46 = vpop.f32.mrf.mxu1  ;;  %6381 = vmatmul.mubr.bf16.gmra.mxu1 %v9192_v27  ;;  %6097 = vmatprep.mubr.bf16.mxu0 %v9193_v15  ;;  %v9194_v5 = vld [vmem:[%s16112_s0 + $0x1f4] ss:$24 sps:$4 sm:$0xff]   ;;  %v7141_v15 = vld [vmem:[%s16113_s3 + $0x180] sm:$0xff] }
 0x4a4   :  { %16953 = vst [vmem:[#allocation309_spill] sm:$0xff] %v14049_v46  ;;  %v5525_v56 = vpop.f32.mrf.mxu0  ;;  %8551 = vmatprep.mubr.msk.bf16.mxu1 %vm2956_vm0, %v9194_v5  ;;  %7264 = vmatpush2.msra.mxu0 %v7145_v40  ;;  %v7171_v40 = vld [vmem:[%s16113_s3 + $0x270] sm:$0xff] }
 0x4a5   :  { %16952 = vst [vmem:[#allocation308_spill] sm:$0xff] %v14047_v33  ;;  %v14068_v43 = vadd.f32 %v5525_v56, %v13197_v48  ;;  %v14070_v27 = vpop.f32.mrf.mxu1  ;;  %7265 = vmatprep.subr.mxu0 %v7144_v6  ;;  %v7140_v48 = vld [vmem:[%s16113_s3 + $0x178] sm:$0xff]  ;;  %7458 = vmatprep.subr.mxu1 %v7172_v59  ;;  %v16982_v33 = vld [vmem:[#allocation215_spill] sm:$0xff] }
 0x4a6   :  { %16955 = vst [vmem:[#allocation311_spill] sm:$0xff] %v14070_v27  ;;  %v5527_v5 = vpop.f32.mrf.mxu0  ;;  %7266 = vmatpush2.msra.mxu0 %v7143_v41  ;;  %7459 = vmatpush1.msra.mxu1 %v7171_v40  ;;  %v7139_v41 = vld [vmem:[%s16113_s3 + $0x170] sm:$0xff] }
 0x4a7   :  { %16954 = vst [vmem:[#allocation310_spill] sm:$0xff] %v14068_v43  ;;  %v14085_v6 = vadd.f32 %v5527_v5, %v13199_v20  ;;  %v14087_v56 = vpop.f32.mrf.mxu1  ;;  %7267 = vmatprep.subr.mxu0 %v7142_v32  ;;  %v9195_v20 = vld [vmem:[%s16112_s0 + $0x1e8] ss:$24 sps:$4 sm:$0xff]   ;;  %v9197_v40 = vld [vmem:[%s16112_s0 + $0x21c] ss:$24 sps:$4 sm:$0xff]  }
 0x4a8   :  { %16957 = vst [vmem:[#allocation313_spill] sm:$0xff] %v14087_v56  ;;  %v5529_v27 = vpop.f32.mrf.mxu0  ;;  %7268 = vmatpush2.msra.mxu0 %v7141_v15  ;;  %v7138_v32 = vld [vmem:[%s16113_s3 + $0x168] sm:$0xff]  ;;  %v7137_v5 = vld [vmem:[%s16113_s3 + $0x160] sm:$0xff] }
 0x4a9   :  { %16956 = vst [vmem:[#allocation312_spill] sm:$0xff] %v14085_v6  ;;  %v14090_v46 = vadd.f32 %v5529_v27, %v13201_v0  ;;  %v14092_v16 = vpop.f32.mrf.mxu1  ;;  %7269 = vmatprep.subr.mxu0 %v7140_v48  ;;  %v9196_v15 = vld [vmem:[%s16112_s0 + $0x1f0] ss:$24 sps:$4 sm:$0xff]  }
 0x4aa   :  { %16959 = vst [vmem:[#allocation315_spill] sm:$0xff] %v14092_v16  ;;  %v5533_v59 = vpop.f32.mrf.mxu0  ;;  %6098 = vmatmul.mubr.bf16.gmra.mxu0 %v9195_v20  ;;  %v7136_v20 = vld [vmem:[%s16113_s3 + $0x158] sm:$0xff]  ;;  %v7135_v16 = vld [vmem:[%s16113_s3 + $0x150] sm:$0xff] }
 0x4ab   :  { %16958 = vst [vmem:[#allocation314_spill] sm:$0xff] %v14090_v46  ;;  %v14104_v0 = vadd.f32 %v5533_v59, %v13213_v63  ;;  %v14106_v27 = vpop.f32.mrf.mxu1  ;;  %6391 = vmatmul.mubr.bf16.gmra.mxu1 %v9196_v15  ;;  %6107 = vmatprep.mubr.bf16.mxu0 %v9197_v40  ;;  %v7170_v63 = vld [vmem:[%s16113_s3 + $0x268] sm:$0xff]  ;;  %v9198_v59 = vld [vmem:[%s16112_s0 + $0x224] ss:$24 sps:$4 sm:$0xff]  }
 0x4ac   :  { %16961 = vst [vmem:[#allocation317_spill] sm:$0xff] %v14106_v27  ;;  %v5535_v48 = vpop.f32.mrf.mxu0  ;;  %8552 = vmatprep.mubr.msk.bf16.mxu1 %vm2956_vm0, %v9198_v59  ;;  %7270 = vmatpush2.msra.mxu0 %v7139_v41  ;;  %v7169_v59 = vld [vmem:[%s16113_s3 + $0x260] sm:$0xff]  ;;  %v7134_v27 = vld [vmem:[%s16113_s3 + $0x148] sm:$0xff] }
 0x4ad   :  { %16960 = vst [vmem:[#allocation316_spill] sm:$0xff] %v14104_v0  ;;  %v14128_v15 = vadd.f32 %v5535_v48, %v13218_v3  ;;  %v14130_v40 = vpop.f32.mrf.mxu1  ;;  %7271 = vmatprep.subr.mxu0 %v7138_v32  ;;  %7460 = vmatprep.subr.mxu1 %v7170_v63  ;;  %v16964_v3 = vld [vmem:[#allocation210_spill] sm:$0xff]  ;;  %v16967_v63 = vld [vmem:[#allocation211_spill] sm:$0xff] }
 0x4ae   :  { %16963 = vst [vmem:[#allocation319_spill] sm:$0xff] %v14130_v40  ;;  %v5537_v41 = vpop.f32.mrf.mxu0  ;;  %7272 = vmatpush2.msra.mxu0 %v7137_v5  ;;  %7461 = vmatpush1.msra.mxu1 %v7169_v59  ;;  %v7133_v5 = vld [vmem:[%s16113_s3 + $0x140] sm:$0xff]  ;;  %v7168_v59 = vld [vmem:[%s16113_s3 + $0x258] sm:$0xff]  ;;  %v16975_v0 = vld [vmem:[#allocation7_spill] sm:$0xff] }
 0x4af   :  { %16962 = vst [vmem:[#allocation318_spill] sm:$0xff] %v14128_v15  ;;  %v14142_v48 = vadd.f32 %v5537_v41, %v16964_v3  ;;  %v14144_v32 = vpop.f32.mrf.mxu1  ;;  %7273 = vmatprep.subr.mxu0 %v7136_v20  ;;  %v9199_v20 = vld [vmem:[%s16112_s0 + $0x218] ss:$24 sps:$4 sm:$0xff]   ;;  %7462 = vmatprep.subr.mxu1 %v7168_v59 }
 0x4b0   :  { %16966 = vst [vmem:[#allocation320_spill] sm:$0xff] %v14144_v32  ;;  %v5539_v40 = vpop.f32.mrf.mxu0  ;;  %7274 = vmatpush2.msra.mxu0 %v7135_v16  ;;  %v7132_v16 = vld [vmem:[%s16113_s3 + $0x138] sm:$0xff]  ;;  %v7167_v59 = vld [vmem:[%s16113_s3 + $0x250] sm:$0xff] }
 0x4b1   :  { %16965 = vst [vmem:[#allocation210_spill] sm:$0xff] %v14142_v48  ;;  %v14147_v56 = vadd.f32 %v5539_v40, %v16967_v63  ;;  %v14149_v15 = vpop.f32.mrf.mxu1  ;;  %7275 = vmatprep.subr.mxu0 %v7134_v27  ;;  %v16970_v27 = vld [vmem:[#allocation212_spill] sm:$0xff]  ;;  %v9200_v63 = vld [vmem:[%s16112_s0 + $0x220] ss:$24 sps:$4 sm:$0xff]   ;;  %7463 = vmatpush1.msra.mxu1 %v7167_v59 }
 0x4b2   :  { %16969 = vst [vmem:[#allocation321_spill] sm:$0xff] %v14149_v15  ;;  %v5543_v41 = vpop.f32.mrf.mxu0  ;;  %6108 = vmatmul.mubr.bf16.gmra.mxu0 %v9199_v20  ;;  %v9201_v15 = vld [vmem:[%s16112_s0 + $0x24c] ss:$24 sps:$4 sm:$0xff]   ;;  %v7131_v20 = vld [vmem:[%s16113_s3 + $0x130] sm:$0xff]  ;;  %v16979_v59 = vld [vmem:[#allocation61_spill] sm:$0xff] }
 0x4b3   :  { %16968 = vst [vmem:[#allocation211_spill] sm:$0xff] %v14147_v56  ;;  %v5544_v40 = vadd.f32 %v5543_v41, %v16970_v27  ;;  %v14164_v3 = vpop.f32.mrf.mxu1  ;;  %6401 = vmatmul.mubr.bf16.gmra.mxu1 %v9200_v63  ;;  %6117 = vmatprep.mubr.bf16.mxu0 %v9201_v15  ;;  %v9202_v27 = vld [vmem:[%s16112_s0 + $0x254] ss:$24 sps:$4 sm:$0xff]   ;;  %v7129_v48 = vld [vmem:[%s16113_s3 + $0x120] sm:$0xff] }
 0x4b4   :  { %16971 = vst [vmem:[#allocation212_spill] sm:$0xff] %v14164_v3  ;;  %v5545_v41 = vpop.f32.mrf.mxu0  ;;  %8553 = vmatprep.mubr.msk.bf16.mxu1 %vm2956_vm0, %v9202_v27  ;;  %7276 = vmatpush2.msra.mxu0 %v7133_v5  ;;  %v7130_v15 = vld [vmem:[%s16113_s3 + $0x128] sm:$0xff]  ;;  %v16972_v3 = vld [vmem:[#allocation213_spill] sm:$0xff] }
 0x4b5   :  { %v6555_v63 = vmax.f32 %v13501_v28, %v5544_v40  ;;  %v5546_v32 = vadd.f32 %v5545_v41, %v16972_v3  ;;  %v14187_v56 = vpop.f32.mrf.mxu1  ;;  %7277 = vmatprep.subr.mxu0 %v7132_v16  ;;  %v7128_v5 = vld [vmem:[%s16113_s3 + $0x118] sm:$0xff]  ;;  %v16974_v27 = vld [vmem:[#allocation59_spill] sm:$0xff]  ;;  %v16977_v3 = vld [vmem:[#allocation214_spill] sm:$0xff] }
 0x4b6   :  { %16973 = vst [vmem:[#allocation213_spill] sm:$0xff] %v14187_v56  ;;  %v5547_v25 = vpop.f32.mrf.mxu0  ;;  %7278 = vmatpush2.msra.mxu0 %v7131_v20  ;;  %v16976_v61 = vmax.f32 %v16974_v27, %v16975_v0  ;;  %v16980_v20 = vld [vmem:[#allocation8_spill] sm:$0xff] }
 0x4b7   :  { %v6556_v40 = vmax.f32 %v13516_v7, %v5546_v32  ;;  %v5548_v16 = vadd.f32 %v5547_v25, %v16977_v3  ;;  %v14202_v41 = vpop.f32.mrf.mxu1  ;;  %7279 = vmatprep.subr.mxu0 %v7130_v15  ;;  %v16981_v46 = vmax.f32 %v16979_v59, %v16980_v20  ;;  %v7127_v25 = vld [vmem:[%s16113_s3 + $0x110] sm:$0xff]  ;;  %v7166_v7 = vld [vmem:[%s16113_s3 + $0x248] sm:$0xff]  ;;  %v9206_v20 = vld [vmem:[%s16112_s0 + $0x284] ss:$24 sps:$4 sm:$0xff]  }
 0x4b8   :  { %v14198_v28 = vmax.f32 %v16976_v61, %v6555_v63  ;;  %16978 = vst [vmem:[#allocation59_spill] sm:$0xff] %v14202_v41  ;;  %v5549_v56 = vpop.f32.mrf.mxu0  ;;  %7280 = vmatpush2.msra.mxu0 %v7129_v48  ;;  %7464 = vmatprep.subr.mxu1 %v7166_v7  ;;  %v9204_v3 = vld [vmem:[%s16112_s0 + $0x250] ss:$24 sps:$4 sm:$0xff]   ;;  %v16990_v7 = vld [vmem:[#allocation10_spill] sm:$0xff] }
 0x4b9   :  { %v14207_v6 = vmax.f32 %v16981_v46, %v6556_v40  ;;  %v6563_v43 = vmax.f32 %v13521_v60, %v5548_v16  ;;  %v5550_v0 = vadd.f32 %v5549_v56, %v16982_v33  ;;  %v14211_v61 = vpop.f32.mrf.mxu1  ;;  %7281 = vmatprep.subr.mxu0 %v7128_v5  ;;  %v9203_v46 = vld [vmem:[%s16112_s0 + $0x248] ss:$24 sps:$4 sm:$0xff]   ;;  %v16985_v56 = vld [vmem:[#allocation9_spill] sm:$0xff]  ;;  %v16987_v5 = vld [vmem:[#allocation216_spill] sm:$0xff] }
 0x4ba   :  { %16983 = vst [vmem:[#allocation7_spill] sm:$0xff] %v14211_v61  ;;  %v5553_v48 = vpop.f32.mrf.mxu0  ;;  %6118 = vmatmul.mubr.bf16.gmra.mxu0 %v9203_v46  ;;  %v7126_v60 = vld [vmem:[%s16113_s3 + $0x108] sm:$0xff]  ;;  %v9205_v16 = vld [vmem:[%s16112_s0 + $0x27c] ss:$24 sps:$4 sm:$0xff]  }
 0x4bb   :  { %v16984_v33 = vld [vmem:[#allocation63_spill] sm:$0xff]  ;;  %v6564_v63 = vmax.f32 %v13526_v21, %v5550_v0  ;;  %v5554_v27 = vadd.f32 %v5553_v48, %v16987_v5  ;;  %v14232_v40 = vpop.f32.mrf.mxu1  ;;  %6411 = vmatmul.mubr.bf16.gmra.mxu1 %v9204_v3  ;;  %6127 = vmatprep.mubr.bf16.mxu0 %v9205_v16  ;;  %v7165_v21 = vld [vmem:[%s16113_s3 + $0x240] sm:$0xff]  ;;  %v16989_v0 = vld [vmem:[#allocation65_spill] sm:$0xff] }
 0x4bc   :  { %v16986_v32 = vmax.f32 %v16984_v33, %v16985_v56  ;;  %16988 = vst [vmem:[#allocation214_spill] sm:$0xff] %v14232_v40  ;;  %v5555_v59 = vpop.f32.mrf.mxu0  ;;  %8554 = vmatprep.mubr.msk.bf16.mxu1 %vm2956_vm0, %v9206_v20  ;;  %7282 = vmatpush2.msra.mxu0 %v7127_v25  ;;  %v16991_v48 = vmax.f32 %v16989_v0, %v16990_v7  ;;  %v16992_v56 = vld [vmem:[#allocation217_spill] sm:$0xff]  ;;  %v16994_v16 = vld [vmem:[#allocation67_spill] sm:$0xff]  ;;  %v16997_v0 = vld [vmem:[#allocation218_spill] sm:$0xff] }
 0x4bd   :  { %v6571_v33 = vmax.f32 %v13534_v35, %v5554_v27  ;;  %v14257_v5 = vpop.f32.mrf.mxu1  ;;  %7283 = vmatprep.subr.mxu0 %v7126_v60  ;;  %7465 = vmatpush1.msra.mxu1 %v7165_v21  ;;  %v16995_v40 = vld [vmem:[#allocation11_spill] sm:$0xff]  ;;  %v7164_v35 = vld [vmem:[%s16113_s3 + $0x238] sm:$0xff]  ;;  %v7163_v60 = vld [vmem:[%s16113_s3 + $0x230] sm:$0xff] }
 0x4be   :  { %v14228_v15 = vmax.f32 %v16986_v32, %v6563_v43  ;;  %v7125_v43 = vld [vmem:[%s16113_s3 + $0x100] sm:$0xff]  ;;  %v14253_v46 = vmax.f32 %v16991_v48, %v6564_v63  ;;  %v5556_v32 = vadd.f32 %v5555_v59, %v16992_v56  ;;  %16993 = vst [vmem:[#allocation61_spill] sm:$0xff] %v14257_v5  ;;  %v5557_v3 = vpop.f32.mrf.mxu0  ;;  %v16996_v61 = vmax.f32 %v16994_v16, %v16995_v40  ;;  %v17000_v40 = vld [vmem:[#allocation12_spill] sm:$0xff]  ;;  %v17002_v59 = vld [vmem:[#allocation219_spill] sm:$0xff] }
 0x4bf   :  { %7284 = vmatpush2.msra.mxu0 %v7125_v43  ;;  %v5558_v63 = vadd.f32 %v5557_v3, %v16997_v0  ;;  %v14266_v7 = vpop.f32.mrf.mxu1  ;;  %7466 = vmatprep.subr.mxu1 %v7164_v35  ;;  %v16999_v43 = vld [vmem:[#allocation69_spill] sm:$0xff]  ;;  %v17004_v3 = vld [vmem:[#allocation71_spill] sm:$0xff]  ;;  %v17205_v41 = vld [vmem:[#allocation52_spill] sm:$0xff] }
 0x4c0   :  { %v14262_v20 = vmax.f32 %v16996_v61, %v6571_v33  ;;  %v6572_v25 = vmax.f32 %v13549_v18, %v5556_v32  ;;  %16998 = vst [vmem:[#allocation8_spill] sm:$0xff] %v14266_v7  ;;  %v5559_v27 = vpop.f32.mrf.mxu0  ;;  %v17001_v61 = vmax.f32 %v16999_v43, %v17000_v40  ;;  %7467 = vmatpush1.msra.mxu1 %v7163_v60  ;;  %v9207_v32 = vld [vmem:[%s16112_s0 + $0x278] ss:$24 sps:$4 sm:$0xff]  }
 0x4c1   :  { %v6579_v18 = vmax.f32 %v13554_v12, %v5558_v63  ;;  %v5560_v48 = vadd.f32 %v5559_v27, %v17002_v59  ;;  %v14281_v33 = vpop.f32.mrf.mxu1  ;;  %v17005_v16 = vld [vmem:[#allocation13_spill] sm:$0xff]  ;;  %v17007_v43 = vld [vmem:[#allocation220_spill] sm:$0xff]  ;;  %v9209_v27 = vld [vmem:[%s16112_s0 + $0x2ac] ss:$24 sps:$4 sm:$0xff]  }
 0x4c2   :  { %v14277_v21 = vmax.f32 %v17001_v61, %v6572_v25  ;;  %17003 = vst [vmem:[#allocation215_spill] sm:$0xff] %v14281_v33  ;;  %v5563_v56 = vpop.f32.mrf.mxu0  ;;  %6128 = vmatmul.mubr.bf16.gmra.mxu0 %v9207_v32  ;;  %v17006_v0 = vmax.f32 %v17004_v3, %v17005_v16  ;;  %v9208_v60 = vld [vmem:[%s16112_s0 + $0x280] ss:$24 sps:$4 sm:$0xff]   ;;  %v9210_v61 = vld [vmem:[%s16112_s0 + $0x2b4] ss:$24 sps:$4 sm:$0xff]  }
 0x4c3   :  { %v6580_v25 = vmax.f32 %v13559_v17, %v5560_v48  ;;  %v5564_v12 = vadd.f32 %v5563_v56, %v17007_v43  ;;  %v14293_v63 = vpop.f32.mrf.mxu1  ;;  %6421 = vmatmul.mubr.bf16.gmra.mxu1 %v9208_v60  ;;  %6137 = vmatprep.mubr.bf16.mxu0 %v9209_v27  ;;  %v17009_v17 = vld [vmem:[#allocation73_spill] sm:$0xff]  ;;  %v17014_v60 = vld [vmem:[#allocation75_spill] sm:$0xff] }
 0x4c4   :  { %v14289_v35 = vmax.f32 %v17006_v0, %v6579_v18  ;;  %17008 = vst [vmem:[#allocation63_spill] sm:$0xff] %v14293_v63  ;;  %v5565_v40 = vpop.f32.mrf.mxu0  ;;  %8555 = vmatprep.mubr.msk.bf16.mxu1 %vm2956_vm0, %v9210_v61  ;;  %v17010_v18 = vld [vmem:[#allocation14_spill] sm:$0xff]  ;;  %v17012_v32 = vld [vmem:[#allocation221_spill] sm:$0xff]  ;;  %v7162_v0 = vld [vmem:[%s16113_s3 + $0x228] sm:$0xff] }
 0x4c5   :  { %v17011_v59 = vmax.f32 %v17009_v17, %v17010_v18  ;;  %v6587_v56 = vmax.f32 %v13567_v10, %v5564_v12  ;;  %v5566_v3 = vadd.f32 %v5565_v40, %v17012_v32  ;;  %v14312_v16 = vpop.f32.mrf.mxu1  ;;  %7468 = vmatprep.subr.mxu1 %v7162_v0  ;;  %v17015_v27 = vld [vmem:[#allocation15_spill] sm:$0xff]  ;;  %v17017_v17 = vld [vmem:[#allocation222_spill] sm:$0xff]  ;;  %v17020_v32 = vld [vmem:[#allocation16_spill] sm:$0xff] }
 0x4c6   :  { %17013 = vst [vmem:[#allocation9_spill] sm:$0xff] %v14312_v16  ;;  %v5567_v43 = vpop.f32.mrf.mxu0  ;;  %v17016_v61 = vmax.f32 %v17014_v60, %v17015_v27  ;;  %v7161_v12 = vld [vmem:[%s16113_s3 + $0x220] sm:$0xff]  ;;  %v17022_v60 = vld [vmem:[#allocation223_spill] sm:$0xff] }
 0x4c7   :  { %v14308_v48 = vmax.f32 %v17011_v59, %v6580_v25  ;;  %v6588_v25 = vmax.f32 %v13582_v53, %v5566_v3  ;;  %v5568_v18 = vadd.f32 %v5567_v43, %v17017_v17  ;;  %v14324_v10 = vpop.f32.mrf.mxu1  ;;  %7469 = vmatpush1.msra.mxu1 %v7161_v12  ;;  %v17019_v59 = vld [vmem:[#allocation77_spill] sm:$0xff]  ;;  %v9211_v43 = vld [vmem:[%s16112_s0 + $0x2a8] ss:$24 sps:$4 sm:$0xff]  }
 0x4c8   :  { %v14320_v63 = vmax.f32 %v17016_v61, %v6587_v56  ;;  %17018 = vst [vmem:[#allocation216_spill] sm:$0xff] %v14324_v10  ;;  %v5569_v40 = vpop.f32.mrf.mxu0  ;;  %v17021_v0 = vmax.f32 %v17019_v59, %v17020_v32  ;;  %v17024_v61 = vld [vmem:[#allocation78_spill] sm:$0xff]  ;;  %v17025_v17 = vld [vmem:[#allocation17_spill] sm:$0xff]  ;;  %v17027_v59 = vld [vmem:[#allocation224_spill] sm:$0xff] }
 0x4c9   :  { %v6595_v56 = vmax.f32 %v13587_v9, %v5568_v18  ;;  %v5570_v27 = vadd.f32 %v5569_v40, %v17022_v60  ;;  %v14336_v53 = vpop.f32.mrf.mxu1  ;;  %v17026_v12 = vmax.f32 %v17024_v61, %v17025_v17  ;;  %v9212_v18 = vld [vmem:[%s16112_s0 + $0x2b0] ss:$24 sps:$4 sm:$0xff]   ;;  %v9213_v40 = vld [vmem:[%s16112_s0 + $0x2dc] ss:$24 sps:$4 sm:$0xff]  }
 0x4ca   :  { %v14332_v16 = vmax.f32 %v17021_v0, %v6588_v25  ;;  %17023 = vst [vmem:[#allocation65_spill] sm:$0xff] %v14336_v53  ;;  %v5573_v3 = vpop.f32.mrf.mxu0  ;;  %6138 = vmatmul.mubr.bf16.gmra.mxu0 %v9211_v43  ;;  %v7160_v0 = vld [vmem:[%s16113_s3 + $0x218] sm:$0xff]  ;;  %v17029_v60 = vld [vmem:[#allocation80_spill] sm:$0xff] }
 0x4cb   :  { %v14344_v10 = vmax.f32 %v17026_v12, %v6595_v56  ;;  %v6596_v25 = vmax.f32 %v13592_v51, %v5570_v27  ;;  %v5574_v32 = vadd.f32 %v5573_v3, %v17027_v59  ;;  %v14348_v9 = vpop.f32.mrf.mxu1  ;;  %6431 = vmatmul.mubr.bf16.gmra.mxu1 %v9212_v18  ;;  %6147 = vmatprep.mubr.bf16.mxu0 %v9213_v40  ;;  %v9214_v51 = vld [vmem:[%s16112_s0 + $0x2e4] ss:$24 sps:$4 sm:$0xff]   ;;  %v7159_v18 = vld [vmem:[%s16113_s3 + $0x210] sm:$0xff] }
 0x4cc   :  { %17028 = vst [vmem:[#allocation10_spill] sm:$0xff] %v14348_v9  ;;  %v5575_v56 = vpop.f32.mrf.mxu0  ;;  %8556 = vmatprep.mubr.msk.bf16.mxu1 %vm2956_vm0, %v9214_v51  ;;  %7470 = vmatprep.subr.mxu1 %v7160_v0  ;;  %v17030_v27 = vld [vmem:[#allocation18_spill] sm:$0xff]  ;;  %v17032_v17 = vld [vmem:[#allocation225_spill] sm:$0xff]  ;;  %v17035_v51 = vld [vmem:[#allocation19_spill] sm:$0xff] }
 0x4cd   :  { %v17031_v3 = vmax.f32 %v17029_v60, %v17030_v27  ;;  %v6603_v61 = vmax.f32 %v13600_v57, %v5574_v32  ;;  %v5576_v12 = vadd.f32 %v5575_v56, %v17032_v17  ;;  %v14370_v59 = vpop.f32.mrf.mxu1  ;;  %7471 = vmatpush1.msra.mxu1 %v7159_v18  ;;  %v17034_v9 = vld [vmem:[#allocation82_spill] sm:$0xff]  ;;  %v17039_v56 = vld [vmem:[#allocation84_spill] sm:$0xff]  ;;  %v17042_v18 = vld [vmem:[#allocation227_spill] sm:$0xff] }
 0x4ce   :  { %17033 = vst [vmem:[#allocation217_spill] sm:$0xff] %v14370_v59  ;;  %v5577_v40 = vpop.f32.mrf.mxu0  ;;  %v17036_v0 = vmax.f32 %v17034_v9, %v17035_v51  ;;  %v17037_v60 = vld [vmem:[#allocation226_spill] sm:$0xff] }
 0x4cf   :  { %v14366_v43 = vmax.f32 %v17031_v3, %v6596_v25  ;;  %v6604_v25 = vmax.f32 %v13615_v30, %v5576_v12  ;;  %v5578_v27 = vadd.f32 %v5577_v40, %v17037_v60  ;;  %v14382_v57 = vpop.f32.mrf.mxu1  ;;  %v17040_v3 = vld [vmem:[#allocation20_spill] sm:$0xff]  ;;  %v17045_v12 = vld [vmem:[#allocation21_spill] sm:$0xff] }
 0x4d0   :  { %v14378_v53 = vmax.f32 %v17036_v0, %v6603_v61  ;;  %17038 = vst [vmem:[#allocation67_spill] sm:$0xff] %v14382_v57  ;;  %v5579_v32 = vpop.f32.mrf.mxu0  ;;  %v17041_v17 = vmax.f32 %v17039_v56, %v17040_v3  ;;  %v9215_v30 = vld [vmem:[%s16112_s0 + $0x2d8] ss:$24 sps:$4 sm:$0xff]   ;;  %v17044_v61 = vld [vmem:[#allocation86_spill] sm:$0xff]  ;;  %v9218_v56 = vld [vmem:[%s16112_s0 + $0x314] ss:$24 sps:$4 sm:$0xff]  }
 0x4d1   :  { %v6611_v33 = vmax.f32 %v13620_v34, %v5578_v27  ;;  %v5580_v7 = vadd.f32 %v5579_v32, %v17042_v18  ;;  %v14391_v5 = vpop.f32.mrf.mxu1  ;;  %v17046_v40 = vmax.f32 %v17044_v61, %v17045_v12  ;;  %v9216_v27 = vld [vmem:[%s16112_s0 + $0x2e0] ss:$24 sps:$4 sm:$0xff]   ;;  %v9217_v32 = vld [vmem:[%s16112_s0 + $0x30c] ss:$24 sps:$4 sm:$0xff]   ;;  %v17049_v3 = vld [vmem:[#allocation88_spill] sm:$0xff] }
 0x4d2   :  { %v14387_v59 = vmax.f32 %v17041_v17, %v6604_v25  ;;  %17043 = vst [vmem:[#allocation11_spill] sm:$0xff] %v14391_v5  ;;  %v5583_v9 = vpop.f32.mrf.mxu0  ;;  %6148 = vmatmul.mubr.bf16.gmra.mxu0 %v9215_v30  ;;  %v17047_v25 = vld [vmem:[#allocation228_spill] sm:$0xff]  ;;  %v17050_v17 = vld [vmem:[#allocation22_spill] sm:$0xff]  ;;  %v17052_v61 = vld [vmem:[#allocation229_spill] sm:$0xff] }
 0x4d3   :  { %v14399_v51 = vmax.f32 %v17046_v40, %v6611_v33  ;;  %v6612_v0 = vmax.f32 %v13625_v11, %v5580_v7  ;;  %v5584_v60 = vadd.f32 %v5583_v9, %v17047_v25  ;;  %v14403_v34 = vpop.f32.mrf.mxu1  ;;  %6441 = vmatmul.mubr.bf16.gmra.mxu1 %v9216_v27  ;;  %6157 = vmatprep.mubr.bf16.mxu0 %v9217_v32  ;;  %v7158_v33 = vld [vmem:[%s16113_s3 + $0x208] sm:$0xff]  ;;  %v7157_v11 = vld [vmem:[%s16113_s3 + $0x200] sm:$0xff] }
 0x4d4   :  { %17048 = vst [vmem:[#allocation218_spill] sm:$0xff] %v14403_v34  ;;  %v5585_v7 = vpop.f32.mrf.mxu0  ;;  %8557 = vmatprep.mubr.msk.bf16.mxu1 %vm2956_vm0, %v9218_v56  ;;  %7472 = vmatprep.subr.mxu1 %v7158_v33  ;;  %v17051_v18 = vmax.f32 %v17049_v3, %v17050_v17  ;;  %v17054_v27 = vld [vmem:[#allocation90_spill] sm:$0xff]  ;;  %v17055_v32 = vld [vmem:[#allocation23_spill] sm:$0xff]  ;;  %v17059_v17 = vld [vmem:[#allocation92_spill] sm:$0xff] }
 0x4d5   :  { %v6619_v30 = vmax.f32 %v13636_v29, %v5584_v60  ;;  %v5586_v12 = vadd.f32 %v5585_v7, %v17052_v61  ;;  %v14428_v40 = vpop.f32.mrf.mxu1  ;;  %7473 = vmatpush1.msra.mxu1 %v7157_v11  ;;  %v17056_v34 = vmax.f32 %v17054_v27, %v17055_v32  ;;  %v17057_v56 = vld [vmem:[#allocation230_spill] sm:$0xff]  ;;  %v17060_v29 = vld [vmem:[#allocation24_spill] sm:$0xff] }
 0x4d6   :  { %v14424_v9 = vmax.f32 %v17051_v18, %v6612_v0  ;;  %17053 = vst [vmem:[#allocation69_spill] sm:$0xff] %v14428_v40  ;;  %v5587_v25 = vpop.f32.mrf.mxu0  ;;  %v17061_v60 = vmax.f32 %v17059_v17, %v17060_v29  ;;  %v17062_v18 = vld [vmem:[#allocation231_spill] sm:$0xff]  ;;  %v9221_v29 = vld [vmem:[%s16112_s0 + $0x33c] ss:$24 sps:$4 sm:$0xff]  }
 0x4d7   :  { %v14433_v5 = vmax.f32 %v17056_v34, %v6619_v30  ;;  %v6620_v33 = vmax.f32 %v13657_v62, %v5586_v12  ;;  %v5588_v57 = vadd.f32 %v5587_v25, %v17057_v56  ;;  %v14437_v3 = vpop.f32.mrf.mxu1  ;;  %v7220_v62 = vld [vmem:[%s16113_s3 + $0x3f8] sm:$0xff]  ;;  %v7219_v34 = vld [vmem:[%s16113_s3 + $0x3f0] sm:$0xff]  ;;  %v9219_v12 = vld [vmem:[%s16112_s0 + $0x308] ss:$24 sps:$4 sm:$0xff]  }
 0x4d8   :  { %17058 = vst [vmem:[#allocation12_spill] sm:$0xff] %v14437_v3  ;;  %v5589_v0 = vpop.f32.mrf.mxu0  ;;  %7474 = vmatprep.subr.mxu1 %v7220_v62  ;;  %v9220_v17 = vld [vmem:[%s16112_s0 + $0x310] ss:$24 sps:$4 sm:$0xff]  }
 0x4d9   :  { %v14442_v7 = vmax.f32 %v17061_v60, %v6620_v33  ;;  %v6627_v11 = vmax.f32 %v13668_v42, %v5588_v57  ;;  %v5590_v61 = vadd.f32 %v5589_v0, %v17062_v18  ;;  %v14446_v40 = vpop.f32.mrf.mxu1  ;;  %v17064_v42 = vld [vmem:[#allocation94_spill] sm:$0xff]  ;;  %v17065_v57 = vld [vmem:[#allocation25_spill] sm:$0xff]  ;;  %v17067_v33 = vld [vmem:[#allocation232_spill] sm:$0xff]  ;;  %7475 = vmatpush2.msra.mxu1 %v7219_v34 }
 0x4da   :  { %17063 = vst [vmem:[#allocation219_spill] sm:$0xff] %v14446_v40  ;;  %v5593_v30 = vpop.f32.mrf.mxu0  ;;  %6158 = vmatmul.mubr.bf16.gmra.mxu0 %v9219_v12  ;;  %v17066_v25 = vmax.f32 %v17064_v42, %v17065_v57  ;;  %v17070_v18 = vld [vmem:[#allocation26_spill] sm:$0xff]  ;;  %v17072_v12 = vld [vmem:[#allocation233_spill] sm:$0xff] }
 0x4db   :  { %v6628_v32 = vmax.f32 %v13679_v24, %v5590_v61  ;;  %v5594_v56 = vadd.f32 %v5593_v30, %v17067_v33  ;;  %v14464_v0 = vpop.f32.mrf.mxu1  ;;  %6451 = vmatmul.mubr.bf16.gmra.mxu1 %v9220_v17  ;;  %6167 = vmatprep.mubr.bf16.mxu0 %v9221_v29  ;;  %v17069_v24 = vld [vmem:[#allocation96_spill] sm:$0xff]  ;;  %v17074_v33 = vld [vmem:[#allocation98_spill] sm:$0xff]  ;;  %v17075_v17 = vld [vmem:[#allocation27_spill] sm:$0xff] }
 0x4dc   :  { %v14460_v27 = vmax.f32 %v17066_v25, %v6627_v11  ;;  %17068 = vst [vmem:[#allocation71_spill] sm:$0xff] %v14464_v0  ;;  %v5595_v60 = vpop.f32.mrf.mxu0  ;;  %v9222_v11 = vld [vmem:[%s16112_s0 + $0x344] ss:$24 sps:$4 sm:$0xff]   ;;  %v17071_v61 = vmax.f32 %v17069_v24, %v17070_v18  ;;  %v17076_v29 = vmax.f32 %v17074_v33, %v17075_v17  ;;  %v9223_v33 = vld [vmem:[%s16112_s0 + $0x338] ss:$24 sps:$4 sm:$0xff]  }
 0x4dd   :  { %8558 = vmatprep.mubr.msk.bf16.mxu1 %vm2956_vm0, %v9222_v11  ;;  %v6635_v30 = vmax.f32 %v13693_v14, %v5594_v56  ;;  %v5596_v42 = vadd.f32 %v5595_v60, %v17072_v12  ;;  %v14483_v57 = vpop.f32.mrf.mxu1  ;;  %v17077_v34 = vld [vmem:[#allocation234_spill] sm:$0xff]  ;;  %v7218_v14 = vld [vmem:[%s16113_s3 + $0x3e8] sm:$0xff]  ;;  %v17079_v56 = vld [vmem:[#allocation100_spill] sm:$0xff] }
 0x4de   :  { %v14479_v62 = vmax.f32 %v17071_v61, %v6628_v32  ;;  %17073 = vst [vmem:[#allocation13_spill] sm:$0xff] %v14483_v57  ;;  %v5597_v25 = vpop.f32.mrf.mxu0  ;;  %7476 = vmatprep.subr.mxu1 %v7218_v14  ;;  %v17080_v60 = vld [vmem:[#allocation28_spill] sm:$0xff]  ;;  %v17084_v17 = vld [vmem:[#allocation101_spill] sm:$0xff] }
 0x4df   :  { %v14488_v0 = vmax.f32 %v17076_v29, %v6635_v30  ;;  %v6636_v11 = vmax.f32 %v13714_v37, %v5596_v42  ;;  %v5598_v40 = vadd.f32 %v5597_v25, %v17077_v34  ;;  %v14492_v3 = vpop.f32.mrf.mxu1  ;;  %v17081_v24 = vmax.f32 %v17079_v56, %v17080_v60  ;;  %v17082_v30 = vld [vmem:[#allocation235_spill] sm:$0xff]  ;;  %v7217_v42 = vld [vmem:[%s16113_s3 + $0x3e0] sm:$0xff]  ;;  %v17085_v29 = vld [vmem:[#allocation29_spill] sm:$0xff] }
 0x4e0   :  { %17078 = vst [vmem:[#allocation220_spill] sm:$0xff] %v14492_v3  ;;  %v5599_v32 = vpop.f32.mrf.mxu0  ;;  %7477 = vmatpush2.msra.mxu1 %v7217_v42  ;;  %v9224_v56 = vld [vmem:[%s16112_s0 + $0x340] ss:$24 sps:$4 sm:$0xff]   ;;  %v9225_v60 = vld [vmem:[%s16112_s0 + $0x36c] ss:$24 sps:$4 sm:$0xff]  }
 0x4e1   :  { %v14500_v18 = vmax.f32 %v17081_v24, %v6636_v11  ;;  %v6643_v61 = vmax.f32 %v13725_v31, %v5598_v40  ;;  %v5600_v12 = vadd.f32 %v5599_v32, %v17082_v30  ;;  %v14504_v37 = vpop.f32.mrf.mxu1  ;;  %v17086_v11 = vmax.f32 %v17084_v17, %v17085_v29  ;;  %v17087_v40 = vld [vmem:[#allocation236_spill] sm:$0xff]  ;;  %v17090_v30 = vld [vmem:[#allocation30_spill] sm:$0xff]  ;;  %v17122_v3 = vld [vmem:[#allocation243_spill] sm:$0xff] }
 0x4e2   :  { %17083 = vst [vmem:[#allocation73_spill] sm:$0xff] %v14504_v37  ;;  %v5603_v25 = vpop.f32.mrf.mxu0  ;;  %6168 = vmatmul.mubr.bf16.gmra.mxu0 %v9223_v33  ;;  %v17092_v33 = vld [vmem:[#allocation237_spill] sm:$0xff] }
 0x4e3   :  { %v14515_v34 = vmax.f32 %v17086_v11, %v6643_v61  ;;  %v6644_v31 = vmax.f32 %v13736_v44, %v5600_v12  ;;  %v5604_v14 = vadd.f32 %v5603_v25, %v17087_v40  ;;  %v14519_v32 = vpop.f32.mrf.mxu1  ;;  %6461 = vmatmul.mubr.bf16.gmra.mxu1 %v9224_v56  ;;  %6177 = vmatprep.mubr.bf16.mxu0 %v9225_v60  ;;  %v9226_v61 = vld [vmem:[%s16112_s0 + $0x374] ss:$24 sps:$4 sm:$0xff]   ;;  %v17089_v44 = vld [vmem:[#allocation102_spill] sm:$0xff]  ;;  %v7216_v11 = vld [vmem:[%s16113_s3 + $0x3d8] sm:$0xff] }
 0x4e4   :  { %17088 = vst [vmem:[#allocation14_spill] sm:$0xff] %v14519_v32  ;;  %v5605_v24 = vpop.f32.mrf.mxu0  ;;  %8559 = vmatprep.mubr.msk.bf16.mxu1 %vm2956_vm0, %v9226_v61  ;;  %v17091_v12 = vmax.f32 %v17089_v44, %v17090_v30  ;;  %7478 = vmatprep.subr.mxu1 %v7216_v11  ;;  %v17094_v56 = vld [vmem:[#allocation104_spill] sm:$0xff]  ;;  %v17095_v60 = vld [vmem:[#allocation31_spill] sm:$0xff]  ;;  %v17097_v44 = vld [vmem:[#allocation238_spill] sm:$0xff] }
 0x4e5   :  { %v6651_v25 = vmax.f32 %v13747_v55, %v5604_v14  ;;  %v5606_v17 = vadd.f32 %v5605_v24, %v17092_v33  ;;  %v14538_v29 = vpop.f32.mrf.mxu1  ;;  %v17096_v61 = vmax.f32 %v17094_v56, %v17095_v60  ;;  %v7215_v14 = vld [vmem:[%s16113_s3 + $0x3d0] sm:$0xff]  ;;  %v17102_v56 = vld [vmem:[#allocation239_spill] sm:$0xff] }
 0x4e6   :  { %v14534_v42 = vmax.f32 %v17091_v12, %v6644_v31  ;;  %17093 = vst [vmem:[#allocation221_spill] sm:$0xff] %v14538_v29  ;;  %v5607_v40 = vpop.f32.mrf.mxu0  ;;  %7479 = vmatpush2.msra.mxu1 %v7215_v14  ;;  %v17099_v12 = vld [vmem:[#allocation106_spill] sm:$0xff]  ;;  %v17100_v33 = vld [vmem:[#allocation32_spill] sm:$0xff] }
 0x4e7   :  { %v14546_v32 = vmax.f32 %v17096_v61, %v6651_v25  ;;  %v6652_v31 = vmax.f32 %v13771_v50, %v5606_v17  ;;  %v5608_v30 = vadd.f32 %v5607_v40, %v17097_v44  ;;  %v14550_v55 = vpop.f32.mrf.mxu1  ;;  %v17101_v11 = vmax.f32 %v17099_v12, %v17100_v33  ;;  %v9227_v40 = vld [vmem:[%s16112_s0 + $0x368] ss:$24 sps:$4 sm:$0xff]   ;;  %v17104_v61 = vld [vmem:[#allocation108_spill] sm:$0xff]  ;;  %v17105_v44 = vld [vmem:[#allocation33_spill] sm:$0xff] }
 0x4e8   :  { %17098 = vst [vmem:[#allocation75_spill] sm:$0xff] %v14550_v55  ;;  %v5609_v24 = vpop.f32.mrf.mxu0  ;;  %v17106_v14 = vmax.f32 %v17104_v61, %v17105_v44  ;;  %v17107_v12 = vld [vmem:[#allocation240_spill] sm:$0xff]  ;;  %v17112_v61 = vld [vmem:[#allocation241_spill] sm:$0xff] }
 0x4e9   :  { %v14558_v29 = vmax.f32 %v17101_v11, %v6652_v31  ;;  %v6659_v25 = vmax.f32 %v13782_v52, %v5608_v30  ;;  %v5610_v60 = vadd.f32 %v5609_v24, %v17102_v56  ;;  %v14562_v50 = vpop.f32.mrf.mxu1  ;;  %v9228_v30 = vld [vmem:[%s16112_s0 + $0x370] ss:$24 sps:$4 sm:$0xff]   ;;  %v9229_v24 = vld [vmem:[%s16112_s0 + $0x39c] ss:$24 sps:$4 sm:$0xff]   ;;  %v17110_v56 = vld [vmem:[#allocation34_spill] sm:$0xff] }
 0x4ea   :  { %17103 = vst [vmem:[#allocation15_spill] sm:$0xff] %v14562_v50  ;;  %v5613_v17 = vpop.f32.mrf.mxu0  ;;  %6178 = vmatmul.mubr.bf16.gmra.mxu0 %v9227_v40 }
 0x4eb   :  { %v14570_v55 = vmax.f32 %v17106_v14, %v6659_v25  ;;  %v6660_v31 = vmax.f32 %v13793_v39, %v5610_v60  ;;  %v5614_v33 = vadd.f32 %v5613_v17, %v17107_v12  ;;  %v14574_v52 = vpop.f32.mrf.mxu1  ;;  %6471 = vmatmul.mubr.bf16.gmra.mxu1 %v9228_v30  ;;  %6187 = vmatprep.mubr.bf16.mxu0 %v9229_v24  ;;  %v9230_v25 = vld [vmem:[%s16112_s0 + $0x3a4] ss:$24 sps:$4 sm:$0xff]   ;;  %v7214_v12 = vld [vmem:[%s16113_s3 + $0x3c8] sm:$0xff] }
 0x4ec   :  { %17108 = vst [vmem:[#allocation222_spill] sm:$0xff] %v14574_v52  ;;  %v5615_v11 = vpop.f32.mrf.mxu0  ;;  %8560 = vmatprep.mubr.msk.bf16.mxu1 %vm2956_vm0, %v9230_v25  ;;  %v17109_v39 = vld [vmem:[#allocation110_spill] sm:$0xff]  ;;  %7480 = vmatprep.subr.mxu1 %v7214_v12  ;;  %v17114_v25 = vld [vmem:[#allocation112_spill] sm:$0xff] }
 0x4ed   :  { %v17111_v60 = vmax.f32 %v17109_v39, %v17110_v56  ;;  %v6667_v40 = vmax.f32 %v13804_v49, %v5614_v33  ;;  %v5616_v44 = vadd.f32 %v5615_v11, %v17112_v61  ;;  %v14593_v14 = vpop.f32.mrf.mxu1  ;;  %v7213_v30 = vld [vmem:[%s16113_s3 + $0x3c0] sm:$0xff]  ;;  %v17115_v39 = vld [vmem:[#allocation35_spill] sm:$0xff]  ;;  %v17120_v52 = vld [vmem:[#allocation36_spill] sm:$0xff] }
 0x4ee   :  { %17113 = vst [vmem:[#allocation77_spill] sm:$0xff] %v14593_v14  ;;  %v5617_v24 = vpop.f32.mrf.mxu0  ;;  %v17117_v33 = vld [vmem:[#allocation242_spill] sm:$0xff]  ;;  %7481 = vmatpush2.msra.mxu1 %v7213_v30  ;;  %v17125_v30 = vld [vmem:[#allocation37_spill] sm:$0xff] }
 0x4ef   :  { %v14589_v17 = vmax.f32 %v17111_v60, %v6660_v31  ;;  %v17116_v31 = vmax.f32 %v17114_v25, %v17115_v39  ;;  %v6668_v49 = vmax.f32 %v13831_v8, %v5616_v44  ;;  %v5618_v11 = vadd.f32 %v5617_v24, %v17117_v33  ;;  %v14608_v60 = vpop.f32.mrf.mxu1  ;;  %v17119_v14 = vld [vmem:[#allocation114_spill] sm:$0xff]  ;;  %v9231_v8 = vld [vmem:[%s16112_s0 + $0x398] ss:$24 sps:$4 sm:$0xff]   ;;  %v9234_v33 = vld [vmem:[%s16112_s0 + $0x3d4] ss:$24 sps:$4 sm:$0xff]  }
 0x4f0   :  { %17118 = vst [vmem:[#allocation16_spill] sm:$0xff] %v14608_v60  ;;  %v5619_v61 = vpop.f32.mrf.mxu0  ;;  %v17121_v50 = vmax.f32 %v17119_v14, %v17120_v52  ;;  %v17124_v44 = vld [vmem:[#allocation116_spill] sm:$0xff] }
 0x4f1   :  { %v14604_v56 = vmax.f32 %v17116_v31, %v6667_v40  ;;  %v6675_v12 = vmax.f32 %v13842_v58, %v5618_v11  ;;  %v5620_v57 = vadd.f32 %v5619_v61, %v17122_v3  ;;  %v14617_v25 = vpop.f32.mrf.mxu1  ;;  %v17126_v24 = vmax.f32 %v17124_v44, %v17125_v30  ;;  %v17127_v52 = vld [vmem:[#allocation244_spill] sm:$0xff]  ;;  %v9232_v3 = vld [vmem:[%s16112_s0 + $0x3a0] ss:$24 sps:$4 sm:$0xff]   ;;  %v9233_v31 = vld [vmem:[%s16112_s0 + $0x3cc] ss:$24 sps:$4 sm:$0xff]  }
 0x4f2   :  { %v14613_v37 = vmax.f32 %v17121_v50, %v6668_v49  ;;  %17123 = vst [vmem:[#allocation223_spill] sm:$0xff] %v14617_v25  ;;  %v5623_v40 = vpop.f32.mrf.mxu0  ;;  %6188 = vmatmul.mubr.bf16.gmra.mxu0 %v9231_v8  ;;  %v7212_v49 = vld [vmem:[%s16113_s3 + $0x3b8] sm:$0xff]  ;;  %v17129_v11 = vld [vmem:[#allocation118_spill] sm:$0xff] }
 0x4f3   :  { %v14625_v39 = vmax.f32 %v17126_v24, %v6675_v12  ;;  %v6676_v50 = vmax.f32 %v13850_v23, %v5620_v57  ;;  %v5624_v14 = vadd.f32 %v5623_v40, %v17127_v52  ;;  %v14629_v58 = vpop.f32.mrf.mxu1  ;;  %6481 = vmatmul.mubr.bf16.gmra.mxu1 %v9232_v3  ;;  %6197 = vmatprep.mubr.bf16.mxu0 %v9233_v31  ;;  %v7211_v23 = vld [vmem:[%s16113_s3 + $0x3b0] sm:$0xff]  ;;  %v17130_v61 = vld [vmem:[#allocation38_spill] sm:$0xff]  ;;  %v17132_v44 = vld [vmem:[#allocation245_spill] sm:$0xff] }
 0x4f4   :  { %17128 = vst [vmem:[#allocation78_spill] sm:$0xff] %v14629_v58  ;;  %v5625_v57 = vpop.f32.mrf.mxu0  ;;  %8561 = vmatprep.mubr.msk.bf16.mxu1 %vm2956_vm0, %v9234_v33  ;;  %7482 = vmatprep.subr.mxu1 %v7212_v49  ;;  %v17131_v12 = vmax.f32 %v17129_v11, %v17130_v61  ;;  %v17134_v3 = vld [vmem:[#allocation120_spill] sm:$0xff]  ;;  %v17135_v31 = vld [vmem:[#allocation39_spill] sm:$0xff]  ;;  %v17137_v33 = vld [vmem:[#allocation246_spill] sm:$0xff] }
 0x4f5   :  { %v6683_v8 = vmax.f32 %v13861_v19, %v5624_v14  ;;  %v5626_v30 = vadd.f32 %v5625_v57, %v17132_v44  ;;  %v14654_v24 = vpop.f32.mrf.mxu1  ;;  %7483 = vmatpush2.msra.mxu1 %v7211_v23  ;;  %v17136_v58 = vmax.f32 %v17134_v3, %v17135_v31  ;;  %v17139_v61 = vld [vmem:[#allocation122_spill] sm:$0xff]  ;;  %v17140_v19 = vld [vmem:[#allocation40_spill] sm:$0xff] }
 0x4f6   :  { %v14650_v40 = vmax.f32 %v17131_v12, %v6676_v50  ;;  %17133 = vst [vmem:[#allocation17_spill] sm:$0xff] %v14654_v24  ;;  %v5627_v52 = vpop.f32.mrf.mxu0  ;;  %v17141_v14 = vmax.f32 %v17139_v61, %v17140_v19  ;;  %v17142_v12 = vld [vmem:[#allocation247_spill] sm:$0xff]  ;;  %v9237_v61 = vld [vmem:[%s16112_s0 + $0x3fc] ss:$24 sps:$4 sm:$0xff]   ;;  %v7209_v19 = vld [vmem:[%s16113_s3 + $0x3a0] sm:$0xff] }
 0x4f7   :  { %v14659_v25 = vmax.f32 %v17136_v58, %v6683_v8  ;;  %v6684_v49 = vmax.f32 %v13888_v26, %v5626_v30  ;;  %v5628_v60 = vadd.f32 %v5627_v52, %v17137_v33  ;;  %v14663_v11 = vpop.f32.mrf.mxu1  ;;  %v7210_v26 = vld [vmem:[%s16113_s3 + $0x3a8] sm:$0xff]  ;;  %v17144_v30 = vld [vmem:[#allocation124_spill] sm:$0xff]  ;;  %v17145_v52 = vld [vmem:[#allocation41_spill] sm:$0xff] }
 0x4f8   :  { %17138 = vst [vmem:[#allocation224_spill] sm:$0xff] %v14663_v11  ;;  %v5629_v50 = vpop.f32.mrf.mxu0  ;;  %v9235_v8 = vld [vmem:[%s16112_s0 + $0x3c8] ss:$24 sps:$4 sm:$0xff]   ;;  %7484 = vmatprep.subr.mxu1 %v7210_v26  ;;  %v17146_v3 = vmax.f32 %v17144_v30, %v17145_v52  ;;  %v17204_v11 = vld [vmem:[#allocation5_spill] sm:$0xff] }
 0x4f9   :  { %v14668_v57 = vmax.f32 %v17141_v14, %v6684_v49  ;;  %v6691_v23 = vmax.f32 %v13899_v1, %v5628_v60  ;;  %v5630_v44 = vadd.f32 %v5629_v50, %v17142_v12  ;;  %v14672_v24 = vpop.f32.mrf.mxu1  ;;  %v17147_v60 = vld [vmem:[#allocation248_spill] sm:$0xff]  ;;  %7485 = vmatpush2.msra.mxu1 %v7209_v19  ;;  %v17150_v12 = vld [vmem:[#allocation42_spill] sm:$0xff] }
 0x4fa   :  { %17143 = vst [vmem:[#allocation80_spill] sm:$0xff] %v14672_v24  ;;  %v5633_v58 = vpop.f32.mrf.mxu0  ;;  %6198 = vmatmul.mubr.bf16.gmra.mxu0 %v9235_v8  ;;  %v9236_v50 = vld [vmem:[%s16112_s0 + $0x3d0] ss:$24 sps:$4 sm:$0xff]   ;;  %v17152_v8 = vld [vmem:[#allocation249_spill] sm:$0xff] }
 0x4fb   :  { %v14683_v31 = vmax.f32 %v17146_v3, %v6691_v23  ;;  %v6692_v1 = vmax.f32 %v13913_v47, %v5630_v44  ;;  %v5634_v49 = vadd.f32 %v5633_v58, %v17147_v60  ;;  %v14687_v33 = vpop.f32.mrf.mxu1  ;;  %6491 = vmatmul.mubr.bf16.gmra.mxu1 %v9236_v50  ;;  %6207 = vmatprep.mubr.bf16.mxu0 %v9237_v61  ;;  %v9238_v47 = vld [vmem:[%s16112_s0 + $0x404] ss:$24 sps:$4 sm:$0xff]   ;;  %v17154_v50 = vld [vmem:[#allocation128_spill] sm:$0xff]  ;;  %v17155_v61 = vld [vmem:[#allocation43_spill] sm:$0xff] }
 0x4fc   :  { %17148 = vst [vmem:[#allocation18_spill] sm:$0xff] %v14687_v33  ;;  %v5635_v14 = vpop.f32.mrf.mxu0  ;;  %8562 = vmatprep.mubr.msk.bf16.mxu1 %vm2956_vm0, %v9238_v47  ;;  %v17149_v23 = vld [vmem:[#allocation126_spill] sm:$0xff]  ;;  %v7208_v60 = vld [vmem:[%s16113_s3 + $0x398] sm:$0xff]  ;;  %v17156_v47 = vmax.f32 %v17154_v50, %v17155_v61 }
 0x4fd   :  { %v17151_v44 = vmax.f32 %v17149_v23, %v17150_v12  ;;  %v6699_v58 = vmax.f32 %v13927_v22, %v5634_v49  ;;  %v5636_v30 = vadd.f32 %v5635_v14, %v17152_v8  ;;  %v14709_v52 = vpop.f32.mrf.mxu1  ;;  %7486 = vmatprep.subr.mxu1 %v7208_v60  ;;  %v7207_v22 = vld [vmem:[%s16113_s3 + $0x390] sm:$0xff]  ;;  %v7206_v14 = vld [vmem:[%s16113_s3 + $0x388] sm:$0xff]  ;;  %v17159_v8 = vld [vmem:[#allocation130_spill] sm:$0xff] }
 0x4fe   :  { %17153 = vst [vmem:[#allocation225_spill] sm:$0xff] %v14709_v52  ;;  %v5637_v3 = vpop.f32.mrf.mxu0  ;;  %7487 = vmatpush2.msra.mxu1 %v7207_v22  ;;  %v9239_v22 = vld [vmem:[%s16112_s0 + $0x3f8] ss:$24 sps:$4 sm:$0xff]  }
 0x4ff   :  { %v14705_v26 = vmax.f32 %v17151_v44, %v6692_v1  ;;  %v14717_v19 = vmax.f32 %v17156_v47, %v6699_v58  ;;  %v6700_v23 = vmax.f32 %v13948_v45, %v5636_v30  ;;  %v17157_v1 = vld [vmem:[#allocation250_spill] sm:$0xff]  ;;  %v14721_v44 = vpop.f32.mrf.mxu1  ;;  %v17160_v58 = vld [vmem:[#allocation44_spill] sm:$0xff]  ;;  %v17162_v30 = vld [vmem:[#allocation251_spill] sm:$0xff]  ;;  %7488 = vmatprep.subr.mxu1 %v7206_v14 }
 0x500   :  { %v5638_v12 = vadd.f32 %v5637_v3, %v17157_v1  ;;  %17158 = vst [vmem:[#allocation82_spill] sm:$0xff] %v14721_v44  ;;  %v5639_v49 = vpop.f32.mrf.mxu0  ;;  %v17161_v50 = vmax.f32 %v17159_v8, %v17160_v58  ;;  %v7205_v47 = vld [vmem:[%s16113_s3 + $0x380] sm:$0xff]  ;;  %v17167_v58 = vld [vmem:[#allocation252_spill] sm:$0xff]  ;;  %v7200_v44 = vld [vmem:[%s16113_s3 + $0x358] sm:$0xff] }
 0x501   :  { %v5640_v3 = vadd.f32 %v5639_v49, %v17162_v30  ;;  %v14736_v60 = vpop.f32.mrf.mxu1  ;;  %7489 = vmatpush2.msra.mxu1 %v7205_v47  ;;  %v9241_v47 = vld [vmem:[%s16112_s0 + $0x42c] ss:$24 sps:$4 sm:$0xff]   ;;  %v7192_v33 = vld [vmem:[%s16113_s3 + $0x318] sm:$0xff] }
 0x502   :  { %v14732_v61 = vmax.f32 %v17161_v50, %v6700_v23  ;;  %v6707_v45 = vmax.f32 %v13959_v38, %v5638_v12  ;;  %17163 = vst [vmem:[#allocation19_spill] sm:$0xff] %v14736_v60  ;;  %v5643_v1 = vpop.f32.mrf.mxu0  ;;  %6208 = vmatmul.mubr.bf16.gmra.mxu0 %v9239_v22  ;;  %v7204_v38 = vld [vmem:[%s16113_s3 + $0x378] sm:$0xff]  ;;  %v17164_v23 = vld [vmem:[#allocation132_spill] sm:$0xff] }
 0x503   :  { %v17165_v12 = vld [vmem:[#allocation45_spill] sm:$0xff]  ;;  %v6708_v14 = vmax.f32 %v13970_v36, %v5640_v3  ;;  %v5644_v50 = vadd.f32 %v5643_v1, %v17167_v58  ;;  %v14754_v30 = vpop.f32.mrf.mxu1  ;;  %6217 = vmatprep.mubr.bf16.mxu0 %v9241_v47  ;;  %v9242_v36 = vld [vmem:[%s16112_s0 + $0x434] ss:$24 sps:$4 sm:$0xff]   ;;  %7490 = vmatprep.subr.mxu1 %v7204_v38  ;;  %v17169_v1 = vld [vmem:[#allocation134_spill] sm:$0xff] }
 0x504   :  { %v17166_v49 = vmax.f32 %v17164_v23, %v17165_v12  ;;  %17168 = vst [vmem:[#allocation226_spill] sm:$0xff] %v14754_v30  ;;  %v9240_v22 = vld [vmem:[%s16112_s0 + $0x400] ss:$24 sps:$4 sm:$0xff]   ;;  %v5645_v23 = vpop.f32.mrf.mxu0  ;;  %v7202_v3 = vld [vmem:[%s16113_s3 + $0x368] sm:$0xff] }
 0x505   :  { %6501 = vmatmul.mubr.bf16.gmra.mxu1 %v9240_v22  ;;  %v17170_v12 = vld [vmem:[#allocation46_spill] sm:$0xff]  ;;  %v6715_v22 = vmax.f32 %v13984_v13, %v5644_v50  ;;  %v17172_v47 = vld [vmem:[#allocation253_spill] sm:$0xff]  ;;  %v14779_v60 = vpop.f32.mrf.mxu1 }
 0x506   :  { %v14750_v8 = vmax.f32 %v17166_v49, %v6707_v45  ;;  %v7203_v45 = vld [vmem:[%s16113_s3 + $0x370] sm:$0xff]  ;;  %8563 = vmatprep.mubr.msk.bf16.mxu1 %vm2956_vm0, %v9242_v36  ;;  %v17171_v49 = vmax.f32 %v17169_v1, %v17170_v12  ;;  %v5646_v30 = vadd.f32 %v5645_v23, %v17172_v47  ;;  %17173 = vst [vmem:[#allocation84_spill] sm:$0xff] %v14779_v60  ;;  %v7201_v38 = vld [vmem:[%s16113_s3 + $0x360] sm:$0xff]  ;;  %v5647_v36 = vpop.f32.mrf.mxu0  ;;  %v7198_v60 = vld [vmem:[%s16113_s3 + $0x348] sm:$0xff] }
 0x507   :  { %7491 = vmatpush2.msra.mxu1 %v7203_v45  ;;  %v17174_v1 = vld [vmem:[#allocation136_spill] sm:$0xff]  ;;  %v17177_v50 = vld [vmem:[#allocation254_spill] sm:$0xff]  ;;  %v14794_v45 = vpop.f32.mrf.mxu1 }
 0x508   :  { %v14775_v58 = vmax.f32 %v17171_v49, %v6708_v14  ;;  %7492 = vmatprep.subr.mxu1 %v7202_v3  ;;  %v17175_v14 = vld [vmem:[#allocation47_spill] sm:$0xff]  ;;  %v6716_v13 = vmax.f32 %v14008_v4, %v5646_v30  ;;  %v5648_v23 = vadd.f32 %v5647_v36, %v17177_v50  ;;  %17178 = vst [vmem:[#allocation20_spill] sm:$0xff] %v14794_v45  ;;  %v7199_v3 = vld [vmem:[%s16113_s3 + $0x350] sm:$0xff]  ;;  %v5649_v47 = vpop.f32.mrf.mxu0 }
 0x509   :  { %v17176_v12 = vmax.f32 %v17174_v1, %v17175_v14  ;;  %7493 = vmatpush2.msra.mxu1 %v7201_v38  ;;  %v17179_v1 = vld [vmem:[#allocation2_spill] sm:$0xff]  ;;  %v17182_v30 = vld [vmem:[#allocation255_spill] sm:$0xff]  ;;  %v14809_v38 = vpop.f32.mrf.mxu1 }
 0x50a   :  { %7494 = vmatprep.subr.mxu1 %v7200_v44  ;;  %v6723_v4 = vmax.f32 %v14019_v54, %v5648_v23  ;;  %v5650_v36 = vadd.f32 %v5649_v47, %v17182_v30  ;;  %17183 = vst [vmem:[#allocation227_spill] sm:$0xff] %v14809_v38  ;;  %v7197_v44 = vld [vmem:[%s16113_s3 + $0x340] sm:$0xff]  ;;  %v5653_v50 = vpop.f32.mrf.mxu0  ;;  %v7196_v54 = vld [vmem:[%s16113_s3 + $0x338] sm:$0xff] }
 0x50b   :  { %v14790_v49 = vmax.f32 %v17176_v12, %v6715_v22  ;;  %v17180_v22 = vld [vmem:[#allocation48_spill] sm:$0xff]  ;;  %7495 = vmatpush2.msra.mxu1 %v7199_v3  ;;  %v9243_v45 = vld [vmem:[%s16112_s0 + $0x428] ss:$24 sps:$4 sm:$0xff]   ;;  %v17185_v23 = vld [vmem:[#allocation49_spill] sm:$0xff]  ;;  %v14827_v30 = vpop.f32.mrf.mxu1 }
 0x50c   :  { %v17181_v14 = vmax.f32 %v17179_v1, %v17180_v22  ;;  %6218 = vmatmul.mubr.bf16.gmra.mxu0 %v9243_v45  ;;  %7496 = vmatprep.subr.mxu1 %v7198_v60  ;;  %v6724_v3 = vmax.f32 %v14033_v2, %v5650_v36  ;;  %v17188_v22 = vld [vmem:[#allocation256_spill] sm:$0xff]  ;;  %17189 = vst [vmem:[#allocation21_spill] sm:$0xff] %v14827_v30  ;;  %v9246_v2 = vld [vmem:[%s16112_s0 + $0x464] ss:$24 sps:$4 sm:$0xff]   ;;  %v7194_v36 = vld [vmem:[%s16113_s3 + $0x328] sm:$0xff] }
 0x50d   :  { %v9244_v45 = vld [vmem:[%s16112_s0 + $0x430] ss:$24 sps:$4 sm:$0xff]   ;;  %v9245_v60 = vld [vmem:[%s16112_s0 + $0x45c] ss:$24 sps:$4 sm:$0xff]   ;;  %7497 = vmatpush2.msra.mxu1 %v7197_v44  ;;  %v14852_v52 = vpop.f32.mrf.mxu1  ;;  %v7193_v44 = vld [vmem:[%s16113_s3 + $0x320] sm:$0xff] }
 0x50e   :  { %v14805_v12 = vmax.f32 %v17181_v14, %v6716_v13  ;;  %v17184_v13 = vld [vmem:[#allocation3_spill] sm:$0xff]  ;;  %v5654_v14 = vadd.f32 %v5653_v50, %v17188_v22  ;;  %6511 = vmatmul.mubr.bf16.gmra.mxu1 %v9244_v45  ;;  %6227 = vmatprep.mubr.bf16.mxu0 %v9245_v60  ;;  %v17190_v50 = vld [vmem:[#allocation140_spill] sm:$0xff]  ;;  %v17195_v30 = vld [vmem:[#allocation257_spill] sm:$0xff]  ;;  %17196 = vst [vmem:[#allocation88_spill] sm:$0xff] %v14852_v52 }
 0x50f   :  { %v17186_v47 = vmax.f32 %v17184_v13, %v17185_v23  ;;  %v5655_v13 = vpop.f32.mrf.mxu0  ;;  %8564 = vmatprep.mubr.msk.bf16.mxu1 %vm2956_vm0, %v9246_v2  ;;  %v17191_v23 = vld [vmem:[#allocation50_spill] sm:$0xff]  ;;  %v17194_v45 = vld [vmem:[#allocation308_spill] sm:$0xff]  ;;  %7498 = vmatprep.subr.mxu1 %v7196_v54  ;;  %v14867_v52 = vpop.f32.mrf.mxu1 }
 0x510   :  { %v6731_v60 = vmax.f32 %v17194_v45, %v5654_v14  ;;  %v5656_v38 = vadd.f32 %v5655_v13, %v17195_v30  ;;  %v17201_v30 = vld [vmem:[#allocation310_spill] sm:$0xff]  ;;  %17203 = vst [vmem:[#allocation229_spill] sm:$0xff] %v14867_v52  ;;  %v17225_v52 = vld [vmem:[#allocation147_spill] sm:$0xff] }
 0x511   :  { %v14823_v1 = vmax.f32 %v17186_v47, %v6723_v4  ;;  %v7195_v4 = vld [vmem:[%s16113_s3 + $0x330] sm:$0xff]  ;;  %v17192_v47 = vmax.f32 %v17190_v50, %v17191_v23  ;;  %v5657_v2 = vpop.f32.mrf.mxu0  ;;  %v6865_v50 = vlaneseq  ;;  %v17198_v23 = vld [vmem:[#allocation51_spill] sm:$0xff]  ;;  %v17202_v45 = vld [vmem:[#allocation258_spill] sm:$0xff] }
 0x512   :  { %7499 = vmatpush2.msra.mxu1 %v7195_v4  ;;  %v6732_v13 = vmax.f32 %v17201_v30, %v5656_v38  ;;  %v5658_v54 = vadd.f32 %v5657_v2, %v17202_v45  ;;  %v7191_v4 = vld [vmem:[%s16113_s3 + $0x310] sm:$0xff] }
 0x513   :  { %17187 = vst [vmem:[#allocation86_spill] sm:$0xff] %v14823_v1  ;;  %v14848_v22 = vmax.f32 %v17192_v47, %v6724_v3  ;;  %v17197_v3 = vld [vmem:[#allocation4_spill] sm:$0xff]  ;;  %7500 = vmatprep.subr.mxu1 %v7194_v36  ;;  %v5659_v24 = vpop.f32.mrf.mxu0  ;;  %v17206_v1 = vmax.f32 %v17204_v11, %v17205_v41  ;;  %v7190_v36 = vld [vmem:[%s16113_s3 + $0x308] sm:$0xff]  ;;  %v7189_v41 = vld [vmem:[%s16113_s3 + $0x300] sm:$0xff]  ;;  %v14890_v11 = vshrl.u32 %v6865_v50, 7 }
 0x514   :  { %v17199_v47 = vmax.f32 %v17197_v3, %v17198_v23  ;;  %7501 = vmatpush2.msra.mxu1 %v7193_v44  ;;  %v17209_v23 = vld [vmem:[#allocation259_spill] sm:$0xff]  ;;  %v9247_v44 = vld [vmem:[%s16112_s0 + $0x458] ss:$24 sps:$4 sm:$0xff]  }
 0x515   :  { %17193 = vst [vmem:[#allocation228_spill] sm:$0xff] %v14848_v22  ;;  %v14875_v22 = vmax.f32 %v17206_v1, %v6732_v13  ;;  %v5660_v38 = vadd.f32 %v5659_v24, %v17209_v23  ;;  %7502 = vmatprep.subr.mxu1 %v7192_v33  ;;  %v5663_v2 = vpop.f32.mrf.mxu0  ;;  %6228 = vmatmul.mubr.bf16.gmra.mxu0 %v9247_v44  ;;  %17211 = vst [vmem:[#allocation230_spill] sm:$0xff] %v14890_v11  ;;  %v17212_v24 = vld [vmem:[#allocation143_spill] sm:$0xff]  ;;  %v17213_v1 = vld [vmem:[#allocation53_spill] sm:$0xff] }
 0x516   :  { %v14863_v14 = vmax.f32 %v17199_v47, %v6731_v60  ;;  %v17208_v60 = vld [vmem:[#allocation312_spill] sm:$0xff]  ;;  %v14879_v47 = vpop.f32.mrf.mxu1  ;;  %7503 = vmatpush2.msra.mxu1 %v7191_v4  ;;  %v17214_v33 = vmax.f32 %v17212_v24, %v17213_v1  ;;  %v17216_v13 = vld [vmem:[#allocation314_spill] sm:$0xff] }
 0x517   :  { %17207 = vst [vmem:[#allocation90_spill] sm:$0xff] %v14875_v22  ;;  %v6739_v3 = vmax.f32 %v17208_v60, %v5658_v54  ;;  %17210 = vst [vmem:[#allocation23_spill] sm:$0xff] %v14879_v47  ;;  %v6740_v45 = vmax.f32 %v17216_v13, %v5660_v38  ;;  %v17217_v54 = vld [vmem:[#allocation260_spill] sm:$0xff]  ;;  %v9248_v4 = vld [vmem:[%s16112_s0 + $0x460] ss:$24 sps:$4 sm:$0xff]   ;;  %v5665_v44 = vpop.f32.mrf.mxu0  ;;  %7504 = vmatprep.subr.mxu1 %v7190_v36 }
 0x518   :  { %17200 = vst [vmem:[#allocation22_spill] sm:$0xff] %v14863_v14  ;;  %v5664_v60 = vadd.f32 %v5663_v2, %v17217_v54  ;;  %v14899_v23 = vpop.f32.mrf.mxu1  ;;  %6521 = vmatmul.mubr.bf16.gmra.mxu1 %v9248_v4  ;;  %v9249_v50 = vld [vmem:[%s16112_s0 + $0x48c] ss:$24 sps:$4 sm:$0xff]   ;;  %v17219_v38 = vld [vmem:[#allocation145_spill] sm:$0xff] }
 0x519   :  { %v14895_v30 = vmax.f32 %v17214_v33, %v6739_v3  ;;  %17218 = vst [vmem:[#allocation24_spill] sm:$0xff] %v14899_v23  ;;  %6237 = vmatprep.mubr.bf16.mxu0 %v9249_v50  ;;  %v9250_v3 = vld [vmem:[%s16112_s0 + $0x494] ss:$24 sps:$4 sm:$0xff]   ;;  %v17220_v2 = vld [vmem:[#allocation54_spill] sm:$0xff]  ;;  %v17223_v54 = vld [vmem:[#allocation261_spill] sm:$0xff]  ;;  %v6871_v50 = vsub.s32 1, %v14890_v11  ;;  %7505 = vmatpush2.msra.mxu1 %v7189_v41  ;;  %v5667_v47 = vpop.f32.mrf.mxu0 }
 0x51a   :  { %8565 = vmatprep.mubr.msk.bf16.mxu1 %vm2956_vm0, %v9250_v3  ;;  %v17221_v24 = vmax.f32 %v17219_v38, %v17220_v2  ;;  %v17222_v33 = vld [vmem:[#allocation316_spill] sm:$0xff]  ;;  %v5666_v4 = vadd.f32 %v5665_v44, %v17223_v54  ;;  %v14918_v23 = vpop.f32.mrf.mxu1  ;;  %v17229_v36 = vld [vmem:[#allocation318_spill] sm:$0xff] }
 0x51b   :  { %17215 = vst [vmem:[#allocation92_spill] sm:$0xff] %v14895_v30  ;;  %v6747_v13 = vmax.f32 %v17222_v33, %v5664_v60  ;;  %17224 = vst [vmem:[#allocation231_spill] sm:$0xff] %v14918_v23  ;;  %v17226_v30 = vld [vmem:[#allocation55_spill] sm:$0xff]  ;;  %v17230_v38 = vld [vmem:[#allocation262_spill] sm:$0xff]  ;;  %v5669_v44 = vpop.f32.mrf.mxu0 }
 0x51c   :  { %v14914_v1 = vmax.f32 %v17221_v24, %v6740_v45  ;;  %v17227_v14 = vmax.f32 %v17225_v52, %v17226_v30  ;;  %v6748_v22 = vmax.f32 %v17229_v36, %v5666_v4  ;;  %v5668_v45 = vadd.f32 %v5667_v47, %v17230_v38  ;;  %v14928_v2 = vpop.f32.mrf.mxu1  ;;  %v14933_v60 = vld [vmem:[%s16114_s2] sm:$0xf]  ;;  %v17232_v24 = vld [vmem:[#allocation149_spill] sm:$0xff]  ;;  %v17233_v41 = vld [vmem:[#allocation56_spill] sm:$0xff] }
 0x51d   :  { %17231 = vst [vmem:[#allocation25_spill] sm:$0xff] %v14928_v2  ;;  %v17234_v33 = vmax.f32 %v17232_v24, %v17233_v41  ;;  %v17235_v52 = vld [vmem:[#allocation210_spill] sm:$0xff]  ;;  %v17236_v30 = vld [vmem:[#allocation263_spill] sm:$0xff]  ;;  %v14945_v47 = vrot.slane %v14933_v60, %v6871_v50  ;;  %v5999_v36 = vpop.f32.mrf.mxu0  ;;  %v17239_v23 = vld [vmem:[#allocation57_spill] sm:$0xff] }
 0x51e   :  { %v14924_v3 = vmax.f32 %v17227_v14, %v6747_v13  ;;  %v6755_v14 = vmax.f32 %v17235_v52, %v5668_v45  ;;  %v5670_v13 = vadd.f32 %v5669_v44, %v17236_v30  ;;  %v14942_v4 = vpop.f32.mrf.mxu1  ;;  %v9251_v38 = vld [vmem:[%s16112_s0 + $0x488] ss:$24 sps:$4 sm:$0xff]   ;;  %v9253_v30 = vld [vmem:[%s16112_s0 + $0x4bc] ss:$24 sps:$4 sm:$0xff]  }
 0x51f   :  { %v14938_v54 = vmax.f32 %v17234_v33, %v6748_v22  ;;  %17237 = vst [vmem:[#allocation232_spill] sm:$0xff] %v14942_v4  ;;  %6238 = vmatmul.mubr.bf16.gmra.mxu0 %v9251_v38  ;;  %v17238_v2 = vld [vmem:[#allocation151_spill] sm:$0xff]  ;;  %v17243_v33 = vld [vmem:[#allocation264_spill] sm:$0xff]  ;;  %v6867_v38 = vsub.s32 0, %v14890_v11  ;;  %v17248_v4 = vld [vmem:[#allocation266_spill] sm:$0xff] }
 0x520   :  { %17228 = vst [vmem:[#allocation94_spill] sm:$0xff] %v14924_v3  ;;  %v17240_v24 = vmax.f32 %v17238_v2, %v17239_v23  ;;  %v17242_v41 = vld [vmem:[#allocation211_spill] sm:$0xff]  ;;  %v6000_v44 = vadd.f32 %v5999_v36, %v17243_v33  ;;  %v6292_v52 = vpop.f32.mrf.mxu1  ;;  %6247 = vmatprep.mubr.bf16.mxu0 %v9253_v30  ;;  %v14964_v23 = vpop.f32.mrf.mxu0  ;;  %v9254_v2 = vld [vmem:[%s16112_s0 + $0x4c4] ss:$24 sps:$4 sm:$0xff]  }
 0x521   :  { %v6756_v45 = vmax.f32 %v17242_v41, %v5670_v13  ;;  %v9252_v50 = vld [vmem:[%s16112_s0 + $0x490] ss:$24 sps:$4 sm:$0xff]   ;;  %17244 = vst [vmem:[#allocation26_spill] sm:$0xff] %v14964_v23  ;;  %v17246_v13 = vld [vmem:[#allocation58_spill] sm:$0xff]  ;;  %v14983_v3 = vrot.slane %v14933_v60, %v6867_v38 }
 0x522   :  { %v14953_v22 = vmax.f32 %v17240_v24, %v6755_v14  ;;  %6531 = vmatmul.mubr.bf16.gmra.mxu1 %v9252_v50  ;;  %v17245_v14 = vld [vmem:[#allocation6_spill] sm:$0xff]  ;;  %v14975_v41 = vadd.f32 %v6292_v52, %v6000_v44  ;;  %v14977_v33 = vpop.f32.mrf.mxu1  ;;  %v6886_v50 = vadd.f32 %v14945_v47, %v14207_v6  ;;  %v6003_v30 = vpop.f32.mrf.mxu0  ;;  %v17251_v6 = vld [vmem:[#allocation268_spill] sm:$0xff] }
 0x523   :  { %8566 = vmatprep.mubr.msk.bf16.mxu1 %vm2956_vm0, %v9254_v2  ;;  %v17247_v36 = vmax.f32 %v17245_v14, %v17246_v13  ;;  %v9255_v14 = vld [vmem:[%s16112_s0 + $0x4b8] ss:$24 sps:$4 sm:$0xff]  }
 0x524   :  { %17241 = vst [vmem:[#allocation96_spill] sm:$0xff] %v14953_v22  ;;  %v6004_v22 = vadd.f32 %v6003_v30, %v17248_v4  ;;  %v6296_v11 = vpop.f32.mrf.mxu1  ;;  %v14985_v2 = vpop.f32.mrf.mxu0  ;;  %v6990_v44 = vmax.f32 %v6886_v50, 0.0  ;;  %v9256_v38 = vld [vmem:[%s16112_s0 + $0x4c0] ss:$24 sps:$4 sm:$0xff]   ;;  %v6890_v30 = vadd.f32 %v14945_v47, %v14253_v46  ;;  %v17257_v46 = vld [vmem:[#allocation272_spill] sm:$0xff] }
 0x525   :  { %v14973_v24 = vmax.f32 %v17247_v36, %v6756_v45 }
 0x526   :  { %v14987_v23 = vadd.f32 %v6296_v11, %v6004_v22  ;;  %v14989_v45 = vpop.f32.mrf.mxu1  ;;  %v6009_v52 = vpop.f32.mrf.mxu0  ;;  %v6885_v11 = vadd.f32 %v14983_v3, %v14198_v28 }
 0x527   :  { %17250 = vst [vmem:[#allocation98_spill] sm:$0xff] %v14989_v45  ;;  %6248 = vmatmul.mubr.bf16.gmra.mxu0 %v9255_v14  ;;  %v6010_v13 = vadd.f32 %v6009_v52, %v17251_v6  ;;  %v17255_v14 = vld [vmem:[#allocation270_spill] sm:$0xff] }
 0x528   :  { %17249 = vst [vmem:[#allocation233_spill] sm:$0xff] %v14987_v23  ;;  %v6302_v4 = vpop.f32.mrf.mxu1  ;;  %7285 = vmatprep.mubr.f32.mxu0 %v6990_v44  ;;  %v15000_v22 = vpop.f32.mrf.mxu0  ;;  %v6989_v23 = vmax.f32 %v6885_v11, 0.0 }
 0x529   :  { %17252 = vst [vmem:[#allocation27_spill] sm:$0xff] %v15000_v22  ;;  %v15002_v36 = vadd.f32 %v6302_v4, %v6010_v13  ;;  %v6994_v13 = vmax.f32 %v6890_v30, 0.0  ;;  %v6894_v4 = vadd.f32 %v14945_v47, %v14277_v21  ;;  %v6898_v21 = vadd.f32 %v14945_v47, %v14308_v48 }
 0x52a   :  { %6541 = vmatmul.mubr.bf16.gmra.mxu1 %v9256_v38  ;;  %v15004_v50 = vpop.f32.mrf.mxu1  ;;  %v6013_v52 = vpop.f32.mrf.mxu0  ;;  %v6889_v38 = vadd.f32 %v14983_v3, %v14228_v15  ;;  %v6893_v15 = vadd.f32 %v14983_v3, %v14262_v20  ;;  %v6897_v20 = vadd.f32 %v14983_v3, %v14289_v35  ;;  %v6902_v48 = vadd.f32 %v14945_v47, %v14332_v16 }
 0x52b   :  { %17253 = vst [vmem:[#allocation234_spill] sm:$0xff] %v15002_v36  ;;  %17254 = vst [vmem:[#allocation100_spill] sm:$0xff] %v15004_v50  ;;  %v6014_v44 = vadd.f32 %v6013_v52, %v17255_v14  ;;  %v6998_v30 = vmax.f32 %v6894_v4, 0.0  ;;  %v7002_v4 = vmax.f32 %v6898_v21, 0.0  ;;  %v6901_v35 = vadd.f32 %v14983_v3, %v14320_v63 }
 0x52c   :  { %v6306_v6 = vpop.f32.mrf.mxu1  ;;  %v15011_v45 = vpop.f32.mrf.mxu0  ;;  %v6993_v11 = vmax.f32 %v6889_v38, 0.0  ;;  %v6997_v38 = vmax.f32 %v6893_v15, 0.0  ;;  %v7001_v15 = vmax.f32 %v6897_v20, 0.0  ;;  %v7006_v21 = vmax.f32 %v6902_v48, 0.0 }
 0x52d   :  { %v15013_v28 = vadd.f32 %v6306_v6, %v6014_v44  ;;  %v6906_v16 = vadd.f32 %v14945_v47, %v14366_v43  ;;  %v7005_v20 = vmax.f32 %v6901_v35, 0.0  ;;  %v6905_v63 = vadd.f32 %v14983_v3, %v14344_v10 }
 0x52e   :  { %v15015_v22 = vpop.f32.mrf.mxu1  ;;  %v6019_v36 = vpop.f32.mrf.mxu0  ;;  %v6910_v43 = vadd.f32 %v14945_v47, %v14387_v59  ;;  %v6909_v10 = vadd.f32 %v14983_v3, %v14378_v53  ;;  %v6914_v59 = vadd.f32 %v14945_v47, %v14424_v9  ;;  %v6913_v53 = vadd.f32 %v14983_v3, %v14399_v51 }
 0x52f   :  { %17256 = vst [vmem:[#allocation28_spill] sm:$0xff] %v15013_v28  ;;  %7286 = vmatmul.mubr.f32.vlgmr.msra.gmra.mxu0 %v6989_v23  ;;  %v6020_v50 = vadd.f32 %v6019_v36, %v17257_v46  ;;  %v17259_v23 = vld [vmem:[#allocation274_spill] sm:$0xff]  ;;  %v7010_v48 = vmax.f32 %v6906_v16, 0.0  ;;  %v7009_v35 = vmax.f32 %v6905_v63, 0.0  ;;  %v6918_v9 = vadd.f32 %v14945_v47, %v14442_v7 }
 0x530   :  { %v6312_v52 = vpop.f32.mrf.mxu1  ;;  %7291 = vmatprep.mubr.f32.mxu0 %v6994_v13  ;;  %v15022_v14 = vpop.f32.mrf.mxu0  ;;  %v7014_v16 = vmax.f32 %v6910_v43, 0.0  ;;  %v7013_v63 = vmax.f32 %v6909_v10, 0.0  ;;  %v7018_v43 = vmax.f32 %v6914_v59, 0.0  ;;  %v7017_v10 = vmax.f32 %v6913_v53, 0.0 }
 0x531   :  { %v15024_v44 = vadd.f32 %v6312_v52, %v6020_v50  ;;  %v6917_v51 = vadd.f32 %v14983_v3, %v14433_v5  ;;  %v7022_v59 = vmax.f32 %v6918_v9, 0.0  ;;  %v6922_v7 = vadd.f32 %v14945_v47, %v14479_v62 }
 0x532   :  { %v15026_v6 = vpop.f32.mrf.mxu1  ;;  %v6023_v28 = vpop.f32.mrf.mxu0  ;;  %v6921_v5 = vadd.f32 %v14983_v3, %v14460_v27  ;;  %v6926_v62 = vadd.f32 %v14945_v47, %v14500_v18  ;;  %v6925_v27 = vadd.f32 %v14983_v3, %v14488_v0  ;;  %v6930_v18 = vadd.f32 %v14945_v47, %v14534_v42 }
 0x533   :  { %17258 = vst [vmem:[#allocation235_spill] sm:$0xff] %v15024_v44  ;;  %7292 = vmatmul.mubr.f32.gmra.mxu0 %v6993_v11  ;;  %v6024_v36 = vadd.f32 %v6023_v28, %v17259_v23  ;;  %v17261_v11 = vld [vmem:[#allocation276_spill] sm:$0xff]  ;;  %v7021_v53 = vmax.f32 %v6917_v51, 0.0  ;;  %v7026_v9 = vmax.f32 %v6922_v7, 0.0  ;;  %v6929_v0 = vadd.f32 %v14983_v3, %v14515_v34 }
 0x534   :  { %v6316_v46 = vpop.f32.mrf.mxu1  ;;  %7297 = vmatprep.mubr.f32.mxu0 %v6998_v30  ;;  %v15033_v13 = vpop.f32.mrf.mxu0  ;;  %v7025_v51 = vmax.f32 %v6921_v5, 0.0  ;;  %v7030_v7 = vmax.f32 %v6926_v62, 0.0  ;;  %v7029_v5 = vmax.f32 %v6925_v27, 0.0  ;;  %v7034_v62 = vmax.f32 %v6930_v18, 0.0 }
 0x535   :  { %v15035_v50 = vadd.f32 %v6316_v46, %v6024_v36  ;;  %v6934_v42 = vadd.f32 %v14945_v47, %v14558_v29  ;;  %v7033_v27 = vmax.f32 %v6929_v0, 0.0  ;;  %v6933_v34 = vadd.f32 %v14983_v3, %v14546_v32 }
 0x536   :  { %v15037_v52 = vpop.f32.mrf.mxu1  ;;  %v6029_v44 = vpop.f32.mrf.mxu0  ;;  %v6938_v29 = vadd.f32 %v14945_v47, %v14589_v17  ;;  %v6937_v32 = vadd.f32 %v14983_v3, %v14570_v55  ;;  %v6942_v17 = vadd.f32 %v14945_v47, %v14613_v37  ;;  %v6941_v55 = vadd.f32 %v14983_v3, %v14604_v56 }
 0x537   :  { %17260 = vst [vmem:[#allocation101_spill] sm:$0xff] %v15035_v50  ;;  %7298 = vmatmul.mubr.f32.gmra.mxu0 %v6997_v38  ;;  %v6030_v28 = vadd.f32 %v6029_v44, %v17261_v11  ;;  %v17263_v38 = vld [vmem:[#allocation278_spill] sm:$0xff]  ;;  %v7038_v18 = vmax.f32 %v6934_v42, 0.0  ;;  %v7037_v0 = vmax.f32 %v6933_v34, 0.0  ;;  %v6946_v37 = vadd.f32 %v14945_v47, %v14650_v40 }
 0x538   :  { %v6322_v23 = vpop.f32.mrf.mxu1  ;;  %7303 = vmatprep.mubr.f32.mxu0 %v7002_v4  ;;  %v15044_v30 = vpop.f32.mrf.mxu0  ;;  %v7042_v42 = vmax.f32 %v6938_v29, 0.0  ;;  %v7041_v34 = vmax.f32 %v6937_v32, 0.0  ;;  %v7046_v29 = vmax.f32 %v6942_v17, 0.0  ;;  %v7045_v32 = vmax.f32 %v6941_v55, 0.0 }
 0x539   :  { %v15046_v36 = vadd.f32 %v6322_v23, %v6030_v28  ;;  %v6945_v56 = vadd.f32 %v14983_v3, %v14625_v39  ;;  %v7050_v17 = vmax.f32 %v6946_v37, 0.0  ;;  %v6950_v40 = vadd.f32 %v14945_v47, %v14668_v57 }
 0x53a   :  { %v15048_v46 = vpop.f32.mrf.mxu1  ;;  %v6033_v50 = vpop.f32.mrf.mxu0  ;;  %v6949_v39 = vadd.f32 %v14983_v3, %v14659_v25  ;;  %v6954_v57 = vadd.f32 %v14945_v47, %v14705_v26  ;;  %v6953_v25 = vadd.f32 %v14983_v3, %v14683_v31  ;;  %v6958_v26 = vadd.f32 %v14945_v47, %v14732_v61 }
 0x53b   :  { %17262 = vst [vmem:[#allocation29_spill] sm:$0xff] %v15046_v36  ;;  %7304 = vmatmul.mubr.f32.gmra.mxu0 %v7001_v15  ;;  %v6034_v44 = vadd.f32 %v6033_v50, %v17263_v38  ;;  %v17265_v15 = vld [vmem:[#allocation280_spill] sm:$0xff]  ;;  %v7049_v55 = vmax.f32 %v6945_v56, 0.0  ;;  %v7054_v37 = vmax.f32 %v6950_v40, 0.0  ;;  %v6957_v31 = vadd.f32 %v14983_v3, %v14717_v19 }
 0x53c   :  { %v6326_v11 = vpop.f32.mrf.mxu1  ;;  %7309 = vmatprep.mubr.f32.mxu0 %v7006_v21  ;;  %v15055_v4 = vpop.f32.mrf.mxu0  ;;  %v7053_v56 = vmax.f32 %v6949_v39, 0.0  ;;  %v7058_v40 = vmax.f32 %v6954_v57, 0.0  ;;  %v7057_v39 = vmax.f32 %v6953_v25, 0.0  ;;  %v7062_v57 = vmax.f32 %v6958_v26, 0.0 }
 0x53d   :  { %v15057_v28 = vadd.f32 %v6326_v11, %v6034_v44  ;;  %v6962_v61 = vadd.f32 %v14945_v47, %v14775_v58  ;;  %v7061_v25 = vmax.f32 %v6957_v31, 0.0  ;;  %v6961_v19 = vadd.f32 %v14983_v3, %v14750_v8 }
 0x53e   :  { %v15059_v23 = vpop.f32.mrf.mxu1  ;;  %v6039_v36 = vpop.f32.mrf.mxu0  ;;  %v6966_v58 = vadd.f32 %v14945_v47, %v14805_v12  ;;  %v6965_v8 = vadd.f32 %v14983_v3, %v14790_v49 }
 0x53f   :  { %17264 = vst [vmem:[#allocation236_spill] sm:$0xff] %v15057_v28  ;;  %7310 = vmatmul.mubr.f32.gmra.mxu0 %v7005_v20  ;;  %v6040_v50 = vadd.f32 %v6039_v36, %v17265_v15  ;;  %v17267_v20 = vld [vmem:[#allocation282_spill] sm:$0xff]  ;;  %v7066_v26 = vmax.f32 %v6962_v61, 0.0  ;;  %v7065_v31 = vmax.f32 %v6961_v19, 0.0 }
 0x540   :  { %v6332_v38 = vpop.f32.mrf.mxu1  ;;  %7315 = vmatprep.mubr.f32.mxu0 %v7010_v48  ;;  %v15066_v21 = vpop.f32.mrf.mxu0  ;;  %v7070_v61 = vmax.f32 %v6966_v58, 0.0  ;;  %v7069_v19 = vmax.f32 %v6965_v8, 0.0 }
 0x541   :  { %v15068_v44 = vadd.f32 %v6332_v38, %v6040_v50 }
 0x542   :  { %v15070_v11 = vpop.f32.mrf.mxu1  ;;  %v6043_v28 = vpop.f32.mrf.mxu0 }
 0x543   :  { %17266 = vst [vmem:[#allocation102_spill] sm:$0xff] %v15068_v44  ;;  %7316 = vmatmul.mubr.f32.gmra.mxu0 %v7009_v35  ;;  %v6044_v36 = vadd.f32 %v6043_v28, %v17267_v20  ;;  %v17269_v35 = vld [vmem:[#allocation284_spill] sm:$0xff] }
 0x544   :  { %v6336_v15 = vpop.f32.mrf.mxu1  ;;  %7321 = vmatprep.mubr.f32.mxu0 %v7014_v16  ;;  %v15077_v48 = vpop.f32.mrf.mxu0 }
 0x545   :  { %v15079_v50 = vadd.f32 %v6336_v15, %v6044_v36 }
 0x546   :  { %v15081_v38 = vpop.f32.mrf.mxu1  ;;  %v6049_v44 = vpop.f32.mrf.mxu0 }
 0x547   :  { %17268 = vst [vmem:[#allocation30_spill] sm:$0xff] %v15079_v50  ;;  %7322 = vmatmul.mubr.f32.gmra.mxu0 %v7013_v63  ;;  %v6050_v28 = vadd.f32 %v6049_v44, %v17269_v35  ;;  %v17271_v63 = vld [vmem:[#allocation286_spill] sm:$0xff] }
 0x548   :  { %v6342_v20 = vpop.f32.mrf.mxu1  ;;  %7327 = vmatprep.mubr.f32.mxu0 %v7018_v43  ;;  %v15088_v16 = vpop.f32.mrf.mxu0 }
 0x549   :  { %v15090_v36 = vadd.f32 %v6342_v20, %v6050_v28 }
 0x54a   :  { %v15092_v15 = vpop.f32.mrf.mxu1  ;;  %v6053_v50 = vpop.f32.mrf.mxu0 }
 0x54b   :  { %17270 = vst [vmem:[#allocation237_spill] sm:$0xff] %v15090_v36  ;;  %7328 = vmatmul.mubr.f32.gmra.mxu0 %v7017_v10  ;;  %v6054_v44 = vadd.f32 %v6053_v50, %v17271_v63  ;;  %v17273_v10 = vld [vmem:[#allocation288_spill] sm:$0xff] }
 0x54c   :  { %v6346_v35 = vpop.f32.mrf.mxu1  ;;  %7333 = vmatprep.mubr.f32.mxu0 %v7022_v59  ;;  %v15099_v43 = vpop.f32.mrf.mxu0 }
 0x54d   :  { %v15101_v28 = vadd.f32 %v6346_v35, %v6054_v44 }
 0x54e   :  { %v15103_v20 = vpop.f32.mrf.mxu1  ;;  %v6059_v36 = vpop.f32.mrf.mxu0 }
 0x54f   :  { %17272 = vst [vmem:[#allocation104_spill] sm:$0xff] %v15101_v28  ;;  %7334 = vmatmul.mubr.f32.gmra.mxu0 %v7021_v53  ;;  %v6060_v50 = vadd.f32 %v6059_v36, %v17273_v10  ;;  %v17275_v53 = vld [vmem:[#allocation290_spill] sm:$0xff] }
 0x550   :  { %v6352_v63 = vpop.f32.mrf.mxu1  ;;  %7339 = vmatprep.mubr.f32.mxu0 %v7026_v9  ;;  %v15110_v59 = vpop.f32.mrf.mxu0 }
 0x551   :  { %v15112_v44 = vadd.f32 %v6352_v63, %v6060_v50 }
 0x552   :  { %v15114_v35 = vpop.f32.mrf.mxu1  ;;  %v6063_v28 = vpop.f32.mrf.mxu0 }
 0x553   :  { %17274 = vst [vmem:[#allocation31_spill] sm:$0xff] %v15112_v44  ;;  %7340 = vmatmul.mubr.f32.gmra.mxu0 %v7025_v51  ;;  %v6064_v36 = vadd.f32 %v6063_v28, %v17275_v53  ;;  %v17277_v51 = vld [vmem:[#allocation292_spill] sm:$0xff] }
 0x554   :  { %v6356_v10 = vpop.f32.mrf.mxu1  ;;  %7345 = vmatprep.mubr.f32.mxu0 %v7030_v7  ;;  %v15121_v9 = vpop.f32.mrf.mxu0 }
 0x555   :  { %v15123_v50 = vadd.f32 %v6356_v10, %v6064_v36 }
 0x556   :  { %v15125_v63 = vpop.f32.mrf.mxu1  ;;  %v6069_v44 = vpop.f32.mrf.mxu0 }
 0x557   :  { %17276 = vst [vmem:[#allocation238_spill] sm:$0xff] %v15123_v50  ;;  %7346 = vmatmul.mubr.f32.gmra.mxu0 %v7029_v5  ;;  %v6070_v28 = vadd.f32 %v6069_v44, %v17277_v51  ;;  %v17279_v5 = vld [vmem:[#allocation294_spill] sm:$0xff] }
 0x558   :  { %v6362_v53 = vpop.f32.mrf.mxu1  ;;  %7351 = vmatprep.mubr.f32.mxu0 %v7034_v62  ;;  %v15132_v7 = vpop.f32.mrf.mxu0 }
 0x559   :  { %v15134_v36 = vadd.f32 %v6362_v53, %v6070_v28 }
 0x55a   :  { %v15136_v10 = vpop.f32.mrf.mxu1  ;;  %v6073_v50 = vpop.f32.mrf.mxu0 }
 0x55b   :  { %17278 = vst [vmem:[#allocation106_spill] sm:$0xff] %v15134_v36  ;;  %7352 = vmatmul.mubr.f32.gmra.mxu0 %v7033_v27  ;;  %v6074_v44 = vadd.f32 %v6073_v50, %v17279_v5  ;;  %v17281_v27 = vld [vmem:[#allocation296_spill] sm:$0xff] }
 0x55c   :  { %v6366_v51 = vpop.f32.mrf.mxu1  ;;  %7357 = vmatprep.mubr.f32.mxu0 %v7038_v18  ;;  %v15143_v62 = vpop.f32.mrf.mxu0 }
 0x55d   :  { %v15145_v28 = vadd.f32 %v6366_v51, %v6074_v44 }
 0x55e   :  { %v15147_v53 = vpop.f32.mrf.mxu1  ;;  %v6079_v36 = vpop.f32.mrf.mxu0 }
 0x55f   :  { %17280 = vst [vmem:[#allocation32_spill] sm:$0xff] %v15145_v28  ;;  %7358 = vmatmul.mubr.f32.gmra.mxu0 %v7037_v0  ;;  %v6080_v50 = vadd.f32 %v6079_v36, %v17281_v27  ;;  %v17283_v0 = vld [vmem:[#allocation298_spill] sm:$0xff] }
 0x560   :  { %v6372_v5 = vpop.f32.mrf.mxu1  ;;  %7363 = vmatprep.mubr.f32.mxu0 %v7042_v42  ;;  %v15154_v18 = vpop.f32.mrf.mxu0 }
 0x561   :  { %v15156_v44 = vadd.f32 %v6372_v5, %v6080_v50 }
 0x562   :  { %v15158_v51 = vpop.f32.mrf.mxu1  ;;  %v6083_v28 = vpop.f32.mrf.mxu0 }
 0x563   :  { %17282 = vst [vmem:[#allocation239_spill] sm:$0xff] %v15158_v51  ;;  %7364 = vmatmul.mubr.f32.gmra.mxu0 %v7041_v34  ;;  %v6084_v36 = vadd.f32 %v6083_v28, %v17283_v0  ;;  %v17285_v34 = vld [vmem:[#allocation300_spill] sm:$0xff] }
 0x564   :  { %v6376_v27 = vpop.f32.mrf.mxu1  ;;  %7369 = vmatprep.mubr.f32.mxu0 %v7046_v29  ;;  %v15165_v42 = vpop.f32.mrf.mxu0 }
 0x565   :  { %v15167_v50 = vadd.f32 %v6376_v27, %v6084_v36 }
 0x566   :  { %v15169_v5 = vpop.f32.mrf.mxu1  ;;  %v6089_v51 = vpop.f32.mrf.mxu0 }
 0x567   :  { %17284 = vst [vmem:[#allocation108_spill] sm:$0xff] %v15167_v50  ;;  %7370 = vmatmul.mubr.f32.gmra.mxu0 %v7045_v32  ;;  %v6090_v28 = vadd.f32 %v6089_v51, %v17285_v34  ;;  %v17288_v32 = vld [vmem:[#allocation302_spill] sm:$0xff] }
 0x568   :  { %v6382_v0 = vpop.f32.mrf.mxu1  ;;  %7375 = vmatprep.mubr.f32.mxu0 %v7050_v17  ;;  %v15176_v29 = vpop.f32.mrf.mxu0 }
 0x569   :  { %v15178_v36 = vadd.f32 %v6382_v0, %v6090_v28 }
 0x56a   :  { %v15180_v27 = vpop.f32.mrf.mxu1  ;;  %v6093_v50 = vpop.f32.mrf.mxu0 }
 0x56b   :  { %17286 = vst [vmem:[#allocation33_spill] sm:$0xff] %v15178_v36  ;;  %17287 = vst [vmem:[#allocation240_spill] sm:$0xff] %v15180_v27  ;;  %7376 = vmatmul.mubr.f32.gmra.mxu0 %v7049_v55  ;;  %v6094_v51 = vadd.f32 %v6093_v50, %v17288_v32  ;;  %v17291_v55 = vld [vmem:[#allocation304_spill] sm:$0xff] }
 0x56c   :  { %v6386_v34 = vpop.f32.mrf.mxu1  ;;  %7381 = vmatprep.mubr.f32.mxu0 %v7054_v37  ;;  %v15187_v17 = vpop.f32.mrf.mxu0 }
 0x56d   :  { %v15189_v28 = vadd.f32 %v6386_v34, %v6094_v51 }
 0x56e   :  { %v15191_v0 = vpop.f32.mrf.mxu1  ;;  %v6099_v36 = vpop.f32.mrf.mxu0 }
 0x56f   :  { %17289 = vst [vmem:[#allocation110_spill] sm:$0xff] %v15189_v28  ;;  %17290 = vst [vmem:[#allocation34_spill] sm:$0xff] %v15191_v0  ;;  %7382 = vmatmul.mubr.f32.gmra.mxu0 %v7053_v56  ;;  %v6100_v50 = vadd.f32 %v6099_v36, %v17291_v55  ;;  %v17295_v56 = vld [vmem:[#allocation306_spill] sm:$0xff] }
 0x570   :  { %v6392_v32 = vpop.f32.mrf.mxu1  ;;  %7387 = vmatprep.mubr.f32.mxu0 %v7058_v40  ;;  %v15198_v37 = vpop.f32.mrf.mxu0 }
 0x571   :  { %17292 = vst [vmem:[#allocation241_spill] sm:$0xff] %v15198_v37  ;;  %v15200_v51 = vadd.f32 %v6392_v32, %v6100_v50 }
 0x572   :  { %v15202_v34 = vpop.f32.mrf.mxu1  ;;  %v6103_v28 = vpop.f32.mrf.mxu0 }
 0x573   :  { %17293 = vst [vmem:[#allocation112_spill] sm:$0xff] %v15200_v51  ;;  %17294 = vst [vmem:[#allocation35_spill] sm:$0xff] %v15202_v34  ;;  %7388 = vmatmul.mubr.f32.gmra.mxu0 %v7057_v39  ;;  %v6104_v36 = vadd.f32 %v6103_v28, %v17295_v56  ;;  %v17299_v39 = vld [vmem:[#allocation309_spill] sm:$0xff] }
 0x574   :  { %v6396_v55 = vpop.f32.mrf.mxu1  ;;  %7393 = vmatprep.mubr.f32.mxu0 %v7062_v57  ;;  %v15209_v40 = vpop.f32.mrf.mxu0 }
 0x575   :  { %17296 = vst [vmem:[#allocation242_spill] sm:$0xff] %v15209_v40  ;;  %v15211_v50 = vadd.f32 %v6396_v55, %v6104_v36 }
 0x576   :  { %v15213_v32 = vpop.f32.mrf.mxu1  ;;  %v6109_v34 = vpop.f32.mrf.mxu0 }
 0x577   :  { %17297 = vst [vmem:[#allocation114_spill] sm:$0xff] %v15211_v50  ;;  %17298 = vst [vmem:[#allocation36_spill] sm:$0xff] %v15213_v32  ;;  %7394 = vmatmul.mubr.f32.gmra.mxu0 %v7061_v25  ;;  %v6110_v28 = vadd.f32 %v6109_v34, %v17299_v39  ;;  %v17303_v50 = vld [vmem:[#allocation228_spill] sm:$0xff]  ;;  %v17304_v25 = vld [vmem:[#allocation313_spill] sm:$0xff] }
 0x578   :  { %v6402_v56 = vpop.f32.mrf.mxu1  ;;  %7399 = vmatprep.mubr.f32.mxu0 %v7066_v26  ;;  %v15220_v57 = vpop.f32.mrf.mxu0  ;;  %v6970_v12 = vadd.f32 %v14945_v47, %v17303_v50  ;;  %v17305_v26 = vld [vmem:[#allocation86_spill] sm:$0xff] }
 0x579   :  { %17300 = vst [vmem:[#allocation243_spill] sm:$0xff] %v15220_v57  ;;  %v15222_v36 = vadd.f32 %v6402_v56, %v6110_v28  ;;  %v6969_v49 = vadd.f32 %v14983_v3, %v17305_v26 }
 0x57a   :  { %v15224_v55 = vpop.f32.mrf.mxu1  ;;  %v6113_v32 = vpop.f32.mrf.mxu0  ;;  %v7074_v58 = vmax.f32 %v6970_v12, 0.0 }
 0x57b   :  { %17301 = vst [vmem:[#allocation116_spill] sm:$0xff] %v15222_v36  ;;  %17302 = vst [vmem:[#allocation37_spill] sm:$0xff] %v15224_v55  ;;  %7400 = vmatmul.mubr.f32.gmra.mxu0 %v7065_v31  ;;  %v6114_v34 = vadd.f32 %v6113_v32, %v17304_v25  ;;  %v17309_v36 = vld [vmem:[#allocation90_spill] sm:$0xff]  ;;  %v17310_v31 = vld [vmem:[#allocation317_spill] sm:$0xff]  ;;  %v7073_v8 = vmax.f32 %v6969_v49, 0.0 }
 0x57c   :  { %v6406_v39 = vpop.f32.mrf.mxu1  ;;  %7405 = vmatprep.mubr.f32.mxu0 %v7070_v61  ;;  %v15231_v51 = vpop.f32.mrf.mxu0  ;;  %v6974_v50 = vadd.f32 %v14945_v47, %v17309_v36  ;;  %v17311_v61 = vld [vmem:[#allocation22_spill] sm:$0xff]  ;;  %v6978_v36 = vadd.f32 %v14945_v47, %v14914_v1  ;;  %v6982_v1 = vadd.f32 %v14945_v47, %v14938_v54  ;;  %v6986_v54 = vadd.f32 %v14945_v47, %v14973_v24 }
 0x57d   :  { %17306 = vst [vmem:[#allocation244_spill] sm:$0xff] %v15231_v51  ;;  %v15233_v28 = vadd.f32 %v6406_v39, %v6114_v34  ;;  %v6973_v26 = vadd.f32 %v14983_v3, %v17311_v61  ;;  %v17313_v34 = vld [vmem:[#allocation319_spill] sm:$0xff]  ;;  %v17316_v61 = vld [vmem:[#allocation92_spill] sm:$0xff] }
 0x57e   :  { %v15235_v56 = vpop.f32.mrf.mxu1  ;;  %v6119_v55 = vpop.f32.mrf.mxu0  ;;  %v7078_v12 = vmax.f32 %v6974_v50, 0.0  ;;  %v7082_v40 = vmax.f32 %v6978_v36, 0.0 }
 0x57f   :  { %17307 = vst [vmem:[#allocation118_spill] sm:$0xff] %v15233_v28  ;;  %17308 = vst [vmem:[#allocation38_spill] sm:$0xff] %v15235_v56  ;;  %7406 = vmatmul.mubr.f32.gmra.mxu0 %v7069_v19  ;;  %v6120_v32 = vadd.f32 %v6119_v55, %v17310_v31  ;;  %v17315_v55 = vld [vmem:[#allocation320_spill] sm:$0xff]  ;;  %v7077_v31 = vmax.f32 %v6973_v26, 0.0 }
 0x580   :  { %v6412_v25 = vpop.f32.mrf.mxu1  ;;  %7411 = vmatprep.mubr.f32.mxu0 %v7074_v58  ;;  %v6121_v57 = vpop.f32.mrf.mxu0  ;;  %v17322_v26 = vld [vmem:[#allocation212_spill] sm:$0xff] }
 0x581   :  { %v15242_v51 = vadd.f32 %v6412_v25, %v6120_v32  ;;  %v6122_v39 = vadd.f32 %v6121_v57, %v17313_v34  ;;  %v6977_v32 = vadd.f32 %v14983_v3, %v17316_v61  ;;  %v17318_v57 = vld [vmem:[#allocation321_spill] sm:$0xff] }
 0x582   :  { %v6414_v28 = vpop.f32.mrf.mxu1  ;;  %v6123_v56 = vpop.f32.mrf.mxu0 }
 0x583   :  { %17312 = vst [vmem:[#allocation245_spill] sm:$0xff] %v15242_v51  ;;  %7412 = vmatmul.mubr.f32.gmra.mxu0 %v7073_v8  ;;  %v15247_v19 = vadd.f32 %v6414_v28, %v6122_v39  ;;  %v6124_v58 = vadd.f32 %v6123_v56, %v17315_v55  ;;  %v17319_v8 = vld [vmem:[#allocation265_spill] sm:$0xff]  ;;  %v17320_v56 = vld [vmem:[#allocation26_spill] sm:$0xff] }
 0x584   :  { %v6416_v49 = vpop.f32.mrf.mxu1  ;;  %7417 = vmatprep.mubr.f32.mxu0 %v7078_v12  ;;  %v6125_v25 = vpop.f32.mrf.mxu0  ;;  %v6002_v39 = vadd.f32 %v17320_v56, %v17319_v8 }
 0x585   :  { %17314 = vst [vmem:[#allocation120_spill] sm:$0xff] %v15247_v19  ;;  %v15252_v51 = vadd.f32 %v6416_v49, %v6124_v58  ;;  %v6126_v50 = vadd.f32 %v6125_v25, %v17318_v57  ;;  %v7081_v58 = vmax.f32 %v6977_v32, 0.0  ;;  %v17323_v49 = vld [vmem:[#allocation94_spill] sm:$0xff]  ;;  %v17325_v19 = vld [vmem:[#allocation213_spill] sm:$0xff] }
 0x586   :  { %v6418_v34 = vpop.f32.mrf.mxu1  ;;  %v6129_v28 = vpop.f32.mrf.mxu0  ;;  %v6981_v25 = vadd.f32 %v14983_v3, %v17323_v49  ;;  %v17324_v57 = vld [vmem:[#allocation230_spill] sm:$0xff]  ;;  %v6295_v32 = vadd.f32 %v14977_v33, %v6002_v39 }
 0x587   :  { %17317 = vst [vmem:[#allocation39_spill] sm:$0xff] %v15252_v51  ;;  %7418 = vmatmul.mubr.f32.gmra.mxu0 %v7077_v31  ;;  %v15259_v12 = vadd.f32 %v6418_v34, %v6126_v50  ;;  %v6130_v55 = vadd.f32 %v6129_v28, %v17322_v26  ;;  %v6875_v36 = vsub.s32 2, %v17324_v57  ;;  %v7086_v50 = vmax.f32 %v6982_v1, 0.0  ;;  %v17326_v34 = vld [vmem:[#allocation267_spill] sm:$0xff] }
 0x588   :  { %v6422_v61 = vpop.f32.mrf.mxu1  ;;  %7423 = vmatprep.mubr.f32.mxu0 %v7082_v40  ;;  %v6131_v51 = vpop.f32.mrf.mxu0  ;;  %v6006_v28 = vadd.f32 %v14985_v2, %v17326_v34  ;;  %v6879_v40 = vsub.s32 3, %v17324_v57  ;;  %v7085_v24 = vmax.f32 %v6981_v25, 0.0  ;;  %v17335_v34 = vld [vmem:[#allocation27_spill] sm:$0xff] }
 0x589   :  { %17321 = vst [vmem:[#allocation246_spill] sm:$0xff] %v15259_v12  ;;  %v6423_v31 = vadd.f32 %v6422_v61, %v6130_v55  ;;  %v6132_v37 = vadd.f32 %v6131_v51, %v17325_v19  ;;  %v17327_v12 = vld [vmem:[#allocation59_spill] sm:$0xff]  ;;  %v17328_v51 = vld [vmem:[#allocation96_spill] sm:$0xff]  ;;  %v15277_v1 = vrot.slane %v14933_v60, %v6875_v36  ;;  %v7090_v55 = vmax.f32 %v6986_v54, 0.0  ;;  %v17334_v36 = vld [vmem:[#allocation269_spill] sm:$0xff] }
 0x58a   :  { %v6424_v8 = vpop.f32.mrf.mxu1  ;;  %v6133_v56 = vpop.f32.mrf.mxu0  ;;  %v6985_v19 = vadd.f32 %v14983_v3, %v17328_v51  ;;  %v17329_v61 = vld [vmem:[#allocation60_spill] sm:$0xff]  ;;  %v15285_v3 = vrot.slane %v14933_v60, %v6879_v40  ;;  %v17336_v54 = vld [vmem:[#allocation62_spill] sm:$0xff]  ;;  %v17337_v51 = vld [vmem:[#allocation155_spill] sm:$0xff] }
 0x58b   :  { %7424 = vmatmul.mubr.f32.gmra.mxu0 %v7081_v58  ;;  %v6557_v26 = vmax.f32 %v14975_v41, %v6423_v31  ;;  %v6425_v49 = vadd.f32 %v6424_v8, %v6132_v37  ;;  %v6134_v0 = vadd.f32 %v6133_v56, %v17327_v12  ;;  %v17330_v58 = vld [vmem:[#allocation154_spill] sm:$0xff]  ;;  %v17332_v37 = vld [vmem:[#allocation7_spill] sm:$0xff]  ;;  %v6012_v56 = vadd.f32 %v17335_v34, %v17334_v36  ;;  %v17341_v60 = vld [vmem:[#allocation64_spill] sm:$0xff] }
 0x58c   :  { %v6426_v47 = vpop.f32.mrf.mxu1  ;;  %7429 = vmatprep.mubr.f32.mxu0 %v7086_v50  ;;  %v6135_v2 = vpop.f32.mrf.mxu0  ;;  %v17331_v57 = vmax.f32 %v17329_v61, %v17330_v58  ;;  %v17333_v8 = vld [vmem:[#allocation98_spill] sm:$0xff]  ;;  %v17338_v27 = vmax.f32 %v17336_v54, %v17337_v51  ;;  %v17342_v40 = vld [vmem:[#allocation156_spill] sm:$0xff]  ;;  %v17344_v36 = vld [vmem:[#allocation61_spill] sm:$0xff] }
 0x58d   :  { %v6558_v39 = vmax.f32 %v6295_v32, %v6425_v49  ;;  %v6427_v41 = vadd.f32 %v6426_v47, %v6134_v0  ;;  %v6136_v31 = vadd.f32 %v6135_v2, %v17332_v37  ;;  %v6299_v50 = vadd.f32 %v17333_v8, %v6006_v28  ;;  %v17340_v2 = vld [vmem:[#allocation214_spill] sm:$0xff] }
 0x58e   :  { %v6761_v33 = vmax.f32 %v17331_v57, %v6557_v26  ;;  %v6428_v12 = vpop.f32.mrf.mxu1  ;;  %v6139_v25 = vpop.f32.mrf.mxu0  ;;  %v17339_v26 = vld [vmem:[#allocation233_spill] sm:$0xff]  ;;  %v7089_v47 = vmax.f32 %v6985_v19, 0.0  ;;  %v17343_v57 = vmax.f32 %v17341_v60, %v17342_v40  ;;  %v17351_v60 = vld [vmem:[#allocation234_spill] sm:$0xff] }
 0x58f   :  { %7430 = vmatmul.mubr.f32.gmra.mxu0 %v7085_v24  ;;  %v6762_v61 = vmax.f32 %v17338_v27, %v6558_v39  ;;  %v6565_v32 = vmax.f32 %v17339_v26, %v6427_v41  ;;  %v6429_v0 = vadd.f32 %v6428_v12, %v6136_v31  ;;  %v6140_v28 = vadd.f32 %v6139_v25, %v17340_v2  ;;  %v17345_v27 = vld [vmem:[#allocation271_spill] sm:$0xff]  ;;  %v17347_v25 = vld [vmem:[#allocation66_spill] sm:$0xff] }
 0x590   :  { %v6432_v49 = vpop.f32.mrf.mxu1  ;;  %7435 = vmatprep.mubr.f32.mxu0 %v7090_v55  ;;  %v6141_v58 = vpop.f32.mrf.mxu0  ;;  %v6887_v24 = vadd.f32 %v15277_v1, %v6761_v33  ;;  %v6016_v39 = vadd.f32 %v15011_v45, %v17345_v27  ;;  %v17346_v55 = vld [vmem:[#allocation100_spill] sm:$0xff]  ;;  %v17348_v33 = vld [vmem:[#allocation157_spill] sm:$0xff] }
 0x591   :  { %v6765_v37 = vmax.f32 %v17343_v57, %v6565_v32  ;;  %v6566_v8 = vmax.f32 %v6299_v50, %v6429_v0  ;;  %v6142_v34 = vadd.f32 %v6141_v58, %v17344_v36  ;;  %v6433_v41 = vadd.f32 %v6432_v49, %v6140_v28  ;;  %v17350_v32 = vld [vmem:[#allocation8_spill] sm:$0xff] }
 0x592   :  { %v6434_v54 = vpop.f32.mrf.mxu1  ;;  %v6143_v31 = vpop.f32.mrf.mxu0  ;;  %v6888_v19 = vadd.f32 %v15285_v3, %v6762_v61  ;;  %v6305_v12 = vadd.f32 %v17346_v55, %v6012_v56  ;;  %v17349_v51 = vmax.f32 %v17347_v25, %v17348_v33  ;;  %v6991_v28 = vmax.f32 %v6887_v24, 0.0  ;;  %v17352_v61 = vld [vmem:[#allocation215_spill] sm:$0xff]  ;;  %v17353_v55 = vld [vmem:[#allocation273_spill] sm:$0xff]  ;;  %v17358_v24 = vld [vmem:[#allocation194_spill] sm:$0xff] }
 0x593   :  { %7436 = vmatmul.mubr.f32.gmra.mxu0 %v7089_v47  ;;  %v6435_v2 = vadd.f32 %v6434_v54, %v6142_v34  ;;  %v6144_v50 = vadd.f32 %v6143_v31, %v17350_v32  ;;  %v6891_v58 = vadd.f32 %v15277_v1, %v6765_v37  ;;  %v6573_v40 = vmax.f32 %v17351_v60, %v6433_v41  ;;  %v17354_v34 = vld [vmem:[#allocation68_spill] sm:$0xff]  ;;  %v17355_v54 = vld [vmem:[#allocation158_spill] sm:$0xff] }
 0x594   :  { %v6766_v26 = vmax.f32 %v17349_v51, %v6566_v8  ;;  %v6436_v0 = vpop.f32.mrf.mxu1  ;;  %v6145_v45 = vpop.f32.mrf.mxu0  ;;  %v6992_v49 = vmax.f32 %v6888_v19, 0.0  ;;  %v6309_v27 = vadd.f32 %v15015_v22, %v6016_v39  ;;  %v6022_v8 = vadd.f32 %v15022_v14, %v17353_v55  ;;  %v17357_v19 = vld [vmem:[#allocation70_spill] sm:$0xff]  ;;  %v17360_v51 = vld [vmem:[#allocation28_spill] sm:$0xff] }
 0x595   :  { %v6574_v47 = vmax.f32 %v6305_v12, %v6435_v2  ;;  %v6437_v57 = vadd.f32 %v6436_v0, %v6144_v50  ;;  %v6146_v36 = vadd.f32 %v6145_v45, %v17352_v61  ;;  %v17356_v31 = vmax.f32 %v17354_v34, %v17355_v54  ;;  %v17361_v50 = vld [vmem:[#allocation63_spill] sm:$0xff]  ;;  %v17362_v45 = vld [vmem:[#allocation72_spill] sm:$0xff]  ;;  %v17365_v54 = vld [vmem:[#allocation9_spill] sm:$0xff] }
 0x596   :  { %v6438_v56 = vpop.f32.mrf.mxu1  ;;  %7506 = vmatprep.mubr.f32.mxu1 %v6992_v49  ;;  %v6149_v37 = vpop.f32.mrf.mxu0  ;;  %v6892_v41 = vadd.f32 %v15285_v3, %v6766_v26  ;;  %v17359_v12 = vmax.f32 %v17357_v19, %v17358_v24  ;;  %v6995_v14 = vmax.f32 %v6891_v58, 0.0  ;;  %v17363_v49 = vld [vmem:[#allocation195_spill] sm:$0xff] }
 0x597   :  { %v6769_v25 = vmax.f32 %v17356_v31, %v6573_v40  ;;  %v6581_v2 = vmax.f32 %v17360_v51, %v6437_v57  ;;  %v6439_v32 = vadd.f32 %v6438_v56, %v6146_v36  ;;  %v6150_v22 = vadd.f32 %v6149_v37, %v17361_v50  ;;  %7507 = vmatmul.mubr.f32.vlgmr.msra.gmra.mxu1 %v6991_v28  ;;  %v17366_v58 = vld [vmem:[#allocation275_spill] sm:$0xff] }
 0x598   :  { %v6770_v33 = vmax.f32 %v17359_v12, %v6574_v47  ;;  %v6442_v39 = vpop.f32.mrf.mxu1  ;;  %v6151_v60 = vpop.f32.mrf.mxu0  ;;  %v6996_v40 = vmax.f32 %v6892_v41, 0.0  ;;  %v17364_v61 = vmax.f32 %v17362_v45, %v17363_v49  ;;  %v6315_v57 = vadd.f32 %v15026_v6, %v6022_v8  ;;  %v17368_v37 = vld [vmem:[#allocation159_spill] sm:$0xff]  ;;  %v17375_v45 = vld [vmem:[#allocation65_spill] sm:$0xff] }
 0x599   :  { %v6895_v0 = vadd.f32 %v15277_v1, %v6769_v25  ;;  %v6582_v55 = vmax.f32 %v6309_v27, %v6439_v32  ;;  %v6443_v34 = vadd.f32 %v6442_v39, %v6150_v22  ;;  %v6152_v47 = vadd.f32 %v6151_v60, %v17365_v54  ;;  %v17367_v25 = vld [vmem:[#allocation74_spill] sm:$0xff]  ;;  %v17370_v24 = vld [vmem:[#allocation235_spill] sm:$0xff]  ;;  %v17371_v32 = vld [vmem:[#allocation216_spill] sm:$0xff] }
 0x59a   :  { %v6773_v26 = vmax.f32 %v17364_v61, %v6581_v2  ;;  %v6444_v31 = vpop.f32.mrf.mxu1  ;;  %7512 = vmatprep.mubr.f32.mxu1 %v6996_v40  ;;  %v6153_v36 = vpop.f32.mrf.mxu0  ;;  %v6896_v28 = vadd.f32 %v15285_v3, %v6770_v33  ;;  %v6026_v56 = vadd.f32 %v15033_v13, %v17366_v58  ;;  %v17369_v41 = vmax.f32 %v17367_v25, %v17368_v37  ;;  %v17372_v33 = vld [vmem:[#allocation76_spill] sm:$0xff]  ;;  %v17380_v25 = vld [vmem:[#allocation10_spill] sm:$0xff] }
 0x59b   :  { %v6589_v12 = vmax.f32 %v17370_v24, %v6443_v34  ;;  %v6445_v27 = vadd.f32 %v6444_v31, %v6152_v47  ;;  %7513 = vmatmul.mubr.f32.gmra.mxu1 %v6995_v14  ;;  %v6999_v2 = vmax.f32 %v6895_v0, 0.0  ;;  %v6154_v50 = vadd.f32 %v6153_v36, %v17371_v32  ;;  %v17373_v39 = vld [vmem:[#allocation160_spill] sm:$0xff]  ;;  %v17377_v31 = vld [vmem:[#allocation190_spill] sm:$0xff]  ;;  %v17381_v24 = vld [vmem:[#allocation101_spill] sm:$0xff] }
 0x59c   :  { %v6774_v19 = vmax.f32 %v17369_v41, %v6582_v55  ;;  %v6446_v51 = vpop.f32.mrf.mxu1  ;;  %v6155_v6 = vpop.f32.mrf.mxu0  ;;  %v7000_v8 = vmax.f32 %v6896_v28, 0.0  ;;  %v6899_v22 = vadd.f32 %v15277_v1, %v6773_v26  ;;  %v17374_v60 = vmax.f32 %v17372_v33, %v17373_v39  ;;  %v17376_v55 = vld [vmem:[#allocation277_spill] sm:$0xff]  ;;  %v17378_v26 = vld [vmem:[#allocation196_spill] sm:$0xff]  ;;  %v17384_v39 = vld [vmem:[#allocation79_spill] sm:$0xff] }
 0x59d   :  { %v6590_v40 = vmax.f32 %v6315_v57, %v6445_v27  ;;  %v6156_v49 = vadd.f32 %v6155_v6, %v17375_v45  ;;  %v6032_v34 = vadd.f32 %v15044_v30, %v17376_v55  ;;  %v6447_v54 = vadd.f32 %v6446_v51, %v6154_v50  ;;  %v17382_v50 = vld [vmem:[#allocation217_spill] sm:$0xff] }
 0x59e   :  { %v6777_v13 = vmax.f32 %v17374_v60, %v6589_v12  ;;  %v6448_v61 = vpop.f32.mrf.mxu1  ;;  %7518 = vmatprep.mubr.f32.mxu1 %v7000_v8  ;;  %v6159_v14 = vpop.f32.mrf.mxu0  ;;  %v6900_v0 = vadd.f32 %v15285_v3, %v6774_v19  ;;  %v6319_v47 = vadd.f32 %v15037_v52, %v6026_v56  ;;  %v17379_v36 = vmax.f32 %v17377_v31, %v17378_v26  ;;  %v17383_v8 = vld [vmem:[#allocation279_spill] sm:$0xff]  ;;  %v17385_v60 = vld [vmem:[#allocation197_spill] sm:$0xff] }
 0x59f   :  { %v6449_v58 = vadd.f32 %v6448_v61, %v6156_v49  ;;  %v6160_v57 = vadd.f32 %v6159_v14, %v17380_v25  ;;  %7519 = vmatmul.mubr.f32.gmra.mxu1 %v6999_v2  ;;  %v6597_v30 = vmax.f32 %v17381_v24, %v6447_v54  ;;  %v7003_v51 = vmax.f32 %v6899_v22, 0.0  ;;  %v17387_v49 = vld [vmem:[#allocation81_spill] sm:$0xff]  ;;  %v17388_v22 = vld [vmem:[#allocation198_spill] sm:$0xff]  ;;  %v17393_v25 = vld [vmem:[#allocation199_spill] sm:$0xff] }
 0x5a0   :  { %v6778_v28 = vmax.f32 %v17379_v36, %v6590_v40  ;;  %v6452_v37 = vpop.f32.mrf.mxu1  ;;  %v6903_v41 = vadd.f32 %v15277_v1, %v6777_v13  ;;  %v6161_v12 = vpop.f32.mrf.mxu0  ;;  %v7004_v27 = vmax.f32 %v6900_v0, 0.0  ;;  %v6325_v6 = vadd.f32 %v15048_v46, %v6032_v34  ;;  %v17390_v54 = vld [vmem:[#allocation29_spill] sm:$0xff] }
 0x5a1   :  { %v6598_v32 = vmax.f32 %v6319_v47, %v6449_v58  ;;  %v6453_v19 = vadd.f32 %v6452_v37, %v6160_v57  ;;  %v6162_v52 = vadd.f32 %v6161_v12, %v17382_v50  ;;  %v6036_v33 = vadd.f32 %v15055_v4, %v17383_v8  ;;  %v17391_v47 = vld [vmem:[#allocation67_spill] sm:$0xff] }
 0x5a2   :  { %v6454_v56 = vpop.f32.mrf.mxu1  ;;  %v17386_v2 = vmax.f32 %v17384_v39, %v17385_v60  ;;  %7524 = vmatprep.mubr.f32.mxu1 %v7004_v27  ;;  %v6163_v13 = vpop.f32.mrf.mxu0  ;;  %v6904_v45 = vadd.f32 %v15285_v3, %v6778_v28  ;;  %v17389_v61 = vmax.f32 %v17387_v49, %v17388_v22  ;;  %v7007_v4 = vmax.f32 %v6903_v41, 0.0  ;;  %v17392_v58 = vld [vmem:[#allocation83_spill] sm:$0xff]  ;;  %v17396_v41 = vld [vmem:[#allocation281_spill] sm:$0xff]  ;;  %v17400_v60 = vld [vmem:[#allocation236_spill] sm:$0xff] }
 0x5a3   :  { %v6605_v14 = vmax.f32 %v17390_v54, %v6453_v19  ;;  %v6455_v0 = vadd.f32 %v6454_v56, %v6162_v52  ;;  %v6164_v46 = vadd.f32 %v6163_v13, %v17391_v47  ;;  %7525 = vmatmul.mubr.f32.gmra.mxu1 %v7003_v51  ;;  %v17394_v57 = vmax.f32 %v17392_v58, %v17393_v25  ;;  %v17397_v52 = vld [vmem:[#allocation85_spill] sm:$0xff]  ;;  %v17398_v56 = vld [vmem:[#allocation200_spill] sm:$0xff] }
 0x5a4   :  { %v6781_v40 = vmax.f32 %v17386_v2, %v6597_v30  ;;  %v6782_v55 = vmax.f32 %v17389_v61, %v6598_v32  ;;  %v6456_v34 = vpop.f32.mrf.mxu1  ;;  %v6165_v26 = vpop.f32.mrf.mxu0  ;;  %v7008_v36 = vmax.f32 %v6904_v45, 0.0  ;;  %v17395_v30 = vld [vmem:[#allocation11_spill] sm:$0xff]  ;;  %v6329_v32 = vadd.f32 %v15059_v23, %v6036_v33  ;;  %v17401_v45 = vld [vmem:[#allocation218_spill] sm:$0xff]  ;;  %v17407_v25 = vld [vmem:[#allocation89_spill] sm:$0xff] }
 0x5a5   :  { %v6785_v28 = vmax.f32 %v17394_v57, %v6605_v14  ;;  %v6606_v37 = vmax.f32 %v6325_v6, %v6455_v0  ;;  %v6457_v24 = vadd.f32 %v6456_v34, %v6164_v46  ;;  %v6166_v12 = vadd.f32 %v6165_v26, %v17395_v30  ;;  %v17402_v61 = vld [vmem:[#allocation87_spill] sm:$0xff]  ;;  %v17405_v0 = vld [vmem:[#allocation69_spill] sm:$0xff]  ;;  %v17408_v57 = vld [vmem:[#allocation202_spill] sm:$0xff] }
 0x5a6   :  { %v6907_v31 = vadd.f32 %v15277_v1, %v6781_v40  ;;  %v6458_v27 = vpop.f32.mrf.mxu1  ;;  %7530 = vmatprep.mubr.f32.mxu1 %v7008_v36  ;;  %v6169_v19 = vpop.f32.mrf.mxu0  ;;  %v6908_v51 = vadd.f32 %v15285_v3, %v6782_v55  ;;  %v6042_v50 = vadd.f32 %v15066_v21, %v17396_v41  ;;  %v17399_v8 = vmax.f32 %v17397_v52, %v17398_v56  ;;  %v17403_v55 = vld [vmem:[#allocation201_spill] sm:$0xff]  ;;  %v17406_v34 = vld [vmem:[#allocation283_spill] sm:$0xff]  ;;  %v17410_v30 = vld [vmem:[#allocation12_spill] sm:$0xff] }
 0x5a7   :  { %v6613_v2 = vmax.f32 %v17400_v60, %v6457_v24  ;;  %v6459_v6 = vadd.f32 %v6458_v27, %v6166_v12  ;;  %7531 = vmatmul.mubr.f32.gmra.mxu1 %v7007_v4  ;;  %v6170_v49 = vadd.f32 %v6169_v19, %v17401_v45  ;;  %v6911_v22 = vadd.f32 %v15277_v1, %v6785_v28  ;;  %v17411_v19 = vld [vmem:[#allocation102_spill] sm:$0xff]  ;;  %v17415_v45 = vld [vmem:[#allocation203_spill] sm:$0xff] }
 0x5a8   :  { %v6786_v39 = vmax.f32 %v17399_v8, %v6606_v37  ;;  %v6462_v40 = vpop.f32.mrf.mxu1  ;;  %v7011_v13 = vmax.f32 %v6907_v31, 0.0  ;;  %v6171_v23 = vpop.f32.mrf.mxu0  ;;  %v7012_v33 = vmax.f32 %v6908_v51, 0.0  ;;  %v17404_v54 = vmax.f32 %v17402_v61, %v17403_v55  ;;  %v17417_v61 = vld [vmem:[#allocation93_spill] sm:$0xff] }
 0x5a9   :  { %v6614_v14 = vmax.f32 %v6329_v32, %v6459_v6  ;;  %v6172_v47 = vadd.f32 %v6171_v23, %v17405_v0  ;;  %v6046_v26 = vadd.f32 %v15077_v48, %v17406_v34  ;;  %v6463_v36 = vadd.f32 %v6462_v40, %v6170_v49  ;;  %v17414_v40 = vld [vmem:[#allocation91_spill] sm:$0xff] }
 0x5aa   :  { %v6789_v21 = vmax.f32 %v17404_v54, %v6613_v2  ;;  %v6464_v46 = vpop.f32.mrf.mxu1  ;;  %7536 = vmatprep.mubr.f32.mxu1 %v7012_v33  ;;  %v6173_v4 = vpop.f32.mrf.mxu0  ;;  %v6912_v31 = vadd.f32 %v15285_v3, %v6786_v39  ;;  %v6335_v58 = vadd.f32 %v15070_v11, %v6042_v50  ;;  %v17409_v28 = vmax.f32 %v17407_v25, %v17408_v57  ;;  %v17412_v39 = vld [vmem:[#allocation219_spill] sm:$0xff]  ;;  %v17413_v2 = vld [vmem:[#allocation285_spill] sm:$0xff] }
 0x5ab   :  { %v6465_v24 = vadd.f32 %v6464_v46, %v6172_v47  ;;  %v6174_v12 = vadd.f32 %v6173_v4, %v17410_v30  ;;  %7537 = vmatmul.mubr.f32.gmra.mxu1 %v7011_v13  ;;  %v6621_v48 = vmax.f32 %v17411_v19, %v6463_v36  ;;  %v7015_v52 = vmax.f32 %v6911_v22, 0.0  ;;  %v17418_v22 = vld [vmem:[#allocation161_spill] sm:$0xff]  ;;  %v17421_v47 = vld [vmem:[#allocation71_spill] sm:$0xff] }
 0x5ac   :  { %v6790_v37 = vmax.f32 %v17409_v28, %v6614_v14  ;;  %v6466_v27 = vpop.f32.mrf.mxu1  ;;  %v6915_v32 = vadd.f32 %v15277_v1, %v6789_v21  ;;  %v6175_v51 = vpop.f32.mrf.mxu0  ;;  %v7016_v41 = vmax.f32 %v6912_v31, 0.0  ;;  %v6339_v60 = vadd.f32 %v15081_v38, %v6046_v26  ;;  %v17420_v21 = vld [vmem:[#allocation30_spill] sm:$0xff]  ;;  %v17422_v4 = vld [vmem:[#allocation95_spill] sm:$0xff] }
 0x5ad   :  { %v6622_v56 = vmax.f32 %v6335_v58, %v6465_v24  ;;  %v6467_v8 = vadd.f32 %v6466_v27, %v6174_v12  ;;  %v6176_v11 = vadd.f32 %v6175_v51, %v17412_v39  ;;  %v6052_v6 = vadd.f32 %v15088_v16, %v17413_v2  ;;  %v17423_v31 = vld [vmem:[#allocation162_spill] sm:$0xff]  ;;  %v17427_v51 = vld [vmem:[#allocation97_spill] sm:$0xff]  ;;  %v17431_v2 = vld [vmem:[#allocation220_spill] sm:$0xff] }
 0x5ae   :  { %v6468_v50 = vpop.f32.mrf.mxu1  ;;  %v17416_v13 = vmax.f32 %v17414_v40, %v17415_v45  ;;  %7542 = vmatprep.mubr.f32.mxu1 %v7016_v41  ;;  %v6179_v23 = vpop.f32.mrf.mxu0  ;;  %v6916_v33 = vadd.f32 %v15285_v3, %v6790_v37  ;;  %v17419_v55 = vmax.f32 %v17417_v61, %v17418_v22  ;;  %v7019_v16 = vmax.f32 %v6915_v32, 0.0  ;;  %v17425_v37 = vld [vmem:[#allocation13_spill] sm:$0xff]  ;;  %v17426_v32 = vld [vmem:[#allocation287_spill] sm:$0xff] }
 0x5af   :  { %v6629_v14 = vmax.f32 %v17420_v21, %v6467_v8  ;;  %v6469_v0 = vadd.f32 %v6468_v50, %v6176_v11  ;;  %v6180_v38 = vadd.f32 %v6179_v23, %v17421_v47  ;;  %7543 = vmatmul.mubr.f32.gmra.mxu1 %v7015_v52  ;;  %v17424_v58 = vmax.f32 %v17422_v4, %v17423_v31  ;;  %v17428_v41 = vld [vmem:[#allocation163_spill] sm:$0xff]  ;;  %v17430_v8 = vld [vmem:[#allocation237_spill] sm:$0xff]  ;;  %v17440_v4 = vld [vmem:[#allocation14_spill] sm:$0xff] }
 0x5b0   :  { %v6793_v49 = vmax.f32 %v17416_v13, %v6621_v48  ;;  %v6794_v54 = vmax.f32 %v17419_v55, %v6622_v56  ;;  %v6472_v46 = vpop.f32.mrf.mxu1  ;;  %v6181_v26 = vpop.f32.mrf.mxu0  ;;  %v7020_v36 = vmax.f32 %v6916_v33, 0.0  ;;  %v6345_v12 = vadd.f32 %v15092_v15, %v6052_v6  ;;  %v17432_v13 = vld [vmem:[#allocation99_spill] sm:$0xff]  ;;  %v17435_v61 = vld [vmem:[#allocation73_spill] sm:$0xff] }
 0x5b1   :  { %v6797_v25 = vmax.f32 %v17424_v58, %v6629_v14  ;;  %v6630_v57 = vmax.f32 %v6339_v60, %v6469_v0  ;;  %v6473_v28 = vadd.f32 %v6472_v46, %v6180_v38  ;;  %v6182_v24 = vadd.f32 %v6181_v26, %v17425_v37  ;;  %v17437_v46 = vld [vmem:[#allocation191_spill] sm:$0xff] }
 0x5b2   :  { %v6919_v34 = vadd.f32 %v15277_v1, %v6793_v49  ;;  %v6474_v30 = vpop.f32.mrf.mxu1  ;;  %7548 = vmatprep.mubr.f32.mxu1 %v7020_v36  ;;  %v6183_v27 = vpop.f32.mrf.mxu0  ;;  %v6920_v19 = vadd.f32 %v15285_v3, %v6794_v54  ;;  %v6056_v48 = vadd.f32 %v15099_v43, %v17426_v32  ;;  %v17429_v52 = vmax.f32 %v17427_v51, %v17428_v41  ;;  %v17433_v49 = vld [vmem:[#allocation164_spill] sm:$0xff]  ;;  %v17436_v54 = vld [vmem:[#allocation289_spill] sm:$0xff] }
 0x5b3   :  { %v6637_v39 = vmax.f32 %v17430_v8, %v6473_v28  ;;  %v6475_v11 = vadd.f32 %v6474_v30, %v6182_v24  ;;  %7549 = vmatmul.mubr.f32.gmra.mxu1 %v7019_v16  ;;  %v6184_v40 = vadd.f32 %v6183_v27, %v17431_v2  ;;  %v6923_v45 = vadd.f32 %v15277_v1, %v6797_v25  ;;  %v17438_v16 = vld [vmem:[#allocation204_spill] sm:$0xff]  ;;  %v17442_v27 = vld [vmem:[#allocation221_spill] sm:$0xff] }
 0x5b4   :  { %v6798_v56 = vmax.f32 %v17429_v52, %v6630_v57  ;;  %v6476_v50 = vpop.f32.mrf.mxu1  ;;  %v7023_v60 = vmax.f32 %v6919_v34, 0.0  ;;  %v6185_v15 = vpop.f32.mrf.mxu0  ;;  %v7024_v6 = vmax.f32 %v6920_v19, 0.0  ;;  %v17434_v23 = vmax.f32 %v17432_v13, %v17433_v49  ;;  %v17441_v57 = vld [vmem:[#allocation104_spill] sm:$0xff]  ;;  %v17445_v52 = vld [vmem:[#allocation205_spill] sm:$0xff]  ;;  %v17451_v13 = vld [vmem:[#allocation75_spill] sm:$0xff] }
 0x5b5   :  { %v6638_v33 = vmax.f32 %v6345_v12, %v6475_v11  ;;  %v6186_v22 = vadd.f32 %v6185_v15, %v17435_v61  ;;  %v6062_v21 = vadd.f32 %v15110_v59, %v17436_v54  ;;  %v6477_v14 = vadd.f32 %v6476_v50, %v6184_v40  ;;  %v17444_v41 = vld [vmem:[#allocation192_spill] sm:$0xff]  ;;  %v17447_v50 = vld [vmem:[#allocation103_spill] sm:$0xff]  ;;  %v17452_v61 = vld [vmem:[#allocation105_spill] sm:$0xff] }
 0x5b6   :  { %v6801_v43 = vmax.f32 %v17434_v23, %v6637_v39  ;;  %v6478_v55 = vpop.f32.mrf.mxu1  ;;  %7554 = vmatprep.mubr.f32.mxu1 %v7024_v6  ;;  %v6189_v0 = vpop.f32.mrf.mxu0  ;;  %v6924_v47 = vadd.f32 %v15285_v3, %v6798_v56  ;;  %v6349_v38 = vadd.f32 %v15103_v20, %v6056_v48  ;;  %v17439_v34 = vmax.f32 %v17437_v46, %v17438_v16  ;;  %v17443_v48 = vld [vmem:[#allocation291_spill] sm:$0xff] }
 0x5b7   :  { %v6479_v36 = vadd.f32 %v6478_v55, %v6186_v22  ;;  %v6190_v31 = vadd.f32 %v6189_v0, %v17440_v4  ;;  %7555 = vmatmul.mubr.f32.gmra.mxu1 %v7023_v60  ;;  %v6645_v59 = vmax.f32 %v17441_v57, %v6477_v14  ;;  %v7027_v24 = vmax.f32 %v6923_v45, 0.0  ;;  %v17448_v60 = vld [vmem:[#allocation206_spill] sm:$0xff]  ;;  %v17450_v15 = vld [vmem:[#allocation31_spill] sm:$0xff] }
 0x5b8   :  { %v6802_v26 = vmax.f32 %v17439_v34, %v6638_v33  ;;  %v6482_v58 = vpop.f32.mrf.mxu1  ;;  %v6927_v25 = vadd.f32 %v15277_v1, %v6801_v43  ;;  %v6191_v28 = vpop.f32.mrf.mxu0  ;;  %v7028_v37 = vmax.f32 %v6924_v47, 0.0  ;;  %v6355_v32 = vadd.f32 %v15114_v35, %v6062_v21  ;;  %v17453_v22 = vld [vmem:[#allocation207_spill] sm:$0xff]  ;;  %v17460_v57 = vld [vmem:[#allocation238_spill] sm:$0xff] }
 0x5b9   :  { %v6646_v30 = vmax.f32 %v6349_v38, %v6479_v36  ;;  %v6483_v12 = vadd.f32 %v6482_v58, %v6190_v31  ;;  %v6192_v20 = vadd.f32 %v6191_v28, %v17442_v27  ;;  %v6066_v51 = vadd.f32 %v15121_v9, %v17443_v48  ;;  %v17455_v0 = vld [vmem:[#allocation15_spill] sm:$0xff]  ;;  %v17458_v31 = vld [vmem:[#allocation208_spill] sm:$0xff] }
 0x5ba   :  { %v6484_v19 = vpop.f32.mrf.mxu1  ;;  %v17446_v56 = vmax.f32 %v17444_v41, %v17445_v52  ;;  %7560 = vmatprep.mubr.f32.mxu1 %v7028_v37  ;;  %v6193_v39 = vpop.f32.mrf.mxu0  ;;  %v6928_v11 = vadd.f32 %v15285_v3, %v6802_v26  ;;  %v17449_v2 = vmax.f32 %v17447_v50, %v17448_v60  ;;  %v7031_v9 = vmax.f32 %v6927_v25, 0.0  ;;  %v17456_v26 = vld [vmem:[#allocation293_spill] sm:$0xff]  ;;  %v17457_v4 = vld [vmem:[#allocation107_spill] sm:$0xff] }
 0x5bb   :  { %v6653_v6 = vmax.f32 %v17450_v15, %v6483_v12  ;;  %v6485_v45 = vadd.f32 %v6484_v19, %v6192_v20  ;;  %v6194_v35 = vadd.f32 %v6193_v39, %v17451_v13  ;;  %7561 = vmatmul.mubr.f32.gmra.mxu1 %v7027_v24  ;;  %v17454_v55 = vmax.f32 %v17452_v61, %v17453_v22  ;;  %v17462_v19 = vld [vmem:[#allocation109_spill] sm:$0xff] }
 0x5bc   :  { %v6805_v8 = vmax.f32 %v17446_v56, %v6645_v59  ;;  %v6806_v40 = vmax.f32 %v17449_v2, %v6646_v30  ;;  %v6486_v49 = vpop.f32.mrf.mxu1  ;;  %v6195_v43 = vpop.f32.mrf.mxu0  ;;  %v7032_v33 = vmax.f32 %v6928_v11, 0.0  ;;  %v6359_v46 = vadd.f32 %v15125_v63, %v6066_v51  ;;  %v17461_v30 = vld [vmem:[#allocation222_spill] sm:$0xff]  ;;  %v17465_v41 = vld [vmem:[#allocation77_spill] sm:$0xff] }
 0x5bd   :  { %v6809_v54 = vmax.f32 %v17454_v55, %v6653_v6  ;;  %v6654_v21 = vmax.f32 %v6355_v32, %v6485_v45  ;;  %v6487_v14 = vadd.f32 %v6486_v49, %v6194_v35  ;;  %v6196_v47 = vadd.f32 %v6195_v43, %v17455_v0  ;;  %v17463_v32 = vld [vmem:[#allocation209_spill] sm:$0xff]  ;;  %v17470_v35 = vld [vmem:[#allocation16_spill] sm:$0xff]  ;;  %v17471_v43 = vld [vmem:[#allocation106_spill] sm:$0xff] }
 0x5be   :  { %v6931_v23 = vadd.f32 %v15277_v1, %v6805_v8  ;;  %v6488_v38 = vpop.f32.mrf.mxu1  ;;  %7566 = vmatprep.mubr.f32.mxu1 %v7032_v33  ;;  %v6199_v16 = vpop.f32.mrf.mxu0  ;;  %v6932_v34 = vadd.f32 %v15285_v3, %v6806_v40  ;;  %v6072_v36 = vadd.f32 %v15132_v7, %v17456_v26  ;;  %v17459_v58 = vmax.f32 %v17457_v4, %v17458_v31  ;;  %v17466_v8 = vld [vmem:[#allocation295_spill] sm:$0xff]  ;;  %v17468_v15 = vld [vmem:[#allocation165_spill] sm:$0xff] }
 0x5bf   :  { %v6661_v59 = vmax.f32 %v17460_v57, %v6487_v14  ;;  %v6489_v28 = vadd.f32 %v6488_v38, %v6196_v47  ;;  %7567 = vmatmul.mubr.f32.gmra.mxu1 %v7031_v9  ;;  %v6200_v12 = vadd.f32 %v6199_v16, %v17461_v30  ;;  %v6935_v20 = vadd.f32 %v15277_v1, %v6809_v54  ;;  %v17467_v40 = vld [vmem:[#allocation111_spill] sm:$0xff]  ;;  %v17473_v47 = vld [vmem:[#allocation113_spill] sm:$0xff]  ;;  %v17474_v38 = vld [vmem:[#allocation166_spill] sm:$0xff] }
 0x5c0   :  { %v6810_v25 = vmax.f32 %v17459_v58, %v6654_v21  ;;  %v6492_v37 = vpop.f32.mrf.mxu1  ;;  %v7035_v24 = vmax.f32 %v6931_v23, 0.0  ;;  %v6201_v63 = vpop.f32.mrf.mxu0  ;;  %v7036_v27 = vmax.f32 %v6932_v34, 0.0  ;;  %v17464_v48 = vmax.f32 %v17462_v19, %v17463_v32  ;;  %v17472_v21 = vld [vmem:[#allocation223_spill] sm:$0xff]  ;;  %v17482_v19 = vld [vmem:[#allocation117_spill] sm:$0xff]  ;;  %v17483_v32 = vld [vmem:[#allocation168_spill] sm:$0xff] }
 0x5c1   :  { %v6662_v51 = vmax.f32 %v6359_v46, %v6489_v28  ;;  %v6202_v52 = vadd.f32 %v6201_v63, %v17465_v41  ;;  %v6076_v39 = vadd.f32 %v15143_v62, %v17466_v8  ;;  %v6493_v11 = vadd.f32 %v6492_v37, %v6200_v12  ;;  %v17477_v4 = vld [vmem:[#allocation167_spill] sm:$0xff]  ;;  %v17480_v28 = vld [vmem:[#allocation78_spill] sm:$0xff]  ;;  %v17485_v41 = vld [vmem:[#allocation17_spill] sm:$0xff] }
 0x5c2   :  { %v6813_v7 = vmax.f32 %v17464_v48, %v6661_v59  ;;  %v6494_v56 = vpop.f32.mrf.mxu1  ;;  %7572 = vmatprep.mubr.f32.mxu1 %v7036_v27  ;;  %v6203_v50 = vpop.f32.mrf.mxu0  ;;  %v6936_v60 = vadd.f32 %v15285_v3, %v6810_v25  ;;  %v6365_v2 = vadd.f32 %v15136_v10, %v6072_v36  ;;  %v17469_v6 = vmax.f32 %v17467_v40, %v17468_v15  ;;  %v17476_v36 = vld [vmem:[#allocation115_spill] sm:$0xff]  ;;  %v17479_v25 = vld [vmem:[#allocation32_spill] sm:$0xff] }
 0x5c3   :  { %v6495_v13 = vadd.f32 %v6494_v56, %v6202_v52  ;;  %v6204_v49 = vadd.f32 %v6203_v50, %v17470_v35  ;;  %7573 = vmatmul.mubr.f32.gmra.mxu1 %v7035_v24  ;;  %v6669_v62 = vmax.f32 %v17471_v43, %v6493_v11  ;;  %v7039_v22 = vmax.f32 %v6935_v20, 0.0 }
 0x5c4   :  { %v6814_v45 = vmax.f32 %v17469_v6, %v6662_v51  ;;  %v6496_v9 = vpop.f32.mrf.mxu1  ;;  %v6939_v23 = vadd.f32 %v15277_v1, %v6813_v7  ;;  %v6205_v33 = vpop.f32.mrf.mxu0  ;;  %v7040_v61 = vmax.f32 %v6936_v60, 0.0  ;;  %v6369_v0 = vadd.f32 %v15147_v53, %v6076_v39  ;;  %v17481_v53 = vld [vmem:[#allocation297_spill] sm:$0xff]  ;;  %v17486_v39 = vld [vmem:[#allocation299_spill] sm:$0xff] }
 0x5c5   :  { %v6670_v55 = vmax.f32 %v6365_v2, %v6495_v13  ;;  %v6497_v54 = vadd.f32 %v6496_v9, %v6204_v49  ;;  %v6206_v10 = vadd.f32 %v6205_v33, %v17472_v21  ;;  %v17475_v46 = vmax.f32 %v17473_v47, %v17474_v38  ;;  %v17487_v60 = vld [vmem:[#allocation119_spill] sm:$0xff]  ;;  %v17488_v2 = vld [vmem:[#allocation169_spill] sm:$0xff]  ;;  %v17495_v21 = vld [vmem:[#allocation80_spill] sm:$0xff] }
 0x5c6   :  { %v6498_v14 = vpop.f32.mrf.mxu1  ;;  %7578 = vmatprep.mubr.f32.mxu1 %v7040_v61  ;;  %v6209_v34 = vpop.f32.mrf.mxu0  ;;  %v6940_v26 = vadd.f32 %v15285_v3, %v6814_v45  ;;  %v17478_v31 = vmax.f32 %v17476_v36, %v17477_v4  ;;  %v6082_v30 = vadd.f32 %v15154_v18, %v17481_v53  ;;  %v7043_v12 = vmax.f32 %v6939_v23, 0.0  ;;  %v17490_v45 = vld [vmem:[#allocation224_spill] sm:$0xff]  ;;  %v17491_v49 = vld [vmem:[#allocation239_spill] sm:$0xff]  ;;  %v17492_v61 = vld [vmem:[#allocation121_spill] sm:$0xff] }
 0x5c7   :  { %v6817_v16 = vmax.f32 %v17475_v46, %v6669_v62  ;;  %v6677_v57 = vmax.f32 %v17479_v25, %v6497_v54  ;;  %v6499_v59 = vadd.f32 %v6498_v14, %v6206_v10  ;;  %v6210_v37 = vadd.f32 %v6209_v34, %v17480_v28  ;;  %7579 = vmatmul.mubr.f32.gmra.mxu1 %v7039_v22  ;;  %v17493_v22 = vld [vmem:[#allocation170_spill] sm:$0xff]  ;;  %v17500_v28 = vld [vmem:[#allocation171_spill] sm:$0xff] }
 0x5c8   :  { %v6818_v58 = vmax.f32 %v17478_v31, %v6670_v55  ;;  %v6502_v24 = vpop.f32.mrf.mxu1  ;;  %v6211_v27 = vpop.f32.mrf.mxu0  ;;  %v7044_v20 = vmax.f32 %v6940_v26, 0.0  ;;  %v17484_v48 = vmax.f32 %v17482_v19, %v17483_v32  ;;  %v6086_v11 = vadd.f32 %v15165_v42, %v17486_v39  ;;  %v17497_v26 = vld [vmem:[#allocation108_spill] sm:$0xff]  ;;  %v17498_v4 = vld [vmem:[#allocation18_spill] sm:$0xff]  ;;  %v17505_v19 = vld [vmem:[#allocation225_spill] sm:$0xff] }
 0x5c9   :  { %v6943_v63 = vadd.f32 %v15277_v1, %v6817_v16  ;;  %v6678_v51 = vmax.f32 %v6369_v0, %v6499_v59  ;;  %v6212_v52 = vadd.f32 %v6211_v27, %v17485_v41  ;;  %v6503_v56 = vadd.f32 %v6502_v24, %v6210_v37  ;;  %v17496_v16 = vld [vmem:[#allocation301_spill] sm:$0xff]  ;;  %v17499_v59 = vld [vmem:[#allocation123_spill] sm:$0xff] }
 0x5ca   :  { %v6821_v7 = vmax.f32 %v17484_v48, %v6677_v57  ;;  %v6504_v8 = vpop.f32.mrf.mxu1  ;;  %7584 = vmatprep.mubr.f32.mxu1 %v7044_v20  ;;  %v6213_v50 = vpop.f32.mrf.mxu0  ;;  %v6944_v18 = vadd.f32 %v15285_v3, %v6818_v58  ;;  %v17489_v40 = vmax.f32 %v17487_v60, %v17488_v2  ;;  %v6375_v9 = vadd.f32 %v17491_v49, %v6082_v30  ;;  %v17511_v2 = vld [vmem:[#allocation82_spill] sm:$0xff] }
 0x5cb   :  { %v6685_v6 = vmax.f32 %v15156_v44, %v6503_v56  ;;  %v6214_v13 = vadd.f32 %v6213_v50, %v17490_v45  ;;  %7585 = vmatmul.mubr.f32.gmra.mxu1 %v7043_v12  ;;  %v6505_v43 = vadd.f32 %v6504_v8, %v6212_v52  ;;  %v7047_v33 = vmax.f32 %v6943_v63, 0.0  ;;  %v17502_v12 = vld [vmem:[#allocation125_spill] sm:$0xff]  ;;  %v17503_v63 = vld [vmem:[#allocation172_spill] sm:$0xff] }
 0x5cc   :  { %v6822_v15 = vmax.f32 %v17489_v40, %v6678_v51  ;;  %v6506_v35 = vpop.f32.mrf.mxu1  ;;  %v6947_v23 = vadd.f32 %v15277_v1, %v6821_v7  ;;  %v6215_v42 = vpop.f32.mrf.mxu0  ;;  %v7048_v62 = vmax.f32 %v6944_v18, 0.0  ;;  %v17494_v55 = vmax.f32 %v17492_v61, %v17493_v22  ;;  %v17506_v7 = vld [vmem:[#allocation303_spill] sm:$0xff]  ;;  %v17507_v8 = vld [vmem:[#allocation240_spill] sm:$0xff]  ;;  %v17509_v50 = vld [vmem:[#allocation173_spill] sm:$0xff] }
 0x5cd   :  { %v6216_v10 = vadd.f32 %v6215_v42, %v17495_v21  ;;  %v6507_v14 = vadd.f32 %v6506_v35, %v6214_v13  ;;  %v6379_v0 = vadd.f32 %v15169_v5, %v6086_v11  ;;  %v6686_v47 = vmax.f32 %v6375_v9, %v6505_v43  ;;  %v17508_v11 = vld [vmem:[#allocation127_spill] sm:$0xff]  ;;  %v17512_v13 = vld [vmem:[#allocation33_spill] sm:$0xff]  ;;  %v17514_v61 = vld [vmem:[#allocation34_spill] sm:$0xff] }
 0x5ce   :  { %v6825_v54 = vmax.f32 %v17494_v55, %v6685_v6  ;;  %v6508_v44 = vpop.f32.mrf.mxu1  ;;  %7590 = vmatprep.mubr.f32.mxu1 %v7048_v62  ;;  %v6219_v38 = vpop.f32.mrf.mxu0  ;;  %v6948_v46 = vadd.f32 %v15285_v3, %v6822_v15  ;;  %v6092_v34 = vadd.f32 %v15176_v29, %v17496_v16  ;;  %v7051_v57 = vmax.f32 %v6947_v23, 0.0  ;;  %v17513_v43 = vld [vmem:[#allocation19_spill] sm:$0xff]  ;;  %v17515_v55 = vld [vmem:[#allocation129_spill] sm:$0xff]  ;;  %v17521_v16 = vld [vmem:[#allocation110_spill] sm:$0xff] }
 0x5cf   :  { %v6693_v36 = vmax.f32 %v17497_v26, %v6507_v14  ;;  %v6220_v31 = vadd.f32 %v6219_v38, %v17498_v4  ;;  %v6509_v58 = vadd.f32 %v6508_v44, %v6216_v10  ;;  %7591 = vmatmul.mubr.f32.gmra.mxu1 %v7047_v33  ;;  %v17501_v37 = vmax.f32 %v17499_v59, %v17500_v28  ;;  %v17522_v26 = vld [vmem:[#allocation226_spill] sm:$0xff] }
 0x5d0   :  { %v6512_v25 = vpop.f32.mrf.mxu1  ;;  %v6221_v24 = vpop.f32.mrf.mxu0  ;;  %v7052_v53 = vmax.f32 %v6948_v46, 0.0  ;;  %v6951_v30 = vadd.f32 %v15277_v1, %v6825_v54  ;;  %v17504_v27 = vmax.f32 %v17502_v12, %v17503_v63  ;;  %v6096_v51 = vadd.f32 %v15187_v17, %v17506_v7  ;;  %v17516_v54 = vld [vmem:[#allocation174_spill] sm:$0xff] }
 0x5d1   :  { %v6826_v5 = vmax.f32 %v17501_v37, %v6686_v47  ;;  %v6694_v20 = vmax.f32 %v6379_v0, %v6509_v58  ;;  %v6222_v32 = vadd.f32 %v6221_v24, %v17505_v19  ;;  %v6513_v41 = vadd.f32 %v6512_v25, %v6220_v31  ;;  %v17518_v0 = vld [vmem:[#allocation131_spill] sm:$0xff]  ;;  %v17523_v58 = vld [vmem:[#allocation305_spill] sm:$0xff] }
 0x5d2   :  { %v6829_v29 = vmax.f32 %v17504_v27, %v6693_v36  ;;  %v6514_v48 = vpop.f32.mrf.mxu1  ;;  %7596 = vmatprep.mubr.f32.mxu1 %v7052_v53  ;;  %v6223_v52 = vpop.f32.mrf.mxu0  ;;  %v6385_v39 = vadd.f32 %v17507_v8, %v6092_v34  ;;  %v17510_v18 = vmax.f32 %v17508_v11, %v17509_v50  ;;  %v7055_v9 = vmax.f32 %v6951_v30, 0.0  ;;  %v17519_v47 = vld [vmem:[#allocation175_spill] sm:$0xff]  ;;  %v17524_v25 = vld [vmem:[#allocation241_spill] sm:$0xff]  ;;  %v17526_v53 = vld [vmem:[#allocation176_spill] sm:$0xff] }
 0x5d3   :  { %v6952_v56 = vadd.f32 %v15285_v3, %v6826_v5  ;;  %v6224_v40 = vadd.f32 %v6223_v52, %v17511_v2  ;;  %v6515_v15 = vadd.f32 %v6514_v48, %v6222_v32  ;;  %7597 = vmatmul.mubr.f32.gmra.mxu1 %v7051_v57  ;;  %v6701_v17 = vmax.f32 %v17512_v13, %v6513_v41  ;;  %v17525_v24 = vld [vmem:[#allocation133_spill] sm:$0xff]  ;;  %v17528_v27 = vld [vmem:[#allocation84_spill] sm:$0xff]  ;;  %v17529_v32 = vld [vmem:[#allocation307_spill] sm:$0xff] }
 0x5d4   :  { %v6830_v60 = vmax.f32 %v17510_v18, %v6694_v20  ;;  %v6516_v6 = vpop.f32.mrf.mxu1  ;;  %v6955_v45 = vadd.f32 %v15277_v1, %v6829_v29  ;;  %v6225_v35 = vpop.f32.mrf.mxu0  ;;  %v6389_v22 = vadd.f32 %v17514_v61, %v6096_v51  ;;  %v17517_v21 = vmax.f32 %v17515_v55, %v17516_v54  ;;  %v17530_v48 = vld [vmem:[#allocation242_spill] sm:$0xff]  ;;  %v17531_v52 = vld [vmem:[#allocation135_spill] sm:$0xff]  ;;  %v17534_v11 = vld [vmem:[#allocation112_spill] sm:$0xff] }
 0x5d5   :  { %v7056_v49 = vmax.f32 %v6952_v56, 0.0  ;;  %v6702_v23 = vmax.f32 %v6385_v39, %v6515_v15  ;;  %v6226_v42 = vadd.f32 %v6225_v35, %v17513_v43  ;;  %v6517_v62 = vadd.f32 %v6516_v6, %v6224_v40  ;;  %v17532_v56 = vld [vmem:[#allocation177_spill] sm:$0xff]  ;;  %v17535_v18 = vld [vmem:[#allocation20_spill] sm:$0xff]  ;;  %v17536_v40 = vld [vmem:[#allocation35_spill] sm:$0xff] }
 0x5d6   :  { %v6518_v33 = vpop.f32.mrf.mxu1  ;;  %v6833_v10 = vmax.f32 %v17517_v21, %v6701_v17  ;;  %v6229_v14 = vpop.f32.mrf.mxu0  ;;  %v6956_v44 = vadd.f32 %v15285_v3, %v6830_v60  ;;  %v17520_v38 = vmax.f32 %v17518_v0, %v17519_v47  ;;  %v6102_v57 = vadd.f32 %v17524_v25, %v17523_v58  ;;  %v17544_v47 = vld [vmem:[#allocation114_spill] sm:$0xff] }
 0x5d7   :  { %7602 = vmatprep.mubr.f32.mxu1 %v7056_v49  ;;  %v6709_v34 = vmax.f32 %v17521_v16, %v6517_v62  ;;  %v6230_v36 = vadd.f32 %v6229_v14, %v17522_v26  ;;  %v6519_v4 = vadd.f32 %v6518_v33, %v6226_v42  ;;  %v7059_v59 = vmax.f32 %v6955_v45, 0.0  ;;  %v17537_v49 = vld [vmem:[#allocation137_spill] sm:$0xff]  ;;  %v17540_v42 = vld [vmem:[#allocation227_spill] sm:$0xff] }
 0x5d8   :  { %v6834_v46 = vmax.f32 %v17520_v38, %v6702_v23  ;;  %7603 = vmatmul.mubr.f32.gmra.mxu1 %v7055_v9  ;;  %v6522_v31 = vpop.f32.mrf.mxu1  ;;  %v6959_v28 = vadd.f32 %v15277_v1, %v6833_v10  ;;  %v6231_v37 = vpop.f32.mrf.mxu0  ;;  %v7060_v5 = vmax.f32 %v6956_v44, 0.0  ;;  %v17527_v30 = vmax.f32 %v17525_v24, %v17526_v53  ;;  %v17538_v9 = vld [vmem:[#allocation178_spill] sm:$0xff]  ;;  %v17542_v14 = vld [vmem:[#allocation311_spill] sm:$0xff] }
 0x5d9   :  { %v6710_v63 = vmax.f32 %v6389_v22, %v6519_v4  ;;  %v6232_v29 = vadd.f32 %v6231_v37, %v17528_v27  ;;  %v6523_v20 = vadd.f32 %v6522_v31, %v6230_v36  ;;  %v6106_v7 = vadd.f32 %v17530_v48, %v17529_v32  ;;  %v17541_v22 = vld [vmem:[#allocation36_spill] sm:$0xff]  ;;  %v17543_v44 = vld [vmem:[#allocation243_spill] sm:$0xff]  ;;  %v17546_v4 = vld [vmem:[#allocation138_spill] sm:$0xff] }
 0x5da   :  { %v6837_v12 = vmax.f32 %v17527_v30, %v6709_v34  ;;  %v6524_v19 = vpop.f32.mrf.mxu1  ;;  %7608 = vmatprep.mubr.f32.mxu1 %v7060_v5  ;;  %v6233_v51 = vpop.f32.mrf.mxu0  ;;  %v6960_v41 = vadd.f32 %v15285_v3, %v6834_v46  ;;  %v17533_v8 = vmax.f32 %v17531_v52, %v17532_v56  ;;  %v6395_v15 = vadd.f32 %v17536_v40, %v6102_v57  ;;  %v17545_v46 = vld [vmem:[#allocation21_spill] sm:$0xff]  ;;  %v17547_v31 = vld [vmem:[#allocation179_spill] sm:$0xff]  ;;  %v17550_v5 = vld [vmem:[#allocation180_spill] sm:$0xff] }
 0x5db   :  { %v6717_v50 = vmax.f32 %v17534_v11, %v6523_v20  ;;  %v6234_v60 = vadd.f32 %v6233_v51, %v17535_v18  ;;  %v6525_v45 = vadd.f32 %v6524_v19, %v6232_v29  ;;  %v7063_v35 = vmax.f32 %v6959_v28, 0.0  ;;  %v17549_v37 = vld [vmem:[#allocation139_spill] sm:$0xff]  ;;  %v17554_v20 = vld [vmem:[#allocation244_spill] sm:$0xff]  ;;  %v17555_v51 = vld [vmem:[#allocation37_spill] sm:$0xff] }
 0x5dc   :  { %v6838_v39 = vmax.f32 %v17533_v8, %v6710_v63  ;;  %7609 = vmatmul.mubr.f32.gmra.mxu1 %v7059_v59  ;;  %v6526_v2 = vpop.f32.mrf.mxu1  ;;  %v6963_v6 = vadd.f32 %v15277_v1, %v6837_v12  ;;  %v6235_v13 = vpop.f32.mrf.mxu0  ;;  %v7064_v17 = vmax.f32 %v6960_v41, 0.0  ;;  %v17539_v23 = vmax.f32 %v17537_v49, %v17538_v9  ;;  %v17552_v12 = vld [vmem:[#allocation88_spill] sm:$0xff]  ;;  %v17553_v29 = vld [vmem:[#allocation315_spill] sm:$0xff]  ;;  %v17556_v52 = vld [vmem:[#allocation141_spill] sm:$0xff] }
 0x5dd   :  { %v6236_v62 = vadd.f32 %v6235_v13, %v17540_v42  ;;  %v6527_v33 = vadd.f32 %v6526_v2, %v6234_v60  ;;  %v6399_v55 = vadd.f32 %v17541_v22, %v6106_v7  ;;  %v6718_v54 = vmax.f32 %v6395_v15, %v6525_v45  ;;  %v17557_v56 = vld [vmem:[#allocation181_spill] sm:$0xff]  ;;  %v17560_v40 = vld [vmem:[#allocation116_spill] sm:$0xff] }
 0x5de   :  { %v6841_v43 = vmax.f32 %v17539_v23, %v6717_v50  ;;  %v6528_v61 = vpop.f32.mrf.mxu1  ;;  %7614 = vmatprep.mubr.f32.mxu1 %v7064_v17  ;;  %v6964_v10 = vadd.f32 %v15285_v3, %v6838_v39  ;;  %v6112_v0 = vadd.f32 %v17543_v44, %v17542_v14  ;;  %v7067_v36 = vmax.f32 %v6963_v6, 0.0  ;;  %v17559_v11 = vld [vmem:[#allocation229_spill] sm:$0xff] }
 0x5df   :  { %v6239_v21 = vpop.f32.mrf.mxu0  ;;  %v6725_v38 = vmax.f32 %v17544_v47, %v6527_v33  ;;  %v6529_v34 = vadd.f32 %v6528_v61, %v6236_v62  ;;  %v17548_v58 = vmax.f32 %v17546_v4, %v17547_v31  ;;  %v17551_v24 = vmax.f32 %v17549_v37, %v17550_v5  ;;  %v17563_v62 = vld [vmem:[#allocation142_spill] sm:$0xff]  ;;  %v17574_v37 = vld [vmem:[#allocation231_spill] sm:$0xff] }
 0x5e0   :  { %v6240_v16 = vadd.f32 %v6239_v21, %v17545_v46  ;;  %7615 = vmatmul.mubr.f32.gmra.mxu1 %v7063_v35  ;;  %v7068_v59 = vmax.f32 %v6964_v10, 0.0  ;;  %v6967_v28 = vadd.f32 %v15277_v1, %v6841_v43  ;;  %v6116_v19 = vadd.f32 %v17554_v20, %v17553_v29  ;;  %v17561_v35 = vld [vmem:[#allocation23_spill] sm:$0xff]  ;;  %v17562_v43 = vld [vmem:[#allocation38_spill] sm:$0xff]  ;;  %v17566_v21 = vld [vmem:[#allocation193_spill] sm:$0xff] }
 0x5e1   :  { %v6842_v25 = vmax.f32 %v17548_v58, %v6718_v54  ;;  %v6241_v57 = vpop.f32.mrf.mxu0  ;;  %v6845_v53 = vmax.f32 %v17551_v24, %v6725_v38  ;;  %v6726_v30 = vmax.f32 %v6399_v55, %v6529_v34  ;;  %v6405_v41 = vadd.f32 %v17555_v51, %v6112_v0  ;;  %v17564_v33 = vld [vmem:[#allocation182_spill] sm:$0xff]  ;;  %v17567_v10 = vld [vmem:[#allocation183_spill] sm:$0xff]  ;;  %v17570_v38 = vld [vmem:[#allocation24_spill] sm:$0xff] }
 0x5e2   :  { %v6532_v26 = vpop.f32.mrf.mxu1  ;;  %v6242_v63 = vadd.f32 %v6241_v57, %v17552_v12  ;;  %7620 = vmatprep.mubr.f32.mxu1 %v7068_v59  ;;  %v17558_v8 = vmax.f32 %v17556_v52, %v17557_v56  ;;  %v7071_v13 = vmax.f32 %v6967_v28, 0.0  ;;  %v6409_v42 = vadd.f32 %v17562_v43, %v6116_v19  ;;  %v17569_v0 = vld [vmem:[#allocation118_spill] sm:$0xff]  ;;  %v17571_v58 = vld [vmem:[#allocation144_spill] sm:$0xff]  ;;  %v17578_v19 = vld [vmem:[#allocation245_spill] sm:$0xff] }
 0x5e3   :  { %v6533_v32 = vadd.f32 %v6532_v26, %v6240_v16  ;;  %v6243_v48 = vpop.f32.mrf.mxu0  ;;  %v6968_v7 = vadd.f32 %v15285_v3, %v6842_v25  ;;  %v6971_v2 = vadd.f32 %v15277_v1, %v6845_v53  ;;  %v17565_v61 = vmax.f32 %v17563_v62, %v17564_v33  ;;  %v17572_v25 = vld [vmem:[#allocation184_spill] sm:$0xff]  ;;  %v17587_v43 = vld [vmem:[#allocation187_spill] sm:$0xff] }
 0x5e4   :  { %v6534_v27 = vpop.f32.mrf.mxu1  ;;  %v6846_v39 = vmax.f32 %v17558_v8, %v6726_v30  ;;  %v6244_v50 = vadd.f32 %v6243_v48, %v17559_v11  ;;  %7621 = vmatmul.mubr.f32.gmra.mxu1 %v7067_v36  ;;  %v17568_v14 = vmax.f32 %v17566_v21, %v17567_v10  ;;  %v17573_v57 = vmax.f32 %v17571_v58, %v17572_v25  ;;  %v17579_v48 = vld [vmem:[#allocation25_spill] sm:$0xff]  ;;  %v17580_v11 = vld [vmem:[#allocation148_spill] sm:$0xff] }
 0x5e5   :  { %v6535_v18 = vadd.f32 %v6534_v27, %v6242_v63  ;;  %v6733_v15 = vmax.f32 %v17560_v40, %v6533_v32  ;;  %v6245_v6 = vpop.f32.mrf.mxu0  ;;  %v7072_v45 = vmax.f32 %v6968_v7, 0.0  ;;  %v7075_v26 = vmax.f32 %v6971_v2, 0.0  ;;  %v17575_v63 = vld [vmem:[#allocation146_spill] sm:$0xff]  ;;  %v17576_v27 = vld [vmem:[#allocation185_spill] sm:$0xff]  ;;  %v17583_v2 = vld [vmem:[#allocation232_spill] sm:$0xff] }
 0x5e6   :  { %v6536_v60 = vpop.f32.mrf.mxu1  ;;  %v6246_v49 = vadd.f32 %v6245_v6, %v17561_v35  ;;  %v6972_v54 = vadd.f32 %v15285_v3, %v6846_v39  ;;  %v17577_v29 = vmax.f32 %v17575_v63, %v17576_v27  ;;  %v17584_v6 = vld [vmem:[#allocation120_spill] sm:$0xff]  ;;  %v17585_v35 = vld [vmem:[#allocation39_spill] sm:$0xff] }
 0x5e7   :  { %v6734_v17 = vmax.f32 %v6405_v41, %v6535_v18  ;;  %v6537_v9 = vadd.f32 %v6536_v60, %v6244_v50  ;;  %v6849_v22 = vmax.f32 %v17565_v61, %v6733_v15  ;;  %7626 = vmatprep.mubr.f32.mxu1 %v7072_v45  ;;  %v6249_v55 = vpop.f32.mrf.mxu0  ;;  %v17581_v50 = vld [vmem:[#allocation186_spill] sm:$0xff] }
 0x5e8   :  { %v6538_v23 = vpop.f32.mrf.mxu1  ;;  %v6250_v46 = vadd.f32 %v6249_v55, %v17570_v38  ;;  %7627 = vmatmul.mubr.f32.gmra.mxu1 %v7071_v13  ;;  %v7076_v31 = vmax.f32 %v6972_v54, 0.0  ;;  %v17582_v18 = vmax.f32 %v17580_v11, %v17581_v50  ;;  %v17589_v55 = vld [vmem:[#allocation152_spill] sm:$0xff]  ;;  %v17594_v38 = vld [vmem:[#allocation153_spill] sm:$0xff] }
 0x5e9   :  { %v6850_v44 = vmax.f32 %v17568_v14, %v6734_v17  ;;  %v6741_v47 = vmax.f32 %v17569_v0, %v6537_v9  ;;  %v6539_v16 = vadd.f32 %v6538_v23, %v6246_v49  ;;  %v6975_v36 = vadd.f32 %v15277_v1, %v6849_v22  ;;  %v6251_v4 = vpop.f32.mrf.mxu0  ;;  %v17586_v23 = vld [vmem:[#allocation150_spill] sm:$0xff]  ;;  %v17590_v54 = vld [vmem:[#allocation188_spill] sm:$0xff] }
 0x5ea   :  { %v6542_v34 = vpop.f32.mrf.mxu1  ;;  %v6252_v5 = vadd.f32 %v6251_v4, %v17574_v37  ;;  %7632 = vmatprep.mubr.f32.mxu1 %v7076_v31  ;;  %v17591_v21 = vmax.f32 %v17589_v55, %v17590_v54  ;;  %v17592_v14 = vld [vmem:[#allocation246_spill] sm:$0xff] }
 0x5eb   :  { %v6853_v59 = vmax.f32 %v17573_v57, %v6741_v47  ;;  %v6742_v28 = vmax.f32 %v6409_v42, %v6539_v16  ;;  %v6543_v24 = vadd.f32 %v6542_v34, %v6250_v46  ;;  %v6253_v30 = vpop.f32.mrf.mxu0  ;;  %v6976_v12 = vadd.f32 %v15285_v3, %v6850_v44  ;;  %v17595_v46 = vld [vmem:[#allocation189_spill] sm:$0xff]  ;;  %v7863_v54 = vld [vmem:[%s16116_s6 + $0x40] sm:$0xff] }
 0x5ec   :  { %v6544_v53 = vpop.f32.mrf.mxu1  ;;  %v6254_v7 = vadd.f32 %v6253_v30, %v17579_v48  ;;  %7633 = vmatmul.mubr.f32.gmra.mxu1 %v7075_v26  ;;  %v7079_v41 = vmax.f32 %v6975_v36, 0.0  ;;  %v17588_v42 = vmax.f32 %v17586_v23, %v17587_v43  ;;  %v17596_v16 = vmax.f32 %v17594_v38, %v17595_v46  ;;  %v7866_v43 = vld [vmem:[%s16116_s6 + $0x58] sm:$0xff] }
 0x5ed   :  { %v6854_v20 = vmax.f32 %v17577_v29, %v6742_v28  ;;  %v6749_v32 = vmax.f32 %v17578_v19, %v6543_v24  ;;  %v6545_v52 = vadd.f32 %v6544_v53, %v6252_v5  ;;  %v6255_v56 = vpop.f32.mrf.mxu0  ;;  %v7080_v8 = vmax.f32 %v6976_v12, 0.0 }
 0x5ee   :  { %v6546_v51 = vpop.f32.mrf.mxu1  ;;  %v6979_v39 = vadd.f32 %v15277_v1, %v6853_v59  ;;  %v6256_v40 = vadd.f32 %v6255_v56, %v17583_v2 }
 0x5ef   :  { %v6857_v60 = vmax.f32 %v17582_v18, %v6749_v32  ;;  %v6547_v15 = vadd.f32 %v6546_v51, %v6254_v7  ;;  %v6750_v45 = vmax.f32 %v17584_v6, %v6545_v52  ;;  %7638 = vmatprep.mubr.f32.mxu1 %v7080_v8  ;;  %v6980_v17 = vadd.f32 %v15285_v3, %v6854_v20  ;;  %v15627_v0 = vpop.f32.mrf.mxu0  ;;  %v7869_v6 = vld [vmem:[%s16116_s6 + $0x70] sm:$0xff] }
 0x5f0   :  { %v6548_v13 = vpop.f32.mrf.mxu1  ;;  %7639 = vmatmul.mubr.f32.gmra.mxu1 %v7079_v41  ;;  %v7083_v61 = vmax.f32 %v6979_v39, 0.0  ;;  %17593 = vst [vmem:[#allocation122_spill] sm:$0xff] %v15627_v0  ;;  %v7664_v39 = vld [vmem:[%s16115_s5 + $0x8] sm:$0xff] }
 0x5f1   :  { %v6757_v49 = vmax.f32 %v17585_v35, %v6547_v15  ;;  %v6549_v9 = vadd.f32 %v6548_v13, %v6256_v40  ;;  %v6858_v62 = vmax.f32 %v17588_v42, %v6750_v45  ;;  %v7084_v33 = vmax.f32 %v6980_v17, 0.0  ;;  %v15634_v31 = vpop.f32.mrf.mxu0  ;;  %8567 = vmatprep.mubr.msk.f32.mxu0 %vm7771_vm1, %v7664_v39  ;;  %v7870_v15 = vld [vmem:[%s16116_s6 + $0x78] sm:$0xff]  ;;  %v7868_v17 = vld [vmem:[%s16116_s6 + $0x68] sm:$0xff] }
 0x5f2   :  { %v6983_v22 = vadd.f32 %v15277_v1, %v6857_v60  ;;  %17597 = vst [vmem:[#allocation40_spill] sm:$0xff] %v15634_v31  ;;  %v9257_v40 = vmov 0.0  }
 0x5f3   :  { %v6861_v10 = vmax.f32 %v17591_v21, %v6757_v49  ;;  %v6758_v44 = vmax.f32 %v17592_v14, %v6549_v9  ;;  %7644 = vmatprep.mubr.f32.mxu1 %v7084_v33  ;;  %v6984_v47 = vadd.f32 %v15285_v3, %v6858_v62  ;;  %v15637_v59 = vpop.f32.mrf.mxu0  ;;  %7890 = vmatprep.subr.mxu1 %v9257_v40  ;;  %v7867_v49 = vld [vmem:[%s16116_s6 + $0x60] sm:$0xff]  ;;  %v7865_v62 = vld [vmem:[%s16116_s6 + $0x50] sm:$0xff]  ;;  %v7862_v14 = vld [vmem:[%s16116_s6 + $0x38] sm:$0xff] }
 0x5f4   :  { %7645 = vmatmul.mubr.f32.gmra.mxu1 %v7083_v61  ;;  %v7087_v36 = vmax.f32 %v6983_v22, 0.0  ;;  %17598 = vst [vmem:[#allocation247_spill] sm:$0xff] %v15637_v59  ;;  %v7864_v22 = vld [vmem:[%s16116_s6 + $0x48] sm:$0xff] }
 0x5f5   :  { %v6862_v34 = vmax.f32 %v17596_v16, %v6758_v44  ;;  %v7088_v26 = vmax.f32 %v6984_v47, 0.0  ;;  %v6987_v4 = vadd.f32 %v15277_v1, %v6861_v10  ;;  %v15639_v28 = vpop.f32.mrf.mxu0  ;;  %7891 = vmatpush1.msra.mxu1 %v7870_v15  ;;  %v7861_v47 = vld [vmem:[%s16116_s6 + $0x30] sm:$0xff]  ;;  %v7860_v16 = vld [vmem:[%s16116_s6 + $0x28] sm:$0xff] }
 0x5f6   :  { %17599 = vst [vmem:[#allocation124_spill] sm:$0xff] %v15639_v28  ;;  %7892 = vmatprep.subr.mxu1 %v9257_v40 }
 0x5f7   :  { %v6988_v58 = vadd.f32 %v15285_v3, %v6862_v34  ;;  %7650 = vmatprep.mubr.f32.mxu1 %v7088_v26  ;;  %v7091_v57 = vmax.f32 %v6987_v4, 0.0  ;;  %v15641_v37 = vpop.f32.mrf.mxu0  ;;  %7893 = vmatpush1.msra.mxu1 %v7869_v6  ;;  %v7859_v26 = vld [vmem:[%s16116_s6 + $0x20] sm:$0xff]  ;;  %v7856_v6 = vld [vmem:[%s16116_s6 + $0x8] sm:$0xff] }
 0x5f8   :  { %7651 = vmatmul.mubr.f32.gmra.mxu1 %v7087_v36  ;;  %7894 = vmatprep.subr.mxu1 %v9257_v40 }
 0x5f9   :  { %v7092_v25 = vmax.f32 %v6988_v58, 0.0  ;;  %v15643_v5 = vpop.f32.mrf.mxu0  ;;  %7895 = vmatpush1.msra.mxu1 %v7868_v17  ;;  %v7858_v58 = vld [vmem:[%s16116_s6 + $0x18] sm:$0xff] }
 0x5fa   :  { %7896 = vmatprep.subr.mxu1 %v9257_v40 }
 0x5fb   :  { %7656 = vmatprep.mubr.f32.mxu1 %v7092_v25  ;;  %v15645_v24 = vpop.f32.mrf.mxu0  ;;  %7897 = vmatpush1.msra.mxu1 %v7867_v49  ;;  %v7855_v49 = vld [vmem:[%s16116_s6] sm:$0xff] }
 0x5fc   :  { %7657 = vmatmul.mubr.f32.gmra.mxu1 %v7091_v57  ;;  %7898 = vmatprep.subr.mxu1 %v9257_v40  ;;  %v7857_v57 = vld [vmem:[%s16116_s6 + $0x10] sm:$0xff] }
 0x5fd   :  { %v15647_v1 = vpop.f32.mrf.mxu0  ;;  %7899 = vmatpush1.msra.mxu1 %v7866_v43 }
 0x5fe   :  { %7900 = vmatprep.subr.mxu1 %v9257_v40 }
 0x5ff   :  { %v15649_v53 = vpop.f32.mrf.mxu0  ;;  %7901 = vmatpush1.msra.mxu1 %v7865_v62 }
 0x600   :  { %7902 = vmatprep.subr.mxu1 %v9257_v40 }
 0x601   :  { %v15651_v3 = vpop.f32.mrf.mxu0  ;;  %7903 = vmatpush1.msra.mxu1 %v7864_v22 }
 0x602   :  { %7904 = vmatprep.subr.mxu1 %v9257_v40 }
 0x603   :  { %v15653_v30 = vpop.f32.mrf.mxu0  ;;  %7905 = vmatpush1.msra.mxu1 %v7863_v54 }
 0x604   :  { %7906 = vmatprep.subr.mxu1 %v9257_v40 }
 0x605   :  { %v15655_v12 = vpop.f32.mrf.mxu0  ;;  %7907 = vmatpush1.msra.mxu1 %v7862_v14 }
 0x606   :  { %7908 = vmatprep.subr.mxu1 %v9257_v40 }
 0x607   :  { %v15657_v63 = vpop.f32.mrf.mxu0  ;;  %7909 = vmatpush1.msra.mxu1 %v7861_v47 }
 0x608   :  { %7910 = vmatprep.subr.mxu1 %v9257_v40 }
 0x609   :  { %v15659_v27 = vpop.f32.mrf.mxu0  ;;  %7911 = vmatpush1.msra.mxu1 %v7860_v16 }
 0x60a   :  { %7912 = vmatprep.subr.mxu1 %v9257_v40 }
 0x60b   :  { %v15661_v29 = vpop.f32.mrf.mxu0  ;;  %7913 = vmatpush1.msra.mxu1 %v7859_v26 }
 0x60c   :  { %7914 = vmatprep.subr.mxu1 %v9257_v40 }
 0x60d   :  { %v15663_v20 = vpop.f32.mrf.mxu0  ;;  %7915 = vmatpush1.msra.mxu1 %v7858_v58 }
 0x60e   :  { %7916 = vmatprep.subr.mxu1 %v9257_v40 }
 0x60f   :  { %v15665_v19 = vpop.f32.mrf.mxu0  ;;  %7917 = vmatpush1.msra.mxu1 %v7857_v57 }
 0x610   :  { %7918 = vmatprep.subr.mxu1 %v9257_v40 }
 0x611   :  { %v15667_v32 = vpop.f32.mrf.mxu0  ;;  %7919 = vmatpush1.msra.mxu1 %v7856_v6 }
 0x612   :  { %7920 = vmatprep.subr.mxu1 %v9257_v40 }
 0x613   :  { %v15669_v48 = vpop.f32.mrf.mxu0  ;;  %7921 = vmatpush1.msra.mxu1 %v7855_v49 }
 0x614   :  { %7952 = vmatprep.subr.mxu1 %v9257_v40 }
 0x615   :  { %v15671_v7 = vpop.f32.mrf.mxu0 }
 0x617   :  { %v15673_v51 = vpop.f32.mrf.mxu0 }
 0x619   :  { %v15675_v41 = vpop.f32.mrf.mxu0 }
 0x61b   :  { %v15677_v52 = vpop.f32.mrf.mxu0 }
 0x61d   :  { %v15679_v56 = vpop.f32.mrf.mxu0 }
 0x61f   :  { %v15681_v8 = vpop.f32.mrf.mxu0 }
 0x621   :  { %v15686_v11 = vpop.f32.mrf.mxu0 }
 0x623   :  { %v15691_v18 = vpop.f32.mrf.mxu0 }
 0x625   :  { %v15704_v45 = vpop.f32.mrf.mxu0 }
 0x627   :  { %v15718_v9 = vpop.f32.mrf.mxu0 }
 0x629   :  { %v15732_v33 = vpop.f32.mrf.mxu0 }
 0x62b   :  { %v7377_v21 = vpop.f32.mrf.mxu0 }
 0x62d   :  { %v7379_v38 = vpop.f32.mrf.mxu0 }
 0x62f   :  { %v15770_v36 = vpop.f32.mrf.mxu0 }
 0x630   :  { %17605 = vst [vmem:[#allocation128_spill] sm:$0xff] %v15770_v36 }
 0x631   :  { %v15784_v39 = vpop.f32.mrf.mxu0 }
 0x632   :  { %17606 = vst [vmem:[#allocation43_spill] sm:$0xff] %v15784_v39 }
 0x633   :  { %v15798_v43 = vpop.f32.mrf.mxu0 }
 0x634   :  { %17607 = vst [vmem:[#allocation250_spill] sm:$0xff] %v15798_v43 }
 0x635   :  { %v15806_v54 = vpop.f32.mrf.mxu0 }
 0x636   :  { %17608 = vst [vmem:[#allocation130_spill] sm:$0xff] %v15806_v54 }
 0x637   :  { %v15810_v16 = vpop.f32.mrf.mxu0 }
 0x638   :  { %17609 = vst [vmem:[#allocation44_spill] sm:$0xff] %v15810_v16 }
 0x639   :  { %v15812_v57 = vpop.f32.mrf.mxu0 }
 0x63a   :  { %17610 = vst [vmem:[#allocation251_spill] sm:$0xff] %v15812_v57  ;;  %v7698_v57 = vld [vmem:[%s16117_s4 + $0xf8] sm:$0xff] }
 0x63b   :  { %v15814_v39 = vpop.f32.mrf.mxu0 }
 0x63c   :  { %17611 = vst [vmem:[#allocation132_spill] sm:$0xff] %v15814_v39 }
 0x657   :  { %v15689_v50 = vpop.f32.mrf.mxu1 }
 0x658   :  { %17600 = vst [vmem:[#allocation41_spill] sm:$0xff] %v15689_v50  ;;  %v15816_v50 = vpop.f32.mrf.mxu0 }
 0x659   :  { %v15693_v60 = vpop.f32.mrf.mxu1  ;;  %17612 = vst [vmem:[#allocation45_spill] sm:$0xff] %v15816_v50  ;;  %v7697_v50 = vld [vmem:[%s16117_s4 + $0xf0] sm:$0xff] }
 0x65a   :  { %17601 = vst [vmem:[#allocation248_spill] sm:$0xff] %v15693_v60  ;;  %v15818_v54 = vpop.f32.mrf.mxu0 }
 0x65b   :  { %v15695_v2 = vpop.f32.mrf.mxu1  ;;  %17613 = vst [vmem:[#allocation252_spill] sm:$0xff] %v15818_v54  ;;  %v7696_v54 = vld [vmem:[%s16117_s4 + $0xe8] sm:$0xff] }
 0x65c   :  { %17602 = vst [vmem:[#allocation126_spill] sm:$0xff] %v15695_v2  ;;  %v15820_v2 = vpop.f32.mrf.mxu0 }
 0x65d   :  { %v15706_v13 = vpop.f32.mrf.mxu1  ;;  %17614 = vst [vmem:[#allocation134_spill] sm:$0xff] %v15820_v2 }
 0x65e   :  { %17603 = vst [vmem:[#allocation42_spill] sm:$0xff] %v15706_v13 }
 0x65f   :  { %v15712_v35 = vpop.f32.mrf.mxu1 }
 0x660   :  { %17604 = vst [vmem:[#allocation249_spill] sm:$0xff] %v15712_v35 }
 0x661   :  { %v15720_v23 = vpop.f32.mrf.mxu1 }
 0x663   :  { %v15726_v42 = vpop.f32.mrf.mxu1 }
 0x665   :  { %v15734_v61 = vpop.f32.mrf.mxu1 }
 0x667   :  { %v15740_v55 = vpop.f32.mrf.mxu1 }
 0x669   :  { %v15746_v10 = vpop.f32.mrf.mxu1 }
 0x66b   :  { %v15752_v44 = vpop.f32.mrf.mxu1 }
 0x66d   :  { %v15758_v46 = vpop.f32.mrf.mxu1 }
 0x66f   :  { %v15764_v34 = vpop.f32.mrf.mxu1 }
 0x671   :  { %v15772_v4 = vpop.f32.mrf.mxu1 }
 0x673   :  { %v15778_v25 = vpop.f32.mrf.mxu1 }
 0x675   :  { %v15786_v15 = vpop.f32.mrf.mxu1 }
 0x677   :  { %v15792_v17 = vpop.f32.mrf.mxu1 }
 0x679   :  { %v15800_v62 = vpop.f32.mrf.mxu1 }
 0x67b   :  { %v15803_v22 = vpop.f32.mrf.mxu1 }
 0x67d   :  { %v15808_v14 = vpop.f32.mrf.mxu1 }
 0x67f   :  { %v7568_v47 = vpop.f32.mrf.mxu1 }
 0x681   :  { %v7570_v26 = vpop.f32.mrf.mxu1 }
 0x683   :  { %v7574_v58 = vpop.f32.mrf.mxu1 }
 0x685   :  { %v7576_v6 = vpop.f32.mrf.mxu1 }
 0x687   :  { %v7580_v36 = vpop.f32.mrf.mxu1 }
 0x689   :  { %v7582_v49 = vpop.f32.mrf.mxu1 }
 0x68b   :  { %v7586_v43 = vpop.f32.mrf.mxu1 }
 0x68c   :  { %v7587_v35 = vadd.f32 %v7586_v43, %v15691_v18  ;;  %v7692_v18 = vld [vmem:[%s16117_s4 + $0xc8] sm:$0xff] }
 0x68d   :  { %v7588_v40 = vpop.f32.mrf.mxu1 }
 0x68f   :  { %v7592_v0 = vpop.f32.mrf.mxu1 }
 0x690   :  { %v7593_v28 = vadd.f32 %v7592_v0, %v15718_v9  ;;  %v7694_v0 = vld [vmem:[%s16117_s4 + $0xd8] sm:$0xff] }
 0x691   :  { %v7594_v60 = vpop.f32.mrf.mxu1 }
 0x692   :  { %v7595_v39 = vadd.f32 %v7594_v60, %v15732_v33  ;;  %v15839_v33 = vpop.f32.mrf.mxu0 }
 0x693   :  { %v7598_v31 = vpop.f32.mrf.mxu1 }
 0x694   :  { %v7599_v16 = vadd.f32 %v7598_v31, %v7377_v21  ;;  %v7589_v31 = vadd.f32 %v7588_v40, %v15704_v45  ;;  %v7695_v21 = vld [vmem:[%s16117_s4 + $0xe0] sm:$0xff]  ;;  %v7693_v45 = vld [vmem:[%s16117_s4 + $0xd0] sm:$0xff]  ;;  %v7748_v40 = vmul.f32 %v7696_v54, %v7595_v39  ;;  %v15861_v39 = vpop.f32.mrf.mxu0 }
 0x695   :  { %v7600_v59 = vpop.f32.mrf.mxu1  ;;  %v7747_v43 = vmul.f32 %v7695_v21, %v7593_v28  ;;  %v7745_v28 = vmul.f32 %v7693_v45, %v7587_v35  ;;  %v7565_v35 = vadd.f32 %v15808_v14, %v15671_v7  ;;  %v7559_v7 = vadd.f32 %v15800_v62, %v15667_v32  ;;  %v7685_v14 = vld [vmem:[%s16117_s4 + $0x90] sm:$0xff]  ;;  %v7683_v62 = vld [vmem:[%s16117_s4 + $0x80] sm:$0xff] }
 0x696   :  { %v7601_v13 = vadd.f32 %v7600_v59, %v7379_v38  ;;  %v7749_v59 = vmul.f32 %v7697_v50, %v7599_v16  ;;  %v7583_v38 = vadd.f32 %v7582_v49, %v15686_v11  ;;  %v7577_v50 = vadd.f32 %v7576_v6, %v15679_v56  ;;  %v7691_v11 = vld [vmem:[%s16117_s4 + $0xc0] sm:$0xff]  ;;  %v7689_v6 = vld [vmem:[%s16117_s4 + $0xb0] sm:$0xff] }
 0x697   :  { %v7746_v16 = vmul.f32 %v7694_v0, %v7589_v31  ;;  %v7571_v56 = vadd.f32 %v7570_v26, %v15675_v41  ;;  %v7569_v31 = vadd.f32 %v7568_v47, %v15673_v51  ;;  %v7687_v41 = vld [vmem:[%s16117_s4 + $0xa0] sm:$0xff]  ;;  %v7563_v51 = vadd.f32 %v15803_v22, %v15669_v48  ;;  %v7686_v47 = vld [vmem:[%s16117_s4 + $0x98] sm:$0xff]  ;;  %v7684_v22 = vld [vmem:[%s16117_s4 + $0x88] sm:$0xff] }
 0x698   :  { %v15833_v2 = vpop.f32.mrf.mxu1  ;;  %v7750_v60 = vmul.f32 %v7698_v57, %v7601_v13  ;;  %v7581_v13 = vadd.f32 %v7580_v36, %v15681_v8  ;;  %v7575_v8 = vadd.f32 %v7574_v58, %v15677_v52  ;;  %v7690_v36 = vld [vmem:[%s16117_s4 + $0xb8] sm:$0xff]  ;;  %v7744_v49 = vmul.f32 %v7692_v18, %v7583_v38  ;;  %v7688_v52 = vld [vmem:[%s16117_s4 + $0xa8] sm:$0xff] }
 0x699   :  { %v7742_v26 = vmul.f32 %v7690_v36, %v7577_v50  ;;  %v7740_v38 = vmul.f32 %v7688_v52, %v7571_v56  ;;  %v7557_v48 = vadd.f32 %v15792_v17, %v15665_v19  ;;  %v7739_v45 = vmul.f32 %v7687_v41, %v7569_v31  ;;  %v7682_v17 = vld [vmem:[%s16117_s4 + $0x78] sm:$0xff] }
 0x69a   :  { %v15845_v9 = vpop.f32.mrf.mxu1  ;;  %7778 = vmatprep.subr.mxu0 %v7750_v60  ;;  %v7743_v58 = vmul.f32 %v7691_v11, %v7581_v13  ;;  %v15884_v60 = vpop.f32.mrf.mxu0  ;;  %v7741_v0 = vmul.f32 %v7689_v6, %v7575_v8  ;;  %v7553_v32 = vadd.f32 %v15786_v15, %v15663_v20  ;;  %v7738_v13 = vmul.f32 %v7686_v47, %v7565_v35  ;;  %v7681_v15 = vld [vmem:[%s16117_s4 + $0x70] sm:$0xff]  ;;  %v17615_v47 = vld [vmem:[#allocation249_spill] sm:$0xff] }
 0x69b   :  { %7779 = vmatpush1.msra.mxu0 %v7749_v59  ;;  %v7551_v19 = vadd.f32 %v15778_v25, %v15661_v29  ;;  %v7547_v20 = vadd.f32 %v15772_v4, %v15659_v27  ;;  %v7736_v11 = vmul.f32 %v7684_v22, %v7559_v7  ;;  %v7545_v29 = vadd.f32 %v15764_v34, %v15657_v63  ;;  %v7680_v25 = vld [vmem:[%s16117_s4 + $0x68] sm:$0xff]  ;;  %v7679_v4 = vld [vmem:[%s16117_s4 + $0x60] sm:$0xff]  ;;  %v7678_v34 = vld [vmem:[%s16117_s4 + $0x58] sm:$0xff] }
 0x69c   :  { %v15855_v57 = vpop.f32.mrf.mxu1  ;;  %7780 = vmatprep.subr.mxu0 %v7748_v40  ;;  %v15910_v18 = vpop.f32.mrf.mxu0  ;;  %v7541_v27 = vadd.f32 %v15758_v46, %v15655_v12  ;;  %v7734_v36 = vmul.f32 %v7682_v17, %v7553_v32  ;;  %v7539_v63 = vadd.f32 %v15752_v44, %v15653_v30  ;;  %v7535_v12 = vadd.f32 %v15746_v10, %v15651_v3  ;;  %v7677_v46 = vld [vmem:[%s16117_s4 + $0x50] sm:$0xff]  ;;  %v7676_v44 = vld [vmem:[%s16117_s4 + $0x48] sm:$0xff]  ;;  %v7675_v10 = vld [vmem:[%s16117_s4 + $0x40] sm:$0xff] }
 0x69d   :  { %7781 = vmatpush1.msra.mxu0 %v7747_v43  ;;  %v7737_v43 = vmul.f32 %v7685_v14, %v7563_v51  ;;  %v7733_v56 = vmul.f32 %v7681_v15, %v7551_v19  ;;  %v7533_v30 = vadd.f32 %v15740_v55, %v15649_v53  ;;  %v7731_v31 = vmul.f32 %v7679_v4, %v7545_v29  ;;  %v7674_v55 = vld [vmem:[%s16117_s4 + $0x38] sm:$0xff]  ;;  %v17616_v14 = vld [vmem:[#allocation124_spill] sm:$0xff]  ;;  %v17619_v32 = vld [vmem:[#allocation126_spill] sm:$0xff] }
 0x69e   :  { %v15867_v54 = vpop.f32.mrf.mxu1  ;;  %7782 = vmatprep.subr.mxu0 %v7746_v16  ;;  %v7735_v16 = vmul.f32 %v7683_v62, %v7557_v48  ;;  %v7529_v3 = vadd.f32 %v15734_v61, %v15647_v1  ;;  %v7527_v53 = vadd.f32 %v15726_v42, %v15645_v24  ;;  %v7729_v41 = vmul.f32 %v7677_v46, %v7539_v63  ;;  %v7673_v61 = vld [vmem:[%s16117_s4 + $0x30] sm:$0xff]  ;;  %v7672_v42 = vld [vmem:[%s16117_s4 + $0x28] sm:$0xff]  ;;  %v7670_v62 = vld [vmem:[%s16117_s4 + $0x18] sm:$0xff] }
 0x69f   :  { %7783 = vmatpush1.msra.mxu0 %v7745_v28  ;;  %v15936_v28 = vpop.f32.mrf.mxu0  ;;  %v7523_v1 = vadd.f32 %v15720_v23, %v15643_v5  ;;  %v7728_v51 = vmul.f32 %v7676_v44, %v7535_v12  ;;  %v7521_v24 = vadd.f32 %v17615_v47, %v15641_v37  ;;  %v7671_v5 = vld [vmem:[%s16117_s4 + $0x20] sm:$0xff]  ;;  %v17620_v17 = vld [vmem:[#allocation40_spill] sm:$0xff] }
 0x6a0   :  { %v15877_v21 = vpop.f32.mrf.mxu1  ;;  %7784 = vmatprep.subr.mxu0 %v7744_v49  ;;  %v7732_v49 = vmul.f32 %v7680_v25, %v7547_v20  ;;  %v7726_v23 = vmul.f32 %v7674_v55, %v7529_v3  ;;  %v7669_v15 = vld [vmem:[%s16117_s4 + $0x10] sm:$0xff]  ;;  %v17622_v29 = vld [vmem:[#allocation122_spill] sm:$0xff]  ;;  %v17623_v25 = vld [vmem:[#allocation41_spill] sm:$0xff] }
 0x6a1   :  { %7785 = vmatpush1.msra.mxu0 %v7743_v58  ;;  %v7730_v58 = vmul.f32 %v7678_v34, %v7541_v27  ;;  %v7427_v35 = vpop.f32.mrf.mxu0  ;;  %v7668_v27 = vld [vmem:[%s16117_s4 + $0x8] sm:$0xff]  ;;  %v7723_v4 = vmul.f32 %v7671_v5, %v7521_v24  ;;  %v7667_v63 = vld [vmem:[%s16117_s4] sm:$0xff] }
 0x6a2   :  { %v15891_v59 = vpop.f32.mrf.mxu1  ;;  %7786 = vmatprep.subr.mxu0 %v7742_v26  ;;  %v7716_v24 = vld [vmem:[%s16117_s4 + $0x188] sm:$0xff] }
 0x6a3   :  { %7787 = vmatpush1.msra.mxu0 %v7741_v0  ;;  %v7727_v0 = vmul.f32 %v7675_v10, %v7533_v30  ;;  %v7431_v22 = vpop.f32.mrf.mxu0 }
 0x6a4   :  { %v15903_v40 = vpop.f32.mrf.mxu1  ;;  %7788 = vmatprep.subr.mxu0 %v7740_v38  ;;  %v17617_v38 = vld [vmem:[#allocation42_spill] sm:$0xff] }
 0x6a5   :  { %7789 = vmatpush1.msra.mxu0 %v7739_v45  ;;  %v7517_v48 = vadd.f32 %v17617_v38, %v17616_v14  ;;  %v17618_v45 = vld [vmem:[#allocation247_spill] sm:$0xff] }
 0x6a6   :  { %v15917_v50 = vpop.f32.mrf.mxu1  ;;  %7790 = vmatprep.subr.mxu0 %v7738_v13  ;;  %v7515_v37 = vadd.f32 %v17619_v32, %v17618_v45  ;;  %v7725_v13 = vmul.f32 %v7673_v61, %v7527_v53  ;;  %v7717_v61 = vld [vmem:[%s16117_s4 + $0x190] sm:$0xff]  ;;  %v7712_v32 = vld [vmem:[%s16117_s4 + $0x168] sm:$0xff] }
 0x6a7   :  { %7791 = vmatpush1.msra.mxu0 %v7737_v43  ;;  %v17621_v43 = vld [vmem:[#allocation248_spill] sm:$0xff]  ;;  %v7722_v34 = vmul.f32 %v7670_v62, %v7517_v48  ;;  %v7714_v48 = vld [vmem:[%s16117_s4 + $0x178] sm:$0xff] }
 0x6a8   :  { %v15929_v8 = vpop.f32.mrf.mxu1  ;;  %7792 = vmatprep.subr.mxu0 %v7736_v11  ;;  %v7511_v20 = vadd.f32 %v17621_v43, %v17620_v17  ;;  %v7724_v11 = vmul.f32 %v7672_v42, %v7523_v1  ;;  %v7721_v12 = vmul.f32 %v7669_v15, %v7515_v37  ;;  %v17625_v43 = vld [vmem:[#allocation252_spill] sm:$0xff]  ;;  %v17626_v15 = vld [vmem:[#allocation45_spill] sm:$0xff] }
 0x6a9   :  { %7793 = vmatpush1.msra.mxu0 %v7735_v16  ;;  %v7509_v16 = vadd.f32 %v17623_v25, %v17622_v29  ;;  %v17627_v25 = vld [vmem:[#allocation132_spill] sm:$0xff] }
 0x6aa   :  { %v15943_v6 = vpop.f32.mrf.mxu1  ;;  %7794 = vmatprep.subr.mxu0 %v7734_v36 }
 0x6ab   :  { %7795 = vmatpush1.msra.mxu0 %v7733_v56  ;;  %v7433_v56 = vpop.f32.mrf.mxu0  ;;  %v7719_v30 = vmul.f32 %v7667_v63, %v7509_v16  ;;  %v7623_v16 = vadd.f32 %v15903_v40, %v17627_v25  ;;  %v7704_v40 = vld [vmem:[%s16117_s4 + $0x128] sm:$0xff] }
 0x6ac   :  { %v15955_v52 = vpop.f32.mrf.mxu1  ;;  %7796 = vmatprep.subr.mxu0 %v7732_v49  ;;  %v7720_v49 = vmul.f32 %v7668_v27, %v7511_v20  ;;  %v7629_v20 = vadd.f32 %v15929_v8, %v17625_v43  ;;  %v7706_v8 = vld [vmem:[%s16117_s4 + $0x138] sm:$0xff] }
 0x6ad   :  { %7797 = vmatpush1.msra.mxu0 %v7731_v31  ;;  %v7437_v31 = vpop.f32.mrf.mxu0 }
 0x6ae   :  { %v15967_v26 = vpop.f32.mrf.mxu1  ;;  %7798 = vmatprep.subr.mxu0 %v7730_v58 }
 0x6af   :  { %7799 = vmatpush1.msra.mxu0 %v7729_v41  ;;  %v7439_v58 = vpop.f32.mrf.mxu0  ;;  %v7718_v41 = vld [vmem:[%s16117_s4 + $0x198] sm:$0xff]  ;;  %v7637_v37 = vadd.f32 %v15967_v26, %v15861_v39  ;;  %v7709_v39 = vld [vmem:[%s16117_s4 + $0x150] sm:$0xff] }
 0x6b0   :  { %v7640_v7 = vpop.f32.mrf.mxu1  ;;  %7800 = vmatprep.subr.mxu0 %v7728_v51 }
 0x6b1   :  { %7801 = vmatpush1.msra.mxu0 %v7727_v0  ;;  %v7715_v0 = vld [vmem:[%s16117_s4 + $0x180] sm:$0xff] }
 0x6b2   :  { %v7642_v19 = vpop.f32.mrf.mxu1  ;;  %7802 = vmatprep.subr.mxu0 %v7726_v23 }
 0x6b3   :  { %7803 = vmatpush1.msra.mxu0 %v7725_v13  ;;  %v7643_v23 = vadd.f32 %v7642_v19, %v15910_v18  ;;  %v7711_v18 = vld [vmem:[%s16117_s4 + $0x160] sm:$0xff]  ;;  %v7635_v13 = vadd.f32 %v15955_v52, %v15839_v33  ;;  %v7708_v33 = vld [vmem:[%s16117_s4 + $0x148] sm:$0xff] }
 0x6b4   :  { %v7646_v36 = vpop.f32.mrf.mxu1  ;;  %7804 = vmatprep.subr.mxu0 %v7724_v11  ;;  %v17624_v19 = vld [vmem:[#allocation134_spill] sm:$0xff]  ;;  %v7625_v11 = vadd.f32 %v15917_v50, %v17626_v15  ;;  %v7705_v50 = vld [vmem:[%s16117_s4 + $0x130] sm:$0xff] }
 0x6b5   :  { %7805 = vmatpush1.msra.mxu0 %v7723_v4  ;;  %v7647_v38 = vadd.f32 %v7646_v36, %v15936_v28  ;;  %v7631_v17 = vadd.f32 %v15943_v6, %v17624_v19  ;;  %v7764_v26 = vmul.f32 %v7712_v32, %v7643_v23  ;;  %v7707_v6 = vld [vmem:[%s16117_s4 + $0x140] sm:$0xff]  ;;  %v7761_v27 = vmul.f32 %v7709_v39, %v7635_v13  ;;  %v17628_v4 = vld [vmem:[#allocation251_spill] sm:$0xff] }
 0x6b6   :  { %v7648_v46 = vpop.f32.mrf.mxu1  ;;  %7806 = vmatprep.subr.mxu0 %v7722_v34  ;;  %v7619_v36 = vadd.f32 %v15891_v59, %v17628_v4  ;;  %v17629_v34 = vld [vmem:[#allocation44_spill] sm:$0xff]  ;;  %v7703_v59 = vld [vmem:[%s16117_s4 + $0x120] sm:$0xff] }
 0x6b7   :  { %7807 = vmatpush1.msra.mxu0 %v7721_v12  ;;  %v7649_v42 = vadd.f32 %v7648_v46, %v7427_v35  ;;  %v7641_v35 = vadd.f32 %v7640_v7, %v15884_v60  ;;  %v7710_v60 = vld [vmem:[%s16117_s4 + $0x158] sm:$0xff]  ;;  %v7760_v63 = vmul.f32 %v7708_v33, %v7631_v17  ;;  %v7759_v12 = vmul.f32 %v7707_v6, %v7629_v20  ;;  %v17630_v46 = vld [vmem:[#allocation130_spill] sm:$0xff] }
 0x6b8   :  { %v7652_v44 = vpop.f32.mrf.mxu1  ;;  %7808 = vmatprep.subr.mxu0 %v7720_v49  ;;  %v7762_v29 = vmul.f32 %v7710_v60, %v7637_v37  ;;  %v7613_v49 = vadd.f32 %v15867_v54, %v17630_v46  ;;  %v7701_v54 = vld [vmem:[%s16117_s4 + $0x110] sm:$0xff] }
 0x6b9   :  { %7809 = vmatpush1.msra.mxu0 %v7719_v30  ;;  %v7653_v47 = vadd.f32 %v7652_v44, %v7431_v22  ;;  %v7713_v22 = vld [vmem:[%s16117_s4 + $0x170] sm:$0xff]  ;;  %v7766_v62 = vmul.f32 %v7714_v48, %v7649_v42  ;;  %v7763_v52 = vmul.f32 %v7711_v18, %v7641_v35  ;;  %v7758_v30 = vmul.f32 %v7706_v8, %v7625_v11  ;;  %v17631_v44 = vld [vmem:[#allocation250_spill] sm:$0xff]  ;;  %v7666_v42 = vld [vmem:[%s16115_s5 + $0x18] sm:$0xff] }
 0x6ba   :  { %v7654_v3 = vpop.f32.mrf.mxu1  ;;  %v7765_v7 = vmul.f32 %v7713_v22, %v7647_v38  ;;  %v8569_v22 = vld [vmem:[%s16118_s7] ss:$0 sm:$0xff] }
 0x6bb   :  { %v7655_v1 = vadd.f32 %v7654_v3, %v7433_v56  ;;  %v7767_v28 = vmul.f32 %v7715_v0, %v7653_v47  ;;  %v7617_v56 = vadd.f32 %v15877_v21, %v17629_v34  ;;  %v7702_v21 = vld [vmem:[%s16117_s4 + $0x118] sm:$0xff]  ;;  %v7757_v3 = vmul.f32 %v7705_v50, %v7623_v16  ;;  %v7665_v0 = vld [vmem:[%s16115_s5 + $0x10] sm:$0xff] }
 0x6bc   :  { %v7658_v10 = vpop.f32.mrf.mxu1 }
 0x6bd   :  { %v7659_v53 = vadd.f32 %v7658_v10, %v7437_v31  ;;  %v7768_v45 = vmul.f32 %v7716_v24, %v7655_v1  ;;  %v7611_v31 = vadd.f32 %v15855_v57, %v17631_v44  ;;  %v17632_v10 = vld [vmem:[#allocation43_spill] sm:$0xff]  ;;  %v7755_v1 = vmul.f32 %v7703_v59, %v7617_v56 }
 0x6be   :  { %v7660_v55 = vpop.f32.mrf.mxu1  ;;  %v7700_v57 = vld [vmem:[%s16117_s4 + $0x108] sm:$0xff] }
 0x6bf   :  { %v7661_v51 = vadd.f32 %v7660_v55, %v7439_v58  ;;  %v7769_v5 = vmul.f32 %v7717_v61, %v7659_v53  ;;  %v7607_v58 = vadd.f32 %v15845_v9, %v17632_v10  ;;  %v7756_v53 = vmul.f32 %v7704_v40, %v7619_v36  ;;  %v17633_v55 = vld [vmem:[#allocation128_spill] sm:$0xff]  ;;  %v7699_v61 = vld [vmem:[%s16117_s4 + $0x100] sm:$0xff] }
 0x6c0   :  { %v7754_v9 = vmul.f32 %v7702_v21, %v7613_v49 }
 0x6c1   :  { %v7770_v14 = vmul.f32 %v7718_v41, %v7661_v51  ;;  %v7605_v41 = vadd.f32 %v15833_v2, %v17633_v55  ;;  %v7753_v51 = vmul.f32 %v7701_v54, %v7611_v31  ;;  %v7752_v47 = vmul.f32 %v7700_v57, %v7607_v58  ;;  %v7663_v2 = vld [vmem:[%s16115_s5] sm:$0xff] }
 0x6c3   :  { %7822 = vmatprep.subr.mxu0 %v7770_v14  ;;  %v7751_v24 = vmul.f32 %v7699_v61, %v7605_v41  ;;  %v7871_v14 = vld [vmem:[%s16116_s6 + $0x80] sm:$0x3] }
 0x6c4   :  { %7823 = vmatpush2.msra.mxu0 %v7769_v5  ;;  %8570 = vmatpush2.msk.msra.mxu1 %vm7886_vm2, %v7871_v14 }
 0x6c5   :  { %7824 = vmatprep.subr.mxu0 %v7768_v45 }
 0x6c6   :  { %7825 = vmatpush2.msra.mxu0 %v7767_v28 }
 0x6c7   :  { %7826 = vmatprep.subr.mxu0 %v7766_v62 }
 0x6c8   :  { %7827 = vmatpush2.msra.mxu0 %v7765_v7 }
 0x6c9   :  { %7828 = vmatprep.subr.mxu0 %v7764_v26 }
 0x6ca   :  { %7829 = vmatpush2.msra.mxu0 %v7763_v52 }
 0x6cb   :  { %7830 = vmatprep.subr.mxu0 %v7762_v29 }
 0x6cc   :  { %7831 = vmatpush2.msra.mxu0 %v7761_v27 }
 0x6cd   :  { %7832 = vmatprep.subr.mxu0 %v7760_v63 }
 0x6ce   :  { %7833 = vmatpush2.msra.mxu0 %v7759_v12 }
 0x6cf   :  { %7834 = vmatprep.subr.mxu0 %v7758_v30 }
 0x6d0   :  { %7835 = vmatpush2.msra.mxu0 %v7757_v3 }
 0x6d1   :  { %7836 = vmatprep.subr.mxu0 %v7756_v53 }
 0x6d2   :  { %7837 = vmatpush2.msra.mxu0 %v7755_v1 }
 0x6d3   :  { %7838 = vmatprep.subr.mxu0 %v7754_v9 }
 0x6d4   :  { %7839 = vmatpush2.msra.mxu0 %v7753_v51 }
 0x6d5   :  { %7840 = vmatprep.subr.mxu0 %v7752_v47 }
 0x6d6   :  { %7841 = vmatpush2.msra.mxu0 %v7751_v24 }
 0x6d7   :  { %7843 = vmatmul.mubr.f32.vlgmr.msra.gmra.mxu0 %v7663_v2 }
 0x6d8   :  { %8568 = vmatprep.mubr.msk.f32.mxu0 %vm7771_vm1, %v7666_v42 }
 0x6db   :  { %7849 = vmatmul.mubr.f32.gmra.mxu0 %v7665_v0 }
 0x797   :  { %v7844_v38 = vpop.f32.mrf.mxu0 }
 0x799   :  { %v7846_v48 = vpop.f32.mrf.mxu0 }
 0x79a   :  { %8571 = vmatprep.mubr.msk.f32.mxu1 %vm7879_vm3, %v7846_v48 }
 0x79b   :  { %v7850_v5 = vpop.f32.mrf.mxu0  ;;  %7955 = vmatmul.mubr.f32.vlgmr.msra.gmra.mxu1 %v7844_v38 }
 0x79d   :  { %v7852_v23 = vpop.f32.mrf.mxu0 }
 0x79e   :  { %8572 = vmatprep.mubr.msk.f32.mxu1 %vm7879_vm3, %v7852_v23 }
 0x79f   :  { %7960 = vmatmul.mubr.f32.gmra.mxu1 %v7850_v5 }
 0x85b   :  { %v7956_v45 = vpop.f32.mrf.mxu1 }
 0x85c   :  { %v7957_v35 = vadd.f32 %v8569_v22, %v7956_v45 }
 0x85d   :  { %v7958_v32 = vpop.f32.mrf.mxu1 }
 0x85e   :  { %7965 = vst [vmem:[%s16119_s8] sm:$0xff] %v7957_v35 }
 0x85f   :  { %v7961_v28 = vpop.f32.mrf.mxu1 }
 0x860   :  { %v7962_v37 = vadd.f32 %v8569_v22, %v7961_v28 }
 0x861   :  { %v7963_v18 = vpop.f32.mrf.mxu1 }
 0x862   :  { %7966 = vst [vmem:[%s16119_s8 + $0x8] sm:$0xff] %v7962_v37 }

</bundles_post_ra>
